<compile_context>
chip_gen: v7x
topology: tpu7x:2x2x1
jax: 0.10.0
libtpu: 0.0.40
codegen_flags: <defaults>
</compile_context>

<pallas_src>
import functools

import jax
import jax.numpy as jnp
from jax.experimental import pallas as pl
from jax.experimental.pallas import tpu as pltpu

# ---- model hyper-parameters (mirroring train.py globals) ----
N_EMBED = 384
NUM_HEADS = 4
HEAD_SIZE = N_EMBED // NUM_HEADS          # 96
HEAD_PAD = 128                            # lane-aligned head dim (zero-padded)
HIDDEN = 4 * N_EMBED                      # 1536
LN_EPS = 1e-5
ATTN_SCALE = float(N_EMBED) ** (-0.5)     # reference scales by C**-0.5, C = n_embed
MAX_TOKENS_PER_STEP = 1024                # per-grid-step token slab cap


def _layernorm(x, gamma, beta):
    mu = jnp.mean(x, axis=-1, keepdims=True)
    var = jnp.mean((x - mu) ** 2, axis=-1, keepdims=True)
    return (x - mu) * jax.lax.rsqrt(var + LN_EPS) * gamma + beta


def block_kernel(x_ref,
                 ln1g_ref, ln1b_ref,
                 wqkv_ref, wp_ref, bp_ref,
                 ln2g_ref, ln2b_ref,
                 w1_ref, b1_ref,
                 w2_ref, b2_ref,
                 o_ref, *, bb, seq):
    H, DP = NUM_HEADS, HEAD_PAD
    m = bb * seq
    x = x_ref[...].reshape(m, N_EMBED)                 # (M, C) f32 token slab

    # ---------------- self-attention branch ----------------
    h = _layernorm(x, ln1g_ref[0], ln1b_ref[0])        # ln1, f32
    h_b = h.astype(jnp.bfloat16)

    # One fused, lane-dense QKV matmul (attention scale folded into the Q block).
    qkv = jnp.dot(h_b, wqkv_ref[...], preferred_element_type=jnp.float32)
    qkv_b = qkv.astype(jnp.bfloat16)                   # (M, 3*H*128)

    row = jax.lax.broadcasted_iota(jnp.int32, (seq, seq), 0)
    col = jax.lax.broadcasted_iota(jnp.int32, (seq, seq), 1)
    causal = row >= col                                # tril mask (T, T)

    KO, VO = H * DP, 2 * H * DP
    heads = []
    # Only the small per-head attention math stays in this loop; all big
    # matmuls (QKV / out-proj / FF) are fused single MXU ops outside it.
    for hd in range(H):
        base = hd * DP                                 # static, 128-aligned slices
        q3 = qkv_b[:, base:base + DP].reshape(bb, seq, DP)
        k3 = qkv_b[:, KO + base:KO + base + DP].reshape(bb, seq, DP)
        v3 = qkv_b[:, VO + base:VO + base + DP].reshape(bb, seq, DP)

        # contract on the last dim of both -> no explicit K transpose
        wei = jnp.einsum('btd,bsd->bts', q3, k3,
                         preferred_element_type=jnp.float32)     # (bb, T, T) f32
        wei = jnp.where(causal, wei, -jnp.inf)

        # stable softmax in f32; EUP approx reciprocal for the denominator
        m_ = jnp.max(wei, axis=-1, keepdims=True)
        e = jnp.exp(wei - m_)
        p = e * pl.reciprocal(jnp.sum(e, axis=-1, keepdims=True), approx=True)

        oh = jnp.einsum('bts,bsd->btd', p.astype(jnp.bfloat16), v3,
                        preferred_element_type=jnp.float32)      # (bb, T, 128)
        heads.append(oh.reshape(m, DP).astype(jnp.bfloat16))

    # lane-aligned concat (128-boundary placement) + ONE fused output projection
    att = jnp.concatenate(heads, axis=-1)              # (M, H*128) bf16
    x1 = x + bp_ref[0] + jnp.dot(att, wp_ref[...],
                                 preferred_element_type=jnp.float32)

    # ---------------- feed-forward branch ----------------
    h2 = _layernorm(x1, ln2g_ref[0], ln2b_ref[0])      # ln2, f32
    ff = jnp.dot(h2.astype(jnp.bfloat16), w1_ref[...],
                 preferred_element_type=jnp.float32) + b1_ref[0]
    ff = jnp.maximum(ff, 0.0)                          # ReLU (f32)
    ff = jnp.dot(ff.astype(jnp.bfloat16), w2_ref[...],
                 preferred_element_type=jnp.float32) + b2_ref[0]

    o_ref[...] = (x1 + ff).reshape(bb, seq, N_EMBED).astype(o_ref.dtype)


def prepare_block_params(params):
    """One-time weight relayout (hoisted out of the per-call path).

    Pads each 96-wide head to 128 lanes (zero columns / rows -> results
    unchanged), fuses Q/K/V into a single (C, 3*H*128) weight, lays the output
    projection out as (H*128, C), folds the attention scale into Wq, and casts
    all matmul weights to bf16.
    """
    (ln1g, ln1b, wq, wk, wv, wp, bp, ln2g, ln2b, w1, b1, w2, b2) = params
    C, H, D, DP = N_EMBED, NUM_HEADS, HEAD_SIZE, HEAD_PAD

    def pad_heads(w, scale=1.0):
        wh = (w * scale).reshape(C, H, D)
        wh = jnp.pad(wh, ((0, 0), (0, 0), (0, DP - D)))
        return wh.reshape(C, H * DP)

    w_qkv = jnp.concatenate(
        [pad_heads(wq, ATTN_SCALE), pad_heads(wk), pad_heads(wv)],
        axis=1).astype(jnp.bfloat16)                    # (C, 3*H*128)

    wp_h = jnp.pad(wp.reshape(H, D, C), ((0, 0), (0, DP - D), (0, 0)))
    wp_p = wp_h.reshape(H * DP, C).astype(jnp.bfloat16)  # (H*128, C)

    return (ln1g, ln1b, w_qkv, wp_p, bp, ln2g, ln2b,
            w1.astype(jnp.bfloat16), b1, w2.astype(jnp.bfloat16), b2)


def _choose_batch_block(batch, seq):
    """Largest batch block with <=MAX_TOKENS_PER_STEP tokens/step and grid>=2."""
    for bb in range(batch, 0, -1):
        if batch % bb:
            continue
        if bb * seq > MAX_TOKENS_PER_STEP:
            continue
        if batch >= 2 and batch // bb < 2:
            continue                                   # keep >=2 steps (megacore)
        return bb
    return 1


def _vmem_limit_bytes():
    # 32 MiB is always safe (v7x has 64 MiB physical per core); allow 64 MiB on
    # chips with 128 MiB VMEM (v5e / v6e).
    try:
        cap = pltpu.get_tpu_info().vmem_capacity_bytes
        return min(64 << 20, cap // 2)
    except Exception:
        return 32 << 20


def _cost_estimate(B, T):
    C, H, DP = N_EMBED, NUM_HEADS, HEAD_PAD
    M = B * T
    matmul_flops = 2 * M * (C * 3 * H * DP + H * DP * C + 2 * C * HIDDEN)
    attn_flops = 2 * 2 * B * H * T * T * DP
    transcendentals = B * H * T * T + 2 * M            # softmax exp + 2x LN rsqrt
    weight_bytes = 2 * (C * 3 * H * DP + H * DP * C + 2 * C * HIDDEN)
    bytes_accessed = 2 * M * C * 4 + weight_bytes + 4 * (4 * C + HIDDEN)
    return pl.CostEstimate(flops=int(matmul_flops + attn_flops),
                           transcendentals=int(transcendentals),
                           bytes_accessed=int(bytes_accessed))


def _build_call(B, T, bb, x_dtype, cost, use_buffered):
    C, H, DP = N_EMBED, NUM_HEADS, HEAD_PAD
    # Weights/biases have constant index maps: single-buffer them to save VMEM.
    kw = dict(pipeline_mode=pl.Buffered(1)) if use_buffered else {}
    const2d = lambda shape: pl.BlockSpec(shape, lambda i: (0, 0), **kw)

    in_specs = [
        pl.BlockSpec((bb, T, C), lambda i: (i, 0, 0)),   # x
        const2d((1, C)), const2d((1, C)),                # ln1 gamma/beta
        const2d((C, 3 * H * DP)),                        # fused W_qkv (padded, scaled Q)
        const2d((H * DP, C)),                            # W_proj (padded rows)
        const2d((1, C)),                                 # b_proj
        const2d((1, C)), const2d((1, C)),                # ln2 gamma/beta
        const2d((C, HIDDEN)), const2d((1, HIDDEN)),      # W1, b1
        const2d((HIDDEN, C)), const2d((1, C)),           # W2, b2
    ]

    kernel = functools.partial(block_kernel, bb=bb, seq=T)
    return pl.pallas_call(
        kernel,
        out_shape=jax.ShapeDtypeStruct((B, T, C), x_dtype),
        grid_spec=pltpu.PrefetchScalarGridSpec(
            num_scalar_prefetch=0,
            grid=(B // bb,),
            in_specs=in_specs,
            out_specs=pl.BlockSpec((bb, T, C), lambda i: (i, 0, 0)),
        ),
        compiler_params=pltpu.CompilerParams(
            dimension_semantics=("parallel",),
            vmem_limit_bytes=_vmem_limit_bytes(),
        ),
        cost_estimate=cost,
    )


def transformer_block(x, kparams):
    """x: (B, T, C) f32; kparams: output of prepare_block_params()."""
    B, T, C = x.shape
    assert C == N_EMBED

    # keep the in-kernel (bb,T,C)<->(M,C) reshapes sublane-aligned
    Tp = ((T + 7) // 8) * 8
    xp = x if Tp == T else jnp.pad(x, ((0, 0), (0, Tp - T), (0, 0)))

    bb = _choose_batch_block(B, Tp)
    cost = _cost_estimate(B, Tp)

    try:
        out = _build_call(B, Tp, bb, x.dtype, cost, use_buffered=True)(xp, *kparams)
    except Exception:
        # Graceful fallback if this JAX build rejects pipeline_mode on TPU.
        out = _build_call(B, Tp, bb, x.dtype, cost, use_buffered=False)(xp, *kparams)

    return out if Tp == T else out[:, :T, :]


def init_params(key):
    """Deterministic synthetic parameters, (in, out) layout for matmul weights."""
    ks = jax.random.split(key, 12)
    s = 0.02
    ln1g = jnp.ones((1, N_EMBED), jnp.float32)
    ln1b = jnp.zeros((1, N_EMBED), jnp.float32)
    wq = jax.random.normal(ks[0], (N_EMBED, N_EMBED), jnp.float32) * s
    wk = jax.random.normal(ks[1], (N_EMBED, N_EMBED), jnp.float32) * s
    wv = jax.random.normal(ks[2], (N_EMBED, N_EMBED), jnp.float32) * s
    wp = jax.random.normal(ks[3], (N_EMBED, N_EMBED), jnp.float32) * s
    bp = jax.random.normal(ks[4], (1, N_EMBED), jnp.float32) * s
    ln2g = jnp.ones((1, N_EMBED), jnp.float32)
    ln2b = jnp.zeros((1, N_EMBED), jnp.float32)
    w1 = jax.random.normal(ks[5], (N_EMBED, HIDDEN), jnp.float32) * s
    b1 = jax.random.normal(ks[6], (1, HIDDEN), jnp.float32) * s
    w2 = jax.random.normal(ks[7], (HIDDEN, N_EMBED), jnp.float32) * s
    b2 = jax.random.normal(ks[8], (1, N_EMBED), jnp.float32) * s
    return (ln1g, ln1b, wq, wk, wv, wp, bp, ln2g, ln2b, w1, b1, w2, b2)


def reference_block(x, params):
    """Pure-JAX f32 reference of Block.forward (eval mode) for verification."""
    (ln1g, ln1b, wq, wk, wv, wp, bp, ln2g, ln2b, w1, b1, w2, b2) = params
    B, T, C = x.shape
    h = _layernorm(x, ln1g[0], ln1b[0])
    q, k, v = h @ wq, h @ wk, h @ wv
    outs = []
    mask = jnp.tril(jnp.ones((T, T), bool))
    for hd in range(NUM_HEADS):
        sl = slice(hd * HEAD_SIZE, (hd + 1) * HEAD_SIZE)
        wei = jnp.einsum('btd,bsd->bts', q[:, :, sl], k[:, :, sl]) * ATTN_SCALE
        wei = jnp.where(mask, wei, -jnp.inf)
        wei = jax.nn.softmax(wei, axis=-1)
        outs.append(jnp.einsum('bts,bsd->btd', wei, v[:, :, sl]))
    sa = jnp.concatenate(outs, axis=-1) @ wp + bp[0]
    x1 = x + sa
    h2 = _layernorm(x1, ln2g[0], ln2b[0])
    ff = jnp.maximum(h2 @ w1 + b1[0], 0.0) @ w2 + b2[0]
    return x1 + ff


if __name__ == "__main__":
    key = jax.random.PRNGKey(0)
    kx, kp = jax.random.split(key)

    B, T = 2, 8                                   # small seq <= block_size (256)
    x = jax.random.normal(kx, (B, T, N_EMBED), jnp.float32)
    params = init_params(kp)

    # Weight relayout hoisted out of the per-call path (done once per layer).
    kparams = prepare_block_params(params)

    out = transformer_block(x, kparams)
    out = jax.block_until_ready(out)

    ref = reference_block(x, params)
    assert out.shape == (B, T, N_EMBED)
    # kernel runs MXU operands in bf16 (f32 accumulate); compare to f32 reference
    assert jnp.allclose(out, ref, atol=2e-2, rtol=2e-2), "mismatch vs JAX reference"

    print("KERNEL_OK")
</pallas_src>

<mosaic_0001>
module attributes {stable_mosaic.version = 11 : i64} {
  func.func @block_kernel(%arg0: i32, %arg1: memref<1x8x384xf32, #tpu.memory_space<vmem>>, %arg2: memref<1x384xf32, #tpu.memory_space<vmem>>, %arg3: memref<1x384xf32, #tpu.memory_space<vmem>>, %arg4: memref<384x1536xbf16, #tpu.memory_space<vmem>>, %arg5: memref<512x384xbf16, #tpu.memory_space<vmem>>, %arg6: memref<1x384xf32, #tpu.memory_space<vmem>>, %arg7: memref<1x384xf32, #tpu.memory_space<vmem>>, %arg8: memref<1x384xf32, #tpu.memory_space<vmem>>, %arg9: memref<384x1536xbf16, #tpu.memory_space<vmem>>, %arg10: memref<1x1536xf32, #tpu.memory_space<vmem>>, %arg11: memref<1536x384xbf16, #tpu.memory_space<vmem>>, %arg12: memref<1x384xf32, #tpu.memory_space<vmem>>, %arg13: memref<1x8x384xf32, #tpu.memory_space<vmem>>) attributes {dimension_semantics = [#tpu.dimension_semantics<parallel>], iteration_bounds = array<i64: 2>, scalar_prefetch = 0 : i64, scratch_operands = 0 : i64, tpu.core_type = #tpu.core_type<tc>, window_params = [{transform_indices = @transform_0, window_bounds = array<i64: 1, 8, 384>}, {pipeline_mode = #tpu.pipeline_mode<synchronous>, transform_indices = @transform_1, window_bounds = array<i64: 1, 384>}, {pipeline_mode = #tpu.pipeline_mode<synchronous>, transform_indices = @transform_2, window_bounds = array<i64: 1, 384>}, {pipeline_mode = #tpu.pipeline_mode<synchronous>, transform_indices = @transform_3, window_bounds = array<i64: 384, 1536>}, {pipeline_mode = #tpu.pipeline_mode<synchronous>, transform_indices = @transform_4, window_bounds = array<i64: 512, 384>}, {pipeline_mode = #tpu.pipeline_mode<synchronous>, transform_indices = @transform_5, window_bounds = array<i64: 1, 384>}, {pipeline_mode = #tpu.pipeline_mode<synchronous>, transform_indices = @transform_6, window_bounds = array<i64: 1, 384>}, {pipeline_mode = #tpu.pipeline_mode<synchronous>, transform_indices = @transform_7, window_bounds = array<i64: 1, 384>}, {pipeline_mode = #tpu.pipeline_mode<synchronous>, transform_indices = @transform_8, window_bounds = array<i64: 384, 1536>}, {pipeline_mode = #tpu.pipeline_mode<synchronous>, transform_indices = @transform_9, window_bounds = array<i64: 1, 1536>}, {pipeline_mode = #tpu.pipeline_mode<synchronous>, transform_indices = @transform_10, window_bounds = array<i64: 1536, 384>}, {pipeline_mode = #tpu.pipeline_mode<synchronous>, transform_indices = @transform_11, window_bounds = array<i64: 1, 384>}, {transform_indices = @transform_12, window_bounds = array<i64: 1, 8, 384>}]} {
    %c0 = arith.constant 0 : index
    %c0_0 = arith.constant 0 : index
    %c0_1 = arith.constant 0 : index
    %0 = vector.load %arg1[%c0, %c0_0, %c0_1] : memref<1x8x384xf32, #tpu.memory_space<vmem>>, vector<1x8x384xf32>
    %1 = vector.shape_cast %0 : vector<1x8x384xf32> to vector<8x384xf32>
    %c0_2 = arith.constant 0 : index
    %c0_3 = arith.constant 0 : index
    %2 = vector.load %arg2[%c0_2, %c0_3] : memref<1x384xf32, #tpu.memory_space<vmem>>, vector<1x384xf32>
    %3 = vector.shape_cast %2 : vector<1x384xf32> to vector<384xf32>
    %c0_4 = arith.constant 0 : index
    %c0_5 = arith.constant 0 : index
    %4 = vector.load %arg3[%c0_4, %c0_5] : memref<1x384xf32, #tpu.memory_space<vmem>>, vector<1x384xf32>
    %5 = vector.shape_cast %4 : vector<1x384xf32> to vector<384xf32>
    %cst = arith.constant dense<0.000000e+00> : vector<8xf32>
    %6 = vector.multi_reduction <add>, %1, %cst [1] : vector<8x384xf32> to vector<8xf32>
    %7 = vector.shape_cast %6 : vector<8xf32> to vector<8x1xf32>
    %cst_6 = arith.constant 3.840000e+02 : f32
    %8 = vector.broadcast %cst_6 : f32 to vector<8x1xf32>
    %9 = arith.divf %7, %8 : vector<8x1xf32>
    %10 = vector.broadcast %9 : vector<8x1xf32> to vector<8x384xf32>
    %11 = arith.subf %1, %10 : vector<8x384xf32>
    %12 = arith.mulf %11, %11 : vector<8x384xf32>
    %cst_7 = arith.constant dense<0.000000e+00> : vector<8xf32>
    %13 = vector.multi_reduction <add>, %12, %cst_7 [1] : vector<8x384xf32> to vector<8xf32>
    %14 = vector.shape_cast %13 : vector<8xf32> to vector<8x1xf32>
    %cst_8 = arith.constant 3.840000e+02 : f32
    %15 = vector.broadcast %cst_8 : f32 to vector<8x1xf32>
    %16 = arith.divf %14, %15 : vector<8x1xf32>
    %17 = vector.broadcast %9 : vector<8x1xf32> to vector<8x384xf32>
    %18 = arith.subf %1, %17 : vector<8x384xf32>
    %cst_9 = arith.constant 9.99999974E-6 : f32
    %19 = vector.broadcast %cst_9 : f32 to vector<8x1xf32>
    %20 = arith.addf %16, %19 : vector<8x1xf32>
    %21 = math.rsqrt %20 : vector<8x1xf32>
    %22 = vector.broadcast %21 : vector<8x1xf32> to vector<8x384xf32>
    %23 = arith.mulf %18, %22 : vector<8x384xf32>
    %24 = vector.shape_cast %3 : vector<384xf32> to vector<1x384xf32>
    %25 = vector.broadcast %24 : vector<1x384xf32> to vector<8x384xf32>
    %26 = arith.mulf %23, %25 : vector<8x384xf32>
    %27 = vector.shape_cast %5 : vector<384xf32> to vector<1x384xf32>
    %28 = vector.broadcast %27 : vector<1x384xf32> to vector<8x384xf32>
    %29 = arith.addf %26, %28 : vector<8x384xf32>
    %30 = arith.truncf %29 : vector<8x384xf32> to vector<8x384xbf16>
    %c0_10 = arith.constant 0 : index
    %c0_11 = arith.constant 0 : index
    %31 = vector.load %arg4[%c0_10, %c0_11] : memref<384x1536xbf16, #tpu.memory_space<vmem>>, vector<384x1536xbf16>
    %cst_12 = arith.constant dense<0.000000e+00> : vector<8x1536xf32>
    %32 = tpu.matmul %30, %31, %cst_12 {dimension_numbers = #tpu.dot_dimension_numbers<[1], [0], [0], [1], [0, 0, 1, 1], [], []>} : vector<8x384xbf16>, vector<384x1536xbf16>, vector<8x1536xf32> -> vector<8x1536xf32>
    %33 = arith.truncf %32 : vector<8x1536xf32> to vector<8x1536xbf16>
    %34 = tpu.iota {dimensions = array<i32: 0>} : vector<8x8xi32>
    %35 = tpu.iota {dimensions = array<i32: 1>} : vector<8x8xi32>
    %36 = arith.cmpi sge, %34, %35 : vector<8x8xi32>
    %37 = vector.extract_strided_slice %33 {offsets = [0, 0], sizes = [8, 128], strides = [1, 1]} : vector<8x1536xbf16> to vector<8x128xbf16>
    %38 = vector.shape_cast %37 : vector<8x128xbf16> to vector<1x8x128xbf16>
    %39 = vector.extract_strided_slice %33 {offsets = [0, 512], sizes = [8, 128], strides = [1, 1]} : vector<8x1536xbf16> to vector<8x128xbf16>
    %40 = vector.shape_cast %39 : vector<8x128xbf16> to vector<1x8x128xbf16>
    %41 = vector.extract_strided_slice %33 {offsets = [0, 1024], sizes = [8, 128], strides = [1, 1]} : vector<8x1536xbf16> to vector<8x128xbf16>
    %42 = vector.shape_cast %41 : vector<8x128xbf16> to vector<1x8x128xbf16>
    "tpu.trace_start"() <{level = 10 : i32, message = "btd,bsd->bts"}> : () -> ()
    %cst_13 = arith.constant dense<0.000000e+00> : vector<1x8x8xf32>
    %43 = tpu.matmul %38, %40, %cst_13 {dimension_numbers = #tpu.dot_dimension_numbers<[2], [2], [1], [1], [0, 0, 0, 1, 1, 1], [0], [0]>} : vector<1x8x128xbf16>, vector<1x8x128xbf16>, vector<1x8x8xf32> -> vector<1x8x8xf32>
    %cst_14 = arith.constant 0xFF800000 : f32
    "tpu.trace_stop"() : () -> ()
    %44 = vector.shape_cast %36 : vector<8x8xi1> to vector<1x8x8xi1>
    %45 = vector.broadcast %cst_14 : f32 to vector<1x8x8xf32>
    %46 = arith.select %44, %43, %45 : vector<1x8x8xi1>, vector<1x8x8xf32>
    %cst_15 = arith.constant dense<0xFF800000> : vector<1x8xf32>
    %47 = vector.multi_reduction <maximumf>, %46, %cst_15 [2] : vector<1x8x8xf32> to vector<1x8xf32>
    %48 = vector.shape_cast %47 : vector<1x8xf32> to vector<1x8x1xf32>
    %49 = vector.broadcast %48 : vector<1x8x1xf32> to vector<1x8x8xf32>
    %50 = arith.subf %46, %49 : vector<1x8x8xf32>
    %51 = math.exp %50 : vector<1x8x8xf32>
    %cst_16 = arith.constant dense<0.000000e+00> : vector<1x8xf32>
    %52 = vector.multi_reduction <add>, %51, %cst_16 [2] : vector<1x8x8xf32> to vector<1x8xf32>
    %53 = vector.shape_cast %52 : vector<1x8xf32> to vector<1x8x1xf32>
    %54 = tpu.reciprocal %53 {approx = true} : vector<1x8x1xf32> -> vector<1x8x1xf32>
    %55 = vector.broadcast %54 : vector<1x8x1xf32> to vector<1x8x8xf32>
    %56 = arith.mulf %51, %55 : vector<1x8x8xf32>
    %57 = arith.truncf %56 : vector<1x8x8xf32> to vector<1x8x8xbf16>
    "tpu.trace_start"() <{level = 10 : i32, message = "bts,bsd->btd"}> : () -> ()
    %cst_17 = arith.constant dense<0.000000e+00> : vector<1x8x128xf32>
    %58 = tpu.matmul %57, %42, %cst_17 {dimension_numbers = #tpu.dot_dimension_numbers<[2], [1], [1], [2], [0, 0, 0, 1, 1, 2], [0], [0]>} : vector<1x8x8xbf16>, vector<1x8x128xbf16>, vector<1x8x128xf32> -> vector<1x8x128xf32>
    "tpu.trace_stop"() : () -> ()
    %59 = vector.shape_cast %58 : vector<1x8x128xf32> to vector<8x128xf32>
    %60 = arith.truncf %59 : vector<8x128xf32> to vector<8x128xbf16>
    %61 = vector.extract_strided_slice %33 {offsets = [0, 128], sizes = [8, 128], strides = [1, 1]} : vector<8x1536xbf16> to vector<8x128xbf16>
    %62 = vector.shape_cast %61 : vector<8x128xbf16> to vector<1x8x128xbf16>
    %63 = vector.extract_strided_slice %33 {offsets = [0, 640], sizes = [8, 128], strides = [1, 1]} : vector<8x1536xbf16> to vector<8x128xbf16>
    %64 = vector.shape_cast %63 : vector<8x128xbf16> to vector<1x8x128xbf16>
    %65 = vector.extract_strided_slice %33 {offsets = [0, 1152], sizes = [8, 128], strides = [1, 1]} : vector<8x1536xbf16> to vector<8x128xbf16>
    %66 = vector.shape_cast %65 : vector<8x128xbf16> to vector<1x8x128xbf16>
    "tpu.trace_start"() <{level = 10 : i32, message = "btd,bsd->bts"}> : () -> ()
    %cst_18 = arith.constant dense<0.000000e+00> : vector<1x8x8xf32>
    %67 = tpu.matmul %62, %64, %cst_18 {dimension_numbers = #tpu.dot_dimension_numbers<[2], [2], [1], [1], [0, 0, 0, 1, 1, 1], [0], [0]>} : vector<1x8x128xbf16>, vector<1x8x128xbf16>, vector<1x8x8xf32> -> vector<1x8x8xf32>
    %cst_19 = arith.constant 0xFF800000 : f32
    "tpu.trace_stop"() : () -> ()
    %68 = vector.shape_cast %36 : vector<8x8xi1> to vector<1x8x8xi1>
    %69 = vector.broadcast %cst_19 : f32 to vector<1x8x8xf32>
    %70 = arith.select %68, %67, %69 : vector<1x8x8xi1>, vector<1x8x8xf32>
    %cst_20 = arith.constant dense<0xFF800000> : vector<1x8xf32>
    %71 = vector.multi_reduction <maximumf>, %70, %cst_20 [2] : vector<1x8x8xf32> to vector<1x8xf32>
    %72 = vector.shape_cast %71 : vector<1x8xf32> to vector<1x8x1xf32>
    %73 = vector.broadcast %72 : vector<1x8x1xf32> to vector<1x8x8xf32>
    %74 = arith.subf %70, %73 : vector<1x8x8xf32>
    %75 = math.exp %74 : vector<1x8x8xf32>
    %cst_21 = arith.constant dense<0.000000e+00> : vector<1x8xf32>
    %76 = vector.multi_reduction <add>, %75, %cst_21 [2] : vector<1x8x8xf32> to vector<1x8xf32>
    %77 = vector.shape_cast %76 : vector<1x8xf32> to vector<1x8x1xf32>
    %78 = tpu.reciprocal %77 {approx = true} : vector<1x8x1xf32> -> vector<1x8x1xf32>
    %79 = vector.broadcast %78 : vector<1x8x1xf32> to vector<1x8x8xf32>
    %80 = arith.mulf %75, %79 : vector<1x8x8xf32>
    %81 = arith.truncf %80 : vector<1x8x8xf32> to vector<1x8x8xbf16>
    "tpu.trace_start"() <{level = 10 : i32, message = "bts,bsd->btd"}> : () -> ()
    %cst_22 = arith.constant dense<0.000000e+00> : vector<1x8x128xf32>
    %82 = tpu.matmul %81, %66, %cst_22 {dimension_numbers = #tpu.dot_dimension_numbers<[2], [1], [1], [2], [0, 0, 0, 1, 1, 2], [0], [0]>} : vector<1x8x8xbf16>, vector<1x8x128xbf16>, vector<1x8x128xf32> -> vector<1x8x128xf32>
    "tpu.trace_stop"() : () -> ()
    %83 = vector.shape_cast %82 : vector<1x8x128xf32> to vector<8x128xf32>
    %84 = arith.truncf %83 : vector<8x128xf32> to vector<8x128xbf16>
    %85 = vector.extract_strided_slice %33 {offsets = [0, 256], sizes = [8, 128], strides = [1, 1]} : vector<8x1536xbf16> to vector<8x128xbf16>
    %86 = vector.shape_cast %85 : vector<8x128xbf16> to vector<1x8x128xbf16>
    %87 = vector.extract_strided_slice %33 {offsets = [0, 768], sizes = [8, 128], strides = [1, 1]} : vector<8x1536xbf16> to vector<8x128xbf16>
    %88 = vector.shape_cast %87 : vector<8x128xbf16> to vector<1x8x128xbf16>
    %89 = vector.extract_strided_slice %33 {offsets = [0, 1280], sizes = [8, 128], strides = [1, 1]} : vector<8x1536xbf16> to vector<8x128xbf16>
    %90 = vector.shape_cast %89 : vector<8x128xbf16> to vector<1x8x128xbf16>
    "tpu.trace_start"() <{level = 10 : i32, message = "btd,bsd->bts"}> : () -> ()
    %cst_23 = arith.constant dense<0.000000e+00> : vector<1x8x8xf32>
    %91 = tpu.matmul %86, %88, %cst_23 {dimension_numbers = #tpu.dot_dimension_numbers<[2], [2], [1], [1], [0, 0, 0, 1, 1, 1], [0], [0]>} : vector<1x8x128xbf16>, vector<1x8x128xbf16>, vector<1x8x8xf32> -> vector<1x8x8xf32>
    %cst_24 = arith.constant 0xFF800000 : f32
    "tpu.trace_stop"() : () -> ()
    %92 = vector.shape_cast %36 : vector<8x8xi1> to vector<1x8x8xi1>
    %93 = vector.broadcast %cst_24 : f32 to vector<1x8x8xf32>
    %94 = arith.select %92, %91, %93 : vector<1x8x8xi1>, vector<1x8x8xf32>
    %cst_25 = arith.constant dense<0xFF800000> : vector<1x8xf32>
    %95 = vector.multi_reduction <maximumf>, %94, %cst_25 [2] : vector<1x8x8xf32> to vector<1x8xf32>
    %96 = vector.shape_cast %95 : vector<1x8xf32> to vector<1x8x1xf32>
    %97 = vector.broadcast %96 : vector<1x8x1xf32> to vector<1x8x8xf32>
    %98 = arith.subf %94, %97 : vector<1x8x8xf32>
    %99 = math.exp %98 : vector<1x8x8xf32>
    %cst_26 = arith.constant dense<0.000000e+00> : vector<1x8xf32>
    %100 = vector.multi_reduction <add>, %99, %cst_26 [2] : vector<1x8x8xf32> to vector<1x8xf32>
    %101 = vector.shape_cast %100 : vector<1x8xf32> to vector<1x8x1xf32>
    %102 = tpu.reciprocal %101 {approx = true} : vector<1x8x1xf32> -> vector<1x8x1xf32>
    %103 = vector.broadcast %102 : vector<1x8x1xf32> to vector<1x8x8xf32>
    %104 = arith.mulf %99, %103 : vector<1x8x8xf32>
    %105 = arith.truncf %104 : vector<1x8x8xf32> to vector<1x8x8xbf16>
    "tpu.trace_start"() <{level = 10 : i32, message = "bts,bsd->btd"}> : () -> ()
    %cst_27 = arith.constant dense<0.000000e+00> : vector<1x8x128xf32>
    %106 = tpu.matmul %105, %90, %cst_27 {dimension_numbers = #tpu.dot_dimension_numbers<[2], [1], [1], [2], [0, 0, 0, 1, 1, 2], [0], [0]>} : vector<1x8x8xbf16>, vector<1x8x128xbf16>, vector<1x8x128xf32> -> vector<1x8x128xf32>
    "tpu.trace_stop"() : () -> ()
    %107 = vector.shape_cast %106 : vector<1x8x128xf32> to vector<8x128xf32>
    %108 = arith.truncf %107 : vector<8x128xf32> to vector<8x128xbf16>
    %109 = vector.extract_strided_slice %33 {offsets = [0, 384], sizes = [8, 128], strides = [1, 1]} : vector<8x1536xbf16> to vector<8x128xbf16>
    %110 = vector.shape_cast %109 : vector<8x128xbf16> to vector<1x8x128xbf16>
    %111 = vector.extract_strided_slice %33 {offsets = [0, 896], sizes = [8, 128], strides = [1, 1]} : vector<8x1536xbf16> to vector<8x128xbf16>
    %112 = vector.shape_cast %111 : vector<8x128xbf16> to vector<1x8x128xbf16>
    %113 = vector.extract_strided_slice %33 {offsets = [0, 1408], sizes = [8, 128], strides = [1, 1]} : vector<8x1536xbf16> to vector<8x128xbf16>
    %114 = vector.shape_cast %113 : vector<8x128xbf16> to vector<1x8x128xbf16>
    "tpu.trace_start"() <{level = 10 : i32, message = "btd,bsd->bts"}> : () -> ()
    %cst_28 = arith.constant dense<0.000000e+00> : vector<1x8x8xf32>
    %115 = tpu.matmul %110, %112, %cst_28 {dimension_numbers = #tpu.dot_dimension_numbers<[2], [2], [1], [1], [0, 0, 0, 1, 1, 1], [0], [0]>} : vector<1x8x128xbf16>, vector<1x8x128xbf16>, vector<1x8x8xf32> -> vector<1x8x8xf32>
    %cst_29 = arith.constant 0xFF800000 : f32
    "tpu.trace_stop"() : () -> ()
    %116 = vector.shape_cast %36 : vector<8x8xi1> to vector<1x8x8xi1>
    %117 = vector.broadcast %cst_29 : f32 to vector<1x8x8xf32>
    %118 = arith.select %116, %115, %117 : vector<1x8x8xi1>, vector<1x8x8xf32>
    %cst_30 = arith.constant dense<0xFF800000> : vector<1x8xf32>
    %119 = vector.multi_reduction <maximumf>, %118, %cst_30 [2] : vector<1x8x8xf32> to vector<1x8xf32>
    %120 = vector.shape_cast %119 : vector<1x8xf32> to vector<1x8x1xf32>
    %121 = vector.broadcast %120 : vector<1x8x1xf32> to vector<1x8x8xf32>
    %122 = arith.subf %118, %121 : vector<1x8x8xf32>
    %123 = math.exp %122 : vector<1x8x8xf32>
    %cst_31 = arith.constant dense<0.000000e+00> : vector<1x8xf32>
    %124 = vector.multi_reduction <add>, %123, %cst_31 [2] : vector<1x8x8xf32> to vector<1x8xf32>
    %125 = vector.shape_cast %124 : vector<1x8xf32> to vector<1x8x1xf32>
    %126 = tpu.reciprocal %125 {approx = true} : vector<1x8x1xf32> -> vector<1x8x1xf32>
    %127 = vector.broadcast %126 : vector<1x8x1xf32> to vector<1x8x8xf32>
    %128 = arith.mulf %123, %127 : vector<1x8x8xf32>
    %129 = arith.truncf %128 : vector<1x8x8xf32> to vector<1x8x8xbf16>
    "tpu.trace_start"() <{level = 10 : i32, message = "bts,bsd->btd"}> : () -> ()
    %cst_32 = arith.constant dense<0.000000e+00> : vector<1x8x128xf32>
    %130 = tpu.matmul %129, %114, %cst_32 {dimension_numbers = #tpu.dot_dimension_numbers<[2], [1], [1], [2], [0, 0, 0, 1, 1, 2], [0], [0]>} : vector<1x8x8xbf16>, vector<1x8x128xbf16>, vector<1x8x128xf32> -> vector<1x8x128xf32>
    "tpu.trace_stop"() : () -> ()
    %131 = vector.shape_cast %130 : vector<1x8x128xf32> to vector<8x128xf32>
    %132 = arith.truncf %131 : vector<8x128xf32> to vector<8x128xbf16>
    %133 = tpu.concatenate %60, %84, %108, %132 in 1 : vector<8x128xbf16>, vector<8x128xbf16>, vector<8x128xbf16>, vector<8x128xbf16> -> vector<8x512xbf16>
    %c0_33 = arith.constant 0 : index
    %c0_34 = arith.constant 0 : index
    %134 = vector.load %arg6[%c0_33, %c0_34] : memref<1x384xf32, #tpu.memory_space<vmem>>, vector<1x384xf32>
    %135 = vector.shape_cast %134 : vector<1x384xf32> to vector<384xf32>
    %136 = vector.shape_cast %135 : vector<384xf32> to vector<1x384xf32>
    %137 = vector.broadcast %136 : vector<1x384xf32> to vector<8x384xf32>
    %138 = arith.addf %1, %137 : vector<8x384xf32>
    %c0_35 = arith.constant 0 : index
    %c0_36 = arith.constant 0 : index
    %139 = vector.load %arg5[%c0_35, %c0_36] : memref<512x384xbf16, #tpu.memory_space<vmem>>, vector<512x384xbf16>
    %cst_37 = arith.constant dense<0.000000e+00> : vector<8x384xf32>
    %140 = tpu.matmul %133, %139, %cst_37 {dimension_numbers = #tpu.dot_dimension_numbers<[1], [0], [0], [1], [0, 0, 1, 1], [], []>} : vector<8x512xbf16>, vector<512x384xbf16>, vector<8x384xf32> -> vector<8x384xf32>
    %141 = arith.addf %138, %140 : vector<8x384xf32>
    %c0_38 = arith.constant 0 : index
    %c0_39 = arith.constant 0 : index
    %142 = vector.load %arg7[%c0_38, %c0_39] : memref<1x384xf32, #tpu.memory_space<vmem>>, vector<1x384xf32>
    %143 = vector.shape_cast %142 : vector<1x384xf32> to vector<384xf32>
    %c0_40 = arith.constant 0 : index
    %c0_41 = arith.constant 0 : index
    %144 = vector.load %arg8[%c0_40, %c0_41] : memref<1x384xf32, #tpu.memory_space<vmem>>, vector<1x384xf32>
    %145 = vector.shape_cast %144 : vector<1x384xf32> to vector<384xf32>
    %cst_42 = arith.constant dense<0.000000e+00> : vector<8xf32>
    %146 = vector.multi_reduction <add>, %141, %cst_42 [1] : vector<8x384xf32> to vector<8xf32>
    %147 = vector.shape_cast %146 : vector<8xf32> to vector<8x1xf32>
    %cst_43 = arith.constant 3.840000e+02 : f32
    %148 = vector.broadcast %cst_43 : f32 to vector<8x1xf32>
    %149 = arith.divf %147, %148 : vector<8x1xf32>
    %150 = vector.broadcast %149 : vector<8x1xf32> to vector<8x384xf32>
    %151 = arith.subf %141, %150 : vector<8x384xf32>
    %152 = arith.mulf %151, %151 : vector<8x384xf32>
    %cst_44 = arith.constant dense<0.000000e+00> : vector<8xf32>
    %153 = vector.multi_reduction <add>, %152, %cst_44 [1] : vector<8x384xf32> to vector<8xf32>
    %154 = vector.shape_cast %153 : vector<8xf32> to vector<8x1xf32>
    %cst_45 = arith.constant 3.840000e+02 : f32
    %155 = vector.broadcast %cst_45 : f32 to vector<8x1xf32>
    %156 = arith.divf %154, %155 : vector<8x1xf32>
    %157 = vector.broadcast %149 : vector<8x1xf32> to vector<8x384xf32>
    %158 = arith.subf %141, %157 : vector<8x384xf32>
    %cst_46 = arith.constant 9.99999974E-6 : f32
    %159 = vector.broadcast %cst_46 : f32 to vector<8x1xf32>
    %160 = arith.addf %156, %159 : vector<8x1xf32>
    %161 = math.rsqrt %160 : vector<8x1xf32>
    %162 = vector.broadcast %161 : vector<8x1xf32> to vector<8x384xf32>
    %163 = arith.mulf %158, %162 : vector<8x384xf32>
    %164 = vector.shape_cast %143 : vector<384xf32> to vector<1x384xf32>
    %165 = vector.broadcast %164 : vector<1x384xf32> to vector<8x384xf32>
    %166 = arith.mulf %163, %165 : vector<8x384xf32>
    %167 = vector.shape_cast %145 : vector<384xf32> to vector<1x384xf32>
    %168 = vector.broadcast %167 : vector<1x384xf32> to vector<8x384xf32>
    %169 = arith.addf %166, %168 : vector<8x384xf32>
    %170 = arith.truncf %169 : vector<8x384xf32> to vector<8x384xbf16>
    %c0_47 = arith.constant 0 : index
    %c0_48 = arith.constant 0 : index
    %171 = vector.load %arg9[%c0_47, %c0_48] : memref<384x1536xbf16, #tpu.memory_space<vmem>>, vector<384x1536xbf16>
    %cst_49 = arith.constant dense<0.000000e+00> : vector<8x1536xf32>
    %172 = tpu.matmul %170, %171, %cst_49 {dimension_numbers = #tpu.dot_dimension_numbers<[1], [0], [0], [1], [0, 0, 1, 1], [], []>} : vector<8x384xbf16>, vector<384x1536xbf16>, vector<8x1536xf32> -> vector<8x1536xf32>
    %c0_50 = arith.constant 0 : index
    %c0_51 = arith.constant 0 : index
    %173 = vector.load %arg10[%c0_50, %c0_51] : memref<1x1536xf32, #tpu.memory_space<vmem>>, vector<1x1536xf32>
    %174 = vector.shape_cast %173 : vector<1x1536xf32> to vector<1536xf32>
    %175 = vector.shape_cast %174 : vector<1536xf32> to vector<1x1536xf32>
    %176 = vector.broadcast %175 : vector<1x1536xf32> to vector<8x1536xf32>
    %177 = arith.addf %172, %176 : vector<8x1536xf32>
    %cst_52 = arith.constant 0.000000e+00 : f32
    %178 = vector.broadcast %cst_52 : f32 to vector<8x1536xf32>
    %179 = arith.maximumf %177, %178 : vector<8x1536xf32>
    %180 = arith.truncf %179 : vector<8x1536xf32> to vector<8x1536xbf16>
    %c0_53 = arith.constant 0 : index
    %c0_54 = arith.constant 0 : index
    %181 = vector.load %arg11[%c0_53, %c0_54] : memref<1536x384xbf16, #tpu.memory_space<vmem>>, vector<1536x384xbf16>
    %cst_55 = arith.constant dense<0.000000e+00> : vector<8x384xf32>
    %182 = tpu.matmul %180, %181, %cst_55 {dimension_numbers = #tpu.dot_dimension_numbers<[1], [0], [0], [1], [0, 0, 1, 1], [], []>} : vector<8x1536xbf16>, vector<1536x384xbf16>, vector<8x384xf32> -> vector<8x384xf32>
    %c0_56 = arith.constant 0 : index
    %c0_57 = arith.constant 0 : index
    %183 = vector.load %arg12[%c0_56, %c0_57] : memref<1x384xf32, #tpu.memory_space<vmem>>, vector<1x384xf32>
    %184 = vector.shape_cast %183 : vector<1x384xf32> to vector<384xf32>
    %185 = vector.shape_cast %184 : vector<384xf32> to vector<1x384xf32>
    %186 = vector.broadcast %185 : vector<1x384xf32> to vector<8x384xf32>
    %187 = arith.addf %182, %186 : vector<8x384xf32>
    %188 = arith.addf %141, %187 : vector<8x384xf32>
    %189 = vector.shape_cast %188 : vector<8x384xf32> to vector<1x8x384xf32>
    %c0_58 = arith.constant 0 : index
    %c0_59 = arith.constant 0 : index
    %c0_60 = arith.constant 0 : index
    %190 = vector.load %arg13[%c0_58, %c0_59, %c0_60] : memref<1x8x384xf32, #tpu.memory_space<vmem>>, vector<1x8x384xf32>
    tpu.vector_store %arg13[%c0_58, %c0_59, %c0_60], %189 {strides = array<i32>} : memref<1x8x384xf32, #tpu.memory_space<vmem>>, vector<1x8x384xf32>,
    return
  }
  func.func @transform_0(%arg0: i32) -> (i32, i32, i32) {
    %c0_i32 = arith.constant 0 : i32
    %c0_i32_0 = arith.constant 0 : i32
    %c0_i32_1 = arith.constant 0 : i32
    return %arg0, %c0_i32, %c0_i32_0 : i32, i32, i32
  }
  func.func @transform_1(%arg0: i32) -> (i32, i32) {
    %c0_i32 = arith.constant 0 : i32
    %c0_i32_0 = arith.constant 0 : i32
    %c0_i32_1 = arith.constant 0 : i32
    return %c0_i32, %c0_i32_0 : i32, i32
  }
  func.func @transform_2(%arg0: i32) -> (i32, i32) {
    %c0_i32 = arith.constant 0 : i32
    %c0_i32_0 = arith.constant 0 : i32
    %c0_i32_1 = arith.constant 0 : i32
    return %c0_i32, %c0_i32_0 : i32, i32
  }
  func.func @transform_3(%arg0: i32) -> (i32, i32) {
    %c0_i32 = arith.constant 0 : i32
    %c0_i32_0 = arith.constant 0 : i32
    %c0_i32_1 = arith.constant 0 : i32
    return %c0_i32, %c0_i32_0 : i32, i32
  }
  func.func @transform_4(%arg0: i32) -> (i32, i32) {
    %c0_i32 = arith.constant 0 : i32
    %c0_i32_0 = arith.constant 0 : i32
    %c0_i32_1 = arith.constant 0 : i32
    return %c0_i32, %c0_i32_0 : i32, i32
  }
  func.func @transform_5(%arg0: i32) -> (i32, i32) {
    %c0_i32 = arith.constant 0 : i32
    %c0_i32_0 = arith.constant 0 : i32
    %c0_i32_1 = arith.constant 0 : i32
    return %c0_i32, %c0_i32_0 : i32, i32
  }
  func.func @transform_6(%arg0: i32) -> (i32, i32) {
    %c0_i32 = arith.constant 0 : i32
    %c0_i32_0 = arith.constant 0 : i32
    %c0_i32_1 = arith.constant 0 : i32
    return %c0_i32, %c0_i32_0 : i32, i32
  }
  func.func @transform_7(%arg0: i32) -> (i32, i32) {
    %c0_i32 = arith.constant 0 : i32
    %c0_i32_0 = arith.constant 0 : i32
    %c0_i32_1 = arith.constant 0 : i32
    return %c0_i32, %c0_i32_0 : i32, i32
  }
  func.func @transform_8(%arg0: i32) -> (i32, i32) {
    %c0_i32 = arith.constant 0 : i32
    %c0_i32_0 = arith.constant 0 : i32
    %c0_i32_1 = arith.constant 0 : i32
    return %c0_i32, %c0_i32_0 : i32, i32
  }
  func.func @transform_9(%arg0: i32) -> (i32, i32) {
    %c0_i32 = arith.constant 0 : i32
    %c0_i32_0 = arith.constant 0 : i32
    %c0_i32_1 = arith.constant 0 : i32
    return %c0_i32, %c0_i32_0 : i32, i32
  }
  func.func @transform_10(%arg0: i32) -> (i32, i32) {
    %c0_i32 = arith.constant 0 : i32
    %c0_i32_0 = arith.constant 0 : i32
    %c0_i32_1 = arith.constant 0 : i32
    return %c0_i32, %c0_i32_0 : i32, i32
  }
  func.func @transform_11(%arg0: i32) -> (i32, i32) {
    %c0_i32 = arith.constant 0 : i32
    %c0_i32_0 = arith.constant 0 : i32
    %c0_i32_1 = arith.constant 0 : i32
    return %c0_i32, %c0_i32_0 : i32, i32
  }
  func.func @transform_12(%arg0: i32) -> (i32, i32, i32) {
    %c0_i32 = arith.constant 0 : i32
    %c0_i32_0 = arith.constant 0 : i32
    %c0_i32_1 = arith.constant 0 : i32
    return %arg0, %c0_i32, %c0_i32_0 : i32, i32, i32
  }
}

module attributes {stable_mosaic.version = 11 : i64} {
  func.func @block_kernel(%arg0: i32, %arg1: memref<1x8x384xf32, #tpu.memory_space<vmem>>, %arg2: memref<1x384xf32, #tpu.memory_space<vmem>>, %arg3: memref<1x384xf32, #tpu.memory_space<vmem>>, %arg4: memref<384x1536xbf16, #tpu.memory_space<vmem>>, %arg5: memref<512x384xbf16, #tpu.memory_space<vmem>>, %arg6: memref<1x384xf32, #tpu.memory_space<vmem>>, %arg7: memref<1x384xf32, #tpu.memory_space<vmem>>, %arg8: memref<1x384xf32, #tpu.memory_space<vmem>>, %arg9: memref<384x1536xbf16, #tpu.memory_space<vmem>>, %arg10: memref<1x1536xf32, #tpu.memory_space<vmem>>, %arg11: memref<1536x384xbf16, #tpu.memory_space<vmem>>, %arg12: memref<1x384xf32, #tpu.memory_space<vmem>>, %arg13: memref<1x8x384xf32, #tpu.memory_space<vmem>>) attributes {dimension_semantics = [#tpu.dimension_semantics<parallel>], iteration_bounds = array<i64: 2>, scalar_prefetch = 0 : i64, scratch_operands = 0 : i64, tpu.core_type = #tpu.core_type<tc>, window_params = [{transform_indices = @transform_0, window_bounds = array<i64: 1, 8, 384>}, {pipeline_mode = #tpu.pipeline_mode<synchronous>, transform_indices = @transform_1, window_bounds = array<i64: 1, 384>}, {pipeline_mode = #tpu.pipeline_mode<synchronous>, transform_indices = @transform_2, window_bounds = array<i64: 1, 384>}, {pipeline_mode = #tpu.pipeline_mode<synchronous>, transform_indices = @transform_3, window_bounds = array<i64: 384, 1536>}, {pipeline_mode = #tpu.pipeline_mode<synchronous>, transform_indices = @transform_4, window_bounds = array<i64: 512, 384>}, {pipeline_mode = #tpu.pipeline_mode<synchronous>, transform_indices = @transform_5, window_bounds = array<i64: 1, 384>}, {pipeline_mode = #tpu.pipeline_mode<synchronous>, transform_indices = @transform_6, window_bounds = array<i64: 1, 384>}, {pipeline_mode = #tpu.pipeline_mode<synchronous>, transform_indices = @transform_7, window_bounds = array<i64: 1, 384>}, {pipeline_mode = #tpu.pipeline_mode<synchronous>, transform_indices = @transform_8, window_bounds = array<i64: 384, 1536>}, {pipeline_mode = #tpu.pipeline_mode<synchronous>, transform_indices = @transform_9, window_bounds = array<i64: 1, 1536>}, {pipeline_mode = #tpu.pipeline_mode<synchronous>, transform_indices = @transform_10, window_bounds = array<i64: 1536, 384>}, {pipeline_mode = #tpu.pipeline_mode<synchronous>, transform_indices = @transform_11, window_bounds = array<i64: 1, 384>}, {transform_indices = @transform_12, window_bounds = array<i64: 1, 8, 384>}]} {
    %c0 = arith.constant 0 : index
    %c0_0 = arith.constant 0 : index
    %c0_1 = arith.constant 0 : index
    %0 = vector.load %arg1[%c0, %c0_0, %c0_1] : memref<1x8x384xf32, #tpu.memory_space<vmem>>, vector<1x8x384xf32>
    %1 = vector.shape_cast %0 : vector<1x8x384xf32> to vector<8x384xf32>
    %c0_2 = arith.constant 0 : index
    %c0_3 = arith.constant 0 : index
    %2 = vector.load %arg2[%c0_2, %c0_3] : memref<1x384xf32, #tpu.memory_space<vmem>>, vector<1x384xf32>
    %3 = vector.shape_cast %2 : vector<1x384xf32> to vector<384xf32>
    %c0_4 = arith.constant 0 : index
    %c0_5 = arith.constant 0 : index
    %4 = vector.load %arg3[%c0_4, %c0_5] : memref<1x384xf32, #tpu.memory_space<vmem>>, vector<1x384xf32>
    %5 = vector.shape_cast %4 : vector<1x384xf32> to vector<384xf32>
    %cst = arith.constant dense<0.000000e+00> : vector<8xf32>
    %6 = vector.multi_reduction <add>, %1, %cst [1] : vector<8x384xf32> to vector<8xf32>
    %7 = vector.shape_cast %6 : vector<8xf32> to vector<8x1xf32>
    %cst_6 = arith.constant 3.840000e+02 : f32
    %8 = vector.broadcast %cst_6 : f32 to vector<8x1xf32>
    %9 = arith.divf %7, %8 : vector<8x1xf32>
    %10 = vector.broadcast %9 : vector<8x1xf32> to vector<8x384xf32>
    %11 = arith.subf %1, %10 : vector<8x384xf32>
    %12 = arith.mulf %11, %11 : vector<8x384xf32>
    %cst_7 = arith.constant dense<0.000000e+00> : vector<8xf32>
    %13 = vector.multi_reduction <add>, %12, %cst_7 [1] : vector<8x384xf32> to vector<8xf32>
    %14 = vector.shape_cast %13 : vector<8xf32> to vector<8x1xf32>
    %cst_8 = arith.constant 3.840000e+02 : f32
    %15 = vector.broadcast %cst_8 : f32 to vector<8x1xf32>
    %16 = arith.divf %14, %15 : vector<8x1xf32>
    %17 = vector.broadcast %9 : vector<8x1xf32> to vector<8x384xf32>
    %18 = arith.subf %1, %17 : vector<8x384xf32>
    %cst_9 = arith.constant 9.99999974E-6 : f32
    %19 = vector.broadcast %cst_9 : f32 to vector<8x1xf32>
    %20 = arith.addf %16, %19 : vector<8x1xf32>
    %21 = math.rsqrt %20 : vector<8x1xf32>
    %22 = vector.broadcast %21 : vector<8x1xf32> to vector<8x384xf32>
    %23 = arith.mulf %18, %22 : vector<8x384xf32>
    %24 = vector.shape_cast %3 : vector<384xf32> to vector<1x384xf32>
    %25 = vector.broadcast %24 : vector<1x384xf32> to vector<8x384xf32>
    %26 = arith.mulf %23, %25 : vector<8x384xf32>
    %27 = vector.shape_cast %5 : vector<384xf32> to vector<1x384xf32>
    %28 = vector.broadcast %27 : vector<1x384xf32> to vector<8x384xf32>
    %29 = arith.addf %26, %28 : vector<8x384xf32>
    %30 = arith.truncf %29 : vector<8x384xf32> to vector<8x384xbf16>
    %c0_10 = arith.constant 0 : index
    %c0_11 = arith.constant 0 : index
    %31 = vector.load %arg4[%c0_10, %c0_11] : memref<384x1536xbf16, #tpu.memory_space<vmem>>, vector<384x1536xbf16>
    %cst_12 = arith.constant dense<0.000000e+00> : vector<8x1536xf32>
    %32 = tpu.matmul %30, %31, %cst_12 {dimension_numbers = #tpu.dot_dimension_numbers<[1], [0], [0], [1], [0, 0, 1, 1], [], []>} : vector<8x384xbf16>, vector<384x1536xbf16>, vector<8x1536xf32> -> vector<8x1536xf32>
    %33 = arith.truncf %32 : vector<8x1536xf32> to vector<8x1536xbf16>
    %34 = tpu.iota {dimensions = array<i32: 0>} : vector<8x8xi32>
    %35 = tpu.iota {dimensions = array<i32: 1>} : vector<8x8xi32>
    %36 = arith.cmpi sge, %34, %35 : vector<8x8xi32>
    %37 = vector.extract_strided_slice %33 {offsets = [0, 0], sizes = [8, 128], strides = [1, 1]} : vector<8x1536xbf16> to vector<8x128xbf16>
    %38 = vector.shape_cast %37 : vector<8x128xbf16> to vector<1x8x128xbf16>
    %39 = vector.extract_strided_slice %33 {offsets = [0, 512], sizes = [8, 128], strides = [1, 1]} : vector<8x1536xbf16> to vector<8x128xbf16>
    %40 = vector.shape_cast %39 : vector<8x128xbf16> to vector<1x8x128xbf16>
    %41 = vector.extract_strided_slice %33 {offsets = [0, 1024], sizes = [8, 128], strides = [1, 1]} : vector<8x1536xbf16> to vector<8x128xbf16>
    %42 = vector.shape_cast %41 : vector<8x128xbf16> to vector<1x8x128xbf16>
    "tpu.trace_start"() <{level = 10 : i32, message = "btd,bsd->bts"}> : () -> ()
    %cst_13 = arith.constant dense<0.000000e+00> : vector<1x8x8xf32>
    %43 = tpu.matmul %38, %40, %cst_13 {dimension_numbers = #tpu.dot_dimension_numbers<[2], [2], [1], [1], [0, 0, 0, 1, 1, 1], [0], [0]>} : vector<1x8x128xbf16>, vector<1x8x128xbf16>, vector<1x8x8xf32> -> vector<1x8x8xf32>
    %cst_14 = arith.constant 0xFF800000 : f32
    "tpu.trace_stop"() : () -> ()
    %44 = vector.shape_cast %36 : vector<8x8xi1> to vector<1x8x8xi1>
    %45 = vector.broadcast %cst_14 : f32 to vector<1x8x8xf32>
    %46 = arith.select %44, %43, %45 : vector<1x8x8xi1>, vector<1x8x8xf32>
    %cst_15 = arith.constant dense<0xFF800000> : vector<1x8xf32>
    %47 = vector.multi_reduction <maximumf>, %46, %cst_15 [2] : vector<1x8x8xf32> to vector<1x8xf32>
    %48 = vector.shape_cast %47 : vector<1x8xf32> to vector<1x8x1xf32>
    %49 = vector.broadcast %48 : vector<1x8x1xf32> to vector<1x8x8xf32>
    %50 = arith.subf %46, %49 : vector<1x8x8xf32>
    %51 = math.exp %50 : vector<1x8x8xf32>
    %cst_16 = arith.constant dense<0.000000e+00> : vector<1x8xf32>
    %52 = vector.multi_reduction <add>, %51, %cst_16 [2] : vector<1x8x8xf32> to vector<1x8xf32>
    %53 = vector.shape_cast %52 : vector<1x8xf32> to vector<1x8x1xf32>
    %54 = tpu.reciprocal %53 {approx = true} : vector<1x8x1xf32> -> vector<1x8x1xf32>
    %55 = vector.broadcast %54 : vector<1x8x1xf32> to vector<1x8x8xf32>
    %56 = arith.mulf %51, %55 : vector<1x8x8xf32>
    %57 = arith.truncf %56 : vector<1x8x8xf32> to vector<1x8x8xbf16>
    "tpu.trace_start"() <{level = 10 : i32, message = "bts,bsd->btd"}> : () -> ()
    %cst_17 = arith.constant dense<0.000000e+00> : vector<1x8x128xf32>
    %58 = tpu.matmul %57, %42, %cst_17 {dimension_numbers = #tpu.dot_dimension_numbers<[2], [1], [1], [2], [0, 0, 0, 1, 1, 2], [0], [0]>} : vector<1x8x8xbf16>, vector<1x8x128xbf16>, vector<1x8x128xf32> -> vector<1x8x128xf32>
    "tpu.trace_stop"() : () -> ()
    %59 = vector.shape_cast %58 : vector<1x8x128xf32> to vector<8x128xf32>
    %60 = arith.truncf %59 : vector<8x128xf32> to vector<8x128xbf16>
    %61 = vector.extract_strided_slice %33 {offsets = [0, 128], sizes = [8, 128], strides = [1, 1]} : vector<8x1536xbf16> to vector<8x128xbf16>
    %62 = vector.shape_cast %61 : vector<8x128xbf16> to vector<1x8x128xbf16>
    %63 = vector.extract_strided_slice %33 {offsets = [0, 640], sizes = [8, 128], strides = [1, 1]} : vector<8x1536xbf16> to vector<8x128xbf16>
    %64 = vector.shape_cast %63 : vector<8x128xbf16> to vector<1x8x128xbf16>
    %65 = vector.extract_strided_slice %33 {offsets = [0, 1152], sizes = [8, 128], strides = [1, 1]} : vector<8x1536xbf16> to vector<8x128xbf16>
    %66 = vector.shape_cast %65 : vector<8x128xbf16> to vector<1x8x128xbf16>
    "tpu.trace_start"() <{level = 10 : i32, message = "btd,bsd->bts"}> : () -> ()
    %cst_18 = arith.constant dense<0.000000e+00> : vector<1x8x8xf32>
    %67 = tpu.matmul %62, %64, %cst_18 {dimension_numbers = #tpu.dot_dimension_numbers<[2], [2], [1], [1], [0, 0, 0, 1, 1, 1], [0], [0]>} : vector<1x8x128xbf16>, vector<1x8x128xbf16>, vector<1x8x8xf32> -> vector<1x8x8xf32>
    %cst_19 = arith.constant 0xFF800000 : f32
    "tpu.trace_stop"() : () -> ()
    %68 = vector.shape_cast %36 : vector<8x8xi1> to vector<1x8x8xi1>
    %69 = vector.broadcast %cst_19 : f32 to vector<1x8x8xf32>
    %70 = arith.select %68, %67, %69 : vector<1x8x8xi1>, vector<1x8x8xf32>
    %cst_20 = arith.constant dense<0xFF800000> : vector<1x8xf32>
    %71 = vector.multi_reduction <maximumf>, %70, %cst_20 [2] : vector<1x8x8xf32> to vector<1x8xf32>
    %72 = vector.shape_cast %71 : vector<1x8xf32> to vector<1x8x1xf32>
    %73 = vector.broadcast %72 : vector<1x8x1xf32> to vector<1x8x8xf32>
    %74 = arith.subf %70, %73 : vector<1x8x8xf32>
    %75 = math.exp %74 : vector<1x8x8xf32>
    %cst_21 = arith.constant dense<0.000000e+00> : vector<1x8xf32>
    %76 = vector.multi_reduction <add>, %75, %cst_21 [2] : vector<1x8x8xf32> to vector<1x8xf32>
    %77 = vector.shape_cast %76 : vector<1x8xf32> to vector<1x8x1xf32>
    %78 = tpu.reciprocal %77 {approx = true} : vector<1x8x1xf32> -> vector<1x8x1xf32>
    %79 = vector.broadcast %78 : vector<1x8x1xf32> to vector<1x8x8xf32>
    %80 = arith.mulf %75, %79 : vector<1x8x8xf32>
    %81 = arith.truncf %80 : vector<1x8x8xf32> to vector<1x8x8xbf16>
    "tpu.trace_start"() <{level = 10 : i32, message = "bts,bsd->btd"}> : () -> ()
    %cst_22 = arith.constant dense<0.000000e+00> : vector<1x8x128xf32>
    %82 = tpu.matmul %81, %66, %cst_22 {dimension_numbers = #tpu.dot_dimension_numbers<[2], [1], [1], [2], [0, 0, 0, 1, 1, 2], [0], [0]>} : vector<1x8x8xbf16>, vector<1x8x128xbf16>, vector<1x8x128xf32> -> vector<1x8x128xf32>
    "tpu.trace_stop"() : () -> ()
    %83 = vector.shape_cast %82 : vector<1x8x128xf32> to vector<8x128xf32>
    %84 = arith.truncf %83 : vector<8x128xf32> to vector<8x128xbf16>
    %85 = vector.extract_strided_slice %33 {offsets = [0, 256], sizes = [8, 128], strides = [1, 1]} : vector<8x1536xbf16> to vector<8x128xbf16>
    %86 = vector.shape_cast %85 : vector<8x128xbf16> to vector<1x8x128xbf16>
    %87 = vector.extract_strided_slice %33 {offsets = [0, 768], sizes = [8, 128], strides = [1, 1]} : vector<8x1536xbf16> to vector<8x128xbf16>
    %88 = vector.shape_cast %87 : vector<8x128xbf16> to vector<1x8x128xbf16>
    %89 = vector.extract_strided_slice %33 {offsets = [0, 1280], sizes = [8, 128], strides = [1, 1]} : vector<8x1536xbf16> to vector<8x128xbf16>
    %90 = vector.shape_cast %89 : vector<8x128xbf16> to vector<1x8x128xbf16>
    "tpu.trace_start"() <{level = 10 : i32, message = "btd,bsd->bts"}> : () -> ()
    %cst_23 = arith.constant dense<0.000000e+00> : vector<1x8x8xf32>
    %91 = tpu.matmul %86, %88, %cst_23 {dimension_numbers = #tpu.dot_dimension_numbers<[2], [2], [1], [1], [0, 0, 0, 1, 1, 1], [0], [0]>} : vector<1x8x128xbf16>, vector<1x8x128xbf16>, vector<1x8x8xf32> -> vector<1x8x8xf32>
    %cst_24 = arith.constant 0xFF800000 : f32
    "tpu.trace_stop"() : () -> ()
    %92 = vector.shape_cast %36 : vector<8x8xi1> to vector<1x8x8xi1>
    %93 = vector.broadcast %cst_24 : f32 to vector<1x8x8xf32>
    %94 = arith.select %92, %91, %93 : vector<1x8x8xi1>, vector<1x8x8xf32>
    %cst_25 = arith.constant dense<0xFF800000> : vector<1x8xf32>
    %95 = vector.multi_reduction <maximumf>, %94, %cst_25 [2] : vector<1x8x8xf32> to vector<1x8xf32>
    %96 = vector.shape_cast %95 : vector<1x8xf32> to vector<1x8x1xf32>
    %97 = vector.broadcast %96 : vector<1x8x1xf32> to vector<1x8x8xf32>
    %98 = arith.subf %94, %97 : vector<1x8x8xf32>
    %99 = math.exp %98 : vector<1x8x8xf32>
    %cst_26 = arith.constant dense<0.000000e+00> : vector<1x8xf32>
    %100 = vector.multi_reduction <add>, %99, %cst_26 [2] : vector<1x8x8xf32> to vector<1x8xf32>
    %101 = vector.shape_cast %100 : vector<1x8xf32> to vector<1x8x1xf32>
    %102 = tpu.reciprocal %101 {approx = true} : vector<1x8x1xf32> -> vector<1x8x1xf32>
    %103 = vector.broadcast %102 : vector<1x8x1xf32> to vector<1x8x8xf32>
    %104 = arith.mulf %99, %103 : vector<1x8x8xf32>
    %105 = arith.truncf %104 : vector<1x8x8xf32> to vector<1x8x8xbf16>
    "tpu.trace_start"() <{level = 10 : i32, message = "bts,bsd->btd"}> : () -> ()
    %cst_27 = arith.constant dense<0.000000e+00> : vector<1x8x128xf32>
    %106 = tpu.matmul %105, %90, %cst_27 {dimension_numbers = #tpu.dot_dimension_numbers<[2], [1], [1], [2], [0, 0, 0, 1, 1, 2], [0], [0]>} : vector<1x8x8xbf16>, vector<1x8x128xbf16>, vector<1x8x128xf32> -> vector<1x8x128xf32>
    "tpu.trace_stop"() : () -> ()
    %107 = vector.shape_cast %106 : vector<1x8x128xf32> to vector<8x128xf32>
    %108 = arith.truncf %107 : vector<8x128xf32> to vector<8x128xbf16>
    %109 = vector.extract_strided_slice %33 {offsets = [0, 384], sizes = [8, 128], strides = [1, 1]} : vector<8x1536xbf16> to vector<8x128xbf16>
    %110 = vector.shape_cast %109 : vector<8x128xbf16> to vector<1x8x128xbf16>
    %111 = vector.extract_strided_slice %33 {offsets = [0, 896], sizes = [8, 128], strides = [1, 1]} : vector<8x1536xbf16> to vector<8x128xbf16>
    %112 = vector.shape_cast %111 : vector<8x128xbf16> to vector<1x8x128xbf16>
    %113 = vector.extract_strided_slice %33 {offsets = [0, 1408], sizes = [8, 128], strides = [1, 1]} : vector<8x1536xbf16> to vector<8x128xbf16>
    %114 = vector.shape_cast %113 : vector<8x128xbf16> to vector<1x8x128xbf16>
    "tpu.trace_start"() <{level = 10 : i32, message = "btd,bsd->bts"}> : () -> ()
    %cst_28 = arith.constant dense<0.000000e+00> : vector<1x8x8xf32>
    %115 = tpu.matmul %110, %112, %cst_28 {dimension_numbers = #tpu.dot_dimension_numbers<[2], [2], [1], [1], [0, 0, 0, 1, 1, 1], [0], [0]>} : vector<1x8x128xbf16>, vector<1x8x128xbf16>, vector<1x8x8xf32> -> vector<1x8x8xf32>
    %cst_29 = arith.constant 0xFF800000 : f32
    "tpu.trace_stop"() : () -> ()
    %116 = vector.shape_cast %36 : vector<8x8xi1> to vector<1x8x8xi1>
    %117 = vector.broadcast %cst_29 : f32 to vector<1x8x8xf32>
    %118 = arith.select %116, %115, %117 : vector<1x8x8xi1>, vector<1x8x8xf32>
    %cst_30 = arith.constant dense<0xFF800000> : vector<1x8xf32>
    %119 = vector.multi_reduction <maximumf>, %118, %cst_30 [2] : vector<1x8x8xf32> to vector<1x8xf32>
    %120 = vector.shape_cast %119 : vector<1x8xf32> to vector<1x8x1xf32>
    %121 = vector.broadcast %120 : vector<1x8x1xf32> to vector<1x8x8xf32>
    %122 = arith.subf %118, %121 : vector<1x8x8xf32>
    %123 = math.exp %122 : vector<1x8x8xf32>
    %cst_31 = arith.constant dense<0.000000e+00> : vector<1x8xf32>
    %124 = vector.multi_reduction <add>, %123, %cst_31 [2] : vector<1x8x8xf32> to vector<1x8xf32>
    %125 = vector.shape_cast %124 : vector<1x8xf32> to vector<1x8x1xf32>
    %126 = tpu.reciprocal %125 {approx = true} : vector<1x8x1xf32> -> vector<1x8x1xf32>
    %127 = vector.broadcast %126 : vector<1x8x1xf32> to vector<1x8x8xf32>
    %128 = arith.mulf %123, %127 : vector<1x8x8xf32>
    %129 = arith.truncf %128 : vector<1x8x8xf32> to vector<1x8x8xbf16>
    "tpu.trace_start"() <{level = 10 : i32, message = "bts,bsd->btd"}> : () -> ()
    %cst_32 = arith.constant dense<0.000000e+00> : vector<1x8x128xf32>
    %130 = tpu.matmul %129, %114, %cst_32 {dimension_numbers = #tpu.dot_dimension_numbers<[2], [1], [1], [2], [0, 0, 0, 1, 1, 2], [0], [0]>} : vector<1x8x8xbf16>, vector<1x8x128xbf16>, vector<1x8x128xf32> -> vector<1x8x128xf32>
    "tpu.trace_stop"() : () -> ()
    %131 = vector.shape_cast %130 : vector<1x8x128xf32> to vector<8x128xf32>
    %132 = arith.truncf %131 : vector<8x128xf32> to vector<8x128xbf16>
    %133 = tpu.concatenate %60, %84, %108, %132 in 1 : vector<8x128xbf16>, vector<8x128xbf16>, vector<8x128xbf16>, vector<8x128xbf16> -> vector<8x512xbf16>
    %c0_33 = arith.constant 0 : index
    %c0_34 = arith.constant 0 : index
    %134 = vector.load %arg6[%c0_33, %c0_34] : memref<1x384xf32, #tpu.memory_space<vmem>>, vector<1x384xf32>
    %135 = vector.shape_cast %134 : vector<1x384xf32> to vector<384xf32>
    %136 = vector.shape_cast %135 : vector<384xf32> to vector<1x384xf32>
    %137 = vector.broadcast %136 : vector<1x384xf32> to vector<8x384xf32>
    %138 = arith.addf %1, %137 : vector<8x384xf32>
    %c0_35 = arith.constant 0 : index
    %c0_36 = arith.constant 0 : index
    %139 = vector.load %arg5[%c0_35, %c0_36] : memref<512x384xbf16, #tpu.memory_space<vmem>>, vector<512x384xbf16>
    %cst_37 = arith.constant dense<0.000000e+00> : vector<8x384xf32>
    %140 = tpu.matmul %133, %139, %cst_37 {dimension_numbers = #tpu.dot_dimension_numbers<[1], [0], [0], [1], [0, 0, 1, 1], [], []>} : vector<8x512xbf16>, vector<512x384xbf16>, vector<8x384xf32> -> vector<8x384xf32>
    %141 = arith.addf %138, %140 : vector<8x384xf32>
    %c0_38 = arith.constant 0 : index
    %c0_39 = arith.constant 0 : index
    %142 = vector.load %arg7[%c0_38, %c0_39] : memref<1x384xf32, #tpu.memory_space<vmem>>, vector<1x384xf32>
    %143 = vector.shape_cast %142 : vector<1x384xf32> to vector<384xf32>
    %c0_40 = arith.constant 0 : index
    %c0_41 = arith.constant 0 : index
    %144 = vector.load %arg8[%c0_40, %c0_41] : memref<1x384xf32, #tpu.memory_space<vmem>>, vector<1x384xf32>
    %145 = vector.shape_cast %144 : vector<1x384xf32> to vector<384xf32>
    %cst_42 = arith.constant dense<0.000000e+00> : vector<8xf32>
    %146 = vector.multi_reduction <add>, %141, %cst_42 [1] : vector<8x384xf32> to vector<8xf32>
    %147 = vector.shape_cast %146 : vector<8xf32> to vector<8x1xf32>
    %cst_43 = arith.constant 3.840000e+02 : f32
    %148 = vector.broadcast %cst_43 : f32 to vector<8x1xf32>
    %149 = arith.divf %147, %148 : vector<8x1xf32>
    %150 = vector.broadcast %149 : vector<8x1xf32> to vector<8x384xf32>
    %151 = arith.subf %141, %150 : vector<8x384xf32>
    %152 = arith.mulf %151, %151 : vector<8x384xf32>
    %cst_44 = arith.constant dense<0.000000e+00> : vector<8xf32>
    %153 = vector.multi_reduction <add>, %152, %cst_44 [1] : vector<8x384xf32> to vector<8xf32>
    %154 = vector.shape_cast %153 : vector<8xf32> to vector<8x1xf32>
    %cst_45 = arith.constant 3.840000e+02 : f32
    %155 = vector.broadcast %cst_45 : f32 to vector<8x1xf32>
    %156 = arith.divf %154, %155 : vector<8x1xf32>
    %157 = vector.broadcast %149 : vector<8x1xf32> to vector<8x384xf32>
    %158 = arith.subf %141, %157 : vector<8x384xf32>
    %cst_46 = arith.constant 9.99999974E-6 : f32
    %159 = vector.broadcast %cst_46 : f32 to vector<8x1xf32>
    %160 = arith.addf %156, %159 : vector<8x1xf32>
    %161 = math.rsqrt %160 : vector<8x1xf32>
    %162 = vector.broadcast %161 : vector<8x1xf32> to vector<8x384xf32>
    %163 = arith.mulf %158, %162 : vector<8x384xf32>
    %164 = vector.shape_cast %143 : vector<384xf32> to vector<1x384xf32>
    %165 = vector.broadcast %164 : vector<1x384xf32> to vector<8x384xf32>
    %166 = arith.mulf %163, %165 : vector<8x384xf32>
    %167 = vector.shape_cast %145 : vector<384xf32> to vector<1x384xf32>
    %168 = vector.broadcast %167 : vector<1x384xf32> to vector<8x384xf32>
    %169 = arith.addf %166, %168 : vector<8x384xf32>
    %170 = arith.truncf %169 : vector<8x384xf32> to vector<8x384xbf16>
    %c0_47 = arith.constant 0 : index
    %c0_48 = arith.constant 0 : index
    %171 = vector.load %arg9[%c0_47, %c0_48] : memref<384x1536xbf16, #tpu.memory_space<vmem>>, vector<384x1536xbf16>
    %cst_49 = arith.constant dense<0.000000e+00> : vector<8x1536xf32>
    %172 = tpu.matmul %170, %171, %cst_49 {dimension_numbers = #tpu.dot_dimension_numbers<[1], [0], [0], [1], [0, 0, 1, 1], [], []>} : vector<8x384xbf16>, vector<384x1536xbf16>, vector<8x1536xf32> -> vector<8x1536xf32>
    %c0_50 = arith.constant 0 : index
    %c0_51 = arith.constant 0 : index
    %173 = vector.load %arg10[%c0_50, %c0_51] : memref<1x1536xf32, #tpu.memory_space<vmem>>, vector<1x1536xf32>
    %174 = vector.shape_cast %173 : vector<1x1536xf32> to vector<1536xf32>
    %175 = vector.shape_cast %174 : vector<1536xf32> to vector<1x1536xf32>
    %176 = vector.broadcast %175 : vector<1x1536xf32> to vector<8x1536xf32>
    %177 = arith.addf %172, %176 : vector<8x1536xf32>
    %cst_52 = arith.constant 0.000000e+00 : f32
    %178 = vector.broadcast %cst_52 : f32 to vector<8x1536xf32>
    %179 = arith.maximumf %177, %178 : vector<8x1536xf32>
    %180 = arith.truncf %179 : vector<8x1536xf32> to vector<8x1536xbf16>
    %c0_53 = arith.constant 0 : index
    %c0_54 = arith.constant 0 : index
    %181 = vector.load %arg11[%c0_53, %c0_54] : memref<1536x384xbf16, #tpu.memory_space<vmem>>, vector<1536x384xbf16>
    %cst_55 = arith.constant dense<0.000000e+00> : vector<8x384xf32>
    %182 = tpu.matmul %180, %181, %cst_55 {dimension_numbers = #tpu.dot_dimension_numbers<[1], [0], [0], [1], [0, 0, 1, 1], [], []>} : vector<8x1536xbf16>, vector<1536x384xbf16>, vector<8x384xf32> -> vector<8x384xf32>
    %c0_56 = arith.constant 0 : index
    %c0_57 = arith.constant 0 : index
    %183 = vector.load %arg12[%c0_56, %c0_57] : memref<1x384xf32, #tpu.memory_space<vmem>>, vector<1x384xf32>
    %184 = vector.shape_cast %183 : vector<1x384xf32> to vector<384xf32>
    %185 = vector.shape_cast %184 : vector<384xf32> to vector<1x384xf32>
    %186 = vector.broadcast %185 : vector<1x384xf32> to vector<8x384xf32>
    %187 = arith.addf %182, %186 : vector<8x384xf32>
    %188 = arith.addf %141, %187 : vector<8x384xf32>
    %189 = vector.shape_cast %188 : vector<8x384xf32> to vector<1x8x384xf32>
    %c0_58 = arith.constant 0 : index
    %c0_59 = arith.constant 0 : index
    %c0_60 = arith.constant 0 : index
    %190 = vector.load %arg13[%c0_58, %c0_59, %c0_60] : memref<1x8x384xf32, #tpu.memory_space<vmem>>, vector<1x8x384xf32>
    tpu.vector_store %arg13[%c0_58, %c0_59, %c0_60], %189 {strides = array<i32>} : memref<1x8x384xf32, #tpu.memory_space<vmem>>, vector<1x8x384xf32>,
    return
  }
  func.func @transform_0(%arg0: i32) -> (i32, i32, i32) {
    %c0_i32 = arith.constant 0 : i32
    %c0_i32_0 = arith.constant 0 : i32
    %c0_i32_1 = arith.constant 0 : i32
    return %arg0, %c0_i32, %c0_i32_0 : i32, i32, i32
  }
  func.func @transform_1(%arg0: i32) -> (i32, i32) {
    %c0_i32 = arith.constant 0 : i32
    %c0_i32_0 = arith.constant 0 : i32
    %c0_i32_1 = arith.constant 0 : i32
    return %c0_i32, %c0_i32_0 : i32, i32
  }
  func.func @transform_2(%arg0: i32) -> (i32, i32) {
    %c0_i32 = arith.constant 0 : i32
    %c0_i32_0 = arith.constant 0 : i32
    %c0_i32_1 = arith.constant 0 : i32
    return %c0_i32, %c0_i32_0 : i32, i32
  }
  func.func @transform_3(%arg0: i32) -> (i32, i32) {
    %c0_i32 = arith.constant 0 : i32
    %c0_i32_0 = arith.constant 0 : i32
    %c0_i32_1 = arith.constant 0 : i32
    return %c0_i32, %c0_i32_0 : i32, i32
  }
  func.func @transform_4(%arg0: i32) -> (i32, i32) {
    %c0_i32 = arith.constant 0 : i32
    %c0_i32_0 = arith.constant 0 : i32
    %c0_i32_1 = arith.constant 0 : i32
    return %c0_i32, %c0_i32_0 : i32, i32
  }
  func.func @transform_5(%arg0: i32) -> (i32, i32) {
    %c0_i32 = arith.constant 0 : i32
    %c0_i32_0 = arith.constant 0 : i32
    %c0_i32_1 = arith.constant 0 : i32
    return %c0_i32, %c0_i32_0 : i32, i32
  }
  func.func @transform_6(%arg0: i32) -> (i32, i32) {
    %c0_i32 = arith.constant 0 : i32
    %c0_i32_0 = arith.constant 0 : i32
    %c0_i32_1 = arith.constant 0 : i32
    return %c0_i32, %c0_i32_0 : i32, i32
  }
  func.func @transform_7(%arg0: i32) -> (i32, i32) {
    %c0_i32 = arith.constant 0 : i32
    %c0_i32_0 = arith.constant 0 : i32
    %c0_i32_1 = arith.constant 0 : i32
    return %c0_i32, %c0_i32_0 : i32, i32
  }
  func.func @transform_8(%arg0: i32) -> (i32, i32) {
    %c0_i32 = arith.constant 0 : i32
    %c0_i32_0 = arith.constant 0 : i32
    %c0_i32_1 = arith.constant 0 : i32
    return %c0_i32, %c0_i32_0 : i32, i32
  }
  func.func @transform_9(%arg0: i32) -> (i32, i32) {
    %c0_i32 = arith.constant 0 : i32
    %c0_i32_0 = arith.constant 0 : i32
    %c0_i32_1 = arith.constant 0 : i32
    return %c0_i32, %c0_i32_0 : i32, i32
  }
  func.func @transform_10(%arg0: i32) -> (i32, i32) {
    %c0_i32 = arith.constant 0 : i32
    %c0_i32_0 = arith.constant 0 : i32
    %c0_i32_1 = arith.constant 0 : i32
    return %c0_i32, %c0_i32_0 : i32, i32
  }
  func.func @transform_11(%arg0: i32) -> (i32, i32) {
    %c0_i32 = arith.constant 0 : i32
    %c0_i32_0 = arith.constant 0 : i32
    %c0_i32_1 = arith.constant 0 : i32
    return %c0_i32, %c0_i32_0 : i32, i32
  }
  func.func @transform_12(%arg0: i32) -> (i32, i32, i32) {
    %c0_i32 = arith.constant 0 : i32
    %c0_i32_0 = arith.constant 0 : i32
    %c0_i32_1 = arith.constant 0 : i32
    return %arg0, %c0_i32, %c0_i32_0 : i32, i32, i32
  }
}

</mosaic_0001>

<bundles_post_ra>
// kernel: tpu_custom_call.1
= control target key start
LH: loop header
LB: loop body
LE: loop exit
PB: predicated region body
PF: predicated region fallthrough
CT: control target
= control target key end

     0   :  { %s13260_s0 = inlined_call_operand.hbm [shape: f32[2,8,384], index: 0, kind: input, shape index: {}]   ;;  %s13261_s1 = inlined_call_operand.hbm [shape: f32[1,384], index: 1, kind: input, shape index: {}]   ;;  %s13262_s2 = inlined_call_operand.hbm [shape: f32[1,384], index: 2, kind: input, shape index: {}]   ;;  %s13263_s3 = inlined_call_operand.hbm [shape: bf16[384,1536], index: 3, kind: input, shape index: {}]   ;;  %s13264_s4 = inlined_call_operand.hbm [shape: bf16[512,384], index: 4, kind: input, shape index: {}]   ;;  %s13265_s5 = inlined_call_operand.hbm [shape: f32[1,384], index: 5, kind: input, shape index: {}]   ;;  %s13266_s6 = inlined_call_operand.hbm [shape: f32[1,384], index: 6, kind: input, shape index: {}]   ;;  %s13267_s7 = inlined_call_operand.hbm [shape: f32[1,384], index: 7, kind: input, shape index: {}]   ;;  %s13268_s8 = inlined_call_operand.hbm [shape: bf16[384,1536], index: 8, kind: input, shape index: {}]   ;;  %s13269_s9 = inlined_call_operand.hbm [shape: f32[1,1536], index: 9, kind: input, shape index: {}]   ;;  %s13270_s10 = inlined_call_operand.hbm [shape: bf16[1536,384], index: 10, kind: input, shape index: {}]   ;;  %s13271_s11 = inlined_call_operand.hbm [shape: f32[1,384], index: 11, kind: input, shape index: {}]   ;;  %s13272_s12 = inlined_call_operand.hbm [shape: f32[2,8,384], index: 12, kind: output, shape index: {}]  }
   0x1   :  { %13281 = sst [smem:[#allocation32_spill]] %s13261_s1 }
   0x2   :  { %13282 = sst [smem:[#allocation33_spill]] %s13262_s2 }
   0x3   :  { %13283 = sst [smem:[#allocation34_spill]] %s13263_s3 }
   0x4   :  { %13284 = sst [smem:[#allocation35_spill]] %s13265_s5 }
   0x5   :  { %13285 = sst [smem:[#allocation36_spill]] %s13272_s12 }
   0x6   :  { %17 = vsyncpa [#allocation3], 0 }
   0x7   :  { %19 = vsyncpa [#allocation3 + $0x1], 0 }
   0x8   :  { %20 = vsyncpa [#allocation6], 0 }
   0x9   :  { %21 = vsyncpa [#allocation9], 0 }
   0xa   :  { %22 = vsyncpa [#allocation12], 0 }
   0xb   :  { %23 = vsyncpa [#allocation15], 0 }
   0xc   :  { %24 = vsyncpa [#allocation18], 0 }
   0xd   :  { %25 = vsyncpa [#allocation21], 0 }
   0xe   :  { %26 = vsyncpa [#allocation4], 0 }
   0xf   :  { %28 = vsyncpa [#allocation4 + $0x1], 0  ;;  %s12476_s21 = smov 0   ;;  %s12478_s22 = smov 0  }
  0x10   :  { %s12480_s23 = smov 0   ;;  %s12482_s24 = smov 0  }
  0x11 LB: > { %s12391_s25 = smov [#allocation5]   ;;  %s12497_s27 = sadd.s32 4294967295, %s12389_s24   ;;  %s12389_s24 = sphi %s12482_s24, %s13323_s24   ;;  %s12385_s23 = sphi %s12480_s23, %s13322_s23   ;;  %s12381_s22 = sphi %s12478_s22, %s13321_s22   ;;  %s12377_s21 = sphi %s12476_s21, %s13320_s21  }
  0x12   : > { %s335_s26 = sshll.u32 %s12391_s25, 4  ;;  %p9101_p0 = scmp.ge.s32.totalorder %s12389_s24, 1  ;;  %s12502_s26 = int_to_ptr.vmem [resolvable:$true] %s335_s26 }
  0x13   : > { %p13277_p1 = scmp.eq.s32.totalorder %s12497_s27, 0  ;;  %p322_p2 = scmp.lt.s32.totalorder %s12389_s24, 3 }
  0x14   : > { %s12392_s29 = smov [#allocation8]   ;;  %s12393_s14 = smov [#allocation11]  }
  0x15   : > { %p12504_p3 = pnand %p9101_p0, %p322_p2  ;;  %s356_s30 = sshll.u32 %s12392_s29, 4  ;;  %s12511_s30 = int_to_ptr.vmem [resolvable:$true] %s356_s30 }
  0x16   : > { %s383_s15 = sshll.u32 %s12393_s14, 4  ;;  %s13289_s1 = sld [smem:[#allocation32_spill]]  ;;  %s12519_s15 = int_to_ptr.vmem [resolvable:$true] %s383_s15 }
  0x17   : > { %s13286_s28 = scalar_select %p12504_p3, 1, 0 }
  0x18   : > { %p10446_p5 = pneg %p12504_p3 }
  0x19   : > { %13287 = sst [smem:[#allocation31_spill]] %s13286_s28 }
  0x1a   : > { %p12515_p6 = pnand %p10446_p5, %p13277_p1 }
  0x1c   : > { %s11961_s18 = scalar_lea.hbm %s13289_s1, 48  ;;  %p12529_p8 = pneg %p12515_p6 }
  0x1d   : > { %p11962_p7 = scmp.ne.s32.totalorder %s13289_s1, %s11961_s18  ;;  %p11968_p11 = scmp.lt.u32.totalorder %s11961_s18, %s13289_s1 }
  0x1f   : > { %p11964_p9 = pnand %p12529_p8, %p11962_p7 }
  0x21   : > { %p11965_p10 = pneg %p11964_p9 }
  0x23   : > { %p11970_p12 = pnand %p11968_p11, %p11965_p10 }
  0x25   : > { %11973 = shalt.err (!%p11970_p12)
}
  0x26   : > { %s11974_s16 = scalar_lea.vmem %s12502_s26, 48  ;;  %s11981_s17 = scalar_lea.vmem %s12502_s26, 64 }
  0x27   : > { %p11975_p13 = scmp.ne.s32.totalorder %s12502_s26, %s11974_s16  ;;  %p11982_p5 = scmp.lt.s32.totalorder %s12502_s26, %s12502_s26 }
  0x28   : > { %p11983_p7 = scmp.lt.s32.totalorder %s11981_s17, %s11974_s16 }
  0x29   : > { %p11977_p0 = pnand %p11975_p13, %p12529_p8 }
  0x2a   : > { %p11984_p9 = por %p11983_p7, %p11982_p5 }
  0x2b   : > { %p11978_p2 = pneg %p11977_p0 }
  0x2d   : > { %p11985_p4 = pnand %p11984_p9, %p11978_p2 }
  0x2f   : > { %11988 = shalt.err (!%p11985_p4)
}
  0x30   : > { %10449 = dma.hbm_to_vmem [thread:$0]  (!%p12515_p6), %s13289_s1, 48, %s12502_s26, [#allocation6]  }
  0x31   : > { %s13291_s3 = sld [smem:[#allocation34_spill]] }
  0x37   : > { %s11989_s14 = scalar_lea.hbm %s13291_s3, 36864 }
  0x38   : > { %p11990_p10 = scmp.ne.s32.totalorder %s13291_s3, %s11989_s14  ;;  %p11996_p4 = scmp.lt.u32.totalorder %s11989_s14, %s13291_s3 }
  0x3a   : > { %p11992_p11 = pnand %p11990_p10, %p12529_p8 }
  0x3c   : > { %p11993_p12 = pneg %p11992_p11 }
  0x3e   : > { %p11998_p13 = pnand %p11996_p4, %p11993_p12 }
  0x40   : > { %12001 = shalt.err (!%p11998_p13)
}
  0x41   : > { %s12002_s26 = scalar_lea.vmem %s12511_s30, 36864  ;;  %p12010_p7 = scmp.lt.s32.totalorder %s12511_s30, %s12511_s30 }
  0x42   : > { %p12003_p0 = scmp.ne.s32.totalorder %s12511_s30, %s12002_s26  ;;  %p12011_p9 = scmp.lt.s32.totalorder %s12002_s26, %s12002_s26 }
  0x44   : > { %p12005_p2 = pnand %p12003_p0, %p12529_p8  ;;  %p12012_p10 = por %p12011_p9, %p12010_p7 }
  0x46   : > { %p12006_p5 = pneg %p12005_p2 }
  0x48   : > { %p12013_p11 = pnand %p12012_p10, %p12006_p5 }
  0x4a   : > { %12016 = shalt.err (!%p12013_p11)
}
  0x4b   : > { %s13275_s12 = smov 768   ;;  %s13276_s28 = smov 48  }
  0x4c   : > { %10455 = dma.hbm_to_vmem [thread:$0]  (!%p12515_p6), %s13291_s3, 36864, %s12511_s30, [#allocation9], %s13275_s12, %s13275_s12, %s13276_s28  }
  0x4d   : > { %s13292_s5 = sld [smem:[#allocation35_spill]] }
  0x53   : > { %s12017_s14 = scalar_lea.hbm %s13292_s5, 48 }
  0x54   : > { %p12018_p12 = scmp.ne.s32.totalorder %s13292_s5, %s12017_s14  ;;  %p12024_p0 = scmp.lt.u32.totalorder %s12017_s14, %s13292_s5 }
  0x56   : > { %p12020_p4 = pnand %p12018_p12, %p12529_p8 }
  0x58   : > { %p12021_p13 = pneg %p12020_p4 }
  0x5a   : > { %p12026_p2 = pnand %p12024_p0, %p12021_p13 }
  0x5c   : > { %12029 = shalt.err (!%p12026_p2)
}
  0x5d   : > { %s12030_s30 = scalar_lea.vmem %s12519_s15, 48  ;;  %s12037_s18 = scalar_lea.vmem %s12519_s15, 64 }
  0x5e   : > { %p12031_p5 = scmp.ne.s32.totalorder %s12519_s15, %s12030_s30  ;;  %p12038_p10 = scmp.lt.s32.totalorder %s12519_s15, %s12519_s15 }
  0x5f   : > { %p12039_p11 = scmp.lt.s32.totalorder %s12037_s18, %s12030_s30 }
  0x60   : > { %p12033_p7 = pnand %p12031_p5, %p12529_p8 }
  0x61   : > { %p12040_p12 = por %p12039_p11, %p12038_p10 }
  0x62   : > { %p12034_p9 = pneg %p12033_p7 }
  0x64   : > { %p12041_p4 = pnand %p12040_p12, %p12034_p9 }
  0x66   : > { %12044 = shalt.err (!%p12041_p4)
}
  0x67   : > { %10461 = dma.hbm_to_vmem [thread:$0]  (!%p12515_p6), %s13292_s5, 48, %s12519_s15, [#allocation12]  }
  0x68   : > { %s12396_s20 = smov [#allocation14]   ;;  %s12397_s14 = smov [#allocation17]  }
  0x69   : > { %s405_s29 = sshll.u32 %s12396_s20, 4  ;;  %s429_s16 = sshll.u32 %s12397_s14, 4  ;;  %s406_s29 = int_to_ptr.vmem [resolvable:$true] %s405_s29  ;;  %s430_s16 = int_to_ptr.vmem [resolvable:$true] %s429_s16 }
  0x6a   : > { %s12045_s30 = scalar_lea.hbm %s13267_s7, 48 }
  0x6b   : > { %p12046_p13 = scmp.ne.s32.totalorder %s13267_s7, %s12045_s30  ;;  %p12052_p5 = scmp.lt.u32.totalorder %s12045_s30, %s13267_s7 }
  0x6d   : > { %p12048_p0 = pnand %p12046_p13, %p12529_p8 }
  0x6f   : > { %p12049_p2 = pneg %p12048_p0 }
  0x71   : > { %p12054_p7 = pnand %p12052_p5, %p12049_p2 }
  0x73   : > { %12057 = shalt.err (!%p12054_p7)
}
  0x74   : > { %s12058_s15 = scalar_lea.vmem %s406_s29, 48  ;;  %s12065_s19 = scalar_lea.vmem %s406_s29, 64 }
  0x75   : > { %p12059_p9 = scmp.ne.s32.totalorder %s406_s29, %s12058_s15  ;;  %p12066_p12 = scmp.lt.s32.totalorder %s406_s29, %s406_s29 }
  0x76   : > { %p12067_p4 = scmp.lt.s32.totalorder %s12065_s19, %s12058_s15 }
  0x77   : > { %p12061_p10 = pnand %p12059_p9, %p12529_p8 }
  0x78   : > { %p12068_p1 = por %p12067_p4, %p12066_p12 }
  0x79   : > { %p12062_p11 = pneg %p12061_p10 }
  0x7b   : > { %p12069_p3 = pnand %p12068_p1, %p12062_p11 }
  0x7d   : > { %12072 = shalt.err (!%p12069_p3)
}
  0x7e   : > { %10467 = dma.hbm_to_vmem [thread:$0]  (!%p12515_p6), %s13267_s7, 48, %s406_s29, [#allocation15]  }
  0x7f   : > { %s12073_s17 = scalar_lea.hbm %s13269_s9, 192 }
  0x80   : > { %p12074_p13 = scmp.ne.s32.totalorder %s13269_s9, %s12073_s17  ;;  %p12080_p3 = scmp.lt.u32.totalorder %s12073_s17, %s13269_s9 }
  0x82   : > { %p12076_p0 = pnand %p12074_p13, %p12529_p8 }
  0x84   : > { %p12077_p1 = pneg %p12076_p0 }
  0x86   : > { %p12082_p2 = pnand %p12080_p3, %p12077_p1 }
  0x88   : > { %12085 = shalt.err (!%p12082_p2)
}
  0x89   : > { %s12086_s15 = scalar_lea.vmem %s430_s16, 192  ;;  %p12094_p10 = scmp.lt.s32.totalorder %s430_s16, %s430_s16 }
  0x8a   : > { %p12087_p5 = scmp.ne.s32.totalorder %s430_s16, %s12086_s15  ;;  %p12095_p11 = scmp.lt.s32.totalorder %s12086_s15, %s12086_s15 }
  0x8c   : > { %p12089_p7 = pnand %p12087_p5, %p12529_p8  ;;  %p12096_p12 = por %p12095_p11, %p12094_p10 }
  0x8e   : > { %p12090_p9 = pneg %p12089_p7 }
  0x90   : > { %p12097_p4 = pnand %p12096_p12, %p12090_p9 }
  0x92   : > { %12100 = shalt.err (!%p12097_p4)
}
  0x93   : > { %10473 = dma.hbm_to_vmem [thread:$0]  (!%p12515_p6), %s13269_s9, 192, %s430_s16, [#allocation18]  }
  0x94   : > { %s12398_s12 = smov [#allocation7]   ;;  %s12399_s28 = smov [#allocation10]  }
  0x95   : > { %s346_s20 = sshll.u32 %s12398_s12, 4  ;;  %s369_s14 = sshll.u32 %s12399_s28, 4  ;;  %s347_s20 = int_to_ptr.vmem [resolvable:$true] %s346_s20  ;;  %s370_s14 = int_to_ptr.vmem [resolvable:$true] %s369_s14 }
  0x96   : > { %s13293_s2 = sld [smem:[#allocation33_spill]] }
  0x9c   : > { %s12101_s30 = scalar_lea.hbm %s13293_s2, 48 }
  0x9d   : > { %p12102_p13 = scmp.ne.s32.totalorder %s13293_s2, %s12101_s30  ;;  %p12108_p3 = scmp.lt.u32.totalorder %s12101_s30, %s13293_s2 }
  0x9f   : > { %p12104_p0 = pnand %p12102_p13, %p12529_p8 }
  0xa1   : > { %p12105_p1 = pneg %p12104_p0 }
  0xa3   : > { %p12110_p2 = pnand %p12108_p3, %p12105_p1 }
  0xa5   : > { %12113 = shalt.err (!%p12110_p2)
}
  0xa6   : > { %s12114_s16 = scalar_lea.vmem %s347_s20, 48  ;;  %s12121_s19 = scalar_lea.vmem %s347_s20, 64 }
  0xa7   : > { %p12115_p5 = scmp.ne.s32.totalorder %s347_s20, %s12114_s16  ;;  %p12122_p10 = scmp.lt.s32.totalorder %s347_s20, %s347_s20 }
  0xa8   : > { %p12123_p11 = scmp.lt.s32.totalorder %s12121_s19, %s12114_s16 }
  0xa9   : > { %p12117_p7 = pnand %p12115_p5, %p12529_p8 }
  0xaa   : > { %p12124_p12 = por %p12123_p11, %p12122_p10 }
  0xab   : > { %p12118_p9 = pneg %p12117_p7 }
  0xad   : > { %p12125_p4 = pnand %p12124_p12, %p12118_p9 }
  0xaf   : > { %12128 = shalt.err (!%p12125_p4)
}
  0xb0   : > { %10452 = dma.hbm_to_vmem [thread:$0]  (!%p12515_p6), %s13293_s2, 48, %s347_s20, [#allocation6]  }
  0xb1   : > { %s12129_s30 = scalar_lea.hbm %s13264_s4, 12288 }
  0xb2   : > { %p12130_p13 = scmp.ne.s32.totalorder %s13264_s4, %s12129_s30  ;;  %p12136_p3 = scmp.lt.u32.totalorder %s12129_s30, %s13264_s4 }
  0xb4   : > { %p12132_p0 = pnand %p12130_p13, %p12529_p8 }
  0xb6   : > { %p12133_p1 = pneg %p12132_p0 }
  0xb8   : > { %p12138_p2 = pnand %p12136_p3, %p12133_p1 }
  0xba   : > { %12141 = shalt.err (!%p12138_p2)
}
  0xbb   : > { %s12142_s16 = scalar_lea.vmem %s370_s14, 12288  ;;  %p12150_p10 = scmp.lt.s32.totalorder %s370_s14, %s370_s14 }
  0xbc   : > { %p12143_p5 = scmp.ne.s32.totalorder %s370_s14, %s12142_s16  ;;  %p12151_p11 = scmp.lt.s32.totalorder %s12142_s16, %s12142_s16 }
  0xbe   : > { %p12145_p7 = pnand %p12143_p5, %p12529_p8  ;;  %p12152_p12 = por %p12151_p11, %p12150_p10 }
  0xc0   : > { %p12146_p9 = pneg %p12145_p7 }
  0xc2   : > { %p12153_p4 = pnand %p12152_p12, %p12146_p9 }
  0xc4   : > { %12156 = shalt.err (!%p12153_p4)
}
  0xc5   : > { %s13279_s20 = smov 192   ;;  %s12401_s19 = smov 12  }
  0xc6   : > { %10458 = dma.hbm_to_vmem [thread:$0]  (!%p12515_p6), %s13264_s4, 12288, %s370_s14, [#allocation9], %s13279_s20, %s13279_s20, %s12401_s19  }
  0xc7   : > { %s12402_s17 = smov [#allocation13]   ;;  %s12403_s30 = smov [#allocation16]  }
  0xc8   : > { %s394_s26 = sshll.u32 %s12402_s17, 4  ;;  %s415_s18 = sshll.u32 %s12403_s30, 4  ;;  %s395_s26 = int_to_ptr.vmem [resolvable:$true] %s394_s26  ;;  %s416_s18 = int_to_ptr.vmem [resolvable:$true] %s415_s18 }
  0xc9   : > { %s12157_s29 = scalar_lea.hbm %s13266_s6, 48 }
  0xca   : > { %p12158_p13 = scmp.ne.s32.totalorder %s13266_s6, %s12157_s29  ;;  %p12164_p3 = scmp.lt.u32.totalorder %s12157_s29, %s13266_s6 }
  0xcc   : > { %p12160_p0 = pnand %p12158_p13, %p12529_p8 }
  0xce   : > { %p12161_p1 = pneg %p12160_p0 }
  0xd0   : > { %p12166_p2 = pnand %p12164_p3, %p12161_p1 }
  0xd2   : > { %12169 = shalt.err (!%p12166_p2)
}
  0xd3   : > { %s12170_s14 = scalar_lea.vmem %s395_s26, 48  ;;  %s12177_s12 = scalar_lea.vmem %s395_s26, 64 }
  0xd4   : > { %p12171_p5 = scmp.ne.s32.totalorder %s395_s26, %s12170_s14  ;;  %p12178_p10 = scmp.lt.s32.totalorder %s395_s26, %s395_s26 }
  0xd5   : > { %p12179_p11 = scmp.lt.s32.totalorder %s12177_s12, %s12170_s14 }
  0xd6   : > { %p12173_p7 = pnand %p12171_p5, %p12529_p8 }
  0xd7   : > { %p12180_p12 = por %p12179_p11, %p12178_p10 }
  0xd8   : > { %p12174_p9 = pneg %p12173_p7 }
  0xda   : > { %p12181_p4 = pnand %p12180_p12, %p12174_p9 }
  0xdc   : > { %12184 = shalt.err (!%p12181_p4)
}
  0xdd   : > { %10464 = dma.hbm_to_vmem [thread:$0]  (!%p12515_p6), %s13266_s6, 48, %s395_s26, [#allocation12]  }
  0xde   : > { %s12185_s17 = scalar_lea.hbm %s13268_s8, 36864 }
  0xdf   : > { %p12186_p13 = scmp.ne.s32.totalorder %s13268_s8, %s12185_s17  ;;  %p12192_p3 = scmp.lt.u32.totalorder %s12185_s17, %s13268_s8 }
  0xe1   : > { %p12188_p0 = pnand %p12186_p13, %p12529_p8 }
  0xe3   : > { %p12189_p1 = pneg %p12188_p0 }
  0xe5   : > { %p12194_p2 = pnand %p12192_p3, %p12189_p1 }
  0xe7   : > { %12197 = shalt.err (!%p12194_p2)
}
  0xe8   : > { %s12198_s16 = scalar_lea.vmem %s416_s18, 36864  ;;  %p12206_p10 = scmp.lt.s32.totalorder %s416_s18, %s416_s18 }
  0xe9   : > { %p12199_p5 = scmp.ne.s32.totalorder %s416_s18, %s12198_s16  ;;  %p12207_p11 = scmp.lt.s32.totalorder %s12198_s16, %s12198_s16 }
  0xeb   : > { %p12201_p7 = pnand %p12199_p5, %p12529_p8  ;;  %p12208_p12 = por %p12207_p11, %p12206_p10 }
  0xed   : > { %p12202_p9 = pneg %p12201_p7 }
  0xef   : > { %p12209_p4 = pnand %p12208_p12, %p12202_p9 }
  0xf1   : > { %12212 = shalt.err (!%p12209_p4)
}
  0xf2   : > { %s13294_s26 = smov 48   ;;  %s13295_s14 = smov 768  }
  0xf3   : > { %10470 = dma.hbm_to_vmem [thread:$0]  (!%p12515_p6), %s13268_s8, 36864, %s416_s18, [#allocation15], %s13295_s14, %s13295_s14, %s13294_s26  }
  0xf4   : > { %s12404_s28 = smov [#allocation19]   ;;  %s12405_s5 = smov [#allocation20]  }
  0xf5   : > { %s439_s3 = sshll.u32 %s12404_s28, 4  ;;  %s453_s17 = sshll.u32 %s12405_s5, 4  ;;  %s440_s3 = int_to_ptr.vmem [resolvable:$true] %s439_s3  ;;  %s454_s17 = int_to_ptr.vmem [resolvable:$true] %s453_s17 }
  0xf6   : > { %s12213_s15 = scalar_lea.hbm %s13270_s10, 36864 }
  0xf7   : > { %p12214_p13 = scmp.ne.s32.totalorder %s13270_s10, %s12213_s15  ;;  %p12220_p3 = scmp.lt.u32.totalorder %s12213_s15, %s13270_s10 }
  0xf9   : > { %p12216_p0 = pnand %p12214_p13, %p12529_p8 }
  0xfb   : > { %p12217_p1 = pneg %p12216_p0 }
  0xfd   : > { %p12222_p2 = pnand %p12220_p3, %p12217_p1 }
  0xff   : > { %12225 = shalt.err (!%p12222_p2)
}
 0x100   : > { %s12226_s18 = scalar_lea.vmem %s440_s3, 36864  ;;  %p12234_p10 = scmp.lt.s32.totalorder %s440_s3, %s440_s3 }
 0x101   : > { %p12227_p5 = scmp.ne.s32.totalorder %s440_s3, %s12226_s18  ;;  %p12235_p11 = scmp.lt.s32.totalorder %s12226_s18, %s12226_s18 }
 0x103   : > { %p12229_p7 = pnand %p12227_p5, %p12529_p8  ;;  %p12236_p12 = por %p12235_p11, %p12234_p10 }
 0x105   : > { %p12230_p9 = pneg %p12229_p7 }
 0x107   : > { %p12237_p4 = pnand %p12236_p12, %p12230_p9 }
 0x109   : > { %12240 = shalt.err (!%p12237_p4)
}
 0x10a   : > { %s13296_s26 = smov 192   ;;  %s12241_s5 = scalar_lea.hbm %s13271_s11, 48 }
 0x10b   : > { %10476 = dma.hbm_to_vmem [thread:$0]  (!%p12515_p6), %s13270_s10, 36864, %s440_s3, [#allocation18], %s13296_s26, %s13296_s26, %s12401_s19  }
 0x10c   : > { %p12242_p13 = scmp.ne.s32.totalorder %s13271_s11, %s12241_s5  ;;  %p12248_p3 = scmp.lt.u32.totalorder %s12241_s5, %s13271_s11 }
 0x10e   : > { %p12244_p0 = pnand %p12242_p13, %p12529_p8 }
 0x110   : > { %p12245_p1 = pneg %p12244_p0 }
 0x112   : > { %p12250_p2 = pnand %p12248_p3, %p12245_p1 }
 0x114   : > { %12253 = shalt.err (!%p12250_p2)
}
 0x115   : > { %s12254_s16 = scalar_lea.vmem %s454_s17, 48  ;;  %s12261_s19 = scalar_lea.vmem %s454_s17, 64 }
 0x116   : > { %p12255_p5 = scmp.ne.s32.totalorder %s454_s17, %s12254_s16  ;;  %p12262_p10 = scmp.lt.s32.totalorder %s454_s17, %s454_s17 }
 0x117   : > { %p12263_p11 = scmp.lt.s32.totalorder %s12261_s19, %s12254_s16 }
 0x118   : > { %p12257_p7 = pnand %p12255_p5, %p12529_p8 }
 0x119   : > { %p12264_p12 = por %p12263_p11, %p12262_p10 }
 0x11a   : > { %p12258_p9 = pneg %p12257_p7 }
 0x11c   : > { %p12265_p4 = pnand %p12264_p12, %p12258_p9 }
 0x11e   : > { %12268 = shalt.err (!%p12265_p4)
}
 0x11f   : > { %10479 = dma.hbm_to_vmem [thread:$0]  (!%p12515_p6), %s13271_s11, 48, %s454_s17, [#allocation21]  }
 0x120   : > { %s9100_s25 = sadd.s32 4294967294, %s12389_s24   ;;  %s12756_s13 = sadd.s32 1, %s12389_s24  }
 0x121   : > { %s41_s18 = sadd.s32 1, %s12385_s23  ;;  %s38_s26 = ssub.s32 %s12389_s24, %s12756_s13 }
 0x122   : > { %p48_p8 = scmp.ne.s32.totalorder %s12385_s23, %s12381_s22  ;;  %p39_p13 = scmp.eq.s32.totalorder %s38_s26, 0 }
 0x123   : > { %p49_p0 = scmp.eq.s32.totalorder %s12389_s24, 0  ;;  %p54_p1 = scmp.ne.s32.totalorder %s12381_s22, %s12377_s21 }
 0x124   : > { %p309_p3 = scmp.eq.s32.totalorder %s12497_s27, 1  ;;  %p13297_p5 = scmp.eq.s32.totalorder %s12497_s27, 0 }
 0x125   : > { %s12768_s20 = scalar_select %p39_p13, %s12385_s23, %s41_s18  }
 0x126   : > { %p50_p2 = por %p49_p0, %p48_p8  ;;  %p12772_p7 = por %p13297_p5, %p54_p1 }
 0x127   : > { %p12776_p6 = por %p309_p3, %p48_p8  ;;  %p315_p9 = scmp.eq.s32.totalorder %s9100_s25, 1 }
 0x128   : > { %p10499_p10 = scmp.lt.s32.totalorder %s12389_s24, 2  ;;  %s464_s2 = sand.u32 1, %s12385_s23  }
 0x129   : > { %s13299_s17 = scalar_select %p12776_p6, 1, 0 }
 0x12a   : > { %p12782_p11 = por %p315_p9, %p54_p1  ;;  %s10394_s5 = smul.u32 24, %s464_s2 }
 0x12b   : > { %p12786_p12 = pnand %p10499_p10, %p50_p2  ;;  %s10395_s1 = smul.u32 384, %s12389_s24 }
 0x12c   : > { %s13300_s28 = scalar_select %p12782_p11, 1, 0 }
 0x12d   : > { %s12794_s16 = scalar_lea.hbm %s13260_s0, %s10395_s1  ;;  %s468_s19 = scalar_lea.vmem [#allocation2], %s10394_s5 }
 0x12e   : > { %s476_s3 = sshll.u32 %s468_s19, 4  ;;  %s465_s12 = scalar_lea.sflag [#allocation3], %s464_s2  ;;  %s12796_s3 = int_to_ptr.vmem [resolvable:$true] %s476_s3 }
 0x12f   : > { %s12269_s25 = scalar_lea.hbm %s12794_s16, 384  ;;  %p12271_p8 = pneg %p12786_p12 }
 0x130   : > { %p12270_p4 = scmp.ne.s32.totalorder %s12794_s16, %s12269_s25  ;;  %s12274_s1 = scalar_lea.hbm %s13260_s0, 768 }
 0x131   : > { %p12275_p1 = scmp.lt.u32.totalorder %s12794_s16, %s13260_s0  ;;  %p12276_p3 = scmp.lt.u32.totalorder %s12274_s1, %s12269_s25 }
 0x132   : > { %p12272_p13 = pnand %p12271_p8, %p12270_p4  ;;  %p12278_p5 = scmp.lt.u32.totalorder %s12269_s25, %s12794_s16 }
 0x133   : > { %p12277_p2 = por %p12276_p3, %p12275_p1 }
 0x134   : > { %p12273_p0 = pneg %p12272_p13 }
 0x135   : > { %p12279_p9 = por %p12278_p5, %p12277_p2 }
 0x137   : > { %p12280_p10 = pnand %p12279_p9, %p12273_p0 }
 0x139   : > { %12283 = shalt.err (!%p12280_p10)
}
 0x13a   : > { %s12284_s2 = scalar_lea.vmem %s12796_s3, 384  ;;  %s12406_s5 = smov [#allocation2]  }
 0x13b   : > { %p12285_p4 = scmp.ne.s32.totalorder %s12796_s3, %s12284_s2  ;;  %s12289_s19 = sshll.u32 %s12406_s5, 4  ;;  %s12290_s19 = int_to_ptr.vmem [resolvable:$false] %s12289_s19 }
 0x13c   : > { %s12291_s18 = scalar_lea.vmem %s12290_s19, 768  ;;  %p12292_p6 = scmp.lt.s32.totalorder %s12796_s3, %s12290_s19 }
 0x13d   : > { %p12287_p13 = pnand %p12285_p4, %p12271_p8  ;;  %p12293_p1 = scmp.lt.s32.totalorder %s12291_s18, %s12284_s2 }
 0x13f   : > { %p12288_p11 = pneg %p12287_p13  ;;  %p12294_p3 = por %p12293_p1, %p12292_p6 }
 0x141   : > { %p12295_p2 = pnand %p12294_p3, %p12288_p11 }
 0x143   : > { %12298 = shalt.err (!%p12295_p2)
}
 0x144   : > { %10483 = dma.hbm_to_vmem [thread:$0]  (!%p12786_p12), %s12794_s16, 384, %s12796_s3, %s465_s12  }
 0x145   : > { %s13302_s25 = sld [smem:[#allocation31_spill]] }
 0x14b   : > { %p13303_p0 = scmp.ne.s32.totalorder %s13302_s25, 0 }
 0x14c   : > { %s12826_s26 = sand.u32 (!%p13303_p0), 1, %s12381_s22  }
 0x14d   : > { %485 = sbr.rel (%p13303_p0) target bundleno = 3145 (0xc49), region = 68  ;;  %s488_s15 = scalar_lea.sflag (!%p13303_p0), [#allocation3], %s12826_s26 }
 0x14e   : > { %s10396_s1 = smul.u32 (!%p13303_p0), 24, %s12826_s26 }
 0x150   : > { %s12832_s29 = scalar_lea.vmem (!%p13303_p0), [#allocation2], %s10396_s1 }
 0x154   : > { %12344 = dma.done.wait (%p12772_p7), %s488_s15, 384  }
 0x155   : > { %12346 = vsyncadd (%p12772_p7), %s488_s15, 4294966912  ;;  %p13304_p6 = scmp.eq.s32.totalorder %s12497_s27, 0 }
 0x157   : > { %12348 = dma.done.wait (%p13304_p6), [#allocation6], 96   ;;  %p13305_p11 = pmov %p13304_p6 }
 0x158   : > { %p13306_p12 = pmov %p13304_p6 }
 0x159   : > { %12350 = vsyncadd (%p13305_p11), [#allocation6], 4294967200 }
 0x15a   : > { %12352 = dma.done.wait (%p13306_p12), [#allocation9], 49152   ;;  %p13307_p8 = pmov %p13304_p6 }
 0x15b   : > { %p13308_p5 = pmov %p13304_p6 }
 0x15c   : > { %12354 = vsyncadd (%p13307_p8), [#allocation9], 4294918144 }
 0x15d   : > { %12356 = dma.done.wait (%p13308_p5), [#allocation12], 96   ;;  %p13309_p9 = pmov %p13308_p5 }
 0x15e   : > { %p13310_p7 = pmov %p13308_p5 }
 0x15f   : > { %12358 = vsyncadd (%p13309_p9), [#allocation12], 4294967200 }
 0x160   : > { %12360 = dma.done.wait (%p13310_p7), [#allocation15], 36912   ;;  %p13311_p10 = pmov %p13308_p5 }
 0x161   : > { %p13312_p4 = pmov %p13308_p5 }
 0x162   : > { %12362 = vsyncadd (%p13311_p10), [#allocation15], 4294930384 }
 0x163   : > { %12364 = dma.done.wait (%p13312_p4), [#allocation18], 37056   ;;  %p13313_p13 = pmov %p13312_p4 }
 0x164   : > { %p13314_p1 = pmov %p13312_p4 }
 0x165   : > { %12366 = vsyncadd (%p13313_p13), [#allocation18], 4294930240 }
 0x166   : > { %12368 = dma.done.wait (%p13314_p1), [#allocation21], 48   ;;  %p13315_p3 = pmov %p13314_p1 }
 0x167   : > { %v12863_v0 = vld [vmem:[%s12832_s29] sm:$0xff]  ;;  %v12866_v1 = vld [vmem:[%s12832_s29 + $0x8] sm:$0xff]  ;;  %v12869_v2 = vld [vmem:[%s12832_s29 + $0x10] sm:$0xff]  ;;  %vm12409_vm0 = vmmov 0   ;;  %vm2939_vm1 = vcmask 1043456   ;;  %vm2923_vm3 = vcmask 64512  }
 0x168   : > { %12370 = vsyncadd (%p13315_p3), [#allocation21], 4294967248  ;;  %v582_v3 = vadd.f32 %v12866_v1, %v12863_v0  ;;  %v10562_v5 = vld [vmem:[#allocation8 + $0x4] ss:$48 sps:$4 sm:$0xff]   ;;  %v10564_v6 = vld [vmem:[#allocation8 + $0xc] ss:$48 sps:$4 sm:$0xff]  }
 0x169   : > { %v10566_v7 = vld [vmem:[#allocation8] ss:$48 sps:$4 sm:$0xff]   ;;  %v10567_v8 = vld [vmem:[#allocation8 + $0x8] ss:$48 sps:$4 sm:$0xff]   ;;  %v10568_v9 = vld [vmem:[#allocation8 + $0x64] ss:$48 sps:$4 sm:$0xff]   ;;  %2373 = vmatprep.subr.bf16.mxu0 %v10562_v5  ;;  %2455 = vmatprep.subr.bf16.mxu1 %v10564_v6 }
 0x16a   : > { %v583_v4 = vadd.f32 %v582_v3, %v12869_v2  ;;  %v10570_v10 = vld [vmem:[#allocation8 + $0x6c] ss:$48 sps:$4 sm:$0xff]   ;;  %2374 = vmatpush1.bf16.msra.mxu0 %v10566_v7  ;;  %2456 = vmatpush1.bf16.msra.mxu1 %v10567_v8  ;;  %v10572_v11 = vld [vmem:[#allocation8 + $0x60] ss:$48 sps:$4 sm:$0xff]   ;;  %v10573_v12 = vld [vmem:[#allocation8 + $0x68] ss:$48 sps:$4 sm:$0xff]  }
 0x16b   : > { %2375 = vmatprep.subr.bf16.mxu0 %v10568_v9  ;;  %2457 = vmatprep.subr.bf16.mxu1 %v10570_v10  ;;  %v10574_v13 = vld [vmem:[#allocation8 + $0xc4] ss:$48 sps:$4 sm:$0xff]   ;;  %v10576_v14 = vld [vmem:[#allocation8 + $0xcc] ss:$48 sps:$4 sm:$0xff]   ;;  %v10578_v15 = vld [vmem:[#allocation8 + $0xc0] ss:$48 sps:$4 sm:$0xff]  }
 0x16c   : > { %584 = vadd.xlane.f32.xlu0 %v583_v4  ;;  %v10579_v16 = vld [vmem:[#allocation8 + $0xc8] ss:$48 sps:$4 sm:$0xff]   ;;  %v10580_v17 = vld [vmem:[#allocation8 + $0x124] ss:$48 sps:$4 sm:$0xff]   ;;  %v10582_v18 = vld [vmem:[#allocation8 + $0x12c] ss:$48 sps:$4 sm:$0xff]  }
 0x16d   : > { %v10584_v19 = vld [vmem:[#allocation8 + $0x120] ss:$48 sps:$4 sm:$0xff]   ;;  %v10585_v20 = vld [vmem:[#allocation8 + $0x128] ss:$48 sps:$4 sm:$0xff]   ;;  %v10586_v21 = vld [vmem:[#allocation8 + $0x184] ss:$48 sps:$4 sm:$0xff]  }
 0x16e   : > { %2376 = vmatpush1.bf16.msra.mxu0 %v10572_v11  ;;  %2458 = vmatpush1.bf16.msra.mxu1 %v10573_v12  ;;  %v10588_v22 = vld [vmem:[#allocation8 + $0x18c] ss:$48 sps:$4 sm:$0xff]   ;;  %v10590_v23 = vld [vmem:[#allocation8 + $0x180] ss:$48 sps:$4 sm:$0xff]   ;;  %v10591_v24 = vld [vmem:[#allocation8 + $0x188] ss:$48 sps:$4 sm:$0xff]  }
 0x16f   : > { %2377 = vmatprep.subr.bf16.mxu0 %v10574_v13  ;;  %2459 = vmatprep.subr.bf16.mxu1 %v10576_v14  ;;  %v10592_v25 = vld [vmem:[#allocation8 + $0x1e4] ss:$48 sps:$4 sm:$0xff]   ;;  %v10594_v26 = vld [vmem:[#allocation8 + $0x1ec] ss:$48 sps:$4 sm:$0xff]   ;;  %v10596_v27 = vld [vmem:[#allocation8 + $0x1e0] ss:$48 sps:$4 sm:$0xff]  }
 0x170   : > { %v10597_v28 = vld [vmem:[#allocation8 + $0x1e8] ss:$48 sps:$4 sm:$0xff]   ;;  %v10598_v29 = vld [vmem:[#allocation8 + $0x244] ss:$48 sps:$4 sm:$0xff]   ;;  %v10600_v30 = vld [vmem:[#allocation8 + $0x24c] ss:$48 sps:$4 sm:$0xff]  }
 0x171   : > { %v10602_v31 = vld [vmem:[#allocation8 + $0x240] ss:$48 sps:$4 sm:$0xff]   ;;  %v10603_v32 = vld [vmem:[#allocation8 + $0x248] ss:$48 sps:$4 sm:$0xff]   ;;  %v10604_v33 = vld [vmem:[#allocation8 + $0x2a4] ss:$48 sps:$4 sm:$0xff]  }
 0x172   : > { %2378 = vmatpush1.bf16.msra.mxu0 %v10578_v15  ;;  %2460 = vmatpush1.bf16.msra.mxu1 %v10579_v16  ;;  %v10606_v34 = vld [vmem:[#allocation8 + $0x2ac] ss:$48 sps:$4 sm:$0xff]   ;;  %v10608_v35 = vld [vmem:[#allocation8 + $0x2a0] ss:$48 sps:$4 sm:$0xff]   ;;  %v10609_v36 = vld [vmem:[#allocation8 + $0x2a8] ss:$48 sps:$4 sm:$0xff]  }
 0x173   : > { %2379 = vmatprep.subr.bf16.mxu0 %v10580_v17  ;;  %2461 = vmatprep.subr.bf16.mxu1 %v10582_v18  ;;  %v10610_v37 = vld [vmem:[#allocation8 + $0x304] ss:$48 sps:$4 sm:$0xff]   ;;  %v10612_v38 = vld [vmem:[#allocation8 + $0x30c] ss:$48 sps:$4 sm:$0xff]   ;;  %v10614_v39 = vld [vmem:[#allocation8 + $0x300] ss:$48 sps:$4 sm:$0xff]  }
 0x174   : > { %v10615_v40 = vld [vmem:[#allocation8 + $0x308] ss:$48 sps:$4 sm:$0xff]   ;;  %v10616_v41 = vld [vmem:[#allocation8 + $0x364] ss:$48 sps:$4 sm:$0xff]   ;;  %v10618_v42 = vld [vmem:[#allocation8 + $0x36c] ss:$48 sps:$4 sm:$0xff]  }
 0x175   : > { %v10620_v43 = vld [vmem:[#allocation8 + $0x360] ss:$48 sps:$4 sm:$0xff]   ;;  %v10621_v44 = vld [vmem:[#allocation8 + $0x368] ss:$48 sps:$4 sm:$0xff]   ;;  %v10622_v45 = vld [vmem:[#allocation8 + $0x3c4] ss:$48 sps:$4 sm:$0xff]  }
 0x176   : > { %2380 = vmatpush1.bf16.msra.mxu0 %v10584_v19  ;;  %2462 = vmatpush1.bf16.msra.mxu1 %v10585_v20  ;;  %v10624_v46 = vld [vmem:[#allocation8 + $0x3cc] ss:$48 sps:$4 sm:$0xff]   ;;  %v10626_v57 = vld [vmem:[#allocation8 + $0x3c0] ss:$48 sps:$4 sm:$0xff]   ;;  %v10627_v58 = vld [vmem:[#allocation8 + $0x3c8] ss:$48 sps:$4 sm:$0xff]   ;;  %v605_v19 = vlaneseq }
 0x177   : > { %2381 = vmatprep.subr.bf16.mxu0 %v10586_v21  ;;  %2463 = vmatprep.subr.bf16.mxu1 %v10588_v22  ;;  %v10628_v59 = vld [vmem:[#allocation8 + $0x424] ss:$48 sps:$4 sm:$0xff]   ;;  %v10630_v60 = vld [vmem:[#allocation8 + $0x42c] ss:$48 sps:$4 sm:$0xff]   ;;  %v10632_v61 = vld [vmem:[#allocation8 + $0x420] ss:$48 sps:$4 sm:$0xff]  }
 0x178   : > { %v10633_v62 = vld [vmem:[#allocation8 + $0x428] ss:$48 sps:$4 sm:$0xff]   ;;  %v10634_v63 = vld [vmem:[#allocation8 + $0x484] ss:$48 sps:$4 sm:$0xff]   ;;  %v10642_v4 = vld [vmem:[#allocation8 + $0x4ec] ss:$48 sps:$4 sm:$0xff]  }
 0x179   : > { %v10640_v3 = vld [vmem:[#allocation8 + $0x4e4] ss:$48 sps:$4 sm:$0xff]   ;;  %v10644_v5 = vld [vmem:[#allocation8 + $0x4e0] ss:$48 sps:$4 sm:$0xff]   ;;  %v10645_v6 = vld [vmem:[#allocation8 + $0x4e8] ss:$48 sps:$4 sm:$0xff]  }
 0x17a   : > { %2382 = vmatpush1.bf16.msra.mxu0 %v10590_v23  ;;  %2464 = vmatpush1.bf16.msra.mxu1 %v10591_v24  ;;  %v10646_v7 = vld [vmem:[#allocation8 + $0x544] ss:$48 sps:$4 sm:$0xff]   ;;  %v10648_v8 = vld [vmem:[#allocation8 + $0x54c] ss:$48 sps:$4 sm:$0xff]   ;;  %v10650_v9 = vld [vmem:[#allocation8 + $0x540] ss:$48 sps:$4 sm:$0xff]  }
 0x17b   : > { %2383 = vmatprep.subr.bf16.mxu0 %v10592_v25  ;;  %2465 = vmatprep.subr.bf16.mxu1 %v10594_v26  ;;  %v10651_v10 = vld [vmem:[#allocation8 + $0x548] ss:$48 sps:$4 sm:$0xff]   ;;  %v10652_v11 = vld [vmem:[#allocation8 + $0x5a4] ss:$48 sps:$4 sm:$0xff]   ;;  %v10654_v12 = vld [vmem:[#allocation8 + $0x5ac] ss:$48 sps:$4 sm:$0xff]  }
 0x17c   : > { %v10656_v13 = vld [vmem:[#allocation8 + $0x5a0] ss:$48 sps:$4 sm:$0xff]   ;;  %v10657_v14 = vld [vmem:[#allocation8 + $0x5a8] ss:$48 sps:$4 sm:$0xff]   ;;  %v10660_v15 = vld [vmem:[#allocation8 + $0x604] ss:$48 sps:$4 sm:$0xff]  }
 0x17d   : > { %v10663_v16 = vld [vmem:[#allocation8 + $0x60c] ss:$48 sps:$4 sm:$0xff]   ;;  %v12890_v21 = vshrl.u32 %v605_v19, 7  ;;  %v12898_v24 = vld [vmem:[#allocation5] sm:$0x7]  ;;  %s13203_s14 = scalar_lea.vmem [#allocation22], %s10396_s1 }
 0x17e   : > { %2384 = vmatpush1.bf16.msra.mxu0 %v10596_v27  ;;  %2466 = vmatpush1.bf16.msra.mxu1 %v10597_v28  ;;  %v12900_v25 = vld [vmem:[#allocation7] sm:$0x7]  ;;  %s10397_s30 = smul.u32 384, %s12497_s27  ;;  %s8925_s16 = sshll.u32 %s13203_s14, 4  ;;  %s13217_s16 = int_to_ptr.vmem [resolvable:$true] %s8925_s16 }
 0x17f   : > { %2385 = vmatprep.subr.bf16.mxu0 %v10598_v29  ;;  %2467 = vmatprep.subr.bf16.mxu1 %v10600_v30  ;;  %v12893_v22 = vsub.s32 1, %v12890_v21  ;;  %v12896_v23 = vsub.s32 0, %v12890_v21  ;;  %s13316_s2 = sld [smem:[#allocation36_spill]]  ;;  %s8911_s19 = scalar_lea.sflag [#allocation4], %s12826_s26 }
 0x180   : > { %s12299_s18 = scalar_lea.vmem %s13217_s16, 384  ;;  %p13317_p0 = scmp.ne.s32.totalorder %s13299_s17, 0 }
 0x181   : > { %v612_v26 = vrot.slane %v12898_v24, %v12893_v22  ;;  %v608_v27 = vrot.slane %v12898_v24, %v12896_v23  ;;  %v631_v30 = vrot.slane %v12900_v25, %v12893_v22  ;;  %p12300_p2 = scmp.ne.s32.totalorder %s13217_s16, %s12299_s18  ;;  %s12410_s27 = smov [#allocation22]  }
 0x182   : > { %2386 = vmatpush1.bf16.msra.mxu0 %v10602_v31  ;;  %2468 = vmatpush1.bf16.msra.mxu1 %v10603_v32  ;;  %v627_v32 = vrot.slane %v12900_v25, %v12896_v23  ;;  %s12303_s25 = sshll.u32 %s12410_s27, 4  ;;  %s12304_s25 = int_to_ptr.vmem [resolvable:$false] %s12303_s25 }
 0x183   : > { %2387 = vmatprep.subr.bf16.mxu0 %v10604_v33  ;;  %2469 = vmatprep.subr.bf16.mxu1 %v10606_v34  ;;  %p12301_p6 = pnand %p12300_p2, %p13317_p0  ;;  %s12305_s1 = scalar_lea.vmem %s12304_s25, 768 }
 0x184   : > { %p12306_p12 = scmp.lt.s32.totalorder %s13217_s16, %s12304_s25  ;;  %p12307_p8 = scmp.lt.s32.totalorder %s12305_s1, %s12299_s18 }
 0x185   : > { %s13215_s5 = scalar_lea.hbm %s13316_s2, %s10397_s30  ;;  %p12302_p11 = pneg %p12301_p6 }
 0x186   : > { %2388 = vmatpush1.bf16.msra.mxu0 %v10608_v35  ;;  %2470 = vmatpush1.bf16.msra.mxu1 %v10609_v36  ;;  %v10658_v36 = vld [vmem:[#allocation8 + $0x600] ss:$48 sps:$4 sm:$0xff]   ;;  %p12308_p5 = por %p12307_p8, %p12306_p12 }
 0x187   : > { %2389 = vmatprep.subr.bf16.mxu0 %v10610_v37  ;;  %2471 = vmatprep.subr.bf16.mxu1 %v10612_v38  ;;  %v10661_v37 = vld [vmem:[#allocation8 + $0x608] ss:$48 sps:$4 sm:$0xff]  }
 0x188   : > { %p12309_p9 = pnand %p12308_p5, %p12302_p11 }
 0x18a   : > { %2390 = vmatpush1.bf16.msra.mxu0 %v10614_v39  ;;  %2472 = vmatpush1.bf16.msra.mxu1 %v10615_v40  ;;  %v10666_v39 = vld [vmem:[#allocation8 + $0x664] ss:$48 sps:$4 sm:$0xff]   ;;  %v10669_v40 = vld [vmem:[#allocation8 + $0x66c] ss:$48 sps:$4 sm:$0xff]  }
 0x18b   : > { %2391 = vmatprep.subr.bf16.mxu0 %v10616_v41  ;;  %2473 = vmatprep.subr.bf16.mxu1 %v10618_v42 }
 0x18e   : > { %2392 = vmatpush1.bf16.msra.mxu0 %v10620_v43  ;;  %2474 = vmatpush1.bf16.msra.mxu1 %v10621_v44  ;;  %v10664_v43 = vld [vmem:[#allocation8 + $0x660] ss:$48 sps:$4 sm:$0xff]   ;;  %v10667_v44 = vld [vmem:[#allocation8 + $0x668] ss:$48 sps:$4 sm:$0xff]  }
 0x18f   : > { %2393 = vmatprep.subr.bf16.mxu0 %v10622_v45  ;;  %2475 = vmatprep.subr.bf16.mxu1 %v10624_v46  ;;  %v10672_v45 = vld [vmem:[#allocation8 + $0x6c4] ss:$48 sps:$4 sm:$0xff]   ;;  %v10675_v46 = vld [vmem:[#allocation8 + $0x6cc] ss:$48 sps:$4 sm:$0xff]  }
 0x192   : > { %2394 = vmatpush1.bf16.msra.mxu0 %v10626_v57  ;;  %2476 = vmatpush1.bf16.msra.mxu1 %v10627_v58  ;;  %v10682_v57 = vld [vmem:[#allocation8 + $0x780] ss:$48 sps:$4 sm:$0xff]   ;;  %v10685_v58 = vld [vmem:[#allocation8 + $0x788] ss:$48 sps:$4 sm:$0xff]  }
 0x193   : > { %2395 = vmatprep.subr.bf16.mxu0 %v10628_v59  ;;  %2477 = vmatprep.subr.bf16.mxu1 %v10630_v60  ;;  %v12927_v59 = vsub.s32 2, %v12890_v21  ;;  %v10690_v60 = vld [vmem:[#allocation8 + $0x7e4] ss:$48 sps:$4 sm:$0xff]  }
 0x196   : > { %2396 = vmatpush1.bf16.msra.mxu0 %v10632_v61  ;;  %2478 = vmatpush1.bf16.msra.mxu1 %v10633_v62  ;;  %v10693_v61 = vld [vmem:[#allocation8 + $0x7ec] ss:$48 sps:$4 sm:$0xff]   ;;  %v10688_v62 = vld [vmem:[#allocation8 + $0x7e0] ss:$48 sps:$4 sm:$0xff]  }
 0x197   : > { %2397 = vmatprep.subr.bf16.mxu0 %v10634_v63  ;;  %v10691_v63 = vld [vmem:[#allocation8 + $0x7e8] ss:$48 sps:$4 sm:$0xff]  }
 0x1f9   : > { %v585_v47 = vpop.xlane.xlu0 %584 }
 0x1fa   : > { %v587_v48 = vmul.f32 0.0026041667, %v585_v47  ;;  %v10670_v47 = vld [vmem:[#allocation8 + $0x6c0] ss:$48 sps:$4 sm:$0xff]  }
 0x1fc   : > { %v12875_v49 = vsub.f32 %v12863_v0, %v587_v48  ;;  %v12878_v50 = vsub.f32 %v12866_v1, %v587_v48  ;;  %v12881_v51 = vsub.f32 %v12869_v2, %v587_v48  ;;  %v10636_v0 = vld [vmem:[#allocation8 + $0x48c] ss:$48 sps:$4 sm:$0xff]   ;;  %v10638_v1 = vld [vmem:[#allocation8 + $0x480] ss:$48 sps:$4 sm:$0xff]   ;;  %v10639_v2 = vld [vmem:[#allocation8 + $0x488] ss:$48 sps:$4 sm:$0xff]  }
 0x1fd   : > { %2479 = vmatprep.subr.bf16.mxu1 %v10636_v0  ;;  %2398 = vmatpush1.bf16.msra.mxu0 %v10638_v1  ;;  %v12407_v48 = vmov 0   ;;  %v10696_v0 = vld [vmem:[#allocation8 + $0x844] ss:$48 sps:$4 sm:$0xff]   ;;  %v10699_v1 = vld [vmem:[#allocation8 + $0x84c] ss:$48 sps:$4 sm:$0xff]  }
 0x1fe   : > { %v591_v52 = vmul.f32 %v12875_v49, %v12875_v49  ;;  %v592_v53 = vmul.f32 %v12878_v50, %v12878_v50  ;;  %v593_v54 = vmul.f32 %v12881_v51, %v12881_v51  ;;  %2480 = vmatpush1.bf16.msra.mxu1 %v10639_v2  ;;  %2399 = vmatprep.subr.bf16.mxu0 %v10640_v3 }
 0x1ff   : > { %2481 = vmatprep.subr.bf16.mxu1 %v10642_v4  ;;  %v616_v3 = vrot.slane %v12898_v24, %v12927_v59  ;;  %v10694_v4 = vld [vmem:[#allocation8 + $0x840] ss:$48 sps:$4 sm:$0xff]   ;;  %v10715_v24 = vld [vmem:[#allocation8 + $0x78] ss:$48 sps:$4 sm:$0xff]  }
 0x200   : > { %v594_v55 = vadd.f32 %v592_v53, %v591_v52  ;;  %v10681_v52 = vld [vmem:[#allocation8 + $0x72c] ss:$48 sps:$4 sm:$0xff]   ;;  %v10676_v53 = vld [vmem:[#allocation8 + $0x720] ss:$48 sps:$4 sm:$0xff]  }
 0x201   : > { %2400 = vmatpush1.bf16.msra.mxu0 %v10644_v5  ;;  %v10697_v5 = vld [vmem:[#allocation8 + $0x848] ss:$48 sps:$4 sm:$0xff]  }
 0x202   : > { %v595_v56 = vadd.f32 %v594_v55, %v593_v54  ;;  %2482 = vmatpush1.bf16.msra.mxu1 %v10645_v6  ;;  %2401 = vmatprep.subr.bf16.mxu0 %v10646_v7  ;;  %v10679_v54 = vld [vmem:[#allocation8 + $0x728] ss:$48 sps:$4 sm:$0xff]   ;;  %v10684_v55 = vld [vmem:[#allocation8 + $0x784] ss:$48 sps:$4 sm:$0xff]   ;;  %v10705_v7 = vld [vmem:[#allocation8 + $0x8ac] ss:$48 sps:$4 sm:$0xff]  }
 0x203   : > { %2483 = vmatprep.subr.bf16.mxu1 %v10648_v8  ;;  %v10702_v6 = vld [vmem:[#allocation8 + $0x8a4] ss:$48 sps:$4 sm:$0xff]  }
 0x204   : > { %596 = vadd.xlane.f32.xlu0 %v595_v56  ;;  %v10687_v56 = vld [vmem:[#allocation8 + $0x78c] ss:$48 sps:$4 sm:$0xff]  }
 0x205   : > { %2402 = vmatpush1.bf16.msra.mxu0 %v10650_v9  ;;  %v635_v9 = vrot.slane %v12900_v25, %v12927_v59  ;;  %v10720_v25 = vld [vmem:[#allocation8 + $0xd4] ss:$48 sps:$4 sm:$0xff]  }
 0x206   : > { %2484 = vmatpush1.bf16.msra.mxu1 %v10651_v10  ;;  %2403 = vmatprep.subr.bf16.mxu0 %v10652_v11  ;;  %v10700_v10 = vld [vmem:[#allocation8 + $0x8a0] ss:$48 sps:$4 sm:$0xff]   ;;  %v10703_v11 = vld [vmem:[#allocation8 + $0x8a8] ss:$48 sps:$4 sm:$0xff]  }
 0x207   : > { %2485 = vmatprep.subr.bf16.mxu1 %v10654_v12  ;;  %v10708_v12 = vld [vmem:[#allocation8 + $0x14] ss:$48 sps:$4 sm:$0xff]  }
 0x209   : > { %2404 = vmatpush1.bf16.msra.mxu0 %v10656_v13  ;;  %v10711_v13 = vld [vmem:[#allocation8 + $0x1c] ss:$48 sps:$4 sm:$0xff]  }
 0x20a   : > { %2486 = vmatpush1.bf16.msra.mxu1 %v10657_v14  ;;  %2414 = vmatprep.subr.bf16.mxu0 %v10660_v15  ;;  %v10706_v14 = vld [vmem:[#allocation8 + $0x10] ss:$48 sps:$4 sm:$0xff]  }
 0x20b   : > { %2496 = vmatprep.subr.bf16.mxu1 %v10663_v16  ;;  %v10709_v16 = vld [vmem:[#allocation8 + $0x18] ss:$48 sps:$4 sm:$0xff]  }
 0x291   : > { %v597_v17 = vpop.xlane.xlu0 %596 }
 0x292   : > { %v598_v18 = vmul.f32 0.0026041667, %v597_v17  ;;  %v10714_v17 = vld [vmem:[#allocation8 + $0x74] ss:$48 sps:$4 sm:$0xff]  }
 0x294   : > { %v599_v20 = vadd.f32 1e-05, %v598_v18  ;;  %v10712_v18 = vld [vmem:[#allocation8 + $0x70] ss:$48 sps:$4 sm:$0xff]  }
 0x296   : > { %11938 = vrsqrt.f32 %v599_v20  ;;  %v10717_v20 = vld [vmem:[#allocation8 + $0x7c] ss:$48 sps:$4 sm:$0xff]  }
 0x2a0   : > { %v12906_v28 = vpop.eup %11938 }
 0x2a1   : > { %v602_v29 = vmul.f32 %v12906_v28, %v12878_v50  ;;  %v601_v31 = vmul.f32 %v12906_v28, %v12875_v49  ;;  %v10673_v49 = vld [vmem:[#allocation8 + $0x6c8] ss:$48 sps:$4 sm:$0xff]   ;;  %v10678_v50 = vld [vmem:[#allocation8 + $0x724] ss:$48 sps:$4 sm:$0xff]   ;;  %v603_v2 = vmul.f32 %v12906_v28, %v12881_v51 }
 0x2a2   : > { %v10721_v28 = vld [vmem:[#allocation8 + $0xd8] ss:$48 sps:$4 sm:$0xff]  }
 0x2a3   : > { %v621_v33 = vmul.f32 %v612_v26, %v602_v29  ;;  %v620_v34 = vmul.f32 %v608_v27, %v601_v31  ;;  %v622_v8 = vmul.f32 %v616_v3, %v603_v2  ;;  %v10718_v26 = vld [vmem:[#allocation8 + $0xd0] ss:$48 sps:$4 sm:$0xff]   ;;  %v10723_v27 = vld [vmem:[#allocation8 + $0xdc] ss:$48 sps:$4 sm:$0xff]   ;;  %v10726_v29 = vld [vmem:[#allocation8 + $0x134] ss:$48 sps:$4 sm:$0xff]  }
 0x2a4   : > { %v10729_v31 = vld [vmem:[#allocation8 + $0x13c] ss:$48 sps:$4 sm:$0xff]   ;;  %v10774_v2 = vld [vmem:[#allocation8 + $0x434] ss:$48 sps:$4 sm:$0xff]   ;;  %v10772_v3 = vld [vmem:[#allocation8 + $0x430] ss:$48 sps:$4 sm:$0xff]  }
 0x2a5   : > { %v640_v35 = vadd.f32 %v631_v30, %v621_v33  ;;  %v639_v38 = vadd.f32 %v627_v32, %v620_v34  ;;  %v641_v51 = vadd.f32 %v635_v9, %v622_v8  ;;  %v10724_v30 = vld [vmem:[#allocation8 + $0x130] ss:$48 sps:$4 sm:$0xff]   ;;  %v10727_v32 = vld [vmem:[#allocation8 + $0x138] ss:$48 sps:$4 sm:$0xff]   ;;  %v10732_v33 = vld [vmem:[#allocation8 + $0x194] ss:$48 sps:$4 sm:$0xff]  }
 0x2a6   : > { %v10730_v34 = vld [vmem:[#allocation8 + $0x190] ss:$48 sps:$4 sm:$0xff]   ;;  %v10783_v8 = vld [vmem:[#allocation8 + $0x49c] ss:$48 sps:$4 sm:$0xff]   ;;  %v10781_v9 = vld [vmem:[#allocation8 + $0x498] ss:$48 sps:$4 sm:$0xff]  }
 0x2a7   : > { %v12916_v41 = vpack.c.bf16 %v640_v35, %v640_v35  ;;  %v12918_v42 = vpack.c.bf16 %v639_v38, %v639_v38  ;;  %v12935_v15 = vpack.c.bf16 %v641_v51, %v641_v51  ;;  %v10735_v35 = vld [vmem:[#allocation8 + $0x19c] ss:$48 sps:$4 sm:$0xff]   ;;  %v10736_v38 = vld [vmem:[#allocation8 + $0x1f0] ss:$48 sps:$4 sm:$0xff]  }
 0x2a8   : > { %v10789_v51 = vld [vmem:[#allocation8 + $0x4fc] ss:$48 sps:$4 sm:$0xff]  }
 0x2a9   : > { %2405 = vmatprep.mubr.bf16.mxu0 %v12916_v41  ;;  %2487 = vmatprep.mubr.bf16.mxu1 %v12916_v41 }
 0x2aa   : > { %2406 = vmatmul.mubr.bf16.vlgmr.msra.gmra.mrb[0].mxu0 %v12918_v42  ;;  %2488 = vmatmul.mubr.bf16.vlgmr.msra.gmra.mrb[0].mxu1 %v12918_v42 }
 0x2ab   : > { %2415 = vmatpush1.bf16.msra.mxu0 %v10658_v36  ;;  %2497 = vmatpush1.bf16.msra.mxu1 %v10661_v37  ;;  %v10733_v36 = vld [vmem:[#allocation8 + $0x198] ss:$48 sps:$4 sm:$0xff]   ;;  %v10738_v37 = vld [vmem:[#allocation8 + $0x1f4] ss:$48 sps:$4 sm:$0xff]  }
 0x2ac   : > { %2416 = vmatprep.subr.bf16.mxu0 %v10666_v39  ;;  %2498 = vmatprep.subr.bf16.mxu1 %v10669_v40  ;;  %v10741_v39 = vld [vmem:[#allocation8 + $0x1fc] ss:$48 sps:$4 sm:$0xff]   ;;  %v10739_v40 = vld [vmem:[#allocation8 + $0x1f8] ss:$48 sps:$4 sm:$0xff]  }
 0x2ad   : > { %2446 = vmatprep.mubr.bf16.mxu0 %v12407_v48  ;;  %2528 = vmatprep.mubr.bf16.mxu1 %v12407_v48 }
 0x2af   : > { %2417 = vmatpush1.bf16.msra.mxu0 %v10664_v43  ;;  %2499 = vmatpush1.bf16.msra.mxu1 %v10667_v44  ;;  %v10744_v43 = vld [vmem:[#allocation8 + $0x254] ss:$48 sps:$4 sm:$0xff]   ;;  %v10742_v44 = vld [vmem:[#allocation8 + $0x250] ss:$48 sps:$4 sm:$0xff]  }
 0x2b0   : > { %2418 = vmatprep.subr.bf16.mxu0 %v10672_v45  ;;  %2500 = vmatprep.subr.bf16.mxu1 %v10675_v46  ;;  %v10747_v45 = vld [vmem:[#allocation8 + $0x25c] ss:$48 sps:$4 sm:$0xff]   ;;  %v10745_v46 = vld [vmem:[#allocation8 + $0x258] ss:$48 sps:$4 sm:$0xff]  }
 0x2b3   : > { %2419 = vmatpush1.bf16.msra.mxu0 %v10670_v47  ;;  %2501 = vmatpush1.bf16.msra.mxu1 %v10673_v49  ;;  %v10750_v47 = vld [vmem:[#allocation8 + $0x2b4] ss:$48 sps:$4 sm:$0xff]   ;;  %v10748_v49 = vld [vmem:[#allocation8 + $0x2b0] ss:$48 sps:$4 sm:$0xff]  }
 0x2b4   : > { %2420 = vmatprep.subr.bf16.mxu0 %v10678_v50  ;;  %2502 = vmatprep.subr.bf16.mxu1 %v10681_v52  ;;  %v10753_v50 = vld [vmem:[#allocation8 + $0x2bc] ss:$48 sps:$4 sm:$0xff]   ;;  %v10751_v52 = vld [vmem:[#allocation8 + $0x2b8] ss:$48 sps:$4 sm:$0xff]  }
 0x2b7   : > { %2421 = vmatpush1.bf16.msra.mxu0 %v10676_v53  ;;  %2503 = vmatpush1.bf16.msra.mxu1 %v10679_v54  ;;  %v10756_v53 = vld [vmem:[#allocation8 + $0x314] ss:$48 sps:$4 sm:$0xff]   ;;  %v10754_v54 = vld [vmem:[#allocation8 + $0x310] ss:$48 sps:$4 sm:$0xff]  }
 0x2b8   : > { %2422 = vmatprep.subr.bf16.mxu0 %v10684_v55  ;;  %2504 = vmatprep.subr.bf16.mxu1 %v10687_v56  ;;  %v10759_v55 = vld [vmem:[#allocation8 + $0x31c] ss:$48 sps:$4 sm:$0xff]   ;;  %v10757_v56 = vld [vmem:[#allocation8 + $0x318] ss:$48 sps:$4 sm:$0xff]  }
 0x2bb   : > { %2423 = vmatpush1.bf16.msra.mxu0 %v10682_v57  ;;  %2505 = vmatpush1.bf16.msra.mxu1 %v10685_v58  ;;  %v10762_v57 = vld [vmem:[#allocation8 + $0x374] ss:$48 sps:$4 sm:$0xff]   ;;  %v10765_v58 = vld [vmem:[#allocation8 + $0x37c] ss:$48 sps:$4 sm:$0xff]  }
 0x2bc   : > { %2424 = vmatprep.subr.bf16.mxu0 %v10690_v60  ;;  %2506 = vmatprep.subr.bf16.mxu1 %v10693_v61  ;;  %v10760_v60 = vld [vmem:[#allocation8 + $0x370] ss:$48 sps:$4 sm:$0xff]   ;;  %v10763_v61 = vld [vmem:[#allocation8 + $0x378] ss:$48 sps:$4 sm:$0xff]  }
 0x2bf   : > { %2425 = vmatpush1.bf16.msra.mxu0 %v10688_v62  ;;  %2507 = vmatpush1.bf16.msra.mxu1 %v10691_v63  ;;  %v10768_v62 = vld [vmem:[#allocation8 + $0x3d4] ss:$48 sps:$4 sm:$0xff]   ;;  %v10766_v63 = vld [vmem:[#allocation8 + $0x3d0] ss:$48 sps:$4 sm:$0xff]  }
 0x2c0   : > { %2426 = vmatprep.subr.bf16.mxu0 %v10696_v0  ;;  %2508 = vmatprep.subr.bf16.mxu1 %v10699_v1  ;;  %v10771_v0 = vld [vmem:[#allocation8 + $0x3dc] ss:$48 sps:$4 sm:$0xff]   ;;  %v10769_v1 = vld [vmem:[#allocation8 + $0x3d8] ss:$48 sps:$4 sm:$0xff]  }
 0x2c3   : > { %2427 = vmatpush1.bf16.msra.mxu0 %v10694_v4  ;;  %2509 = vmatpush1.bf16.msra.mxu1 %v10697_v5  ;;  %v10777_v4 = vld [vmem:[#allocation8 + $0x43c] ss:$48 sps:$4 sm:$0xff]   ;;  %v10775_v5 = vld [vmem:[#allocation8 + $0x438] ss:$48 sps:$4 sm:$0xff]  }
 0x2c4   : > { %2428 = vmatprep.subr.bf16.mxu0 %v10702_v6  ;;  %2510 = vmatprep.subr.bf16.mxu1 %v10705_v7  ;;  %v10780_v6 = vld [vmem:[#allocation8 + $0x494] ss:$48 sps:$4 sm:$0xff]   ;;  %v10778_v7 = vld [vmem:[#allocation8 + $0x490] ss:$48 sps:$4 sm:$0xff]  }
 0x2c7   : > { %2429 = vmatpush1.bf16.msra.mxu0 %v10700_v10  ;;  %2511 = vmatpush1.bf16.msra.mxu1 %v10703_v11  ;;  %v10786_v10 = vld [vmem:[#allocation8 + $0x4f4] ss:$48 sps:$4 sm:$0xff]   ;;  %v10784_v11 = vld [vmem:[#allocation8 + $0x4f0] ss:$48 sps:$4 sm:$0xff]  }
 0x2c8   : > { %2537 = vmatprep.subr.bf16.mxu0 %v10708_v12  ;;  %2619 = vmatprep.subr.bf16.mxu1 %v10711_v13  ;;  %v10787_v12 = vld [vmem:[#allocation8 + $0x4f8] ss:$48 sps:$4 sm:$0xff]   ;;  %v10792_v13 = vld [vmem:[#allocation8 + $0x554] ss:$48 sps:$4 sm:$0xff]  }
 0x2ca   : > { %2447 = vmatmul.mubr.bf16.vlgmr.msra.gmra.mrb[0].mxu0 %v12935_v15  ;;  %2529 = vmatmul.mubr.bf16.vlgmr.msra.gmra.mrb[0].mxu1 %v12935_v15 }
 0x2cb   : > { %2538 = vmatpush1.bf16.msra.mxu0 %v10706_v14  ;;  %2569 = vmatprep.mubr.bf16.mxu0 %v12916_v41  ;;  %v10790_v14 = vld [vmem:[#allocation8 + $0x550] ss:$48 sps:$4 sm:$0xff]  }
 0x2cc   : > { %2620 = vmatpush1.bf16.msra.mxu1 %v10709_v16  ;;  %2651 = vmatprep.mubr.bf16.mxu1 %v12916_v41  ;;  %v10795_v16 = vld [vmem:[#allocation8 + $0x55c] ss:$48 sps:$4 sm:$0xff]  }
 0x2cd   : > { %2539 = vmatprep.subr.bf16.mxu0 %v10714_v17  ;;  %2621 = vmatprep.subr.bf16.mxu1 %v10717_v20  ;;  %v10793_v17 = vld [vmem:[#allocation8 + $0x558] ss:$48 sps:$4 sm:$0xff]   ;;  %v10796_v20 = vld [vmem:[#allocation8 + $0x5b0] ss:$48 sps:$4 sm:$0xff]  }
 0x2cf   : > { %2540 = vmatpush1.bf16.msra.mxu0 %v10712_v18  ;;  %v10798_v18 = vld [vmem:[#allocation8 + $0x5b4] ss:$48 sps:$4 sm:$0xff]  }
 0x2d0   : > { %2622 = vmatpush1.bf16.msra.mxu1 %v10715_v24  ;;  %2541 = vmatprep.subr.bf16.mxu0 %v10720_v25  ;;  %v10801_v24 = vld [vmem:[#allocation8 + $0x5bc] ss:$48 sps:$4 sm:$0xff]   ;;  %v10799_v25 = vld [vmem:[#allocation8 + $0x5b8] ss:$48 sps:$4 sm:$0xff]  }
 0x2d1   : > { %2623 = vmatprep.subr.bf16.mxu1 %v10723_v27  ;;  %v10807_v27 = vld [vmem:[#allocation8 + $0x61c] ss:$48 sps:$4 sm:$0xff]  }
 0x2d3   : > { %2542 = vmatpush1.bf16.msra.mxu0 %v10718_v26  ;;  %v10804_v26 = vld [vmem:[#allocation8 + $0x614] ss:$48 sps:$4 sm:$0xff]  }
 0x2d4   : > { %2624 = vmatpush1.bf16.msra.mxu1 %v10721_v28  ;;  %2543 = vmatprep.subr.bf16.mxu0 %v10726_v29  ;;  %v10802_v28 = vld [vmem:[#allocation8 + $0x610] ss:$48 sps:$4 sm:$0xff]   ;;  %v10805_v29 = vld [vmem:[#allocation8 + $0x618] ss:$48 sps:$4 sm:$0xff]  }
 0x2d5   : > { %2625 = vmatprep.subr.bf16.mxu1 %v10729_v31  ;;  %v10813_v31 = vld [vmem:[#allocation8 + $0x67c] ss:$48 sps:$4 sm:$0xff]  }
 0x2d7   : > { %2544 = vmatpush1.bf16.msra.mxu0 %v10724_v30  ;;  %v10810_v30 = vld [vmem:[#allocation8 + $0x674] ss:$48 sps:$4 sm:$0xff]  }
 0x2d8   : > { %2626 = vmatpush1.bf16.msra.mxu1 %v10727_v32  ;;  %2545 = vmatprep.subr.bf16.mxu0 %v10732_v33  ;;  %v10808_v32 = vld [vmem:[#allocation8 + $0x670] ss:$48 sps:$4 sm:$0xff]   ;;  %v10811_v33 = vld [vmem:[#allocation8 + $0x678] ss:$48 sps:$4 sm:$0xff]  }
 0x2d9   : > { %2627 = vmatprep.subr.bf16.mxu1 %v10735_v35  ;;  %v10819_v35 = vld [vmem:[#allocation8 + $0x6dc] ss:$48 sps:$4 sm:$0xff]  }
 0x2db   : > { %2546 = vmatpush1.bf16.msra.mxu0 %v10730_v34  ;;  %v10816_v34 = vld [vmem:[#allocation8 + $0x6d4] ss:$48 sps:$4 sm:$0xff]  }
 0x2dc   : > { %2628 = vmatpush1.bf16.msra.mxu1 %v10733_v36  ;;  %2547 = vmatprep.subr.bf16.mxu0 %v10738_v37  ;;  %v10814_v36 = vld [vmem:[#allocation8 + $0x6d0] ss:$48 sps:$4 sm:$0xff]   ;;  %v10817_v37 = vld [vmem:[#allocation8 + $0x6d8] ss:$48 sps:$4 sm:$0xff]  }
 0x2dd   : > { %2629 = vmatprep.subr.bf16.mxu1 %v10741_v39  ;;  %v10825_v39 = vld [vmem:[#allocation8 + $0x73c] ss:$48 sps:$4 sm:$0xff]  }
 0x2df   : > { %2548 = vmatpush1.bf16.msra.mxu0 %v10736_v38  ;;  %v10822_v38 = vld [vmem:[#allocation8 + $0x734] ss:$48 sps:$4 sm:$0xff]  }
 0x2e0   : > { %2630 = vmatpush1.bf16.msra.mxu1 %v10739_v40  ;;  %2549 = vmatprep.subr.bf16.mxu0 %v10744_v43  ;;  %v10820_v40 = vld [vmem:[#allocation8 + $0x730] ss:$48 sps:$4 sm:$0xff]   ;;  %v10823_v43 = vld [vmem:[#allocation8 + $0x738] ss:$48 sps:$4 sm:$0xff]  }
 0x2e1   : > { %2631 = vmatprep.subr.bf16.mxu1 %v10747_v45  ;;  %v10831_v45 = vld [vmem:[#allocation8 + $0x79c] ss:$48 sps:$4 sm:$0xff]  }
 0x2e3   : > { %2550 = vmatpush1.bf16.msra.mxu0 %v10742_v44  ;;  %v10828_v44 = vld [vmem:[#allocation8 + $0x794] ss:$48 sps:$4 sm:$0xff]  }
 0x2e4   : > { %2632 = vmatpush1.bf16.msra.mxu1 %v10745_v46  ;;  %2551 = vmatprep.subr.bf16.mxu0 %v10750_v47  ;;  %v10826_v46 = vld [vmem:[#allocation8 + $0x790] ss:$48 sps:$4 sm:$0xff]   ;;  %v10829_v47 = vld [vmem:[#allocation8 + $0x798] ss:$48 sps:$4 sm:$0xff]  }
 0x2e5   : > { %2633 = vmatprep.subr.bf16.mxu1 %v10753_v50  ;;  %v10837_v50 = vld [vmem:[#allocation8 + $0x7fc] ss:$48 sps:$4 sm:$0xff]  }
 0x2e7   : > { %2552 = vmatpush1.bf16.msra.mxu0 %v10748_v49  ;;  %v10834_v49 = vld [vmem:[#allocation8 + $0x7f4] ss:$48 sps:$4 sm:$0xff]  }
 0x2e8   : > { %2634 = vmatpush1.bf16.msra.mxu1 %v10751_v52  ;;  %2553 = vmatprep.subr.bf16.mxu0 %v10756_v53  ;;  %v10832_v52 = vld [vmem:[#allocation8 + $0x7f0] ss:$48 sps:$4 sm:$0xff]   ;;  %v10835_v53 = vld [vmem:[#allocation8 + $0x7f8] ss:$48 sps:$4 sm:$0xff]  }
 0x2e9   : > { %2635 = vmatprep.subr.bf16.mxu1 %v10759_v55  ;;  %v10843_v55 = vld [vmem:[#allocation8 + $0x85c] ss:$48 sps:$4 sm:$0xff]  }
 0x2eb   : > { %2554 = vmatpush1.bf16.msra.mxu0 %v10754_v54  ;;  %v10840_v54 = vld [vmem:[#allocation8 + $0x854] ss:$48 sps:$4 sm:$0xff]  }
 0x2ec   : > { %2636 = vmatpush1.bf16.msra.mxu1 %v10757_v56  ;;  %2555 = vmatprep.subr.bf16.mxu0 %v10762_v57  ;;  %v10838_v56 = vld [vmem:[#allocation8 + $0x850] ss:$48 sps:$4 sm:$0xff]   ;;  %v10841_v57 = vld [vmem:[#allocation8 + $0x858] ss:$48 sps:$4 sm:$0xff]  }
 0x2ed   : > { %2637 = vmatprep.subr.bf16.mxu1 %v10765_v58  ;;  %v10846_v58 = vld [vmem:[#allocation8 + $0x8b4] ss:$48 sps:$4 sm:$0xff]  }
 0x2ef   : > { %2556 = vmatpush1.bf16.msra.mxu0 %v10760_v60  ;;  %v10849_v60 = vld [vmem:[#allocation8 + $0x8bc] ss:$48 sps:$4 sm:$0xff]  }
 0x2f0   : > { %2638 = vmatpush1.bf16.msra.mxu1 %v10763_v61  ;;  %2557 = vmatprep.subr.bf16.mxu0 %v10768_v62  ;;  %v10844_v61 = vld [vmem:[#allocation8 + $0x8b0] ss:$48 sps:$4 sm:$0xff]   ;;  %v10847_v62 = vld [vmem:[#allocation8 + $0x8b8] ss:$48 sps:$4 sm:$0xff]  }
 0x2f1   : > { %2639 = vmatprep.subr.bf16.mxu1 %v10771_v0  ;;  %v10855_v0 = vld [vmem:[#allocation8 + $0x2c] ss:$48 sps:$4 sm:$0xff]  }
 0x2f3   : > { %2558 = vmatpush1.bf16.msra.mxu0 %v10766_v63  ;;  %v10852_v63 = vld [vmem:[#allocation8 + $0x24] ss:$48 sps:$4 sm:$0xff]  }
 0x2f4   : > { %2640 = vmatpush1.bf16.msra.mxu1 %v10769_v1  ;;  %2559 = vmatprep.subr.bf16.mxu0 %v10774_v2  ;;  %v10850_v1 = vld [vmem:[#allocation8 + $0x20] ss:$48 sps:$4 sm:$0xff]   ;;  %v10853_v2 = vld [vmem:[#allocation8 + $0x28] ss:$48 sps:$4 sm:$0xff]  }
 0x2f5   : > { %2641 = vmatprep.subr.bf16.mxu1 %v10777_v4  ;;  %v10861_v4 = vld [vmem:[#allocation8 + $0x8c] ss:$48 sps:$4 sm:$0xff]  }
 0x2f7   : > { %2560 = vmatpush1.bf16.msra.mxu0 %v10772_v3  ;;  %v10858_v3 = vld [vmem:[#allocation8 + $0x84] ss:$48 sps:$4 sm:$0xff]  }
 0x2f8   : > { %2642 = vmatpush1.bf16.msra.mxu1 %v10775_v5  ;;  %2561 = vmatprep.subr.bf16.mxu0 %v10780_v6  ;;  %v10856_v5 = vld [vmem:[#allocation8 + $0x80] ss:$48 sps:$4 sm:$0xff]   ;;  %v10859_v6 = vld [vmem:[#allocation8 + $0x88] ss:$48 sps:$4 sm:$0xff]  }
 0x2f9   : > { %2643 = vmatprep.subr.bf16.mxu1 %v10783_v8  ;;  %v10867_v8 = vld [vmem:[#allocation8 + $0xec] ss:$48 sps:$4 sm:$0xff]  }
 0x2fb   : > { %2562 = vmatpush1.bf16.msra.mxu0 %v10778_v7  ;;  %v10864_v7 = vld [vmem:[#allocation8 + $0xe4] ss:$48 sps:$4 sm:$0xff]  }
 0x2fc   : > { %2644 = vmatpush1.bf16.msra.mxu1 %v10781_v9  ;;  %2563 = vmatprep.subr.bf16.mxu0 %v10786_v10  ;;  %v10862_v9 = vld [vmem:[#allocation8 + $0xe0] ss:$48 sps:$4 sm:$0xff]   ;;  %v10865_v10 = vld [vmem:[#allocation8 + $0xe8] ss:$48 sps:$4 sm:$0xff]  }
 0x2fd   : > { %2645 = vmatprep.subr.bf16.mxu1 %v10789_v51  ;;  %v10873_v51 = vld [vmem:[#allocation8 + $0x14c] ss:$48 sps:$4 sm:$0xff]  }
 0x2ff   : > { %2564 = vmatpush1.bf16.msra.mxu0 %v10784_v11  ;;  %v10870_v11 = vld [vmem:[#allocation8 + $0x144] ss:$48 sps:$4 sm:$0xff]  }
 0x300   : > { %2646 = vmatpush1.bf16.msra.mxu1 %v10787_v12  ;;  %2565 = vmatprep.subr.bf16.mxu0 %v10792_v13  ;;  %v10868_v12 = vld [vmem:[#allocation8 + $0x140] ss:$48 sps:$4 sm:$0xff]   ;;  %v10871_v13 = vld [vmem:[#allocation8 + $0x148] ss:$48 sps:$4 sm:$0xff]  }
 0x301   : > { %2647 = vmatprep.subr.bf16.mxu1 %v10795_v16  ;;  %v10879_v16 = vld [vmem:[#allocation8 + $0x1ac] ss:$48 sps:$4 sm:$0xff]  }
 0x303   : > { %2566 = vmatpush1.bf16.msra.mxu0 %v10790_v14  ;;  %v10876_v14 = vld [vmem:[#allocation8 + $0x1a4] ss:$48 sps:$4 sm:$0xff]  }
 0x304   : > { %2648 = vmatpush1.bf16.msra.mxu1 %v10793_v17  ;;  %2567 = vmatprep.subr.bf16.mxu0 %v10798_v18  ;;  %v10877_v17 = vld [vmem:[#allocation8 + $0x1a8] ss:$48 sps:$4 sm:$0xff]   ;;  %v10882_v18 = vld [vmem:[#allocation8 + $0x204] ss:$48 sps:$4 sm:$0xff]  }
 0x305   : > { %2649 = vmatprep.subr.bf16.mxu1 %v10801_v24  ;;  %v10880_v24 = vld [vmem:[#allocation8 + $0x200] ss:$48 sps:$4 sm:$0xff]  }
 0x307   : > { %2568 = vmatpush1.bf16.msra.mxu0 %v10796_v20  ;;  %v10885_v20 = vld [vmem:[#allocation8 + $0x20c] ss:$48 sps:$4 sm:$0xff]  }
 0x308   : > { %2650 = vmatpush1.bf16.msra.mxu1 %v10799_v25  ;;  %2578 = vmatprep.subr.bf16.mxu0 %v10804_v26  ;;  %v10883_v25 = vld [vmem:[#allocation8 + $0x208] ss:$48 sps:$4 sm:$0xff]   ;;  %v10888_v26 = vld [vmem:[#allocation8 + $0x264] ss:$48 sps:$4 sm:$0xff]  }
 0x309   : > { %2660 = vmatprep.subr.bf16.mxu1 %v10807_v27  ;;  %v10891_v27 = vld [vmem:[#allocation8 + $0x26c] ss:$48 sps:$4 sm:$0xff]  }
 0x30a   : > { %2570 = vmatmul.mubr.bf16.vlgmr.msra.gmra.mrb[4].mxu0 %v12918_v42 }
 0x30b   : > { %2652 = vmatmul.mubr.bf16.vlgmr.msra.gmra.mrb[4].mxu1 %v12918_v42  ;;  %2579 = vmatpush1.bf16.msra.mxu0 %v10802_v28  ;;  %v10886_v28 = vld [vmem:[#allocation8 + $0x260] ss:$48 sps:$4 sm:$0xff]  }
 0x30c   : > { %2661 = vmatpush1.bf16.msra.mxu1 %v10805_v29  ;;  %2580 = vmatprep.subr.bf16.mxu0 %v10810_v30  ;;  %v10889_v29 = vld [vmem:[#allocation8 + $0x268] ss:$48 sps:$4 sm:$0xff]   ;;  %v10894_v30 = vld [vmem:[#allocation8 + $0x2c4] ss:$48 sps:$4 sm:$0xff]  }
 0x30d   : > { %2662 = vmatprep.subr.bf16.mxu1 %v10813_v31  ;;  %2610 = vmatprep.mubr.bf16.mxu0 %v12407_v48  ;;  %v10897_v31 = vld [vmem:[#allocation8 + $0x2cc] ss:$48 sps:$4 sm:$0xff]  }
 0x30e   : > { %2692 = vmatprep.mubr.bf16.mxu1 %v12407_v48 }
 0x30f   : > { %2581 = vmatpush1.bf16.msra.mxu0 %v10808_v32  ;;  %v10892_v32 = vld [vmem:[#allocation8 + $0x2c0] ss:$48 sps:$4 sm:$0xff]  }
 0x310   : > { %2663 = vmatpush1.bf16.msra.mxu1 %v10811_v33  ;;  %2582 = vmatprep.subr.bf16.mxu0 %v10816_v34  ;;  %v10895_v33 = vld [vmem:[#allocation8 + $0x2c8] ss:$48 sps:$4 sm:$0xff]   ;;  %v10900_v34 = vld [vmem:[#allocation8 + $0x324] ss:$48 sps:$4 sm:$0xff]  }
 0x311   : > { %2664 = vmatprep.subr.bf16.mxu1 %v10819_v35  ;;  %v10903_v35 = vld [vmem:[#allocation8 + $0x32c] ss:$48 sps:$4 sm:$0xff]  }
 0x313   : > { %2583 = vmatpush1.bf16.msra.mxu0 %v10814_v36  ;;  %v10898_v36 = vld [vmem:[#allocation8 + $0x320] ss:$48 sps:$4 sm:$0xff]  }
 0x314   : > { %2665 = vmatpush1.bf16.msra.mxu1 %v10817_v37  ;;  %2584 = vmatprep.subr.bf16.mxu0 %v10822_v38  ;;  %v10901_v37 = vld [vmem:[#allocation8 + $0x328] ss:$48 sps:$4 sm:$0xff]   ;;  %v10906_v38 = vld [vmem:[#allocation8 + $0x384] ss:$48 sps:$4 sm:$0xff]  }
 0x315   : > { %2666 = vmatprep.subr.bf16.mxu1 %v10825_v39  ;;  %v10909_v39 = vld [vmem:[#allocation8 + $0x38c] ss:$48 sps:$4 sm:$0xff]  }
 0x317   : > { %2585 = vmatpush1.bf16.msra.mxu0 %v10820_v40  ;;  %v10904_v40 = vld [vmem:[#allocation8 + $0x380] ss:$48 sps:$4 sm:$0xff]  }
 0x318   : > { %2667 = vmatpush1.bf16.msra.mxu1 %v10823_v43  ;;  %2586 = vmatprep.subr.bf16.mxu0 %v10828_v44  ;;  %v10907_v43 = vld [vmem:[#allocation8 + $0x388] ss:$48 sps:$4 sm:$0xff]   ;;  %v10912_v44 = vld [vmem:[#allocation8 + $0x3e4] ss:$48 sps:$4 sm:$0xff]  }
 0x319   : > { %2668 = vmatprep.subr.bf16.mxu1 %v10831_v45  ;;  %v10915_v45 = vld [vmem:[#allocation8 + $0x3ec] ss:$48 sps:$4 sm:$0xff]  }
 0x31b   : > { %2587 = vmatpush1.bf16.msra.mxu0 %v10826_v46  ;;  %v10910_v46 = vld [vmem:[#allocation8 + $0x3e0] ss:$48 sps:$4 sm:$0xff]  }
 0x31c   : > { %2669 = vmatpush1.bf16.msra.mxu1 %v10829_v47  ;;  %2588 = vmatprep.subr.bf16.mxu0 %v10834_v49  ;;  %v10913_v47 = vld [vmem:[#allocation8 + $0x3e8] ss:$48 sps:$4 sm:$0xff]   ;;  %v10918_v49 = vld [vmem:[#allocation8 + $0x444] ss:$48 sps:$4 sm:$0xff]  }
 0x31d   : > { %2670 = vmatprep.subr.bf16.mxu1 %v10837_v50  ;;  %v10921_v50 = vld [vmem:[#allocation8 + $0x44c] ss:$48 sps:$4 sm:$0xff]  }
 0x31f   : > { %2589 = vmatpush1.bf16.msra.mxu0 %v10832_v52  ;;  %v10916_v52 = vld [vmem:[#allocation8 + $0x440] ss:$48 sps:$4 sm:$0xff]  }
 0x320   : > { %2671 = vmatpush1.bf16.msra.mxu1 %v10835_v53  ;;  %2590 = vmatprep.subr.bf16.mxu0 %v10840_v54  ;;  %v10919_v53 = vld [vmem:[#allocation8 + $0x448] ss:$48 sps:$4 sm:$0xff]   ;;  %v10924_v54 = vld [vmem:[#allocation8 + $0x4a4] ss:$48 sps:$4 sm:$0xff]  }
 0x321   : > { %2672 = vmatprep.subr.bf16.mxu1 %v10843_v55  ;;  %v10927_v55 = vld [vmem:[#allocation8 + $0x4ac] ss:$48 sps:$4 sm:$0xff]  }
 0x323   : > { %2591 = vmatpush1.bf16.msra.mxu0 %v10838_v56  ;;  %v10922_v56 = vld [vmem:[#allocation8 + $0x4a0] ss:$48 sps:$4 sm:$0xff]  }
 0x324   : > { %2673 = vmatpush1.bf16.msra.mxu1 %v10841_v57  ;;  %2592 = vmatprep.subr.bf16.mxu0 %v10846_v58  ;;  %v10925_v57 = vld [vmem:[#allocation8 + $0x4a8] ss:$48 sps:$4 sm:$0xff]   ;;  %v10930_v58 = vld [vmem:[#allocation8 + $0x504] ss:$48 sps:$4 sm:$0xff]  }
 0x325   : > { %2674 = vmatprep.subr.bf16.mxu1 %v10849_v60  ;;  %v10933_v60 = vld [vmem:[#allocation8 + $0x50c] ss:$48 sps:$4 sm:$0xff]  }
 0x327   : > { %2593 = vmatpush1.bf16.msra.mxu0 %v10844_v61  ;;  %v10928_v61 = vld [vmem:[#allocation8 + $0x500] ss:$48 sps:$4 sm:$0xff]  }
 0x328   : > { %2675 = vmatpush1.bf16.msra.mxu1 %v10847_v62  ;;  %2701 = vmatprep.subr.bf16.mxu0 %v10852_v63  ;;  %v10931_v62 = vld [vmem:[#allocation8 + $0x508] ss:$48 sps:$4 sm:$0xff]   ;;  %v10936_v63 = vld [vmem:[#allocation8 + $0x564] ss:$48 sps:$4 sm:$0xff]  }
 0x329   : > { %2783 = vmatprep.subr.bf16.mxu1 %v10855_v0  ;;  %v10939_v0 = vld [vmem:[#allocation8 + $0x56c] ss:$48 sps:$4 sm:$0xff]  }
 0x32a   : > { %2611 = vmatmul.mubr.bf16.vlgmr.msra.gmra.mrb[4].mxu0 %v12935_v15 }
 0x32b   : > { %2693 = vmatmul.mubr.bf16.vlgmr.msra.gmra.mrb[4].mxu1 %v12935_v15  ;;  %2702 = vmatpush1.bf16.msra.mxu0 %v10850_v1  ;;  %v10934_v1 = vld [vmem:[#allocation8 + $0x560] ss:$48 sps:$4 sm:$0xff]  }
 0x32c   : > { %2733 = vmatprep.mubr.bf16.mxu0 %v12916_v41  ;;  %2784 = vmatpush1.bf16.msra.mxu1 %v10853_v2  ;;  %v10937_v2 = vld [vmem:[#allocation8 + $0x568] ss:$48 sps:$4 sm:$0xff]  }
 0x32d   : > { %2815 = vmatprep.mubr.bf16.mxu1 %v12916_v41  ;;  %2703 = vmatprep.subr.bf16.mxu0 %v10858_v3  ;;  %v10874_v41 = vld [vmem:[#allocation8 + $0x1a0] ss:$48 sps:$4 sm:$0xff]   ;;  %v10942_v3 = vld [vmem:[#allocation8 + $0x5c4] ss:$48 sps:$4 sm:$0xff]  }
 0x32e   : > { %2785 = vmatprep.subr.bf16.mxu1 %v10861_v4  ;;  %v10945_v4 = vld [vmem:[#allocation8 + $0x5cc] ss:$48 sps:$4 sm:$0xff]  }
 0x32f   : > { %2704 = vmatpush1.bf16.msra.mxu0 %v10856_v5  ;;  %v10940_v5 = vld [vmem:[#allocation8 + $0x5c0] ss:$48 sps:$4 sm:$0xff]  }
 0x330   : > { %2786 = vmatpush1.bf16.msra.mxu1 %v10859_v6  ;;  %2705 = vmatprep.subr.bf16.mxu0 %v10864_v7  ;;  %v10943_v6 = vld [vmem:[#allocation8 + $0x5c8] ss:$48 sps:$4 sm:$0xff]   ;;  %v10948_v7 = vld [vmem:[#allocation8 + $0x624] ss:$48 sps:$4 sm:$0xff]  }
 0x331   : > { %2787 = vmatprep.subr.bf16.mxu1 %v10867_v8  ;;  %v10951_v8 = vld [vmem:[#allocation8 + $0x62c] ss:$48 sps:$4 sm:$0xff]  }
 0x333   : > { %2706 = vmatpush1.bf16.msra.mxu0 %v10862_v9  ;;  %v10946_v9 = vld [vmem:[#allocation8 + $0x620] ss:$48 sps:$4 sm:$0xff]  }
 0x334   : > { %2788 = vmatpush1.bf16.msra.mxu1 %v10865_v10  ;;  %2707 = vmatprep.subr.bf16.mxu0 %v10870_v11  ;;  %v10949_v10 = vld [vmem:[#allocation8 + $0x628] ss:$48 sps:$4 sm:$0xff]   ;;  %v10954_v11 = vld [vmem:[#allocation8 + $0x684] ss:$48 sps:$4 sm:$0xff]  }
 0x335   : > { %2789 = vmatprep.subr.bf16.mxu1 %v10873_v51  ;;  %v10957_v51 = vld [vmem:[#allocation8 + $0x68c] ss:$48 sps:$4 sm:$0xff]  }
 0x337   : > { %2708 = vmatpush1.bf16.msra.mxu0 %v10868_v12  ;;  %v10952_v12 = vld [vmem:[#allocation8 + $0x680] ss:$48 sps:$4 sm:$0xff]  }
 0x338   : > { %2790 = vmatpush1.bf16.msra.mxu1 %v10871_v13  ;;  %2709 = vmatprep.subr.bf16.mxu0 %v10876_v14  ;;  %v10955_v13 = vld [vmem:[#allocation8 + $0x688] ss:$48 sps:$4 sm:$0xff]   ;;  %v10960_v14 = vld [vmem:[#allocation8 + $0x6e4] ss:$48 sps:$4 sm:$0xff]  }
 0x339   : > { %2791 = vmatprep.subr.bf16.mxu1 %v10879_v16  ;;  %v10963_v16 = vld [vmem:[#allocation8 + $0x6ec] ss:$48 sps:$4 sm:$0xff]  }
 0x33b   : > { %2710 = vmatpush1.bf16.msra.mxu0 %v10874_v41  ;;  %v10958_v41 = vld [vmem:[#allocation8 + $0x6e0] ss:$48 sps:$4 sm:$0xff]  }
 0x33c   : > { %2792 = vmatpush1.bf16.msra.mxu1 %v10877_v17  ;;  %2711 = vmatprep.subr.bf16.mxu0 %v10882_v18  ;;  %v10961_v17 = vld [vmem:[#allocation8 + $0x6e8] ss:$48 sps:$4 sm:$0xff]   ;;  %v10966_v18 = vld [vmem:[#allocation8 + $0x744] ss:$48 sps:$4 sm:$0xff]  }
 0x33d   : > { %2793 = vmatprep.subr.bf16.mxu1 %v10885_v20  ;;  %v10964_v20 = vld [vmem:[#allocation8 + $0x740] ss:$48 sps:$4 sm:$0xff]  }
 0x33f   : > { %2712 = vmatpush1.bf16.msra.mxu0 %v10880_v24  ;;  %v10967_v24 = vld [vmem:[#allocation8 + $0x748] ss:$48 sps:$4 sm:$0xff]  }
 0x340   : > { %2794 = vmatpush1.bf16.msra.mxu1 %v10883_v25  ;;  %2713 = vmatprep.subr.bf16.mxu0 %v10888_v26  ;;  %v10972_v25 = vld [vmem:[#allocation8 + $0x7a4] ss:$48 sps:$4 sm:$0xff]   ;;  %v10975_v26 = vld [vmem:[#allocation8 + $0x7ac] ss:$48 sps:$4 sm:$0xff]  }
 0x341   : > { %2795 = vmatprep.subr.bf16.mxu1 %v10891_v27  ;;  %v10970_v27 = vld [vmem:[#allocation8 + $0x7a0] ss:$48 sps:$4 sm:$0xff]  }
 0x343   : > { %2714 = vmatpush1.bf16.msra.mxu0 %v10886_v28  ;;  %v10973_v28 = vld [vmem:[#allocation8 + $0x7a8] ss:$48 sps:$4 sm:$0xff]  }
 0x344   : > { %2796 = vmatpush1.bf16.msra.mxu1 %v10889_v29  ;;  %2715 = vmatprep.subr.bf16.mxu0 %v10894_v30  ;;  %v10978_v29 = vld [vmem:[#allocation8 + $0x804] ss:$48 sps:$4 sm:$0xff]   ;;  %v10981_v30 = vld [vmem:[#allocation8 + $0x80c] ss:$48 sps:$4 sm:$0xff]  }
 0x345   : > { %2797 = vmatprep.subr.bf16.mxu1 %v10897_v31  ;;  %v10976_v31 = vld [vmem:[#allocation8 + $0x800] ss:$48 sps:$4 sm:$0xff]  }
 0x347   : > { %2716 = vmatpush1.bf16.msra.mxu0 %v10892_v32  ;;  %v10979_v32 = vld [vmem:[#allocation8 + $0x808] ss:$48 sps:$4 sm:$0xff]  }
 0x348   : > { %2798 = vmatpush1.bf16.msra.mxu1 %v10895_v33  ;;  %2717 = vmatprep.subr.bf16.mxu0 %v10900_v34  ;;  %v10984_v33 = vld [vmem:[#allocation8 + $0x864] ss:$48 sps:$4 sm:$0xff]   ;;  %v10987_v34 = vld [vmem:[#allocation8 + $0x86c] ss:$48 sps:$4 sm:$0xff]  }
 0x349   : > { %2799 = vmatprep.subr.bf16.mxu1 %v10903_v35  ;;  %v10982_v35 = vld [vmem:[#allocation8 + $0x860] ss:$48 sps:$4 sm:$0xff]  }
 0x34b   : > { %2718 = vmatpush1.bf16.msra.mxu0 %v10898_v36  ;;  %v10985_v36 = vld [vmem:[#allocation8 + $0x868] ss:$48 sps:$4 sm:$0xff]  }
 0x34c   : > { %2800 = vmatpush1.bf16.msra.mxu1 %v10901_v37  ;;  %2719 = vmatprep.subr.bf16.mxu0 %v10906_v38  ;;  %v10990_v37 = vld [vmem:[#allocation8 + $0x8c4] ss:$48 sps:$4 sm:$0xff]   ;;  %v10993_v38 = vld [vmem:[#allocation8 + $0x8cc] ss:$48 sps:$4 sm:$0xff]  }
 0x34d   : > { %2801 = vmatprep.subr.bf16.mxu1 %v10909_v39  ;;  %v10988_v39 = vld [vmem:[#allocation8 + $0x8c0] ss:$48 sps:$4 sm:$0xff]  }
 0x34f   : > { %2720 = vmatpush1.bf16.msra.mxu0 %v10904_v40  ;;  %v10991_v40 = vld [vmem:[#allocation8 + $0x8c8] ss:$48 sps:$4 sm:$0xff]  }
 0x350   : > { %2802 = vmatpush1.bf16.msra.mxu1 %v10907_v43  ;;  %2721 = vmatprep.subr.bf16.mxu0 %v10912_v44  ;;  %v12408_v43 = vmov 0.0  }
 0x351   : > { %2803 = vmatprep.subr.bf16.mxu1 %v10915_v45 }
 0x353   : > { %2722 = vmatpush1.bf16.msra.mxu0 %v10910_v46 }
 0x354   : > { %2804 = vmatpush1.bf16.msra.mxu1 %v10913_v47  ;;  %2723 = vmatprep.subr.bf16.mxu0 %v10918_v49 }
 0x355   : > { %2805 = vmatprep.subr.bf16.mxu1 %v10921_v50 }
 0x357   : > { %2724 = vmatpush1.bf16.msra.mxu0 %v10916_v52 }
 0x358   : > { %2806 = vmatpush1.bf16.msra.mxu1 %v10919_v53  ;;  %2725 = vmatprep.subr.bf16.mxu0 %v10924_v54 }
 0x359   : > { %2807 = vmatprep.subr.bf16.mxu1 %v10927_v55 }
 0x35b   : > { %2726 = vmatpush1.bf16.msra.mxu0 %v10922_v56 }
 0x35c   : > { %2808 = vmatpush1.bf16.msra.mxu1 %v10925_v57  ;;  %2727 = vmatprep.subr.bf16.mxu0 %v10930_v58 }
 0x35d   : > { %2809 = vmatprep.subr.bf16.mxu1 %v10933_v60 }
 0x35f   : > { %2728 = vmatpush1.bf16.msra.mxu0 %v10928_v61 }
 0x360   : > { %2810 = vmatpush1.bf16.msra.mxu1 %v10931_v62  ;;  %2729 = vmatprep.subr.bf16.mxu0 %v10936_v63 }
 0x361   : > { %2811 = vmatprep.subr.bf16.mxu1 %v10939_v0 }
 0x363   : > { %2730 = vmatpush1.bf16.msra.mxu0 %v10934_v1 }
 0x364   : > { %2812 = vmatpush1.bf16.msra.mxu1 %v10937_v2  ;;  %2731 = vmatprep.subr.bf16.mxu0 %v10942_v3 }
 0x365   : > { %2813 = vmatprep.subr.bf16.mxu1 %v10945_v4 }
 0x367   : > { %2732 = vmatpush1.bf16.msra.mxu0 %v10940_v5 }
 0x368   : > { %2814 = vmatpush1.bf16.msra.mxu1 %v10943_v6  ;;  %2742 = vmatprep.subr.bf16.mxu0 %v10948_v7 }
 0x369   : > { %2824 = vmatprep.subr.bf16.mxu1 %v10951_v8 }
 0x36a   : > { %2734 = vmatmul.mubr.bf16.vlgmr.msra.gmra.mrb[8].mxu0 %v12918_v42 }
 0x36b   : > { %2816 = vmatmul.mubr.bf16.vlgmr.msra.gmra.mrb[8].mxu1 %v12918_v42  ;;  %2743 = vmatpush1.bf16.msra.mxu0 %v10946_v9  ;;  %v10969_v42 = vld [vmem:[#allocation8 + $0x74c] ss:$48 sps:$4 sm:$0xff]  }
 0x36c   : > { %2825 = vmatpush1.bf16.msra.mxu1 %v10949_v10  ;;  %2744 = vmatprep.subr.bf16.mxu0 %v10954_v11 }
 0x36d   : > { %2826 = vmatprep.subr.bf16.mxu1 %v10957_v51  ;;  %2774 = vmatprep.mubr.bf16.mxu0 %v12407_v48 }
 0x36e   : > { %2856 = vmatprep.mubr.bf16.mxu1 %v12407_v48 }
 0x36f   : > { %2745 = vmatpush1.bf16.msra.mxu0 %v10952_v12 }
 0x370   : > { %2827 = vmatpush1.bf16.msra.mxu1 %v10955_v13  ;;  %2746 = vmatprep.subr.bf16.mxu0 %v10960_v14 }
 0x371   : > { %2828 = vmatprep.subr.bf16.mxu1 %v10963_v16 }
 0x373   : > { %2747 = vmatpush1.bf16.msra.mxu0 %v10958_v41 }
 0x374   : > { %2829 = vmatpush1.bf16.msra.mxu1 %v10961_v17  ;;  %2748 = vmatprep.subr.bf16.mxu0 %v10966_v18 }
 0x375   : > { %2830 = vmatprep.subr.bf16.mxu1 %v10969_v42 }
 0x377   : > { %2749 = vmatpush1.bf16.msra.mxu0 %v10964_v20 }
 0x378   : > { %2831 = vmatpush1.bf16.msra.mxu1 %v10967_v24  ;;  %2750 = vmatprep.subr.bf16.mxu0 %v10972_v25  ;;  %v2880_v24 = vand.u32 127, %v605_v19 }
 0x379   : > { %2832 = vmatprep.subr.bf16.mxu1 %v10975_v26 }
 0x37a   : > { %vm2881_vm2 = vcmp.ge.s32.totalorder %v12890_v21, %v2880_v24  ;;  %v11014_v24 = vld [vmem:[#allocation10 + $0x7c] ss:$12 sps:$4 sm:$0xff]  }
 0x37b   : > { %2751 = vmatpush1.bf16.msra.mxu0 %v10970_v27 }
 0x37c   : > { %2833 = vmatpush1.bf16.msra.mxu1 %v10973_v28  ;;  %2752 = vmatprep.subr.bf16.mxu0 %v10978_v29 }
 0x37d   : > { %2834 = vmatprep.subr.bf16.mxu1 %v10981_v30 }
 0x37f   : > { %2753 = vmatpush1.bf16.msra.mxu0 %v10976_v31 }
 0x380   : > { %2835 = vmatpush1.bf16.msra.mxu1 %v10979_v32  ;;  %2754 = vmatprep.subr.bf16.mxu0 %v10984_v33 }
 0x381   : > { %2836 = vmatprep.subr.bf16.mxu1 %v10987_v34 }
 0x383   : > { %2755 = vmatpush1.bf16.msra.mxu0 %v10982_v35 }
 0x384   : > { %2837 = vmatpush1.bf16.msra.mxu1 %v10985_v36  ;;  %2756 = vmatprep.subr.bf16.mxu0 %v10990_v37 }
 0x385   : > { %2838 = vmatprep.subr.bf16.mxu1 %v10993_v38 }
 0x387   : > { %2757 = vmatpush1.bf16.msra.mxu0 %v10988_v39 }
 0x388   : > { %2839 = vmatpush1.bf16.msra.mxu1 %v10991_v40  ;;  %10286 = vmatprep.subr.bf16.mxu0 %v12408_v43 }
 0x389   : > { %10292 = vmatprep.subr.bf16.mxu1 %v12408_v43 }
 0x38a   : > { %2775 = vmatmul.mubr.bf16.vlgmr.msra.gmra.mrb[8].mxu0 %v12935_v15 }
 0x38b   : > { %2857 = vmatmul.mubr.bf16.vlgmr.msra.gmra.mrb[8].mxu1 %v12935_v15  ;;  %10288 = vmatprep.mubr.msk.bf16.mxu0 %vm12409_vm0, %v12408_v43 }
 0x38c   : > { %10294 = vmatprep.mubr.msk.bf16.mxu1 %vm12409_vm0, %v12408_v43 }
 0x39d   : > { %v2448_v44 = vpop.f32.mrb[0].mxu0  ;;  %v2530_v45 = vpop.f32.mrb[0].mxu1 }
 0x39e   : > { %v2450_v46 = vpop.f32.mrb[1].mxu0  ;;  %v2532_v47 = vpop.f32.mrb[1].mxu1  ;;  %v2865_v63 = vpack.c.bf16 %v2448_v44, %v2448_v44  ;;  %v2867_v3 = vpack.c.bf16 %v2530_v45, %v2530_v45 }
 0x39f   : > { %v2452_v49 = vpop.f32.mrb[2].mxu0  ;;  %v2534_v50 = vpop.f32.mrb[2].mxu1  ;;  %v2866_v1 = vpack.c.bf16 %v2450_v46, %v2450_v46  ;;  %v2868_v5 = vpack.c.bf16 %v2532_v47, %v2532_v47 }
 0x3a0   : > { %v2453_v52 = vpop.f32.mrb[3].mxu0  ;;  %v2535_v53 = vpop.f32.mrb[3].mxu1 }
 0x3fd   : > { %v2612_v54 = vpop.f32.mrb[4].mxu0 }
 0x3fe   : > { %v2869_v55 = vpack.c.bf16 %v2612_v54, %v2612_v54  ;;  %v2694_v56 = vpop.f32.mrb[4].mxu1  ;;  %v2614_v57 = vpop.f32.mrb[5].mxu0 }
 0x3ff   : > { %v2696_v15 = vpop.f32.mrb[5].mxu1  ;;  %v2616_v58 = vpop.f32.mrb[6].mxu0  ;;  %v2870_v0 = vpack.c.bf16 %v2614_v57, %v2614_v57  ;;  %v2871_v2 = vpack.c.bf16 %v2694_v56, %v2694_v56 }
 0x400   : > { %v2698_v60 = vpop.f32.mrb[6].mxu1  ;;  %v2617_v61 = vpop.f32.mrb[7].mxu0  ;;  %10287 = vmatpush3.bf16.xpose.msra.mxu0 %v2869_v55  ;;  %v2872_v4 = vpack.c.bf16 %v2696_v15, %v2696_v15 }
 0x401   : > { %v2699_v62 = vpop.f32.mrb[7].mxu1  ;;  %10298 = vmatprep.subr.bf16.mxu0 %v12408_v43 }
 0x407   : > { %10289 = vmatmul.mubr.bf16.vlgmr.msra.gmra.mrb[12].mxu0 %v2865_v63 }
 0x408   : > { %10299 = vmatpush3.bf16.xpose.msra.mxu0 %v2870_v0  ;;  %10300 = vmatprep.mubr.msk.bf16.mxu0 %vm12409_vm0, %v12408_v43 }
 0x409   : > { %10310 = vmatprep.subr.bf16.mxu0 %v12408_v43 }
 0x40f   : > { %10301 = vmatmul.mubr.bf16.vlgmr.msra.gmra.mrb[16].mxu0 %v2866_v1 }
 0x410   : > { %10311 = vmatpush3.bf16.xpose.msra.mxu0 %v2871_v2  ;;  %10312 = vmatprep.mubr.msk.bf16.mxu0 %vm12409_vm0, %v12408_v43 }
 0x411   : > { %10322 = vmatprep.subr.bf16.mxu0 %v12408_v43 }
 0x417   : > { %10313 = vmatmul.mubr.bf16.vlgmr.msra.gmra.mrb[20].mxu0 %v2867_v3 }
 0x418   : > { %10323 = vmatpush3.bf16.xpose.msra.mxu0 %v2872_v4  ;;  %10324 = vmatprep.mubr.msk.bf16.mxu0 %vm12409_vm0, %v12408_v43 }
 0x41f   : > { %10325 = vmatmul.mubr.bf16.vlgmr.msra.gmra.mrb[24].mxu0 %v2868_v5 }
 0x45d   : > { %v2776_v6 = vpop.f32.mrb[8].mxu0 }
 0x45e   : > { %v2873_v7 = vpack.c.bf16 %v2776_v6, %v2776_v6  ;;  %v2858_v8 = vpop.f32.mrb[8].mxu1  ;;  %v2778_v9 = vpop.f32.mrb[9].mxu0 }
 0x45f   : > { %v2875_v10 = vpack.c.bf16 %v2858_v8, %v2858_v8  ;;  %v2874_v11 = vpack.c.bf16 %v2778_v9, %v2778_v9  ;;  %v2860_v51 = vpop.f32.mrb[9].mxu1  ;;  %v2780_v12 = vpop.f32.mrb[10].mxu0  ;;  %v10994_v9 = vld [vmem:[#allocation10] ss:$12 sps:$4 sm:$0xff]  }
 0x460   : > { %v2941_v13 = vsel %vm2939_vm1, %v2873_v7, 0  ;;  %v2876_v14 = vpack.c.bf16 %v2860_v51, %v2860_v51  ;;  %v2862_v16 = vpop.f32.mrb[10].mxu1  ;;  %v2781_v41 = vpop.f32.mrb[11].mxu0  ;;  %v10997_v51 = vld [vmem:[#allocation10 + $0x18] ss:$12 sps:$4 sm:$0xff]  }
 0x461   : > { %v12972_v17 = vsel %vm2939_vm1, %v2875_v10, 0  ;;  %v12975_v18 = vsel %vm2939_vm1, %v2874_v11, 0  ;;  %v2863_v42 = vpop.f32.mrb[11].mxu1  ;;  %10293 = vmatpush3.bf16.msra.mxu1 %v2941_v13  ;;  %v10996_v10 = vld [vmem:[#allocation10 + $0x4] ss:$12 sps:$4 sm:$0xff]  }
 0x462   : > { %v12978_v20 = vsel %vm2939_vm1, %v2876_v14, 0  ;;  %10304 = vmatprep.subr.bf16.mxu1 %v12408_v43  ;;  %v10999_v11 = vld [vmem:[#allocation10 + $0x1c] ss:$12 sps:$4 sm:$0xff]   ;;  %3944 = vmatprep.subr.bf16.mxu0 %v10996_v10  ;;  %v11002_v12 = vld [vmem:[#allocation10 + $0x34] ss:$12 sps:$4 sm:$0xff]  }
 0x463   : > { %3945 = vmatpush1.bf16.msra.mxu0 %v10994_v9  ;;  %v11000_v13 = vld [vmem:[#allocation10 + $0x30] ss:$12 sps:$4 sm:$0xff]   ;;  %v11005_v14 = vld [vmem:[#allocation10 + $0x4c] ss:$12 sps:$4 sm:$0xff]   ;;  %v11003_v16 = vld [vmem:[#allocation10 + $0x48] ss:$12 sps:$4 sm:$0xff]  }
 0x464   : > { %3946 = vmatprep.subr.bf16.mxu0 %v10999_v11  ;;  %v11008_v41 = vld [vmem:[#allocation10 + $0x64] ss:$12 sps:$4 sm:$0xff]   ;;  %v11006_v42 = vld [vmem:[#allocation10 + $0x60] ss:$12 sps:$4 sm:$0xff]   ;;  %v11051_v9 = vld [vmem:[#allocation10 + $0x228] ss:$12 sps:$4 sm:$0xff]  }
 0x465   : > { %v11059_v10 = vld [vmem:[#allocation10 + $0x244] ss:$12 sps:$4 sm:$0xff]   ;;  %v11057_v11 = vld [vmem:[#allocation10 + $0x240] ss:$12 sps:$4 sm:$0xff]  }
 0x467   : > { %3947 = vmatpush1.bf16.msra.mxu0 %v10997_v51  ;;  %v11065_v51 = vld [vmem:[#allocation10 + $0x25c] ss:$12 sps:$4 sm:$0xff]  }
 0x468   : > { %3948 = vmatprep.subr.bf16.mxu0 %v11002_v12  ;;  %v11063_v12 = vld [vmem:[#allocation10 + $0x258] ss:$12 sps:$4 sm:$0xff]  }
 0x46b   : > { %3949 = vmatpush1.bf16.msra.mxu0 %v11000_v13  ;;  %v11066_v13 = vld [vmem:[#allocation10 + $0x150] ss:$12 sps:$4 sm:$0xff]  }
 0x46c   : > { %3950 = vmatprep.subr.bf16.mxu0 %v11005_v14  ;;  %v11068_v14 = vld [vmem:[#allocation10 + $0x154] ss:$12 sps:$4 sm:$0xff]  }
 0x46f   : > { %3951 = vmatpush1.bf16.msra.mxu0 %v11003_v16  ;;  %v11069_v16 = vld [vmem:[#allocation10 + $0x270] ss:$12 sps:$4 sm:$0xff]  }
 0x470   : > { %3952 = vmatprep.subr.bf16.mxu0 %v11008_v41  ;;  %v11071_v41 = vld [vmem:[#allocation10 + $0x274] ss:$12 sps:$4 sm:$0xff]  }
 0x473   : > { %3953 = vmatpush1.bf16.msra.mxu0 %v11006_v42  ;;  %v11074_v42 = vld [vmem:[#allocation10 + $0x16c] ss:$12 sps:$4 sm:$0xff]  }
 0x474   : > { %3954 = vmatprep.subr.bf16.mxu0 %v11014_v24  ;;  %v11077_v24 = vld [vmem:[#allocation10 + $0x28c] ss:$12 sps:$4 sm:$0xff]  }
 0x4da   : > { %v2916_v25 = vpop.f32.mrb[12].mxu0 }
 0x4db   : > { %v2922_v26 = vsel %vm2881_vm2, %v2916_v25, -inf  ;;  %v10290_v27 = vpop.f32.mrb[13].mxu0  ;;  %v11012_v25 = vld [vmem:[#allocation10 + $0x78] ss:$12 sps:$4 sm:$0xff]  }
 0x4dc   : > { %v2919_v28 = vpop.f32.mrb[14].mxu0  ;;  %v2924_v29 = vsel %vm2923_vm3, %v2922_v26, -inf  ;;  %3955 = vmatpush1.bf16.msra.mxu0 %v11012_v25  ;;  %v11018_v27 = vld [vmem:[#allocation10 + $0x90] ss:$12 sps:$4 sm:$0xff]   ;;  %v11072_v25 = vld [vmem:[#allocation10 + $0x168] ss:$12 sps:$4 sm:$0xff]  }
 0x4dd   : > { %2925 = vmax.xlane.f32.xlu1 %v2924_v29  ;;  %v10291_v30 = vpop.f32.mrb[15].mxu0  ;;  %v11026_v28 = vld [vmem:[#allocation10 + $0xac] ss:$12 sps:$4 sm:$0xff]   ;;  %v11024_v29 = vld [vmem:[#allocation10 + $0xa8] ss:$12 sps:$4 sm:$0xff]  }
 0x4de   : > { %v11032_v30 = vld [vmem:[#allocation10 + $0xc4] ss:$12 sps:$4 sm:$0xff]  }
 0x4e2   : > { %v3018_v31 = vpop.f32.mrb[16].mxu0 }
 0x4e3   : > { %v3024_v32 = vsel %vm2881_vm2, %v3018_v31, -inf  ;;  %v10302_v33 = vpop.f32.mrb[17].mxu0  ;;  %v11030_v31 = vld [vmem:[#allocation10 + $0xc0] ss:$12 sps:$4 sm:$0xff]  }
 0x4e4   : > { %v3021_v34 = vpop.f32.mrb[18].mxu0  ;;  %v3025_v19 = vsel %vm2923_vm3, %v3024_v32, -inf  ;;  %v11036_v33 = vld [vmem:[#allocation10 + $0xd8] ss:$12 sps:$4 sm:$0xff]  }
 0x4e5   : > { %3026 = vmax.xlane.f32.xlu1 %v3025_v19  ;;  %v10303_v35 = vpop.f32.mrb[19].mxu0  ;;  %v11044_v34 = vld [vmem:[#allocation10 + $0xf4] ss:$12 sps:$4 sm:$0xff]   ;;  %v11042_v19 = vld [vmem:[#allocation10 + $0xf0] ss:$12 sps:$4 sm:$0xff]  }
 0x4e6   : > { %v11050_v35 = vld [vmem:[#allocation10 + $0x10c] ss:$12 sps:$4 sm:$0xff]  }
 0x4ea   : > { %v3118_v36 = vpop.f32.mrb[20].mxu0 }
 0x4eb   : > { %v3124_v37 = vsel %vm2881_vm2, %v3118_v36, -inf  ;;  %v10314_v38 = vpop.f32.mrb[21].mxu0  ;;  %v11048_v36 = vld [vmem:[#allocation10 + $0x108] ss:$12 sps:$4 sm:$0xff]  }
 0x4ec   : > { %v3121_v39 = vpop.f32.mrb[22].mxu0  ;;  %v3125_v40 = vsel %vm2923_vm3, %v3124_v37, -inf  ;;  %v11054_v38 = vld [vmem:[#allocation10 + $0x120] ss:$12 sps:$4 sm:$0xff]  }
 0x4ed   : > { %3126 = vmax.xlane.f32.xlu0 %v3125_v40  ;;  %v10315_v44 = vpop.f32.mrb[23].mxu0  ;;  %v11062_v39 = vld [vmem:[#allocation10 + $0x13c] ss:$12 sps:$4 sm:$0xff]   ;;  %v11060_v40 = vld [vmem:[#allocation10 + $0x138] ss:$12 sps:$4 sm:$0xff]  }
 0x4f2   : > { %v3218_v45 = vpop.f32.mrb[24].mxu0 }
 0x4f3   : > { %v3224_v46 = vsel %vm2881_vm2, %v3218_v45, -inf  ;;  %v10326_v47 = vpop.f32.mrb[25].mxu0 }
 0x4f4   : > { %v3221_v49 = vpop.f32.mrb[26].mxu0  ;;  %v3225_v50 = vsel %vm2923_vm3, %v3224_v46, -inf }
 0x4f5   : > { %3226 = vmax.xlane.f32.xlu1 %v3225_v50  ;;  %v10327_v52 = vpop.f32.mrb[27].mxu0 }
 0x56a   : > { %v2926_v53 = vpop.xlane.xlu1 %2925 }
 0x56b   : > { %v2927_v54 = vsub.f32 %v2922_v26, %v2926_v53  ;;  %v11020_v26 = vld [vmem:[#allocation10 + $0x94] ss:$12 sps:$4 sm:$0xff]  }
 0x56c   : > { %3956 = vmatprep.subr.bf16.mxu0 %v11020_v26  ;;  %v11075_v26 = vld [vmem:[#allocation10 + $0x288] ss:$12 sps:$4 sm:$0xff]  }
 0x56d   : > { %v2928_v55 = vmul.f32 1.442695, %v2927_v54  ;;  %3957 = vmatpush1.bf16.msra.mxu0 %v11018_v27  ;;  %v11078_v27 = vld [vmem:[#allocation10 + $0x2a0] ss:$12 sps:$4 sm:$0xff]  }
 0x56e   : > { %3958 = vmatprep.subr.bf16.mxu0 %v11026_v28  ;;  %v11080_v28 = vld [vmem:[#allocation10 + $0x2a4] ss:$12 sps:$4 sm:$0xff]  }
 0x56f   : > { %11940 = vpow2.f32 %v2928_v55 }
 0x571   : > { %3959 = vmatpush1.bf16.msra.mxu0 %v11024_v29  ;;  %v11081_v29 = vld [vmem:[#allocation10 + $0xc8] ss:$12 sps:$4 sm:$0xff]  }
 0x572   : > { %v3027_v56 = vpop.xlane.xlu1 %3026  ;;  %3960 = vmatprep.subr.bf16.mxu0 %v11032_v30  ;;  %v11085_v30 = vld [vmem:[#allocation10 + $0x2bc] ss:$12 sps:$4 sm:$0xff]  }
 0x573   : > { %v3028_v57 = vsub.f32 %v3024_v32, %v3027_v56  ;;  %v11038_v32 = vld [vmem:[#allocation10 + $0xdc] ss:$12 sps:$4 sm:$0xff]  }
 0x575   : > { %v3029_v15 = vmul.f32 1.442695, %v3028_v57  ;;  %3961 = vmatpush1.bf16.msra.mxu0 %v11030_v31  ;;  %v11083_v31 = vld [vmem:[#allocation10 + $0x2b8] ss:$12 sps:$4 sm:$0xff]  }
 0x576   : > { %3962 = vmatprep.subr.bf16.mxu0 %v11038_v32  ;;  %v11088_v32 = vld [vmem:[#allocation10 + $0x2d0] ss:$12 sps:$4 sm:$0xff]  }
 0x577   : > { %11942 = vpow2.f32 %v3029_v15  ;;  %v11011_v15 = vld [vmem:[#allocation10 + $0x184] ss:$12 sps:$4 sm:$0xff]  }
 0x579   : > { %v12995_v58 = vpop.eup %11940  ;;  %3963 = vmatpush1.bf16.msra.mxu0 %v11036_v33  ;;  %v11090_v33 = vld [vmem:[#allocation10 + $0x2d4] ss:$12 sps:$4 sm:$0xff]  }
 0x57a   : > { %v3127_v60 = vpop.xlane.xlu0 %3126  ;;  %v2930_v61 = vsel %vm2923_vm3, %v12995_v58, 0.0  ;;  %3964 = vmatprep.subr.bf16.mxu0 %v11044_v34  ;;  %v11095_v34 = vld [vmem:[#allocation10 + $0x2ec] ss:$12 sps:$4 sm:$0xff]  }
 0x57b   : > { %v3128_v62 = vsub.f32 %v3124_v37, %v3127_v60  ;;  %2931 = vadd.xlane.f32.xlu0 %v2930_v61  ;;  %v11056_v37 = vld [vmem:[#allocation10 + $0x124] ss:$12 sps:$4 sm:$0xff]   ;;  %v11009_v60 = vld [vmem:[#allocation10 + $0x180] ss:$12 sps:$4 sm:$0xff]  }
 0x57d   : > { %v3129_v63 = vmul.f32 1.442695, %v3128_v62  ;;  %3965 = vmatpush1.bf16.msra.mxu0 %v11042_v19  ;;  %v11017_v62 = vld [vmem:[#allocation10 + $0x19c] ss:$12 sps:$4 sm:$0xff]  }
 0x57e   : > { %3966 = vmatprep.subr.bf16.mxu0 %v11050_v35  ;;  %v11093_v19 = vld [vmem:[#allocation10 + $0x2e8] ss:$12 sps:$4 sm:$0xff]  }
 0x57f   : > { %11944 = vpow2.f32 %v3129_v63  ;;  %v11015_v63 = vld [vmem:[#allocation10 + $0x198] ss:$12 sps:$4 sm:$0xff]   ;;  %v11099_v35 = vld [vmem:[#allocation10 + $0x248] ss:$12 sps:$4 sm:$0xff]  }
 0x581   : > { %v12999_v0 = vpop.eup %11942  ;;  %3967 = vmatpush1.bf16.msra.mxu0 %v11048_v36 }
 0x582   : > { %v3227_v1 = vpop.xlane.xlu1 %3226  ;;  %v3031_v2 = vsel %vm2923_vm3, %v12999_v0, 0.0  ;;  %3968 = vmatprep.subr.bf16.mxu0 %v11056_v37 }
 0x583   : > { %v3228_v3 = vsub.f32 %v3224_v46, %v3227_v1  ;;  %3032 = vadd.xlane.f32.xlu1 %v3031_v2  ;;  %v11021_v1 = vld [vmem:[#allocation10 + $0x1b0] ss:$12 sps:$4 sm:$0xff]   ;;  %v11027_v2 = vld [vmem:[#allocation10 + $0x1c8] ss:$12 sps:$4 sm:$0xff]  }
 0x585   : > { %v3229_v4 = vmul.f32 1.442695, %v3228_v3  ;;  %3969 = vmatpush1.bf16.msra.mxu0 %v11054_v38  ;;  %v11033_v3 = vld [vmem:[#allocation10 + $0x1e0] ss:$12 sps:$4 sm:$0xff]  }
 0x586   : > { %3970 = vmatprep.subr.bf16.mxu0 %v11062_v39 }
 0x587   : > { %11946 = vpow2.f32 %v3229_v4  ;;  %v11041_v4 = vld [vmem:[#allocation10 + $0x1fc] ss:$12 sps:$4 sm:$0xff]  }
 0x589   : > { %v13003_v5 = vpop.eup %11944  ;;  %3971 = vmatpush1.bf16.msra.mxu0 %v11060_v40 }
 0x58a   : > { %v3131_v6 = vsel %vm2923_vm3, %v13003_v5, 0.0  ;;  %3972 = vmatprep.subr.bf16.mxu0 %v11068_v14  ;;  %v11114_v14 = vld [vmem:[#allocation10 + $0x2a8] ss:$12 sps:$4 sm:$0xff]  }
 0x58b   : > { %3132 = vadd.xlane.f32.xlu0 %v3131_v6  ;;  %v11047_v6 = vld [vmem:[#allocation10 + $0x214] ss:$12 sps:$4 sm:$0xff]  }
 0x58d   : > { %3973 = vmatpush1.bf16.msra.mxu0 %v11066_v13  ;;  %v11113_v13 = vld [vmem:[#allocation10 + $0x1d0] ss:$12 sps:$4 sm:$0xff]  }
 0x58e   : > { %3974 = vmatprep.subr.bf16.mxu0 %v11074_v42  ;;  %v11117_v42 = vld [vmem:[#allocation10 + $0x200] ss:$12 sps:$4 sm:$0xff]  }
 0x591   : > { %v13007_v7 = vpop.eup %11946  ;;  %3975 = vmatpush1.bf16.msra.mxu0 %v11072_v25  ;;  %v11119_v25 = vld [vmem:[#allocation10 + $0x218] ss:$12 sps:$4 sm:$0xff]  }
 0x592   : > { %v3231_v8 = vsel %vm2923_vm3, %v13007_v7, 0.0  ;;  %10110 = vmatprep.subr.bf16.mxu0 %v11081_v29 }
 0x593   : > { %3232 = vadd.xlane.f32.xlu1 %v3231_v8  ;;  %v11053_v8 = vld [vmem:[#allocation10 + $0x22c] ss:$12 sps:$4 sm:$0xff]  }
 0x608   : > { %v2932_v44 = vpop.xlane.xlu0 %2931 }
 0x609   : > { %11948 = vrcp.f32 %v2932_v44 }
 0x610   : > { %v3033_v45 = vpop.xlane.xlu1 %3032 }
 0x611   : > { %11950 = vrcp.f32 %v3033_v45 }
 0x613   : > { %v11949_v46 = vpop.eup %11948 }
 0x614   : > { %v2934_v47 = vmul.f32 %v11949_v46, %v12995_v58  ;;  %v11082_v46 = vld [vmem:[#allocation10 + $0x8] ss:$12 sps:$4 sm:$0xff]  }
 0x616   : > { %v2935_v49 = vpack.c.bf16 %v2934_v47, %v2934_v47 }
 0x618   : > { %10295 = vmatmul.mubr.msk.bf16.vlgmr.msra.gmra.mrb[12].mxu1 %vm2923_vm3, %v2935_v49  ;;  %v3133_v50 = vpop.xlane.xlu0 %3132 }
 0x619   : > { %10305 = vmatpush3.bf16.msra.mxu1 %v12975_v18  ;;  %11952 = vrcp.f32 %v3133_v50  ;;  %10306 = vmatprep.mubr.msk.bf16.mxu1 %vm12409_vm0, %v12408_v43  ;;  %v11086_v50 = vld [vmem:[#allocation10 + $0xe0] ss:$12 sps:$4 sm:$0xff]  }
 0x61a   : > { %10316 = vmatprep.subr.bf16.mxu1 %v12408_v43 }
 0x61b   : > { %v11951_v52 = vpop.eup %11950 }
 0x61c   : > { %v3035_v53 = vmul.f32 %v11951_v52, %v12999_v0  ;;  %v11023_v0 = vld [vmem:[#allocation10 + $0x1b4] ss:$12 sps:$4 sm:$0xff]  }
 0x61e   : > { %v3036_v54 = vpack.c.bf16 %v3035_v53, %v3035_v53  ;;  %v11087_v53 = vld [vmem:[#allocation10 + $0x20] ss:$12 sps:$4 sm:$0xff]  }
 0x620   : > { %10307 = vmatmul.mubr.msk.bf16.vlgmr.msra.gmra.mrb[16].mxu1 %vm2923_vm3, %v3036_v54  ;;  %v3233_v55 = vpop.xlane.xlu1 %3232  ;;  %v11091_v54 = vld [vmem:[#allocation10 + $0xf8] ss:$12 sps:$4 sm:$0xff]  }
 0x621   : > { %10317 = vmatpush3.bf16.msra.mxu1 %v12972_v17  ;;  %11954 = vrcp.f32 %v3233_v55  ;;  %10318 = vmatprep.mubr.msk.bf16.mxu1 %vm12409_vm0, %v12408_v43 }
 0x622   : > { %10328 = vmatprep.subr.bf16.mxu1 %v12408_v43 }
 0x623   : > { %v11953_v18 = vpop.eup %11952 }
 0x624   : > { %v3135_v56 = vmul.f32 %v11953_v18, %v13003_v5  ;;  %v11039_v5 = vld [vmem:[#allocation10 + $0x1f8] ss:$12 sps:$4 sm:$0xff]  }
 0x626   : > { %v3136_v57 = vpack.c.bf16 %v3135_v56, %v3135_v56  ;;  %v11092_v56 = vld [vmem:[#allocation10 + $0x38] ss:$12 sps:$4 sm:$0xff]  }
 0x628   : > { %10319 = vmatmul.mubr.msk.bf16.vlgmr.msra.gmra.mrb[20].mxu1 %vm2923_vm3, %v3136_v57 }
 0x629   : > { %10329 = vmatpush3.bf16.msra.mxu1 %v12978_v20  ;;  %10330 = vmatprep.mubr.msk.bf16.mxu1 %vm12409_vm0, %v12408_v43  ;;  %v11029_v20 = vld [vmem:[#allocation10 + $0x1cc] ss:$12 sps:$4 sm:$0xff]   ;;  %v11035_v43 = vld [vmem:[#allocation10 + $0x1e4] ss:$12 sps:$4 sm:$0xff]  }
 0x62a   : > { %3985 = vmatprep.subr.bf16.mxu1 %v11011_v15  ;;  %v11096_v15 = vld [vmem:[#allocation10 + $0x110] ss:$12 sps:$4 sm:$0xff]  }
 0x62b   : > { %v11955_v17 = vpop.eup %11954 }
 0x62c   : > { %v3235_v58 = vmul.f32 %v11955_v17, %v13007_v7  ;;  %v11045_v7 = vld [vmem:[#allocation10 + $0x210] ss:$12 sps:$4 sm:$0xff]  }
 0x62e   : > { %v3236_v61 = vpack.c.bf16 %v3235_v58, %v3235_v58  ;;  %v11097_v58 = vld [vmem:[#allocation10 + $0x50] ss:$12 sps:$4 sm:$0xff]  }
 0x630   : > { %10331 = vmatmul.mubr.msk.bf16.vlgmr.msra.gmra.mrb[24].mxu1 %vm2923_vm3, %v3236_v61 }
 0x631   : > { %3986 = vmatpush1.bf16.msra.mxu1 %v11009_v60  ;;  %v11098_v60 = vld [vmem:[#allocation10 + $0x128] ss:$12 sps:$4 sm:$0xff]  }
 0x632   : > { %3987 = vmatprep.subr.bf16.mxu1 %v11017_v62 }
 0x635   : > { %3988 = vmatpush1.bf16.msra.mxu1 %v11015_v63 }
 0x636   : > { %3989 = vmatprep.subr.bf16.mxu1 %v11023_v0  ;;  %v11100_v0 = vld [vmem:[#allocation10 + $0x68] ss:$12 sps:$4 sm:$0xff]  }
 0x639   : > { %3990 = vmatpush1.bf16.msra.mxu1 %v11021_v1  ;;  %v11101_v1 = vld [vmem:[#allocation10 + $0x188] ss:$12 sps:$4 sm:$0xff]  }
 0x63a   : > { %3991 = vmatprep.subr.bf16.mxu1 %v11029_v20 }
 0x63d   : > { %3992 = vmatpush1.bf16.msra.mxu1 %v11027_v2 }
 0x63e   : > { %3993 = vmatprep.subr.bf16.mxu1 %v11035_v43  ;;  %v11102_v43 = vld [vmem:[#allocation10 + $0x140] ss:$12 sps:$4 sm:$0xff]  }
 0x641   : > { %3994 = vmatpush1.bf16.msra.mxu1 %v11033_v3 }
 0x642   : > { %3995 = vmatprep.subr.bf16.mxu1 %v11041_v4  ;;  %v11103_v4 = vld [vmem:[#allocation10 + $0x260] ss:$12 sps:$4 sm:$0xff]  }
 0x645   : > { %3996 = vmatpush1.bf16.msra.mxu1 %v11039_v5  ;;  %v11104_v5 = vld [vmem:[#allocation10 + $0x80] ss:$12 sps:$4 sm:$0xff]  }
 0x646   : > { %3997 = vmatprep.subr.bf16.mxu1 %v11047_v6  ;;  %v11105_v6 = vld [vmem:[#allocation10 + $0x1a0] ss:$12 sps:$4 sm:$0xff]  }
 0x649   : > { %3998 = vmatpush1.bf16.msra.mxu1 %v11045_v7  ;;  %v11106_v7 = vld [vmem:[#allocation10 + $0x158] ss:$12 sps:$4 sm:$0xff]  }
 0x64a   : > { %3999 = vmatprep.subr.bf16.mxu1 %v11053_v8  ;;  %v11107_v8 = vld [vmem:[#allocation10 + $0x278] ss:$12 sps:$4 sm:$0xff]  }
 0x64d   : > { %4000 = vmatpush1.bf16.msra.mxu1 %v11051_v9  ;;  %v11108_v9 = vld [vmem:[#allocation10 + $0x98] ss:$12 sps:$4 sm:$0xff]  }
 0x64e   : > { %4001 = vmatprep.subr.bf16.mxu1 %v11059_v10  ;;  %v11109_v10 = vld [vmem:[#allocation10 + $0x1b8] ss:$12 sps:$4 sm:$0xff]  }
 0x651   : > { %4002 = vmatpush1.bf16.msra.mxu1 %v11057_v11  ;;  %v11110_v11 = vld [vmem:[#allocation10 + $0x170] ss:$12 sps:$4 sm:$0xff]  }
 0x652   : > { %4003 = vmatprep.subr.bf16.mxu1 %v11065_v51  ;;  %v11111_v51 = vld [vmem:[#allocation10 + $0x290] ss:$12 sps:$4 sm:$0xff]  }
 0x655   : > { %4004 = vmatpush1.bf16.msra.mxu1 %v11063_v12  ;;  %v11112_v12 = vld [vmem:[#allocation10 + $0xb0] ss:$12 sps:$4 sm:$0xff]  }
 0x656   : > { %4005 = vmatprep.subr.bf16.mxu1 %v11071_v41  ;;  %v11116_v41 = vld [vmem:[#allocation10 + $0x2c0] ss:$12 sps:$4 sm:$0xff]  }
 0x659   : > { %4006 = vmatpush1.bf16.msra.mxu1 %v11069_v16  ;;  %v11115_v16 = vld [vmem:[#allocation10 + $0x1e8] ss:$12 sps:$4 sm:$0xff]  }
 0x65a   : > { %4007 = vmatprep.subr.bf16.mxu1 %v11077_v24  ;;  %v11118_v24 = vld [vmem:[#allocation10 + $0x2d8] ss:$12 sps:$4 sm:$0xff]  }
 0x65d   : > { %4008 = vmatpush1.bf16.msra.mxu1 %v11075_v26  ;;  %v11120_v26 = vld [vmem:[#allocation10 + $0x2f0] ss:$12 sps:$4 sm:$0xff]  }
 0x65e   : > { %4009 = vmatprep.subr.bf16.mxu1 %v11080_v28 }
 0x661   : > { %4010 = vmatpush1.bf16.msra.mxu1 %v11078_v27  ;;  %v11121_v27 = vld [vmem:[#allocation10 + $0x230] ss:$12 sps:$4 sm:$0xff]  }
 0x662   : > { %4011 = vmatprep.subr.bf16.mxu1 %v11085_v30 }
 0x665   : > { %4012 = vmatpush1.bf16.msra.mxu1 %v11083_v31 }
 0x666   : > { %4013 = vmatprep.subr.bf16.mxu1 %v11090_v33 }
 0x669   : > { %4014 = vmatpush1.bf16.msra.mxu1 %v11088_v32 }
 0x66a   : > { %4015 = vmatprep.subr.bf16.mxu1 %v11095_v34 }
 0x66d   : > { %4016 = vmatpush1.bf16.msra.mxu1 %v11093_v19 }
 0x66e   : > { %10132 = vmatprep.subr.bf16.mxu1 %v11099_v35 }
 0x6eb   : > { %v2977_v36 = vpop.f32.mrb[12].mxu1 }
 0x6ec   : > { %v10296_v37 = vpop.f32.mrb[13].mxu1  ;;  %v13030_v47 = vpack.c.bf16 %v2977_v36, %v2977_v36 }
 0x6ed   : > { %v2980_v38 = vpop.f32.mrb[14].mxu1 }
 0x6ee   : > { %v10297_v39 = vpop.f32.mrb[15].mxu1 }
 0x6f3   : > { %v3077_v40 = vpop.f32.mrb[16].mxu1 }
 0x6f4   : > { %v3083_v44 = vpack.c.bf16 %v3077_v40, %v3077_v40  ;;  %v10308_v45 = vpop.f32.mrb[17].mxu1 }
 0x6f5   : > { %v3080_v49 = vpop.f32.mrb[18].mxu1  ;;  %v3284_v45 = vld [vmem:[#allocation11] sm:$0x7] }
 0x6f6   : > { %v10309_v52 = vpop.f32.mrb[19].mxu1  ;;  %3976 = vmatprep.mubr.bf16.mxu0 %v3083_v44  ;;  %v3297_v49 = vrot.slane %v3284_v45, %v12927_v59 }
 0x6f7   : > { %3977 = vmatmul.mubr.bf16.vlgmr.msra.gmra.mrb[28].mxu0 %v13030_v47 }
 0x6f8   : > { %10111 = vmatpush3.bf16.msra.mxu0 %v11082_v46  ;;  %4058 = vmatprep.mubr.bf16.mxu0 %v3083_v44  ;;  %v3289_v46 = vrot.slane %v3284_v45, %v12896_v23 }
 0x6f9   : > { %10112 = vmatprep.subr.bf16.mxu0 %v11086_v50  ;;  %v11958_v50 = vld [vmem:[%s12832_s29] sm:$0xff] }
 0x6fa   : > { %v3301_v52 = vadd.f32 %v11958_v50, %v3289_v46  ;;  %v11179_v46 = vld [vmem:[#allocation16 + $0x368] ss:$48 sps:$4 sm:$0xff]   ;;  %v11182_v50 = vld [vmem:[#allocation16 + $0x3c0] ss:$48 sps:$4 sm:$0xff]  }
 0x6fb   : > { %v3177_v55 = vpop.f32.mrb[20].mxu1 }
 0x6fc   : > { %10113 = vmatpush3.bf16.msra.mxu0 %v11087_v53  ;;  %v10320_v18 = vpop.f32.mrb[21].mxu1  ;;  %v3183_v20 = vpack.c.bf16 %v3177_v55, %v3177_v55  ;;  %v11959_v53 = vld [vmem:[%s12832_s29 + $0x8] sm:$0xff] }
 0x6fd   : > { %v3180_v57 = vpop.f32.mrb[22].mxu1  ;;  %10114 = vmatprep.subr.bf16.mxu0 %v11091_v54 }
 0x6fe   : > { %v10321_v17 = vpop.f32.mrb[23].mxu1 }
 0x700   : > { %10115 = vmatpush3.bf16.msra.mxu0 %v11092_v56  ;;  %v11960_v56 = vld [vmem:[%s12832_s29 + $0x10] sm:$0xff] }
 0x701   : > { %10116 = vmatprep.subr.bf16.mxu0 %v11096_v15  ;;  %v3303_v57 = vadd.f32 %v11960_v56, %v3297_v49  ;;  %v11187_v49 = vld [vmem:[#allocation16 + $0x3cc] ss:$48 sps:$4 sm:$0xff]  }
 0x703   : > { %v3277_v61 = vpop.f32.mrb[24].mxu1 }
 0x704   : > { %v3283_v62 = vpack.c.bf16 %v3277_v61, %v3277_v61  ;;  %10117 = vmatpush3.bf16.msra.mxu0 %v11097_v58  ;;  %v10332_v63 = vpop.f32.mrb[25].mxu1 }
 0x705   : > { %v3280_v2 = vpop.f32.mrb[26].mxu1  ;;  %10118 = vmatprep.subr.bf16.mxu0 %v11098_v60 }
 0x706   : > { %v10333_v3 = vpop.f32.mrb[27].mxu1  ;;  %4017 = vmatprep.mubr.bf16.mxu1 %v3283_v62  ;;  %v11124_v2 = vld [vmem:[#allocation16 + $0x4] ss:$48 sps:$4 sm:$0xff]  }
 0x707   : > { %4018 = vmatmul.mubr.bf16.vlgmr.msra.gmra.mrb[28].mxu1 %v3183_v20  ;;  %v11127_v3 = vld [vmem:[#allocation16 + $0xc] ss:$48 sps:$4 sm:$0xff]  }
 0x708   : > { %10119 = vmatpush3.bf16.msra.mxu0 %v11100_v0  ;;  %10133 = vmatpush3.bf16.msra.mxu1 %v11101_v1 }
 0x709   : > { %4098 = vmatprep.mubr.bf16.mxu1 %v3283_v62  ;;  %10120 = vmatprep.subr.bf16.mxu0 %v11102_v43  ;;  %v11125_v43 = vld [vmem:[#allocation16 + $0x8] ss:$48 sps:$4 sm:$0xff]  }
 0x70a   : > { %10134 = vmatprep.subr.bf16.mxu1 %v11103_v4  ;;  %v11130_v4 = vld [vmem:[#allocation16 + $0x64] ss:$48 sps:$4 sm:$0xff]  }
 0x70c   : > { %10121 = vmatpush3.bf16.msra.mxu0 %v11104_v5  ;;  %10135 = vmatpush3.bf16.msra.mxu1 %v11105_v6  ;;  %v11133_v5 = vld [vmem:[#allocation16 + $0x6c] ss:$48 sps:$4 sm:$0xff]   ;;  %v11128_v6 = vld [vmem:[#allocation16 + $0x60] ss:$48 sps:$4 sm:$0xff]  }
 0x70d   : > { %10122 = vmatprep.subr.bf16.mxu0 %v11106_v7  ;;  %10136 = vmatprep.subr.bf16.mxu1 %v11107_v8  ;;  %v11131_v7 = vld [vmem:[#allocation16 + $0x68] ss:$48 sps:$4 sm:$0xff]   ;;  %v11136_v8 = vld [vmem:[#allocation16 + $0xc4] ss:$48 sps:$4 sm:$0xff]  }
 0x710   : > { %10123 = vmatpush3.bf16.msra.mxu0 %v11108_v9  ;;  %10137 = vmatpush3.bf16.msra.mxu1 %v11109_v10  ;;  %v11139_v9 = vld [vmem:[#allocation16 + $0xcc] ss:$48 sps:$4 sm:$0xff]   ;;  %v11134_v10 = vld [vmem:[#allocation16 + $0xc0] ss:$48 sps:$4 sm:$0xff]  }
 0x711   : > { %10124 = vmatprep.subr.bf16.mxu0 %v11110_v11  ;;  %10138 = vmatprep.subr.bf16.mxu1 %v11111_v51  ;;  %v11137_v11 = vld [vmem:[#allocation16 + $0xc8] ss:$48 sps:$4 sm:$0xff]   ;;  %v11142_v51 = vld [vmem:[#allocation16 + $0x124] ss:$48 sps:$4 sm:$0xff]  }
 0x714   : > { %10125 = vmatpush3.bf16.msra.mxu0 %v11112_v12  ;;  %10139 = vmatpush3.bf16.msra.mxu1 %v11113_v13  ;;  %v11145_v12 = vld [vmem:[#allocation16 + $0x12c] ss:$48 sps:$4 sm:$0xff]   ;;  %v11140_v13 = vld [vmem:[#allocation16 + $0x120] ss:$48 sps:$4 sm:$0xff]  }
 0x715   : > { %10140 = vmatprep.subr.bf16.mxu1 %v11114_v14  ;;  %5965 = vmatprep.subr.bf16.mxu0 %v11124_v2  ;;  %v11143_v14 = vld [vmem:[#allocation16 + $0x128] ss:$48 sps:$4 sm:$0xff]  }
 0x716   : > { %v11191_v2 = vld [vmem:[#allocation16 + $0x428] ss:$48 sps:$4 sm:$0xff]  }
 0x717   : > { %4059 = vmatmul.mubr.bf16.vlgmr.msra.gmra.mrb[32].mxu0 %v13030_v47  ;;  %v3293_v47 = vrot.slane %v3284_v45, %v12893_v22  ;;  %v11176_v45 = vld [vmem:[#allocation16 + $0x360] ss:$48 sps:$4 sm:$0xff]  }
 0x718   : > { %10141 = vmatpush3.bf16.msra.mxu1 %v11115_v16  ;;  %v11148_v16 = vld [vmem:[#allocation16 + $0x184] ss:$48 sps:$4 sm:$0xff]  }
 0x719   : > { %10142 = vmatprep.subr.bf16.mxu1 %v11116_v41  ;;  %v3302_v54 = vadd.f32 %v11959_v53, %v3293_v47  ;;  %v11151_v41 = vld [vmem:[#allocation16 + $0x18c] ss:$48 sps:$4 sm:$0xff]   ;;  %v11184_v47 = vld [vmem:[#allocation16 + $0x3c4] ss:$48 sps:$4 sm:$0xff]  }
 0x71c   : > { %10143 = vmatpush3.bf16.msra.mxu1 %v11117_v42  ;;  %v11146_v42 = vld [vmem:[#allocation16 + $0x180] ss:$48 sps:$4 sm:$0xff]  }
 0x71d   : > { %10144 = vmatprep.subr.bf16.mxu1 %v11118_v24  ;;  %v11149_v24 = vld [vmem:[#allocation16 + $0x188] ss:$48 sps:$4 sm:$0xff]  }
 0x720   : > { %10145 = vmatpush3.bf16.msra.mxu1 %v11119_v25  ;;  %v11154_v25 = vld [vmem:[#allocation16 + $0x1e4] ss:$48 sps:$4 sm:$0xff]  }
 0x721   : > { %10146 = vmatprep.subr.bf16.mxu1 %v11120_v26  ;;  %v11157_v26 = vld [vmem:[#allocation16 + $0x1ec] ss:$48 sps:$4 sm:$0xff]  }
 0x724   : > { %10147 = vmatpush3.bf16.msra.mxu1 %v11121_v27  ;;  %v11152_v27 = vld [vmem:[#allocation16 + $0x1e0] ss:$48 sps:$4 sm:$0xff]  }
 0x725   : > { %6047 = vmatprep.subr.bf16.mxu1 %v11127_v3  ;;  %v11194_v3 = vld [vmem:[#allocation16 + $0x480] ss:$48 sps:$4 sm:$0xff]  }
 0x727   : > { %4099 = vmatmul.mubr.bf16.vlgmr.msra.gmra.mrb[32].mxu1 %v3183_v20  ;;  %v11122_v20 = vld [vmem:[#allocation16] ss:$48 sps:$4 sm:$0xff]  }
 0x728   : > { %5966 = vmatpush1.bf16.msra.mxu0 %v11122_v20  ;;  %6048 = vmatpush1.bf16.msra.mxu1 %v11125_v43  ;;  %v11188_v20 = vld [vmem:[#allocation16 + $0x420] ss:$48 sps:$4 sm:$0xff]   ;;  %v11196_v43 = vld [vmem:[#allocation16 + $0x484] ss:$48 sps:$4 sm:$0xff]  }
 0x729   : > { %5967 = vmatprep.subr.bf16.mxu0 %v11130_v4  ;;  %6049 = vmatprep.subr.bf16.mxu1 %v11133_v5  ;;  %v11197_v4 = vld [vmem:[#allocation16 + $0x488] ss:$48 sps:$4 sm:$0xff]   ;;  %v11199_v5 = vld [vmem:[#allocation16 + $0x48c] ss:$48 sps:$4 sm:$0xff]  }
 0x72c   : > { %5968 = vmatpush1.bf16.msra.mxu0 %v11128_v6  ;;  %6050 = vmatpush1.bf16.msra.mxu1 %v11131_v7  ;;  %v11202_v6 = vld [vmem:[#allocation16 + $0x4e4] ss:$48 sps:$4 sm:$0xff]   ;;  %v11205_v7 = vld [vmem:[#allocation16 + $0x4ec] ss:$48 sps:$4 sm:$0xff]  }
 0x72d   : > { %5969 = vmatprep.subr.bf16.mxu0 %v11136_v8  ;;  %6051 = vmatprep.subr.bf16.mxu1 %v11139_v9  ;;  %v11200_v8 = vld [vmem:[#allocation16 + $0x4e0] ss:$48 sps:$4 sm:$0xff]   ;;  %v11203_v9 = vld [vmem:[#allocation16 + $0x4e8] ss:$48 sps:$4 sm:$0xff]  }
 0x730   : > { %5970 = vmatpush1.bf16.msra.mxu0 %v11134_v10  ;;  %6052 = vmatpush1.bf16.msra.mxu1 %v11137_v11  ;;  %v11208_v10 = vld [vmem:[#allocation16 + $0x544] ss:$48 sps:$4 sm:$0xff]   ;;  %v11211_v11 = vld [vmem:[#allocation16 + $0x54c] ss:$48 sps:$4 sm:$0xff]  }
 0x731   : > { %5971 = vmatprep.subr.bf16.mxu0 %v11142_v51  ;;  %6053 = vmatprep.subr.bf16.mxu1 %v11145_v12  ;;  %v11206_v51 = vld [vmem:[#allocation16 + $0x540] ss:$48 sps:$4 sm:$0xff]   ;;  %v11209_v12 = vld [vmem:[#allocation16 + $0x548] ss:$48 sps:$4 sm:$0xff]  }
 0x734   : > { %5972 = vmatpush1.bf16.msra.mxu0 %v11140_v13  ;;  %6054 = vmatpush1.bf16.msra.mxu1 %v11143_v14  ;;  %v11214_v13 = vld [vmem:[#allocation16 + $0x5a4] ss:$48 sps:$4 sm:$0xff]   ;;  %v11217_v14 = vld [vmem:[#allocation16 + $0x5ac] ss:$48 sps:$4 sm:$0xff]  }
 0x735   : > { %5973 = vmatprep.subr.bf16.mxu0 %v11148_v16  ;;  %6055 = vmatprep.subr.bf16.mxu1 %v11151_v41  ;;  %v11212_v16 = vld [vmem:[#allocation16 + $0x5a0] ss:$48 sps:$4 sm:$0xff]   ;;  %v11215_v41 = vld [vmem:[#allocation16 + $0x5a8] ss:$48 sps:$4 sm:$0xff]  }
 0x738   : > { %5974 = vmatpush1.bf16.msra.mxu0 %v11146_v42  ;;  %6056 = vmatpush1.bf16.msra.mxu1 %v11149_v24  ;;  %v11220_v42 = vld [vmem:[#allocation16 + $0x604] ss:$48 sps:$4 sm:$0xff]   ;;  %v11223_v24 = vld [vmem:[#allocation16 + $0x60c] ss:$48 sps:$4 sm:$0xff]  }
 0x739   : > { %5975 = vmatprep.subr.bf16.mxu0 %v11154_v25  ;;  %6057 = vmatprep.subr.bf16.mxu1 %v11157_v26 }
 0x73c   : > { %5976 = vmatpush1.bf16.msra.mxu0 %v11152_v27 }
 0x7ca   : > { %v3978_v28 = vpop.f32.mrb[28].mxu0 }
 0x7cb   : > { %v3980_v29 = vpop.f32.mrb[29].mxu0 }
 0x7cc   : > { %v3982_v30 = vpop.f32.mrb[30].mxu0 }
 0x7cd   : > { %v3983_v31 = vpop.f32.mrb[31].mxu0  ;;  %v11163_v30 = vld [vmem:[#allocation16 + $0x24c] ss:$48 sps:$4 sm:$0xff]  }
 0x7ce   : > { %v11158_v31 = vld [vmem:[#allocation16 + $0x240] ss:$48 sps:$4 sm:$0xff]  }
 0x7da   : > { %v4019_v32 = vpop.f32.mrb[28].mxu1 }
 0x7db   : > { %v4020_v33 = vadd.f32 %v4019_v32, %v3978_v28  ;;  %v4021_v34 = vpop.f32.mrb[29].mxu1  ;;  %v11155_v28 = vld [vmem:[#allocation16 + $0x1e8] ss:$48 sps:$4 sm:$0xff]  }
 0x7dc   : > { %v4022_v19 = vadd.f32 %v4021_v34, %v3980_v29  ;;  %v4023_v35 = vpop.f32.mrb[30].mxu1  ;;  %v11160_v29 = vld [vmem:[#allocation16 + $0x244] ss:$48 sps:$4 sm:$0xff]   ;;  %6058 = vmatpush1.bf16.msra.mxu1 %v11155_v28  ;;  %v11161_v32 = vld [vmem:[#allocation16 + $0x248] ss:$48 sps:$4 sm:$0xff]  }
 0x7dd   : > { %v4024_v36 = vpop.f32.mrb[31].mxu1  ;;  %v13040_v15 = vadd.f32 %v4020_v33, %v3301_v52  ;;  %5977 = vmatprep.subr.bf16.mxu0 %v11160_v29  ;;  %v11166_v33 = vld [vmem:[#allocation16 + $0x2a4] ss:$48 sps:$4 sm:$0xff]   ;;  %6059 = vmatprep.subr.bf16.mxu1 %v11163_v30  ;;  %v11169_v34 = vld [vmem:[#allocation16 + $0x2ac] ss:$48 sps:$4 sm:$0xff]  }
 0x7de   : > { %v13042_v17 = vadd.f32 %v4022_v19, %v3302_v54  ;;  %5978 = vmatpush1.bf16.msra.mxu0 %v11158_v31  ;;  %v11164_v19 = vld [vmem:[#allocation16 + $0x2a0] ss:$48 sps:$4 sm:$0xff]   ;;  %v11167_v35 = vld [vmem:[#allocation16 + $0x2a8] ss:$48 sps:$4 sm:$0xff]   ;;  %v11172_v36 = vld [vmem:[#allocation16 + $0x304] ss:$48 sps:$4 sm:$0xff]  }
 0x7df   : > { %5979 = vmatprep.subr.bf16.mxu0 %v11166_v33  ;;  %v11185_v52 = vld [vmem:[#allocation16 + $0x3c8] ss:$48 sps:$4 sm:$0xff]   ;;  %v13062_v29 = vld [vmem:[#allocation14] sm:$0x7] }
 0x7e0   : > { %v4111_v0 = vadd.f32 %v13042_v17, %v13040_v15  ;;  %6060 = vmatpush1.bf16.msra.mxu1 %v11161_v32  ;;  %v13060_v28 = vld [vmem:[#allocation13] sm:$0x7] }
 0x7e1   : > { %6061 = vmatprep.subr.bf16.mxu1 %v11169_v34  ;;  %v4140_v30 = vrot.slane %v13060_v28, %v12893_v22  ;;  %v4136_v31 = vrot.slane %v13060_v28, %v12896_v23  ;;  %v4159_v34 = vrot.slane %v13062_v29, %v12893_v22 }
 0x7e2   : > { %5980 = vmatpush1.bf16.msra.mxu0 %v11164_v19 }
 0x7e3   : > { %5981 = vmatprep.subr.bf16.mxu0 %v11172_v36 }
 0x7e4   : > { %6062 = vmatpush1.bf16.msra.mxu1 %v11167_v35  ;;  %v4155_v35 = vrot.slane %v13062_v29, %v12896_v23 }
 0x7ea   : > { %v10126_v37 = vpop.f32.mrb[32].mxu0 }
 0x7eb   : > { %v10127_v38 = vpop.f32.mrb[33].mxu0 }
 0x7ec   : > { %v10128_v39 = vadd.f32 %v10127_v38, %v10126_v37  ;;  %v10129_v40 = vpop.f32.mrb[34].mxu0  ;;  %v11175_v37 = vld [vmem:[#allocation16 + $0x30c] ss:$48 sps:$4 sm:$0xff]   ;;  %v11170_v38 = vld [vmem:[#allocation16 + $0x300] ss:$48 sps:$4 sm:$0xff]  }
 0x7ed   : > { %v10130_v44 = vpop.f32.mrb[35].mxu0  ;;  %v11178_v40 = vld [vmem:[#allocation16 + $0x364] ss:$48 sps:$4 sm:$0xff]   ;;  %6063 = vmatprep.subr.bf16.mxu1 %v11175_v37  ;;  %5982 = vmatpush1.bf16.msra.mxu0 %v11170_v38 }
 0x7ee   : > { %v11181_v44 = vld [vmem:[#allocation16 + $0x36c] ss:$48 sps:$4 sm:$0xff]   ;;  %5983 = vmatprep.subr.bf16.mxu0 %v11178_v40 }
 0x7f1   : > { %5984 = vmatpush1.bf16.msra.mxu0 %v11176_v45  ;;  %v11221_v45 = vld [vmem:[#allocation16 + $0x608] ss:$48 sps:$4 sm:$0xff]  }
 0x7f2   : > { %5985 = vmatprep.subr.bf16.mxu0 %v11184_v47  ;;  %v11226_v47 = vld [vmem:[#allocation16 + $0x664] ss:$48 sps:$4 sm:$0xff]  }
 0x7f5   : > { %5986 = vmatpush1.bf16.msra.mxu0 %v11182_v50  ;;  %v11224_v50 = vld [vmem:[#allocation16 + $0x660] ss:$48 sps:$4 sm:$0xff]  }
 0x7fa   : > { %v10148_v55 = vpop.f32.mrb[32].mxu1 }
 0x7fb   : > { %v10149_v18 = vpop.f32.mrb[33].mxu1 }
 0x7fc   : > { %v10150_v58 = vadd.f32 %v10149_v18, %v10148_v55  ;;  %v10151_v60 = vpop.f32.mrb[34].mxu1 }
 0x7fd   : > { %v10152_v61 = vpop.f32.mrb[35].mxu1 }
 0x7fe   : > { %v4101_v62 = vadd.f32 %v10150_v58, %v10128_v39  ;;  %v11173_v39 = vld [vmem:[#allocation16 + $0x308] ss:$48 sps:$4 sm:$0xff]  }
 0x7ff   : > { %6064 = vmatpush1.bf16.msra.mxu1 %v11173_v39 }
 0x800   : > { %v13044_v63 = vadd.f32 %v4101_v62, %v3303_v57  ;;  %6065 = vmatprep.subr.bf16.mxu1 %v11181_v44  ;;  %v11218_v44 = vld [vmem:[#allocation16 + $0x600] ss:$48 sps:$4 sm:$0xff]  }
 0x802   : > { %v4112_v1 = vadd.f32 %v4111_v0, %v13044_v63  ;;  %v11190_v0 = vld [vmem:[#allocation16 + $0x424] ss:$48 sps:$4 sm:$0xff]  }
 0x803   : > { %6066 = vmatpush1.bf16.msra.mxu1 %v11179_v46  ;;  %5987 = vmatprep.subr.bf16.mxu0 %v11190_v0  ;;  %v11247_v0 = vld [vmem:[#allocation16 + $0x78c] ss:$48 sps:$4 sm:$0xff]  }
 0x804   : > { %4113 = vadd.xlane.f32.xlu0 %v4112_v1  ;;  %6067 = vmatprep.subr.bf16.mxu1 %v11187_v49  ;;  %v11193_v1 = vld [vmem:[#allocation16 + $0x42c] ss:$48 sps:$4 sm:$0xff]  }
 0x805   : > { %5988 = vmatpush1.bf16.msra.mxu0 %v11188_v20  ;;  %v11229_v49 = vld [vmem:[#allocation16 + $0x66c] ss:$48 sps:$4 sm:$0xff]   ;;  %v11245_v20 = vld [vmem:[#allocation16 + $0x788] ss:$48 sps:$4 sm:$0xff]  }
 0x806   : > { %5989 = vmatprep.subr.bf16.mxu0 %v11196_v43  ;;  %v11253_v43 = vld [vmem:[#allocation16 + $0x7ec] ss:$48 sps:$4 sm:$0xff]  }
 0x807   : > { %6068 = vmatpush1.bf16.msra.mxu1 %v11185_v52  ;;  %v11227_v52 = vld [vmem:[#allocation16 + $0x668] ss:$48 sps:$4 sm:$0xff]  }
 0x808   : > { %6069 = vmatprep.subr.bf16.mxu1 %v11193_v1  ;;  %v11242_v1 = vld [vmem:[#allocation16 + $0x780] ss:$48 sps:$4 sm:$0xff]  }
 0x809   : > { %5990 = vmatpush1.bf16.msra.mxu0 %v11194_v3  ;;  %v11248_v3 = vld [vmem:[#allocation16 + $0x7e0] ss:$48 sps:$4 sm:$0xff]  }
 0x80a   : > { %5991 = vmatprep.subr.bf16.mxu0 %v11202_v6  ;;  %v11259_v6 = vld [vmem:[#allocation16 + $0x84c] ss:$48 sps:$4 sm:$0xff]  }
 0x80b   : > { %6070 = vmatpush1.bf16.msra.mxu1 %v11191_v2  ;;  %v11250_v2 = vld [vmem:[#allocation16 + $0x7e4] ss:$48 sps:$4 sm:$0xff]  }
 0x80c   : > { %6071 = vmatprep.subr.bf16.mxu1 %v11199_v5  ;;  %v11256_v5 = vld [vmem:[#allocation16 + $0x844] ss:$48 sps:$4 sm:$0xff]  }
 0x80d   : > { %5992 = vmatpush1.bf16.msra.mxu0 %v11200_v8  ;;  %v4144_v8 = vrot.slane %v13060_v28, %v12927_v59  ;;  %v11277_v28 = vld [vmem:[#allocation16 + $0x7c] ss:$48 sps:$4 sm:$0xff]  }
 0x80e   : > { %5993 = vmatprep.subr.bf16.mxu0 %v11208_v10  ;;  %v11257_v10 = vld [vmem:[#allocation16 + $0x848] ss:$48 sps:$4 sm:$0xff]  }
 0x80f   : > { %6072 = vmatpush1.bf16.msra.mxu1 %v11197_v4  ;;  %v11251_v4 = vld [vmem:[#allocation16 + $0x7e8] ss:$48 sps:$4 sm:$0xff]  }
 0x810   : > { %6073 = vmatprep.subr.bf16.mxu1 %v11205_v7 }
 0x811   : > { %5994 = vmatpush1.bf16.msra.mxu0 %v11206_v51  ;;  %v11265_v51 = vld [vmem:[#allocation16 + $0x8ac] ss:$48 sps:$4 sm:$0xff]  }
 0x812   : > { %5995 = vmatprep.subr.bf16.mxu0 %v11214_v13  ;;  %v4163_v13 = vrot.slane %v13062_v29, %v12927_v59  ;;  %v11272_v29 = vld [vmem:[#allocation16 + $0x70] ss:$48 sps:$4 sm:$0xff]  }
 0x813   : > { %6074 = vmatpush1.bf16.msra.mxu1 %v11203_v9  ;;  %v11254_v9 = vld [vmem:[#allocation16 + $0x840] ss:$48 sps:$4 sm:$0xff]  }
 0x814   : > { %6075 = vmatprep.subr.bf16.mxu1 %v11211_v11  ;;  %v11262_v11 = vld [vmem:[#allocation16 + $0x8a4] ss:$48 sps:$4 sm:$0xff]  }
 0x815   : > { %5996 = vmatpush1.bf16.msra.mxu0 %v11212_v16  ;;  %v11263_v16 = vld [vmem:[#allocation16 + $0x8a8] ss:$48 sps:$4 sm:$0xff]  }
 0x816   : > { %6006 = vmatprep.subr.bf16.mxu0 %v11220_v42  ;;  %v11271_v42 = vld [vmem:[#allocation16 + $0x1c] ss:$48 sps:$4 sm:$0xff]  }
 0x817   : > { %6076 = vmatpush1.bf16.msra.mxu1 %v11209_v12 }
 0x818   : > { %6077 = vmatprep.subr.bf16.mxu1 %v11217_v14  ;;  %v11260_v14 = vld [vmem:[#allocation16 + $0x8a0] ss:$48 sps:$4 sm:$0xff]  }
 0x81b   : > { %6078 = vmatpush1.bf16.msra.mxu1 %v11215_v41  ;;  %v11268_v41 = vld [vmem:[#allocation16 + $0x14] ss:$48 sps:$4 sm:$0xff]  }
 0x81c   : > { %6088 = vmatprep.subr.bf16.mxu1 %v11223_v24  ;;  %v11266_v24 = vld [vmem:[#allocation16 + $0x10] ss:$48 sps:$4 sm:$0xff]  }
 0x891   : > { %v4114_v53 = vpop.xlane.xlu0 %4113 }
 0x892   : > { %v4115_v54 = vmul.f32 0.0026041667, %v4114_v53  ;;  %v11232_v53 = vld [vmem:[#allocation16 + $0x6c4] ss:$48 sps:$4 sm:$0xff]  }
 0x894   : > { %v13050_v55 = vsub.f32 %v13040_v15, %v4115_v54  ;;  %v4117_v18 = vsub.f32 %v13042_v17, %v4115_v54  ;;  %v13054_v56 = vsub.f32 %v13044_v63, %v4115_v54  ;;  %v11235_v54 = vld [vmem:[#allocation16 + $0x6cc] ss:$48 sps:$4 sm:$0xff]  }
 0x896   : > { %v4119_v57 = vmul.f32 %v13050_v55, %v13050_v55  ;;  %v4120_v58 = vmul.f32 %v4117_v18, %v4117_v18  ;;  %v4121_v60 = vmul.f32 %v13054_v56, %v13054_v56 }
 0x898   : > { %v4122_v61 = vadd.f32 %v4120_v58, %v4119_v57  ;;  %v11238_v57 = vld [vmem:[#allocation16 + $0x724] ss:$48 sps:$4 sm:$0xff]   ;;  %v11241_v58 = vld [vmem:[#allocation16 + $0x72c] ss:$48 sps:$4 sm:$0xff]  }
 0x89a   : > { %v4123_v62 = vadd.f32 %v4122_v61, %v4121_v60  ;;  %v11236_v60 = vld [vmem:[#allocation16 + $0x720] ss:$48 sps:$4 sm:$0xff]   ;;  %v11239_v61 = vld [vmem:[#allocation16 + $0x728] ss:$48 sps:$4 sm:$0xff]  }
 0x89c   : > { %4124 = vadd.xlane.f32.xlu1 %v4123_v62  ;;  %v11244_v62 = vld [vmem:[#allocation16 + $0x784] ss:$48 sps:$4 sm:$0xff]  }
 0x929   : > { %v4125_v25 = vpop.xlane.xlu1 %4124 }
 0x92a   : > { %v4126_v26 = vmul.f32 0.0026041667, %v4125_v25 }
 0x92c   : > { %v4127_v27 = vadd.f32 1e-05, %v4126_v26  ;;  %v11269_v26 = vld [vmem:[#allocation16 + $0x18] ss:$48 sps:$4 sm:$0xff]  }
 0x92e   : > { %11956 = vrsqrt.f32 %v4127_v27  ;;  %v11274_v27 = vld [vmem:[#allocation16 + $0x74] ss:$48 sps:$4 sm:$0xff]  }
 0x938   : > { %v11957_v32 = vpop.eup %11956 }
 0x939   : > { %v4130_v33 = vmul.f32 %v11957_v32, %v4117_v18  ;;  %v4129_v19 = vmul.f32 %v11957_v32, %v13050_v55  ;;  %v11230_v55 = vld [vmem:[#allocation16 + $0x6c0] ss:$48 sps:$4 sm:$0xff]   ;;  %v11233_v18 = vld [vmem:[#allocation16 + $0x6c8] ss:$48 sps:$4 sm:$0xff]   ;;  %v4131_v7 = vmul.f32 %v11957_v32, %v13054_v56  ;;  %v11283_v32 = vld [vmem:[#allocation16 + $0xdc] ss:$48 sps:$4 sm:$0xff]  }
 0x93b   : > { %v4149_v36 = vmul.f32 %v4140_v30, %v4130_v33  ;;  %v4148_v37 = vmul.f32 %v4136_v31, %v4129_v19  ;;  %v4150_v12 = vmul.f32 %v4144_v8, %v4131_v7  ;;  %v11275_v30 = vld [vmem:[#allocation16 + $0x78] ss:$48 sps:$4 sm:$0xff]   ;;  %v11280_v31 = vld [vmem:[#allocation16 + $0xd4] ss:$48 sps:$4 sm:$0xff]   ;;  %v11278_v33 = vld [vmem:[#allocation16 + $0xd0] ss:$48 sps:$4 sm:$0xff]  }
 0x93c   : > { %v11286_v19 = vld [vmem:[#allocation16 + $0x134] ss:$48 sps:$4 sm:$0xff]   ;;  %v11326_v7 = vld [vmem:[#allocation16 + $0x3d0] ss:$48 sps:$4 sm:$0xff]   ;;  %v11329_v8 = vld [vmem:[#allocation16 + $0x3d8] ss:$48 sps:$4 sm:$0xff]  }
 0x93d   : > { %v4168_v38 = vadd.f32 %v4159_v34, %v4149_v36  ;;  %v4167_v39 = vadd.f32 %v4155_v35, %v4148_v37  ;;  %v4169_v56 = vadd.f32 %v4163_v13, %v4150_v12  ;;  %v11281_v34 = vld [vmem:[#allocation16 + $0xd8] ss:$48 sps:$4 sm:$0xff]   ;;  %v11289_v35 = vld [vmem:[#allocation16 + $0x13c] ss:$48 sps:$4 sm:$0xff]   ;;  %v11284_v36 = vld [vmem:[#allocation16 + $0x130] ss:$48 sps:$4 sm:$0xff]  }
 0x93e   : > { %v11287_v37 = vld [vmem:[#allocation16 + $0x138] ss:$48 sps:$4 sm:$0xff]   ;;  %v11340_v12 = vld [vmem:[#allocation16 + $0x494] ss:$48 sps:$4 sm:$0xff]   ;;  %v11343_v13 = vld [vmem:[#allocation16 + $0x49c] ss:$48 sps:$4 sm:$0xff]  }
 0x93f   : > { %v13073_v40 = vpack.c.bf16 %v4168_v38, %v4168_v38  ;;  %v13075_v46 = vpack.c.bf16 %v4167_v39, %v4167_v39  ;;  %v13088_v25 = vpack.c.bf16 %v4169_v56, %v4169_v56  ;;  %v11292_v38 = vld [vmem:[#allocation16 + $0x194] ss:$48 sps:$4 sm:$0xff]   ;;  %v11295_v39 = vld [vmem:[#allocation16 + $0x19c] ss:$48 sps:$4 sm:$0xff]  }
 0x940   : > { %v11346_v56 = vld [vmem:[#allocation16 + $0x4f4] ss:$48 sps:$4 sm:$0xff]  }
 0x941   : > { %5997 = vmatprep.mubr.bf16.mxu0 %v13073_v40  ;;  %6079 = vmatprep.mubr.bf16.mxu1 %v13073_v40 }
 0x942   : > { %5998 = vmatmul.mubr.bf16.vlgmr.msra.gmra.mrb[36].mxu0 %v13075_v46  ;;  %6080 = vmatmul.mubr.bf16.vlgmr.msra.gmra.mrb[36].mxu1 %v13075_v46 }
 0x943   : > { %6007 = vmatpush1.bf16.msra.mxu0 %v11218_v44  ;;  %6089 = vmatpush1.bf16.msra.mxu1 %v11221_v45  ;;  %v11290_v44 = vld [vmem:[#allocation16 + $0x190] ss:$48 sps:$4 sm:$0xff]   ;;  %v11293_v45 = vld [vmem:[#allocation16 + $0x198] ss:$48 sps:$4 sm:$0xff]  }
 0x944   : > { %6008 = vmatprep.subr.bf16.mxu0 %v11226_v47  ;;  %6090 = vmatprep.subr.bf16.mxu1 %v11229_v49  ;;  %v11298_v47 = vld [vmem:[#allocation16 + $0x1f4] ss:$48 sps:$4 sm:$0xff]   ;;  %v11301_v49 = vld [vmem:[#allocation16 + $0x1fc] ss:$48 sps:$4 sm:$0xff]  }
 0x945   : > { %6038 = vmatprep.mubr.bf16.mxu0 %v12407_v48  ;;  %6120 = vmatprep.mubr.bf16.mxu1 %v12407_v48 }
 0x947   : > { %6009 = vmatpush1.bf16.msra.mxu0 %v11224_v50  ;;  %6091 = vmatpush1.bf16.msra.mxu1 %v11227_v52  ;;  %v11296_v50 = vld [vmem:[#allocation16 + $0x1f0] ss:$48 sps:$4 sm:$0xff]   ;;  %v11299_v52 = vld [vmem:[#allocation16 + $0x1f8] ss:$48 sps:$4 sm:$0xff]  }
 0x948   : > { %6010 = vmatprep.subr.bf16.mxu0 %v11232_v53  ;;  %6092 = vmatprep.subr.bf16.mxu1 %v11235_v54  ;;  %v11304_v53 = vld [vmem:[#allocation16 + $0x254] ss:$48 sps:$4 sm:$0xff]   ;;  %v11307_v54 = vld [vmem:[#allocation16 + $0x25c] ss:$48 sps:$4 sm:$0xff]  }
 0x94b   : > { %6011 = vmatpush1.bf16.msra.mxu0 %v11230_v55  ;;  %6093 = vmatpush1.bf16.msra.mxu1 %v11233_v18  ;;  %v11302_v55 = vld [vmem:[#allocation16 + $0x250] ss:$48 sps:$4 sm:$0xff]   ;;  %v11305_v18 = vld [vmem:[#allocation16 + $0x258] ss:$48 sps:$4 sm:$0xff]  }
 0x94c   : > { %6012 = vmatprep.subr.bf16.mxu0 %v11238_v57  ;;  %6094 = vmatprep.subr.bf16.mxu1 %v11241_v58  ;;  %v11310_v57 = vld [vmem:[#allocation16 + $0x2b4] ss:$48 sps:$4 sm:$0xff]   ;;  %v11313_v58 = vld [vmem:[#allocation16 + $0x2bc] ss:$48 sps:$4 sm:$0xff]  }
 0x94f   : > { %6013 = vmatpush1.bf16.msra.mxu0 %v11236_v60  ;;  %6095 = vmatpush1.bf16.msra.mxu1 %v11239_v61  ;;  %v11308_v60 = vld [vmem:[#allocation16 + $0x2b0] ss:$48 sps:$4 sm:$0xff]   ;;  %v11311_v61 = vld [vmem:[#allocation16 + $0x2b8] ss:$48 sps:$4 sm:$0xff]  }
 0x950   : > { %6014 = vmatprep.subr.bf16.mxu0 %v11244_v62  ;;  %6096 = vmatprep.subr.bf16.mxu1 %v11247_v0  ;;  %v11316_v62 = vld [vmem:[#allocation16 + $0x314] ss:$48 sps:$4 sm:$0xff]   ;;  %v11319_v0 = vld [vmem:[#allocation16 + $0x31c] ss:$48 sps:$4 sm:$0xff]  }
 0x953   : > { %6015 = vmatpush1.bf16.msra.mxu0 %v11242_v1  ;;  %6097 = vmatpush1.bf16.msra.mxu1 %v11245_v20  ;;  %v11314_v1 = vld [vmem:[#allocation16 + $0x310] ss:$48 sps:$4 sm:$0xff]   ;;  %v11317_v20 = vld [vmem:[#allocation16 + $0x318] ss:$48 sps:$4 sm:$0xff]  }
 0x954   : > { %6016 = vmatprep.subr.bf16.mxu0 %v11250_v2  ;;  %6098 = vmatprep.subr.bf16.mxu1 %v11253_v43  ;;  %v11322_v2 = vld [vmem:[#allocation16 + $0x374] ss:$48 sps:$4 sm:$0xff]   ;;  %v11325_v43 = vld [vmem:[#allocation16 + $0x37c] ss:$48 sps:$4 sm:$0xff]  }
 0x957   : > { %6017 = vmatpush1.bf16.msra.mxu0 %v11248_v3  ;;  %6099 = vmatpush1.bf16.msra.mxu1 %v11251_v4  ;;  %v11320_v3 = vld [vmem:[#allocation16 + $0x370] ss:$48 sps:$4 sm:$0xff]   ;;  %v11323_v4 = vld [vmem:[#allocation16 + $0x378] ss:$48 sps:$4 sm:$0xff]  }
 0x958   : > { %6018 = vmatprep.subr.bf16.mxu0 %v11256_v5  ;;  %6100 = vmatprep.subr.bf16.mxu1 %v11259_v6  ;;  %v11328_v5 = vld [vmem:[#allocation16 + $0x3d4] ss:$48 sps:$4 sm:$0xff]   ;;  %v11331_v6 = vld [vmem:[#allocation16 + $0x3dc] ss:$48 sps:$4 sm:$0xff]  }
 0x95b   : > { %6019 = vmatpush1.bf16.msra.mxu0 %v11254_v9  ;;  %6101 = vmatpush1.bf16.msra.mxu1 %v11257_v10  ;;  %v11334_v9 = vld [vmem:[#allocation16 + $0x434] ss:$48 sps:$4 sm:$0xff]   ;;  %v11337_v10 = vld [vmem:[#allocation16 + $0x43c] ss:$48 sps:$4 sm:$0xff]  }
 0x95c   : > { %6020 = vmatprep.subr.bf16.mxu0 %v11262_v11  ;;  %6102 = vmatprep.subr.bf16.mxu1 %v11265_v51  ;;  %v11332_v11 = vld [vmem:[#allocation16 + $0x430] ss:$48 sps:$4 sm:$0xff]   ;;  %v11335_v51 = vld [vmem:[#allocation16 + $0x438] ss:$48 sps:$4 sm:$0xff]  }
 0x95f   : > { %6021 = vmatpush1.bf16.msra.mxu0 %v11260_v14  ;;  %6103 = vmatpush1.bf16.msra.mxu1 %v11263_v16  ;;  %v11338_v14 = vld [vmem:[#allocation16 + $0x490] ss:$48 sps:$4 sm:$0xff]   ;;  %v11341_v16 = vld [vmem:[#allocation16 + $0x498] ss:$48 sps:$4 sm:$0xff]  }
 0x960   : > { %6129 = vmatprep.subr.bf16.mxu0 %v11268_v41  ;;  %6211 = vmatprep.subr.bf16.mxu1 %v11271_v42  ;;  %v11349_v41 = vld [vmem:[#allocation16 + $0x4fc] ss:$48 sps:$4 sm:$0xff]   ;;  %v11344_v42 = vld [vmem:[#allocation16 + $0x4f0] ss:$48 sps:$4 sm:$0xff]  }
 0x962   : > { %6039 = vmatmul.mubr.bf16.vlgmr.msra.gmra.mrb[36].mxu0 %v13088_v25  ;;  %6121 = vmatmul.mubr.bf16.vlgmr.msra.gmra.mrb[36].mxu1 %v13088_v25 }
 0x963   : > { %6130 = vmatpush1.bf16.msra.mxu0 %v11266_v24  ;;  %6161 = vmatprep.mubr.bf16.mxu0 %v13073_v40  ;;  %v11347_v24 = vld [vmem:[#allocation16 + $0x4f8] ss:$48 sps:$4 sm:$0xff]  }
 0x964   : > { %6212 = vmatpush1.bf16.msra.mxu1 %v11269_v26  ;;  %6243 = vmatprep.mubr.bf16.mxu1 %v13073_v40  ;;  %v11352_v26 = vld [vmem:[#allocation16 + $0x554] ss:$48 sps:$4 sm:$0xff]  }
 0x965   : > { %6131 = vmatprep.subr.bf16.mxu0 %v11274_v27  ;;  %6213 = vmatprep.subr.bf16.mxu1 %v11277_v28  ;;  %v11355_v27 = vld [vmem:[#allocation16 + $0x55c] ss:$48 sps:$4 sm:$0xff]   ;;  %v11350_v28 = vld [vmem:[#allocation16 + $0x550] ss:$48 sps:$4 sm:$0xff]  }
 0x967   : > { %6132 = vmatpush1.bf16.msra.mxu0 %v11272_v29  ;;  %v11353_v29 = vld [vmem:[#allocation16 + $0x558] ss:$48 sps:$4 sm:$0xff]  }
 0x968   : > { %6214 = vmatpush1.bf16.msra.mxu1 %v11275_v30  ;;  %6133 = vmatprep.subr.bf16.mxu0 %v11280_v31  ;;  %v11358_v30 = vld [vmem:[#allocation16 + $0x5b4] ss:$48 sps:$4 sm:$0xff]   ;;  %v11361_v31 = vld [vmem:[#allocation16 + $0x5bc] ss:$48 sps:$4 sm:$0xff]  }
 0x969   : > { %6215 = vmatprep.subr.bf16.mxu1 %v11283_v32  ;;  %v11356_v32 = vld [vmem:[#allocation16 + $0x5b0] ss:$48 sps:$4 sm:$0xff]  }
 0x96b   : > { %6134 = vmatpush1.bf16.msra.mxu0 %v11278_v33  ;;  %v11359_v33 = vld [vmem:[#allocation16 + $0x5b8] ss:$48 sps:$4 sm:$0xff]  }
 0x96c   : > { %6216 = vmatpush1.bf16.msra.mxu1 %v11281_v34  ;;  %6135 = vmatprep.subr.bf16.mxu0 %v11286_v19  ;;  %v11364_v34 = vld [vmem:[#allocation16 + $0x614] ss:$48 sps:$4 sm:$0xff]   ;;  %v11367_v19 = vld [vmem:[#allocation16 + $0x61c] ss:$48 sps:$4 sm:$0xff]  }
 0x96d   : > { %6217 = vmatprep.subr.bf16.mxu1 %v11289_v35  ;;  %v11362_v35 = vld [vmem:[#allocation16 + $0x610] ss:$48 sps:$4 sm:$0xff]  }
 0x96f   : > { %6136 = vmatpush1.bf16.msra.mxu0 %v11284_v36  ;;  %v11365_v36 = vld [vmem:[#allocation16 + $0x618] ss:$48 sps:$4 sm:$0xff]  }
 0x970   : > { %6218 = vmatpush1.bf16.msra.mxu1 %v11287_v37  ;;  %6137 = vmatprep.subr.bf16.mxu0 %v11292_v38  ;;  %v11370_v37 = vld [vmem:[#allocation16 + $0x674] ss:$48 sps:$4 sm:$0xff]   ;;  %v11373_v38 = vld [vmem:[#allocation16 + $0x67c] ss:$48 sps:$4 sm:$0xff]  }
 0x971   : > { %6219 = vmatprep.subr.bf16.mxu1 %v11295_v39  ;;  %v11368_v39 = vld [vmem:[#allocation16 + $0x670] ss:$48 sps:$4 sm:$0xff]  }
 0x973   : > { %6138 = vmatpush1.bf16.msra.mxu0 %v11290_v44  ;;  %v11371_v44 = vld [vmem:[#allocation16 + $0x678] ss:$48 sps:$4 sm:$0xff]  }
 0x974   : > { %6220 = vmatpush1.bf16.msra.mxu1 %v11293_v45  ;;  %6139 = vmatprep.subr.bf16.mxu0 %v11298_v47  ;;  %v11376_v45 = vld [vmem:[#allocation16 + $0x6d4] ss:$48 sps:$4 sm:$0xff]   ;;  %v11379_v47 = vld [vmem:[#allocation16 + $0x6dc] ss:$48 sps:$4 sm:$0xff]  }
 0x975   : > { %6221 = vmatprep.subr.bf16.mxu1 %v11301_v49  ;;  %v11374_v49 = vld [vmem:[#allocation16 + $0x6d0] ss:$48 sps:$4 sm:$0xff]  }
 0x977   : > { %6140 = vmatpush1.bf16.msra.mxu0 %v11296_v50  ;;  %v11377_v50 = vld [vmem:[#allocation16 + $0x6d8] ss:$48 sps:$4 sm:$0xff]  }
 0x978   : > { %6222 = vmatpush1.bf16.msra.mxu1 %v11299_v52  ;;  %6141 = vmatprep.subr.bf16.mxu0 %v11304_v53  ;;  %v11382_v52 = vld [vmem:[#allocation16 + $0x734] ss:$48 sps:$4 sm:$0xff]   ;;  %v11385_v53 = vld [vmem:[#allocation16 + $0x73c] ss:$48 sps:$4 sm:$0xff]  }
 0x979   : > { %6223 = vmatprep.subr.bf16.mxu1 %v11307_v54  ;;  %v11380_v54 = vld [vmem:[#allocation16 + $0x730] ss:$48 sps:$4 sm:$0xff]  }
 0x97b   : > { %6142 = vmatpush1.bf16.msra.mxu0 %v11302_v55  ;;  %v11383_v55 = vld [vmem:[#allocation16 + $0x738] ss:$48 sps:$4 sm:$0xff]  }
 0x97c   : > { %6224 = vmatpush1.bf16.msra.mxu1 %v11305_v18  ;;  %6143 = vmatprep.subr.bf16.mxu0 %v11310_v57  ;;  %v11388_v18 = vld [vmem:[#allocation16 + $0x794] ss:$48 sps:$4 sm:$0xff]   ;;  %v11391_v57 = vld [vmem:[#allocation16 + $0x79c] ss:$48 sps:$4 sm:$0xff]  }
 0x97d   : > { %6225 = vmatprep.subr.bf16.mxu1 %v11313_v58  ;;  %v11386_v58 = vld [vmem:[#allocation16 + $0x790] ss:$48 sps:$4 sm:$0xff]  }
 0x97f   : > { %6144 = vmatpush1.bf16.msra.mxu0 %v11308_v60  ;;  %v11389_v60 = vld [vmem:[#allocation16 + $0x798] ss:$48 sps:$4 sm:$0xff]  }
 0x980   : > { %6226 = vmatpush1.bf16.msra.mxu1 %v11311_v61  ;;  %6145 = vmatprep.subr.bf16.mxu0 %v11316_v62  ;;  %v11394_v61 = vld [vmem:[#allocation16 + $0x7f4] ss:$48 sps:$4 sm:$0xff]   ;;  %v11397_v62 = vld [vmem:[#allocation16 + $0x7fc] ss:$48 sps:$4 sm:$0xff]  }
 0x981   : > { %6227 = vmatprep.subr.bf16.mxu1 %v11319_v0  ;;  %v11392_v0 = vld [vmem:[#allocation16 + $0x7f0] ss:$48 sps:$4 sm:$0xff]  }
 0x983   : > { %6146 = vmatpush1.bf16.msra.mxu0 %v11314_v1  ;;  %v11395_v1 = vld [vmem:[#allocation16 + $0x7f8] ss:$48 sps:$4 sm:$0xff]  }
 0x984   : > { %6228 = vmatpush1.bf16.msra.mxu1 %v11317_v20  ;;  %6147 = vmatprep.subr.bf16.mxu0 %v11322_v2  ;;  %v11400_v20 = vld [vmem:[#allocation16 + $0x854] ss:$48 sps:$4 sm:$0xff]   ;;  %v11403_v2 = vld [vmem:[#allocation16 + $0x85c] ss:$48 sps:$4 sm:$0xff]  }
 0x985   : > { %6229 = vmatprep.subr.bf16.mxu1 %v11325_v43  ;;  %v11398_v43 = vld [vmem:[#allocation16 + $0x850] ss:$48 sps:$4 sm:$0xff]  }
 0x987   : > { %6148 = vmatpush1.bf16.msra.mxu0 %v11320_v3  ;;  %v11401_v3 = vld [vmem:[#allocation16 + $0x858] ss:$48 sps:$4 sm:$0xff]  }
 0x988   : > { %6230 = vmatpush1.bf16.msra.mxu1 %v11323_v4  ;;  %6149 = vmatprep.subr.bf16.mxu0 %v11328_v5  ;;  %v11406_v4 = vld [vmem:[#allocation16 + $0x8b4] ss:$48 sps:$4 sm:$0xff]   ;;  %v11409_v5 = vld [vmem:[#allocation16 + $0x8bc] ss:$48 sps:$4 sm:$0xff]  }
 0x989   : > { %6231 = vmatprep.subr.bf16.mxu1 %v11331_v6  ;;  %v11404_v6 = vld [vmem:[#allocation16 + $0x8b0] ss:$48 sps:$4 sm:$0xff]  }
 0x98b   : > { %6150 = vmatpush1.bf16.msra.mxu0 %v11326_v7  ;;  %v11407_v7 = vld [vmem:[#allocation16 + $0x8b8] ss:$48 sps:$4 sm:$0xff]  }
 0x98c   : > { %6232 = vmatpush1.bf16.msra.mxu1 %v11329_v8  ;;  %6151 = vmatprep.subr.bf16.mxu0 %v11334_v9  ;;  %v11412_v8 = vld [vmem:[#allocation16 + $0x24] ss:$48 sps:$4 sm:$0xff]   ;;  %v11415_v9 = vld [vmem:[#allocation16 + $0x2c] ss:$48 sps:$4 sm:$0xff]  }
 0x98d   : > { %6233 = vmatprep.subr.bf16.mxu1 %v11337_v10  ;;  %v11410_v10 = vld [vmem:[#allocation16 + $0x20] ss:$48 sps:$4 sm:$0xff]  }
 0x98f   : > { %6152 = vmatpush1.bf16.msra.mxu0 %v11332_v11  ;;  %v11413_v11 = vld [vmem:[#allocation16 + $0x28] ss:$48 sps:$4 sm:$0xff]  }
 0x990   : > { %6234 = vmatpush1.bf16.msra.mxu1 %v11335_v51  ;;  %6153 = vmatprep.subr.bf16.mxu0 %v11340_v12  ;;  %v11418_v51 = vld [vmem:[#allocation16 + $0x84] ss:$48 sps:$4 sm:$0xff]   ;;  %v11421_v12 = vld [vmem:[#allocation16 + $0x8c] ss:$48 sps:$4 sm:$0xff]  }
 0x991   : > { %6235 = vmatprep.subr.bf16.mxu1 %v11343_v13  ;;  %v11416_v13 = vld [vmem:[#allocation16 + $0x80] ss:$48 sps:$4 sm:$0xff]  }
 0x993   : > { %6154 = vmatpush1.bf16.msra.mxu0 %v11338_v14  ;;  %v11419_v14 = vld [vmem:[#allocation16 + $0x88] ss:$48 sps:$4 sm:$0xff]  }
 0x994   : > { %6236 = vmatpush1.bf16.msra.mxu1 %v11341_v16  ;;  %6155 = vmatprep.subr.bf16.mxu0 %v11346_v56  ;;  %v11424_v16 = vld [vmem:[#allocation16 + $0xe4] ss:$48 sps:$4 sm:$0xff]   ;;  %v11427_v56 = vld [vmem:[#allocation16 + $0xec] ss:$48 sps:$4 sm:$0xff]  }
 0x995   : > { %6237 = vmatprep.subr.bf16.mxu1 %v11349_v41  ;;  %v11422_v41 = vld [vmem:[#allocation16 + $0xe0] ss:$48 sps:$4 sm:$0xff]  }
 0x997   : > { %6156 = vmatpush1.bf16.msra.mxu0 %v11344_v42  ;;  %v11425_v42 = vld [vmem:[#allocation16 + $0xe8] ss:$48 sps:$4 sm:$0xff]  }
 0x998   : > { %6238 = vmatpush1.bf16.msra.mxu1 %v11347_v24  ;;  %6157 = vmatprep.subr.bf16.mxu0 %v11352_v26  ;;  %v11430_v24 = vld [vmem:[#allocation16 + $0x144] ss:$48 sps:$4 sm:$0xff]   ;;  %v11433_v26 = vld [vmem:[#allocation16 + $0x14c] ss:$48 sps:$4 sm:$0xff]  }
 0x999   : > { %6239 = vmatprep.subr.bf16.mxu1 %v11355_v27  ;;  %v11428_v27 = vld [vmem:[#allocation16 + $0x140] ss:$48 sps:$4 sm:$0xff]  }
 0x99b   : > { %6158 = vmatpush1.bf16.msra.mxu0 %v11350_v28  ;;  %v11431_v28 = vld [vmem:[#allocation16 + $0x148] ss:$48 sps:$4 sm:$0xff]  }
 0x99c   : > { %6240 = vmatpush1.bf16.msra.mxu1 %v11353_v29  ;;  %6159 = vmatprep.subr.bf16.mxu0 %v11358_v30  ;;  %v11436_v29 = vld [vmem:[#allocation16 + $0x1a4] ss:$48 sps:$4 sm:$0xff]   ;;  %v11439_v30 = vld [vmem:[#allocation16 + $0x1ac] ss:$48 sps:$4 sm:$0xff]  }
 0x99d   : > { %6241 = vmatprep.subr.bf16.mxu1 %v11361_v31  ;;  %v11437_v31 = vld [vmem:[#allocation16 + $0x1a8] ss:$48 sps:$4 sm:$0xff]  }
 0x99f   : > { %6160 = vmatpush1.bf16.msra.mxu0 %v11356_v32  ;;  %v11442_v32 = vld [vmem:[#allocation16 + $0x204] ss:$48 sps:$4 sm:$0xff]  }
 0x9a0   : > { %6242 = vmatpush1.bf16.msra.mxu1 %v11359_v33  ;;  %6170 = vmatprep.subr.bf16.mxu0 %v11364_v34  ;;  %v11445_v33 = vld [vmem:[#allocation16 + $0x20c] ss:$48 sps:$4 sm:$0xff]   ;;  %v11440_v34 = vld [vmem:[#allocation16 + $0x200] ss:$48 sps:$4 sm:$0xff]  }
 0x9a1   : > { %6252 = vmatprep.subr.bf16.mxu1 %v11367_v19  ;;  %v11443_v19 = vld [vmem:[#allocation16 + $0x208] ss:$48 sps:$4 sm:$0xff]  }
 0x9a2   : > { %6162 = vmatmul.mubr.bf16.vlgmr.msra.gmra.mrb[40].mxu0 %v13075_v46 }
 0x9a3   : > { %6244 = vmatmul.mubr.bf16.vlgmr.msra.gmra.mrb[40].mxu1 %v13075_v46  ;;  %6171 = vmatpush1.bf16.msra.mxu0 %v11362_v35  ;;  %v11448_v35 = vld [vmem:[#allocation16 + $0x264] ss:$48 sps:$4 sm:$0xff]  }
 0x9a4   : > { %6253 = vmatpush1.bf16.msra.mxu1 %v11365_v36  ;;  %6172 = vmatprep.subr.bf16.mxu0 %v11370_v37  ;;  %v11451_v36 = vld [vmem:[#allocation16 + $0x26c] ss:$48 sps:$4 sm:$0xff]   ;;  %v11446_v37 = vld [vmem:[#allocation16 + $0x260] ss:$48 sps:$4 sm:$0xff]  }
 0x9a5   : > { %6254 = vmatprep.subr.bf16.mxu1 %v11373_v38  ;;  %6202 = vmatprep.mubr.bf16.mxu0 %v12407_v48  ;;  %v11449_v38 = vld [vmem:[#allocation16 + $0x268] ss:$48 sps:$4 sm:$0xff]  }
 0x9a6   : > { %6284 = vmatprep.mubr.bf16.mxu1 %v12407_v48 }
 0x9a7   : > { %6173 = vmatpush1.bf16.msra.mxu0 %v11368_v39  ;;  %v11454_v39 = vld [vmem:[#allocation16 + $0x2c4] ss:$48 sps:$4 sm:$0xff]  }
 0x9a8   : > { %6255 = vmatpush1.bf16.msra.mxu1 %v11371_v44  ;;  %6174 = vmatprep.subr.bf16.mxu0 %v11376_v45  ;;  %v11457_v44 = vld [vmem:[#allocation16 + $0x2cc] ss:$48 sps:$4 sm:$0xff]   ;;  %v11452_v45 = vld [vmem:[#allocation16 + $0x2c0] ss:$48 sps:$4 sm:$0xff]  }
 0x9a9   : > { %6256 = vmatprep.subr.bf16.mxu1 %v11379_v47  ;;  %v11455_v47 = vld [vmem:[#allocation16 + $0x2c8] ss:$48 sps:$4 sm:$0xff]  }
 0x9ab   : > { %6175 = vmatpush1.bf16.msra.mxu0 %v11374_v49  ;;  %v11460_v49 = vld [vmem:[#allocation16 + $0x324] ss:$48 sps:$4 sm:$0xff]  }
 0x9ac   : > { %6257 = vmatpush1.bf16.msra.mxu1 %v11377_v50  ;;  %6176 = vmatprep.subr.bf16.mxu0 %v11382_v52  ;;  %v11463_v50 = vld [vmem:[#allocation16 + $0x32c] ss:$48 sps:$4 sm:$0xff]   ;;  %v11458_v52 = vld [vmem:[#allocation16 + $0x320] ss:$48 sps:$4 sm:$0xff]  }
 0x9ad   : > { %6258 = vmatprep.subr.bf16.mxu1 %v11385_v53  ;;  %v11461_v53 = vld [vmem:[#allocation16 + $0x328] ss:$48 sps:$4 sm:$0xff]  }
 0x9af   : > { %6177 = vmatpush1.bf16.msra.mxu0 %v11380_v54  ;;  %v11466_v54 = vld [vmem:[#allocation16 + $0x384] ss:$48 sps:$4 sm:$0xff]  }
 0x9b0   : > { %6259 = vmatpush1.bf16.msra.mxu1 %v11383_v55  ;;  %6178 = vmatprep.subr.bf16.mxu0 %v11388_v18  ;;  %v11469_v55 = vld [vmem:[#allocation16 + $0x38c] ss:$48 sps:$4 sm:$0xff]   ;;  %v11464_v18 = vld [vmem:[#allocation16 + $0x380] ss:$48 sps:$4 sm:$0xff]  }
 0x9b1   : > { %6260 = vmatprep.subr.bf16.mxu1 %v11391_v57  ;;  %v11467_v57 = vld [vmem:[#allocation16 + $0x388] ss:$48 sps:$4 sm:$0xff]  }
 0x9b3   : > { %6179 = vmatpush1.bf16.msra.mxu0 %v11386_v58  ;;  %v11472_v58 = vld [vmem:[#allocation16 + $0x3e4] ss:$48 sps:$4 sm:$0xff]  }
 0x9b4   : > { %6261 = vmatpush1.bf16.msra.mxu1 %v11389_v60  ;;  %6180 = vmatprep.subr.bf16.mxu0 %v11394_v61  ;;  %v11475_v60 = vld [vmem:[#allocation16 + $0x3ec] ss:$48 sps:$4 sm:$0xff]   ;;  %v11470_v61 = vld [vmem:[#allocation16 + $0x3e0] ss:$48 sps:$4 sm:$0xff]  }
 0x9b5   : > { %6262 = vmatprep.subr.bf16.mxu1 %v11397_v62  ;;  %v11473_v62 = vld [vmem:[#allocation16 + $0x3e8] ss:$48 sps:$4 sm:$0xff]  }
 0x9b7   : > { %6181 = vmatpush1.bf16.msra.mxu0 %v11392_v0  ;;  %v11478_v0 = vld [vmem:[#allocation16 + $0x444] ss:$48 sps:$4 sm:$0xff]  }
 0x9b8   : > { %6263 = vmatpush1.bf16.msra.mxu1 %v11395_v1  ;;  %6182 = vmatprep.subr.bf16.mxu0 %v11400_v20  ;;  %v11481_v1 = vld [vmem:[#allocation16 + $0x44c] ss:$48 sps:$4 sm:$0xff]   ;;  %v11476_v20 = vld [vmem:[#allocation16 + $0x440] ss:$48 sps:$4 sm:$0xff]  }
 0x9b9   : > { %6264 = vmatprep.subr.bf16.mxu1 %v11403_v2  ;;  %v11479_v2 = vld [vmem:[#allocation16 + $0x448] ss:$48 sps:$4 sm:$0xff]  }
 0x9bb   : > { %6183 = vmatpush1.bf16.msra.mxu0 %v11398_v43  ;;  %v11484_v43 = vld [vmem:[#allocation16 + $0x4a4] ss:$48 sps:$4 sm:$0xff]  }
 0x9bc   : > { %6265 = vmatpush1.bf16.msra.mxu1 %v11401_v3  ;;  %6184 = vmatprep.subr.bf16.mxu0 %v11406_v4  ;;  %v11487_v3 = vld [vmem:[#allocation16 + $0x4ac] ss:$48 sps:$4 sm:$0xff]   ;;  %v11482_v4 = vld [vmem:[#allocation16 + $0x4a0] ss:$48 sps:$4 sm:$0xff]  }
 0x9bd   : > { %6266 = vmatprep.subr.bf16.mxu1 %v11409_v5  ;;  %v11485_v5 = vld [vmem:[#allocation16 + $0x4a8] ss:$48 sps:$4 sm:$0xff]  }
 0x9bf   : > { %6185 = vmatpush1.bf16.msra.mxu0 %v11404_v6  ;;  %v11490_v6 = vld [vmem:[#allocation16 + $0x504] ss:$48 sps:$4 sm:$0xff]  }
 0x9c0   : > { %6267 = vmatpush1.bf16.msra.mxu1 %v11407_v7  ;;  %6293 = vmatprep.subr.bf16.mxu0 %v11412_v8  ;;  %v11493_v7 = vld [vmem:[#allocation16 + $0x50c] ss:$48 sps:$4 sm:$0xff]   ;;  %v11488_v8 = vld [vmem:[#allocation16 + $0x500] ss:$48 sps:$4 sm:$0xff]  }
 0x9c1   : > { %6375 = vmatprep.subr.bf16.mxu1 %v11415_v9  ;;  %v11491_v9 = vld [vmem:[#allocation16 + $0x508] ss:$48 sps:$4 sm:$0xff]  }
 0x9c2   : > { %6203 = vmatmul.mubr.bf16.vlgmr.msra.gmra.mrb[40].mxu0 %v13088_v25 }
 0x9c3   : > { %6285 = vmatmul.mubr.bf16.vlgmr.msra.gmra.mrb[40].mxu1 %v13088_v25  ;;  %6294 = vmatpush1.bf16.msra.mxu0 %v11410_v10  ;;  %v11496_v10 = vld [vmem:[#allocation16 + $0x564] ss:$48 sps:$4 sm:$0xff]  }
 0x9c4   : > { %6325 = vmatprep.mubr.bf16.mxu0 %v13073_v40  ;;  %6376 = vmatpush1.bf16.msra.mxu1 %v11413_v11  ;;  %v11499_v11 = vld [vmem:[#allocation16 + $0x56c] ss:$48 sps:$4 sm:$0xff]  }
 0x9c5   : > { %6407 = vmatprep.mubr.bf16.mxu1 %v13073_v40  ;;  %6295 = vmatprep.subr.bf16.mxu0 %v11418_v51  ;;  %v11434_v40 = vld [vmem:[#allocation16 + $0x1a0] ss:$48 sps:$4 sm:$0xff]  }
 0x9c6   : > { %6377 = vmatprep.subr.bf16.mxu1 %v11421_v12  ;;  %v11494_v51 = vld [vmem:[#allocation16 + $0x560] ss:$48 sps:$4 sm:$0xff]   ;;  %v11497_v12 = vld [vmem:[#allocation16 + $0x568] ss:$48 sps:$4 sm:$0xff]  }
 0x9c7   : > { %6296 = vmatpush1.bf16.msra.mxu0 %v11416_v13  ;;  %v11502_v13 = vld [vmem:[#allocation16 + $0x5c4] ss:$48 sps:$4 sm:$0xff]  }
 0x9c8   : > { %6378 = vmatpush1.bf16.msra.mxu1 %v11419_v14  ;;  %6297 = vmatprep.subr.bf16.mxu0 %v11424_v16  ;;  %v11505_v14 = vld [vmem:[#allocation16 + $0x5cc] ss:$48 sps:$4 sm:$0xff]   ;;  %v11500_v16 = vld [vmem:[#allocation16 + $0x5c0] ss:$48 sps:$4 sm:$0xff]  }
 0x9c9   : > { %6379 = vmatprep.subr.bf16.mxu1 %v11427_v56  ;;  %v11503_v56 = vld [vmem:[#allocation16 + $0x5c8] ss:$48 sps:$4 sm:$0xff]  }
 0x9cb   : > { %6298 = vmatpush1.bf16.msra.mxu0 %v11422_v41  ;;  %v11508_v41 = vld [vmem:[#allocation16 + $0x624] ss:$48 sps:$4 sm:$0xff]  }
 0x9cc   : > { %6380 = vmatpush1.bf16.msra.mxu1 %v11425_v42  ;;  %6299 = vmatprep.subr.bf16.mxu0 %v11430_v24  ;;  %v11511_v42 = vld [vmem:[#allocation16 + $0x62c] ss:$48 sps:$4 sm:$0xff]   ;;  %v11506_v24 = vld [vmem:[#allocation16 + $0x620] ss:$48 sps:$4 sm:$0xff]  }
 0x9cd   : > { %6381 = vmatprep.subr.bf16.mxu1 %v11433_v26  ;;  %v11509_v26 = vld [vmem:[#allocation16 + $0x628] ss:$48 sps:$4 sm:$0xff]  }
 0x9cf   : > { %6300 = vmatpush1.bf16.msra.mxu0 %v11428_v27  ;;  %v11514_v27 = vld [vmem:[#allocation16 + $0x684] ss:$48 sps:$4 sm:$0xff]  }
 0x9d0   : > { %6382 = vmatpush1.bf16.msra.mxu1 %v11431_v28  ;;  %6301 = vmatprep.subr.bf16.mxu0 %v11436_v29  ;;  %v11517_v28 = vld [vmem:[#allocation16 + $0x68c] ss:$48 sps:$4 sm:$0xff]   ;;  %v11512_v29 = vld [vmem:[#allocation16 + $0x680] ss:$48 sps:$4 sm:$0xff]  }
 0x9d1   : > { %6383 = vmatprep.subr.bf16.mxu1 %v11439_v30  ;;  %v11515_v30 = vld [vmem:[#allocation16 + $0x688] ss:$48 sps:$4 sm:$0xff]  }
 0x9d3   : > { %6302 = vmatpush1.bf16.msra.mxu0 %v11434_v40  ;;  %v11520_v40 = vld [vmem:[#allocation16 + $0x6e4] ss:$48 sps:$4 sm:$0xff]  }
 0x9d4   : > { %6384 = vmatpush1.bf16.msra.mxu1 %v11437_v31  ;;  %6303 = vmatprep.subr.bf16.mxu0 %v11442_v32  ;;  %v11523_v31 = vld [vmem:[#allocation16 + $0x6ec] ss:$48 sps:$4 sm:$0xff]   ;;  %v11518_v32 = vld [vmem:[#allocation16 + $0x6e0] ss:$48 sps:$4 sm:$0xff]  }
 0x9d5   : > { %6385 = vmatprep.subr.bf16.mxu1 %v11445_v33  ;;  %v11521_v33 = vld [vmem:[#allocation16 + $0x6e8] ss:$48 sps:$4 sm:$0xff]  }
 0x9d7   : > { %6304 = vmatpush1.bf16.msra.mxu0 %v11440_v34  ;;  %v11526_v34 = vld [vmem:[#allocation16 + $0x744] ss:$48 sps:$4 sm:$0xff]  }
 0x9d8   : > { %6386 = vmatpush1.bf16.msra.mxu1 %v11443_v19  ;;  %6305 = vmatprep.subr.bf16.mxu0 %v11448_v35  ;;  %v11524_v19 = vld [vmem:[#allocation16 + $0x740] ss:$48 sps:$4 sm:$0xff]   ;;  %v11527_v35 = vld [vmem:[#allocation16 + $0x748] ss:$48 sps:$4 sm:$0xff]  }
 0x9d9   : > { %6387 = vmatprep.subr.bf16.mxu1 %v11451_v36  ;;  %v11532_v36 = vld [vmem:[#allocation16 + $0x7a4] ss:$48 sps:$4 sm:$0xff]  }
 0x9db   : > { %6306 = vmatpush1.bf16.msra.mxu0 %v11446_v37  ;;  %v11535_v37 = vld [vmem:[#allocation16 + $0x7ac] ss:$48 sps:$4 sm:$0xff]  }
 0x9dc   : > { %6388 = vmatpush1.bf16.msra.mxu1 %v11449_v38  ;;  %6307 = vmatprep.subr.bf16.mxu0 %v11454_v39  ;;  %v11530_v38 = vld [vmem:[#allocation16 + $0x7a0] ss:$48 sps:$4 sm:$0xff]   ;;  %v11538_v39 = vld [vmem:[#allocation16 + $0x804] ss:$48 sps:$4 sm:$0xff]  }
 0x9dd   : > { %6389 = vmatprep.subr.bf16.mxu1 %v11457_v44  ;;  %v11541_v44 = vld [vmem:[#allocation16 + $0x80c] ss:$48 sps:$4 sm:$0xff]  }
 0x9df   : > { %6308 = vmatpush1.bf16.msra.mxu0 %v11452_v45  ;;  %v11536_v45 = vld [vmem:[#allocation16 + $0x800] ss:$48 sps:$4 sm:$0xff]  }
 0x9e0   : > { %6390 = vmatpush1.bf16.msra.mxu1 %v11455_v47  ;;  %6309 = vmatprep.subr.bf16.mxu0 %v11460_v49  ;;  %v11539_v47 = vld [vmem:[#allocation16 + $0x808] ss:$48 sps:$4 sm:$0xff]   ;;  %v11544_v49 = vld [vmem:[#allocation16 + $0x864] ss:$48 sps:$4 sm:$0xff]  }
 0x9e1   : > { %6391 = vmatprep.subr.bf16.mxu1 %v11463_v50  ;;  %v11547_v50 = vld [vmem:[#allocation16 + $0x86c] ss:$48 sps:$4 sm:$0xff]  }
 0x9e3   : > { %6310 = vmatpush1.bf16.msra.mxu0 %v11458_v52  ;;  %v11542_v52 = vld [vmem:[#allocation16 + $0x860] ss:$48 sps:$4 sm:$0xff]  }
 0x9e4   : > { %6392 = vmatpush1.bf16.msra.mxu1 %v11461_v53  ;;  %6311 = vmatprep.subr.bf16.mxu0 %v11466_v54  ;;  %v11545_v53 = vld [vmem:[#allocation16 + $0x868] ss:$48 sps:$4 sm:$0xff]   ;;  %v11550_v54 = vld [vmem:[#allocation16 + $0x8c4] ss:$48 sps:$4 sm:$0xff]  }
 0x9e5   : > { %6393 = vmatprep.subr.bf16.mxu1 %v11469_v55  ;;  %v11553_v55 = vld [vmem:[#allocation16 + $0x8cc] ss:$48 sps:$4 sm:$0xff]  }
 0x9e7   : > { %6312 = vmatpush1.bf16.msra.mxu0 %v11464_v18  ;;  %v11548_v18 = vld [vmem:[#allocation16 + $0x8c0] ss:$48 sps:$4 sm:$0xff]  }
 0x9e8   : > { %6394 = vmatpush1.bf16.msra.mxu1 %v11467_v57  ;;  %6313 = vmatprep.subr.bf16.mxu0 %v11472_v58  ;;  %v11551_v57 = vld [vmem:[#allocation16 + $0x8c8] ss:$48 sps:$4 sm:$0xff]   ;;  %v11556_v58 = vld [vmem:[#allocation19 + $0x4] ss:$12 sps:$4 sm:$0xff]  }
 0x9e9   : > { %6395 = vmatprep.subr.bf16.mxu1 %v11475_v60  ;;  %v11559_v60 = vld [vmem:[#allocation19 + $0x184] ss:$12 sps:$4 sm:$0xff]  }
 0x9eb   : > { %6314 = vmatpush1.bf16.msra.mxu0 %v11470_v61  ;;  %v11554_v61 = vld [vmem:[#allocation19] ss:$12 sps:$4 sm:$0xff]  }
 0x9ec   : > { %6396 = vmatpush1.bf16.msra.mxu1 %v11473_v62  ;;  %6315 = vmatprep.subr.bf16.mxu0 %v11478_v0  ;;  %v11557_v62 = vld [vmem:[#allocation19 + $0x180] ss:$12 sps:$4 sm:$0xff]   ;;  %v11562_v0 = vld [vmem:[#allocation19 + $0x1c] ss:$12 sps:$4 sm:$0xff]  }
 0x9ed   : > { %6397 = vmatprep.subr.bf16.mxu1 %v11481_v1  ;;  %v11565_v1 = vld [vmem:[#allocation19 + $0x19c] ss:$12 sps:$4 sm:$0xff]  }
 0x9ef   : > { %6316 = vmatpush1.bf16.msra.mxu0 %v11476_v20  ;;  %v11560_v20 = vld [vmem:[#allocation19 + $0x18] ss:$12 sps:$4 sm:$0xff]  }
 0x9f0   : > { %6398 = vmatpush1.bf16.msra.mxu1 %v11479_v2  ;;  %6317 = vmatprep.subr.bf16.mxu0 %v11484_v43  ;;  %v11563_v2 = vld [vmem:[#allocation19 + $0x198] ss:$12 sps:$4 sm:$0xff]   ;;  %v11568_v43 = vld [vmem:[#allocation19 + $0x34] ss:$12 sps:$4 sm:$0xff]  }
 0x9f1   : > { %6399 = vmatprep.subr.bf16.mxu1 %v11487_v3  ;;  %v11571_v3 = vld [vmem:[#allocation19 + $0x1b4] ss:$12 sps:$4 sm:$0xff]  }
 0x9f3   : > { %6318 = vmatpush1.bf16.msra.mxu0 %v11482_v4  ;;  %v11566_v4 = vld [vmem:[#allocation19 + $0x30] ss:$12 sps:$4 sm:$0xff]  }
 0x9f4   : > { %6400 = vmatpush1.bf16.msra.mxu1 %v11485_v5  ;;  %6319 = vmatprep.subr.bf16.mxu0 %v11490_v6  ;;  %v11569_v5 = vld [vmem:[#allocation19 + $0x1b0] ss:$12 sps:$4 sm:$0xff]   ;;  %v11574_v6 = vld [vmem:[#allocation19 + $0x4c] ss:$12 sps:$4 sm:$0xff]  }
 0x9f5   : > { %6401 = vmatprep.subr.bf16.mxu1 %v11493_v7  ;;  %v11577_v7 = vld [vmem:[#allocation19 + $0x1cc] ss:$12 sps:$4 sm:$0xff]  }
 0x9f7   : > { %6320 = vmatpush1.bf16.msra.mxu0 %v11488_v8  ;;  %v11572_v8 = vld [vmem:[#allocation19 + $0x48] ss:$12 sps:$4 sm:$0xff]  }
 0x9f8   : > { %6402 = vmatpush1.bf16.msra.mxu1 %v11491_v9  ;;  %6321 = vmatprep.subr.bf16.mxu0 %v11496_v10  ;;  %v11580_v9 = vld [vmem:[#allocation19 + $0x64] ss:$12 sps:$4 sm:$0xff]  }
 0x9f9   : > { %6403 = vmatprep.subr.bf16.mxu1 %v11499_v11  ;;  %v11583_v10 = vld [vmem:[#allocation19 + $0x1e4] ss:$12 sps:$4 sm:$0xff]   ;;  %v11578_v11 = vld [vmem:[#allocation19 + $0x60] ss:$12 sps:$4 sm:$0xff]  }
 0x9fb   : > { %6322 = vmatpush1.bf16.msra.mxu0 %v11494_v51  ;;  %v4479_v51 = vsub.s32 3, %v12890_v21 }
 0x9fc   : > { %6404 = vmatpush1.bf16.msra.mxu1 %v11497_v12  ;;  %6323 = vmatprep.subr.bf16.mxu0 %v11502_v13  ;;  %v11581_v12 = vld [vmem:[#allocation19 + $0x1e0] ss:$12 sps:$4 sm:$0xff]   ;;  %v13109_v13 = vld [vmem:[#allocation17] sm:$0xff] }
 0x9fd   : > { %6405 = vmatprep.subr.bf16.mxu1 %v11505_v14  ;;  %v11586_v14 = vld [vmem:[#allocation19 + $0x7c] ss:$12 sps:$4 sm:$0xff]  }
 0x9ff   : > { %6324 = vmatpush1.bf16.msra.mxu0 %v11500_v16  ;;  %v11589_v16 = vld [vmem:[#allocation19 + $0x1fc] ss:$12 sps:$4 sm:$0xff]  }
 0xa00   : > { %6406 = vmatpush1.bf16.msra.mxu1 %v11503_v56  ;;  %6334 = vmatprep.subr.bf16.mxu0 %v11508_v41  ;;  %v4472_v56 = vrot.slane %v13109_v13, %v12893_v22  ;;  %v4480_v41 = vrot.slane %v13109_v13, %v4479_v51 }
 0xa01   : > { %6416 = vmatprep.subr.bf16.mxu1 %v11511_v42  ;;  %v11584_v42 = vld [vmem:[#allocation19 + $0x78] ss:$12 sps:$4 sm:$0xff]  }
 0xa02   : > { %6326 = vmatmul.mubr.bf16.vlgmr.msra.gmra.mrb[44].mxu0 %v13075_v46 }
 0xa03   : > { %6408 = vmatmul.mubr.bf16.vlgmr.msra.gmra.mrb[44].mxu1 %v13075_v46  ;;  %6335 = vmatpush1.bf16.msra.mxu0 %v11506_v24  ;;  %v11529_v46 = vld [vmem:[#allocation16 + $0x74c] ss:$48 sps:$4 sm:$0xff]   ;;  %v11587_v24 = vld [vmem:[#allocation19 + $0x1f8] ss:$12 sps:$4 sm:$0xff]  }
 0xa04   : > { %6417 = vmatpush1.bf16.msra.mxu1 %v11509_v26  ;;  %6336 = vmatprep.subr.bf16.mxu0 %v11514_v27  ;;  %v11592_v26 = vld [vmem:[#allocation19 + $0x94] ss:$12 sps:$4 sm:$0xff]  }
 0xa05   : > { %6418 = vmatprep.subr.bf16.mxu1 %v11517_v28  ;;  %6366 = vmatprep.mubr.bf16.mxu0 %v12407_v48 }
 0xa06   : > { %6448 = vmatprep.mubr.bf16.mxu1 %v12407_v48  ;;  %v11533_v48 = vld [vmem:[#allocation16 + $0x7a8] ss:$48 sps:$4 sm:$0xff]  }
 0xa07   : > { %6337 = vmatpush1.bf16.msra.mxu0 %v11512_v29  ;;  %v11595_v29 = vld [vmem:[#allocation19 + $0x214] ss:$12 sps:$4 sm:$0xff]  }
 0xa08   : > { %6419 = vmatpush1.bf16.msra.mxu1 %v11515_v30  ;;  %6338 = vmatprep.subr.bf16.mxu0 %v11520_v40 }
 0xa09   : > { %6420 = vmatprep.subr.bf16.mxu1 %v11523_v31 }
 0xa0b   : > { %6339 = vmatpush1.bf16.msra.mxu0 %v11518_v32 }
 0xa0c   : > { %6421 = vmatpush1.bf16.msra.mxu1 %v11521_v33  ;;  %6340 = vmatprep.subr.bf16.mxu0 %v11526_v34 }
 0xa0d   : > { %6422 = vmatprep.subr.bf16.mxu1 %v11529_v46  ;;  %v11590_v46 = vld [vmem:[#allocation19 + $0x90] ss:$12 sps:$4 sm:$0xff]  }
 0xa0f   : > { %6341 = vmatpush1.bf16.msra.mxu0 %v11524_v19 }
 0xa10   : > { %6423 = vmatpush1.bf16.msra.mxu1 %v11527_v35  ;;  %6342 = vmatprep.subr.bf16.mxu0 %v11532_v36  ;;  %v11593_v36 = vld [vmem:[#allocation19 + $0x210] ss:$12 sps:$4 sm:$0xff]  }
 0xa11   : > { %6424 = vmatprep.subr.bf16.mxu1 %v11535_v37  ;;  %v11598_v37 = vld [vmem:[#allocation19 + $0xac] ss:$12 sps:$4 sm:$0xff]  }
 0xa13   : > { %6343 = vmatpush1.bf16.msra.mxu0 %v11530_v38 }
 0xa14   : > { %6425 = vmatpush1.bf16.msra.mxu1 %v11533_v48  ;;  %6344 = vmatprep.subr.bf16.mxu0 %v11538_v39  ;;  %v11601_v39 = vld [vmem:[#allocation19 + $0x22c] ss:$12 sps:$4 sm:$0xff]  }
 0xa15   : > { %6426 = vmatprep.subr.bf16.mxu1 %v11541_v44 }
 0xa17   : > { %6345 = vmatpush1.bf16.msra.mxu0 %v11536_v45 }
 0xa18   : > { %6427 = vmatpush1.bf16.msra.mxu1 %v11539_v47  ;;  %6346 = vmatprep.subr.bf16.mxu0 %v11544_v49  ;;  %v11596_v47 = vld [vmem:[#allocation19 + $0xa8] ss:$12 sps:$4 sm:$0xff]  }
 0xa19   : > { %6428 = vmatprep.subr.bf16.mxu1 %v11547_v50  ;;  %v11599_v49 = vld [vmem:[#allocation19 + $0x228] ss:$12 sps:$4 sm:$0xff]   ;;  %v11604_v50 = vld [vmem:[#allocation19 + $0xc4] ss:$12 sps:$4 sm:$0xff]  }
 0xa1b   : > { %6347 = vmatpush1.bf16.msra.mxu0 %v11542_v52  ;;  %v11607_v52 = vld [vmem:[#allocation19 + $0x244] ss:$12 sps:$4 sm:$0xff]  }
 0xa1c   : > { %6429 = vmatpush1.bf16.msra.mxu1 %v11545_v53  ;;  %6348 = vmatprep.subr.bf16.mxu0 %v11550_v54  ;;  %v11602_v53 = vld [vmem:[#allocation19 + $0xc0] ss:$12 sps:$4 sm:$0xff]  }
 0xa1d   : > { %6430 = vmatprep.subr.bf16.mxu1 %v11553_v55  ;;  %v11605_v54 = vld [vmem:[#allocation19 + $0x240] ss:$12 sps:$4 sm:$0xff]   ;;  %v11610_v55 = vld [vmem:[#allocation19 + $0xdc] ss:$12 sps:$4 sm:$0xff]  }
 0xa1f   : > { %6349 = vmatpush1.bf16.msra.mxu0 %v11548_v18  ;;  %v11613_v18 = vld [vmem:[#allocation19 + $0x25c] ss:$12 sps:$4 sm:$0xff]  }
 0xa20   : > { %6431 = vmatpush1.bf16.msra.mxu1 %v11551_v57  ;;  %8418 = vmatprep.subr.bf16.mxu0 %v11556_v58  ;;  %v11608_v57 = vld [vmem:[#allocation19 + $0xd8] ss:$12 sps:$4 sm:$0xff]  }
 0xa21   : > { %8459 = vmatprep.subr.bf16.mxu1 %v11559_v60  ;;  %v11611_v58 = vld [vmem:[#allocation19 + $0x258] ss:$12 sps:$4 sm:$0xff]   ;;  %v11616_v60 = vld [vmem:[#allocation19 + $0xf4] ss:$12 sps:$4 sm:$0xff]  }
 0xa22   : > { %6367 = vmatmul.mubr.bf16.vlgmr.msra.gmra.mrb[44].mxu0 %v13088_v25 }
 0xa23   : > { %6449 = vmatmul.mubr.bf16.vlgmr.msra.gmra.mrb[44].mxu1 %v13088_v25  ;;  %8419 = vmatpush1.bf16.msra.mxu0 %v11554_v61  ;;  %v11575_v25 = vld [vmem:[#allocation19 + $0x1c8] ss:$12 sps:$4 sm:$0xff]  }
 0xa24   : > { %8460 = vmatpush1.bf16.msra.mxu1 %v11557_v62  ;;  %8420 = vmatprep.subr.bf16.mxu0 %v11562_v0  ;;  %v11619_v61 = vld [vmem:[#allocation19 + $0x274] ss:$12 sps:$4 sm:$0xff]   ;;  %v11614_v62 = vld [vmem:[#allocation19 + $0xf0] ss:$12 sps:$4 sm:$0xff]  }
 0xa25   : > { %8461 = vmatprep.subr.bf16.mxu1 %v11565_v1  ;;  %v11617_v0 = vld [vmem:[#allocation19 + $0x270] ss:$12 sps:$4 sm:$0xff]   ;;  %v11622_v1 = vld [vmem:[#allocation19 + $0x10c] ss:$12 sps:$4 sm:$0xff]  }
 0xa27   : > { %8421 = vmatpush1.bf16.msra.mxu0 %v11560_v20  ;;  %v11625_v20 = vld [vmem:[#allocation19 + $0x28c] ss:$12 sps:$4 sm:$0xff]  }
 0xa28   : > { %8462 = vmatpush1.bf16.msra.mxu1 %v11563_v2  ;;  %8422 = vmatprep.subr.bf16.mxu0 %v11568_v43  ;;  %v11620_v2 = vld [vmem:[#allocation19 + $0x108] ss:$12 sps:$4 sm:$0xff]  }
 0xa29   : > { %8463 = vmatprep.subr.bf16.mxu1 %v11571_v3  ;;  %v11623_v43 = vld [vmem:[#allocation19 + $0x288] ss:$12 sps:$4 sm:$0xff]   ;;  %v11628_v3 = vld [vmem:[#allocation19 + $0x124] ss:$12 sps:$4 sm:$0xff]  }
 0xa2b   : > { %8423 = vmatpush1.bf16.msra.mxu0 %v11566_v4  ;;  %v11631_v4 = vld [vmem:[#allocation19 + $0x2a4] ss:$12 sps:$4 sm:$0xff]  }
 0xa2c   : > { %8464 = vmatpush1.bf16.msra.mxu1 %v11569_v5  ;;  %8424 = vmatprep.subr.bf16.mxu0 %v11574_v6  ;;  %v11626_v5 = vld [vmem:[#allocation19 + $0x120] ss:$12 sps:$4 sm:$0xff]  }
 0xa2d   : > { %8465 = vmatprep.subr.bf16.mxu1 %v11577_v7  ;;  %v11629_v6 = vld [vmem:[#allocation19 + $0x2a0] ss:$12 sps:$4 sm:$0xff]   ;;  %v11634_v7 = vld [vmem:[#allocation19 + $0x13c] ss:$12 sps:$4 sm:$0xff]  }
 0xa2f   : > { %8425 = vmatpush1.bf16.msra.mxu0 %v11572_v8  ;;  %v11637_v8 = vld [vmem:[#allocation19 + $0x2bc] ss:$12 sps:$4 sm:$0xff]  }
 0xa30   : > { %8466 = vmatpush1.bf16.msra.mxu1 %v11575_v25  ;;  %8426 = vmatprep.subr.bf16.mxu0 %v11580_v9  ;;  %v11632_v25 = vld [vmem:[#allocation19 + $0x138] ss:$12 sps:$4 sm:$0xff]   ;;  %v4468_v9 = vrot.slane %v13109_v13, %v12896_v23 }
 0xa31   : > { %8467 = vmatprep.subr.bf16.mxu1 %v11583_v10  ;;  %v11635_v10 = vld [vmem:[#allocation19 + $0x2b8] ss:$12 sps:$4 sm:$0xff]  }
 0xa33   : > { %8427 = vmatpush1.bf16.msra.mxu0 %v11578_v11  ;;  %v11640_v11 = vld [vmem:[#allocation19 + $0x154] ss:$12 sps:$4 sm:$0xff]  }
 0xa34   : > { %8468 = vmatpush1.bf16.msra.mxu1 %v11581_v12  ;;  %8428 = vmatprep.subr.bf16.mxu0 %v11586_v14  ;;  %v4476_v12 = vrot.slane %v13109_v13, %v12927_v59  ;;  %v11643_v14 = vld [vmem:[#allocation19 + $0x2d4] ss:$12 sps:$4 sm:$0xff]  }
 0xa35   : > { %v13116_v27 = vpop.f32.mrb[36].mxu0  ;;  %v13118_v28 = vpop.f32.mrb[36].mxu1  ;;  %8469 = vmatprep.subr.bf16.mxu1 %v11589_v16  ;;  %v11638_v16 = vld [vmem:[#allocation19 + $0x150] ss:$12 sps:$4 sm:$0xff]  }
 0xa36   : > { %v6042_v30 = vpop.f32.mrb[37].mxu0  ;;  %v6124_v40 = vpop.f32.mrb[37].mxu1 }
 0xa37   : > { %v10335_v31 = vadd.f32 %v6042_v30, %v4472_v56  ;;  %v10337_v32 = vadd.f32 %v6124_v40, %v4480_v41  ;;  %v6044_v33 = vpop.f32.mrb[38].mxu0  ;;  %v6126_v34 = vpop.f32.mrb[38].mxu1  ;;  %8429 = vmatpush1.bf16.msra.mxu0 %v11584_v42  ;;  %v10334_v56 = vadd.f32 %v13116_v27, %v4468_v9  ;;  %v11641_v41 = vld [vmem:[#allocation19 + $0x2d0] ss:$12 sps:$4 sm:$0xff]   ;;  %v11646_v42 = vld [vmem:[#allocation19 + $0x16c] ss:$12 sps:$4 sm:$0xff]  }
 0xa38   : > { %8470 = vmatpush1.bf16.msra.mxu1 %v11587_v24  ;;  %v6045_v19 = vpop.f32.mrb[39].mxu0  ;;  %v6127_v35 = vpop.f32.mrb[39].mxu1  ;;  %8430 = vmatprep.subr.bf16.mxu0 %v11592_v26  ;;  %v10336_v24 = vadd.f32 %v13118_v28, %v4476_v12  ;;  %v11649_v26 = vld [vmem:[#allocation19 + $0x2ec] ss:$12 sps:$4 sm:$0xff]   ;;  %v11647_v40 = vld [vmem:[#allocation19 + $0x2e8] ss:$12 sps:$4 sm:$0xff]  }
 0xa39   : > { %v6458_v38 = vmax.f32 %v10335_v31, 0.0  ;;  %v6460_v48 = vmax.f32 %v10337_v32, 0.0  ;;  %8471 = vmatprep.subr.bf16.mxu1 %v11595_v29  ;;  %v11644_v29 = vld [vmem:[#allocation19 + $0x168] ss:$12 sps:$4 sm:$0xff]   ;;  %v6457_v30 = vmax.f32 %v10334_v56, 0.0 }
 0xa3a   : > { %v11652_v31 = vld [vmem:[#allocation19 + $0x304] ss:$12 sps:$4 sm:$0xff]   ;;  %v6459_v32 = vmax.f32 %v10336_v24, 0.0  ;;  %v11650_v27 = vld [vmem:[#allocation19 + $0x300] ss:$12 sps:$4 sm:$0xff]  }
 0xa3b   : > { %v13120_v44 = vpack.c.bf16 %v6458_v38, %v6458_v38  ;;  %v13122_v45 = vpack.c.bf16 %v6460_v48, %v6460_v48  ;;  %8431 = vmatpush1.bf16.msra.mxu0 %v11590_v46  ;;  %v11655_v33 = vld [vmem:[#allocation19 + $0x484] ss:$12 sps:$4 sm:$0xff]   ;;  %v13132_v34 = vpack.c.bf16 %v6457_v30, %v6457_v30  ;;  %v11653_v46 = vld [vmem:[#allocation19 + $0x480] ss:$12 sps:$4 sm:$0xff]   ;;  %v11658_v28 = vld [vmem:[#allocation19 + $0x31c] ss:$12 sps:$4 sm:$0xff]  }
 0xa3c   : > { %8472 = vmatpush1.bf16.msra.mxu1 %v11593_v36  ;;  %8432 = vmatprep.subr.bf16.mxu0 %v11598_v37  ;;  %v13134_v19 = vpack.c.bf16 %v6459_v32, %v6459_v32  ;;  %v11661_v35 = vld [vmem:[#allocation19 + $0x49c] ss:$12 sps:$4 sm:$0xff]   ;;  %v11656_v36 = vld [vmem:[#allocation19 + $0x318] ss:$12 sps:$4 sm:$0xff]   ;;  %v11664_v38 = vld [vmem:[#allocation19 + $0x334] ss:$12 sps:$4 sm:$0xff]  }
 0xa3d   : > { %8450 = vmatprep.mubr.bf16.mxu0 %v13120_v44  ;;  %8491 = vmatprep.mubr.bf16.mxu1 %v13122_v45  ;;  %v11659_v37 = vld [vmem:[#allocation19 + $0x498] ss:$12 sps:$4 sm:$0xff]   ;;  %v11667_v48 = vld [vmem:[#allocation19 + $0x4b4] ss:$12 sps:$4 sm:$0xff]   ;;  %v11706_v9 = vld [vmem:[#allocation19 + $0x3dc] ss:$12 sps:$4 sm:$0xff]  }
 0xa3e   : > { %8473 = vmatprep.subr.bf16.mxu1 %v11601_v39  ;;  %v11662_v39 = vld [vmem:[#allocation19 + $0x330] ss:$12 sps:$4 sm:$0xff]   ;;  %v11707_v12 = vld [vmem:[#allocation19 + $0x558] ss:$12 sps:$4 sm:$0xff]   ;;  %v4487_v32 = vsub.s32 5, %v12890_v21 }
 0xa3f   : > { %8433 = vmatpush1.bf16.msra.mxu0 %v11596_v47  ;;  %v11665_v47 = vld [vmem:[#allocation19 + $0x4b0] ss:$12 sps:$4 sm:$0xff]   ;;  %v11721_v24 = vld [vmem:[#allocation19 + $0x58c] ss:$12 sps:$4 sm:$0xff]  }
 0xa40   : > { %8474 = vmatpush1.bf16.msra.mxu1 %v11599_v49  ;;  %8434 = vmatprep.subr.bf16.mxu0 %v11604_v50  ;;  %v11670_v49 = vld [vmem:[#allocation19 + $0x34c] ss:$12 sps:$4 sm:$0xff]   ;;  %v11710_v56 = vld [vmem:[#allocation19 + $0x3f0] ss:$12 sps:$4 sm:$0xff]  }
 0xa41   : > { %8475 = vmatprep.subr.bf16.mxu1 %v11607_v52  ;;  %v11673_v50 = vld [vmem:[#allocation19 + $0x4cc] ss:$12 sps:$4 sm:$0xff]   ;;  %v11668_v52 = vld [vmem:[#allocation19 + $0x348] ss:$12 sps:$4 sm:$0xff]   ;;  %v11724_v30 = vld [vmem:[#allocation19 + $0x424] ss:$12 sps:$4 sm:$0xff]  }
 0xa43   : > { %8435 = vmatpush1.bf16.msra.mxu0 %v11602_v53  ;;  %v11671_v53 = vld [vmem:[#allocation19 + $0x4c8] ss:$12 sps:$4 sm:$0xff]  }
 0xa44   : > { %8476 = vmatpush1.bf16.msra.mxu1 %v11605_v54  ;;  %8436 = vmatprep.subr.bf16.mxu0 %v11610_v55  ;;  %v11676_v54 = vld [vmem:[#allocation19 + $0x364] ss:$12 sps:$4 sm:$0xff]  }
 0xa45   : > { %8477 = vmatprep.subr.bf16.mxu1 %v11613_v18  ;;  %v11679_v55 = vld [vmem:[#allocation19 + $0x4e4] ss:$12 sps:$4 sm:$0xff]   ;;  %v11674_v18 = vld [vmem:[#allocation19 + $0x360] ss:$12 sps:$4 sm:$0xff]  }
 0xa47   : > { %8437 = vmatpush1.bf16.msra.mxu0 %v11608_v57  ;;  %v11677_v57 = vld [vmem:[#allocation19 + $0x4e0] ss:$12 sps:$4 sm:$0xff]  }
 0xa48   : > { %8478 = vmatpush1.bf16.msra.mxu1 %v11611_v58  ;;  %8438 = vmatprep.subr.bf16.mxu0 %v11616_v60  ;;  %v11682_v58 = vld [vmem:[#allocation19 + $0x37c] ss:$12 sps:$4 sm:$0xff]  }
 0xa49   : > { %8479 = vmatprep.subr.bf16.mxu1 %v11619_v61  ;;  %v11685_v60 = vld [vmem:[#allocation19 + $0x4fc] ss:$12 sps:$4 sm:$0xff]   ;;  %v11680_v61 = vld [vmem:[#allocation19 + $0x378] ss:$12 sps:$4 sm:$0xff]  }
 0xa4b   : > { %8439 = vmatpush1.bf16.msra.mxu0 %v11614_v62  ;;  %v11683_v62 = vld [vmem:[#allocation19 + $0x4f8] ss:$12 sps:$4 sm:$0xff]  }
 0xa4c   : > { %8480 = vmatpush1.bf16.msra.mxu1 %v11617_v0  ;;  %8440 = vmatprep.subr.bf16.mxu0 %v11622_v1  ;;  %v11688_v0 = vld [vmem:[#allocation19 + $0x394] ss:$12 sps:$4 sm:$0xff]  }
 0xa4d   : > { %8481 = vmatprep.subr.bf16.mxu1 %v11625_v20  ;;  %v11691_v1 = vld [vmem:[#allocation19 + $0x514] ss:$12 sps:$4 sm:$0xff]   ;;  %v11686_v20 = vld [vmem:[#allocation19 + $0x390] ss:$12 sps:$4 sm:$0xff]  }
 0xa4f   : > { %8441 = vmatpush1.bf16.msra.mxu0 %v11620_v2  ;;  %v11689_v2 = vld [vmem:[#allocation19 + $0x510] ss:$12 sps:$4 sm:$0xff]  }
 0xa50   : > { %8482 = vmatpush1.bf16.msra.mxu1 %v11623_v43  ;;  %8442 = vmatprep.subr.bf16.mxu0 %v11628_v3  ;;  %v11694_v43 = vld [vmem:[#allocation19 + $0x3ac] ss:$12 sps:$4 sm:$0xff]  }
 0xa51   : > { %8483 = vmatprep.subr.bf16.mxu1 %v11631_v4  ;;  %v11697_v3 = vld [vmem:[#allocation19 + $0x52c] ss:$12 sps:$4 sm:$0xff]   ;;  %v11692_v4 = vld [vmem:[#allocation19 + $0x3a8] ss:$12 sps:$4 sm:$0xff]  }
 0xa53   : > { %8443 = vmatpush1.bf16.msra.mxu0 %v11626_v5  ;;  %v11695_v5 = vld [vmem:[#allocation19 + $0x528] ss:$12 sps:$4 sm:$0xff]  }
 0xa54   : > { %8484 = vmatpush1.bf16.msra.mxu1 %v11629_v6  ;;  %8444 = vmatprep.subr.bf16.mxu0 %v11634_v7  ;;  %v11700_v6 = vld [vmem:[#allocation19 + $0x3c4] ss:$12 sps:$4 sm:$0xff]  }
 0xa55   : > { %8485 = vmatprep.subr.bf16.mxu1 %v11637_v8  ;;  %v11703_v7 = vld [vmem:[#allocation19 + $0x544] ss:$12 sps:$4 sm:$0xff]   ;;  %v11698_v8 = vld [vmem:[#allocation19 + $0x3c0] ss:$12 sps:$4 sm:$0xff]  }
 0xa57   : > { %8445 = vmatpush1.bf16.msra.mxu0 %v11632_v25  ;;  %v11701_v25 = vld [vmem:[#allocation19 + $0x540] ss:$12 sps:$4 sm:$0xff]  }
 0xa58   : > { %8486 = vmatpush1.bf16.msra.mxu1 %v11635_v10  ;;  %8446 = vmatprep.subr.bf16.mxu0 %v11640_v11  ;;  %v11709_v10 = vld [vmem:[#allocation19 + $0x55c] ss:$12 sps:$4 sm:$0xff]   ;;  %v11704_v11 = vld [vmem:[#allocation19 + $0x3d8] ss:$12 sps:$4 sm:$0xff]  }
 0xa59   : > { %8487 = vmatprep.subr.bf16.mxu1 %v11643_v14  ;;  %v11712_v14 = vld [vmem:[#allocation19 + $0x3f4] ss:$12 sps:$4 sm:$0xff]  }
 0xa5b   : > { %8447 = vmatpush1.bf16.msra.mxu0 %v11638_v16  ;;  %v11715_v16 = vld [vmem:[#allocation19 + $0x574] ss:$12 sps:$4 sm:$0xff]  }
 0xa5c   : > { %8488 = vmatpush1.bf16.msra.mxu1 %v11641_v41  ;;  %8448 = vmatprep.subr.bf16.mxu0 %v11646_v42  ;;  %v11713_v41 = vld [vmem:[#allocation19 + $0x570] ss:$12 sps:$4 sm:$0xff]   ;;  %v11718_v42 = vld [vmem:[#allocation19 + $0x40c] ss:$12 sps:$4 sm:$0xff]  }
 0xa5d   : > { %8489 = vmatprep.subr.bf16.mxu1 %v11649_v26  ;;  %v11716_v26 = vld [vmem:[#allocation19 + $0x408] ss:$12 sps:$4 sm:$0xff]  }
 0xa5f   : > { %8449 = vmatpush1.bf16.msra.mxu0 %v11644_v29  ;;  %v11719_v29 = vld [vmem:[#allocation19 + $0x588] ss:$12 sps:$4 sm:$0xff]  }
 0xa60   : > { %8490 = vmatpush1.bf16.msra.mxu1 %v11647_v40  ;;  %8500 = vmatprep.subr.bf16.mxu0 %v11652_v31  ;;  %v11727_v40 = vld [vmem:[#allocation19 + $0x5a4] ss:$12 sps:$4 sm:$0xff]   ;;  %v11722_v31 = vld [vmem:[#allocation19 + $0x420] ss:$12 sps:$4 sm:$0xff]  }
 0xa61   : > { %8541 = vmatprep.subr.bf16.mxu1 %v11655_v33  ;;  %v11725_v33 = vld [vmem:[#allocation19 + $0x5a0] ss:$12 sps:$4 sm:$0xff]  }
 0xa62   : > { %8451 = vmatmul.mubr.bf16.vlgmr.msra.gmra.mrb[48].mxu0 %v13132_v34 }
 0xa63   : > { %8492 = vmatmul.mubr.bf16.vlgmr.msra.gmra.mrb[48].mxu1 %v13134_v19  ;;  %8501 = vmatpush1.bf16.msra.mxu0 %v11650_v27  ;;  %v4483_v27 = vsub.s32 4, %v12890_v21 }
 0xa64   : > { %8542 = vmatpush1.bf16.msra.mxu1 %v11653_v46  ;;  %8502 = vmatprep.subr.bf16.mxu0 %v11658_v28  ;;  %v4495_v46 = vsub.s32 7, %v12890_v21  ;;  %v11730_v28 = vld [vmem:[#allocation19 + $0x43c] ss:$12 sps:$4 sm:$0xff]  }
 0xa65   : > { %8543 = vmatprep.subr.bf16.mxu1 %v11661_v35  ;;  %v4491_v35 = vsub.s32 6, %v12890_v21  ;;  %v11844_v21 = vld [vmem:[#allocation19 + $0x8] ss:$12 sps:$4 sm:$0xff]  }
 0xa67   : > { %8503 = vmatpush1.bf16.msra.mxu0 %v11656_v36  ;;  %v11733_v36 = vld [vmem:[#allocation19 + $0x5bc] ss:$12 sps:$4 sm:$0xff]  }
 0xa68   : > { %8544 = vmatpush1.bf16.msra.mxu1 %v11659_v37  ;;  %8504 = vmatprep.subr.bf16.mxu0 %v11664_v38  ;;  %v4488_v37 = vrot.slane %v13109_v13, %v4487_v32  ;;  %v11728_v38 = vld [vmem:[#allocation19 + $0x438] ss:$12 sps:$4 sm:$0xff]   ;;  %v11761_v32 = vld [vmem:[#allocation19 + $0x7b0] ss:$12 sps:$4 sm:$0xff]  }
 0xa69   : > { %8545 = vmatprep.subr.bf16.mxu1 %v11667_v48  ;;  %v4484_v48 = vrot.slane %v13109_v13, %v4483_v27  ;;  %v11769_v27 = vld [vmem:[#allocation19 + $0x7cc] ss:$12 sps:$4 sm:$0xff]  }
 0xa6b   : > { %8505 = vmatpush1.bf16.msra.mxu0 %v11662_v39  ;;  %v4496_v39 = vrot.slane %v13109_v13, %v4495_v46  ;;  %v11764_v46 = vld [vmem:[#allocation19 + $0x648] ss:$12 sps:$4 sm:$0xff]  }
 0xa6c   : > { %8546 = vmatpush1.bf16.msra.mxu1 %v11665_v47  ;;  %8506 = vmatprep.subr.bf16.mxu0 %v11670_v49  ;;  %v11731_v47 = vld [vmem:[#allocation19 + $0x5b8] ss:$12 sps:$4 sm:$0xff]   ;;  %v11736_v49 = vld [vmem:[#allocation19 + $0x454] ss:$12 sps:$4 sm:$0xff]  }
 0xa6d   : > { %8547 = vmatprep.subr.bf16.mxu1 %v11673_v50 }
 0xa6f   : > { %8507 = vmatpush1.bf16.msra.mxu0 %v11668_v52  ;;  %v4492_v52 = vrot.slane %v13109_v13, %v4491_v35  ;;  %v11772_v35 = vld [vmem:[#allocation19 + $0x664] ss:$12 sps:$4 sm:$0xff]  }
 0xa70   : > { %8548 = vmatpush1.bf16.msra.mxu1 %v11671_v53  ;;  %8508 = vmatprep.subr.bf16.mxu0 %v11676_v54  ;;  %v11739_v53 = vld [vmem:[#allocation19 + $0x5d4] ss:$12 sps:$4 sm:$0xff]  }
 0xa71   : > { %8549 = vmatprep.subr.bf16.mxu1 %v11679_v55 }
 0xa73   : > { %8509 = vmatpush1.bf16.msra.mxu0 %v11674_v18 }
 0xa74   : > { %8550 = vmatpush1.bf16.msra.mxu1 %v11677_v57  ;;  %8510 = vmatprep.subr.bf16.mxu0 %v11682_v58 }
 0xa75   : > { %8551 = vmatprep.subr.bf16.mxu1 %v11685_v60  ;;  %v11734_v60 = vld [vmem:[#allocation19 + $0x450] ss:$12 sps:$4 sm:$0xff]  }
 0xa77   : > { %8511 = vmatpush1.bf16.msra.mxu0 %v11680_v61 }
 0xa78   : > { %8552 = vmatpush1.bf16.msra.mxu1 %v11683_v62  ;;  %8512 = vmatprep.subr.bf16.mxu0 %v11688_v0 }
 0xa79   : > { %8553 = vmatprep.subr.bf16.mxu1 %v11691_v1 }
 0xa7b   : > { %8513 = vmatpush1.bf16.msra.mxu0 %v11686_v20  ;;  %v11737_v20 = vld [vmem:[#allocation19 + $0x5d0] ss:$12 sps:$4 sm:$0xff]  }
 0xa7c   : > { %8554 = vmatpush1.bf16.msra.mxu1 %v11689_v2  ;;  %8514 = vmatprep.subr.bf16.mxu0 %v11694_v43  ;;  %v11742_v2 = vld [vmem:[#allocation19 + $0x46c] ss:$12 sps:$4 sm:$0xff]  }
 0xa7d   : > { %8555 = vmatprep.subr.bf16.mxu1 %v11697_v3 }
 0xa7f   : > { %8515 = vmatpush1.bf16.msra.mxu0 %v11692_v4  ;;  %v11745_v4 = vld [vmem:[#allocation19 + $0x5ec] ss:$12 sps:$4 sm:$0xff]  }
 0xa80   : > { %8556 = vmatpush1.bf16.msra.mxu1 %v11695_v5  ;;  %8516 = vmatprep.subr.bf16.mxu0 %v11700_v6 }
 0xa81   : > { %8557 = vmatprep.subr.bf16.mxu1 %v11703_v7  ;;  %v11740_v7 = vld [vmem:[#allocation19 + $0x468] ss:$12 sps:$4 sm:$0xff]  }
 0xa83   : > { %8517 = vmatpush1.bf16.msra.mxu0 %v11698_v8 }
 0xa84   : > { %8558 = vmatpush1.bf16.msra.mxu1 %v11701_v25  ;;  %8518 = vmatprep.subr.bf16.mxu0 %v11706_v9  ;;  %v11743_v9 = vld [vmem:[#allocation19 + $0x5e8] ss:$12 sps:$4 sm:$0xff]  }
 0xa85   : > { %8559 = vmatprep.subr.bf16.mxu1 %v11709_v10  ;;  %v11748_v10 = vld [vmem:[#allocation19 + $0x604] ss:$12 sps:$4 sm:$0xff]  }
 0xa87   : > { %8519 = vmatpush1.bf16.msra.mxu0 %v11704_v11 }
 0xa88   : > { %8560 = vmatpush1.bf16.msra.mxu1 %v11707_v12  ;;  %8520 = vmatprep.subr.bf16.mxu0 %v11712_v14  ;;  %v11751_v12 = vld [vmem:[#allocation19 + $0x784] ss:$12 sps:$4 sm:$0xff]   ;;  %v11746_v14 = vld [vmem:[#allocation19 + $0x600] ss:$12 sps:$4 sm:$0xff]  }
 0xa89   : > { %8561 = vmatprep.subr.bf16.mxu1 %v11715_v16 }
 0xa8b   : > { %8521 = vmatpush1.bf16.msra.mxu0 %v11710_v56  ;;  %v11749_v56 = vld [vmem:[#allocation19 + $0x780] ss:$12 sps:$4 sm:$0xff]  }
 0xa8c   : > { %8562 = vmatpush1.bf16.msra.mxu1 %v11713_v41  ;;  %8522 = vmatprep.subr.bf16.mxu0 %v11718_v42  ;;  %v11754_v41 = vld [vmem:[#allocation19 + $0x61c] ss:$12 sps:$4 sm:$0xff]  }
 0xa8d   : > { %8563 = vmatprep.subr.bf16.mxu1 %v11721_v24  ;;  %v11757_v24 = vld [vmem:[#allocation19 + $0x79c] ss:$12 sps:$4 sm:$0xff]  }
 0xa8f   : > { %8523 = vmatpush1.bf16.msra.mxu0 %v11716_v26  ;;  %v11752_v26 = vld [vmem:[#allocation19 + $0x618] ss:$12 sps:$4 sm:$0xff]  }
 0xa90   : > { %8564 = vmatpush1.bf16.msra.mxu1 %v11719_v29  ;;  %8524 = vmatprep.subr.bf16.mxu0 %v11724_v30  ;;  %v11755_v29 = vld [vmem:[#allocation19 + $0x798] ss:$12 sps:$4 sm:$0xff]   ;;  %v11760_v30 = vld [vmem:[#allocation19 + $0x634] ss:$12 sps:$4 sm:$0xff]  }
 0xa91   : > { %8565 = vmatprep.subr.bf16.mxu1 %v11727_v40  ;;  %v11763_v40 = vld [vmem:[#allocation19 + $0x7b4] ss:$12 sps:$4 sm:$0xff]  }
 0xa93   : > { %8525 = vmatpush1.bf16.msra.mxu0 %v11722_v31  ;;  %v11758_v31 = vld [vmem:[#allocation19 + $0x630] ss:$12 sps:$4 sm:$0xff]  }
 0xa94   : > { %8566 = vmatpush1.bf16.msra.mxu1 %v11725_v33  ;;  %8526 = vmatprep.subr.bf16.mxu0 %v11730_v28  ;;  %v11766_v33 = vld [vmem:[#allocation19 + $0x64c] ss:$12 sps:$4 sm:$0xff]   ;;  %v11767_v28 = vld [vmem:[#allocation19 + $0x7c8] ss:$12 sps:$4 sm:$0xff]  }
 0xa95   : > { %v6204_v50 = vpop.f32.mrb[40].mxu0  ;;  %8567 = vmatprep.subr.bf16.mxu1 %v11733_v36  ;;  %v11775_v36 = vld [vmem:[#allocation19 + $0x7e4] ss:$12 sps:$4 sm:$0xff]  }
 0xa96   : > { %v6286_v54 = vpop.f32.mrb[40].mxu1  ;;  %v6206_v55 = vpop.f32.mrb[41].mxu0  ;;  %v10338_v61 = vadd.f32 %v6204_v50, %v4484_v48  ;;  %v11778_v48 = vld [vmem:[#allocation19 + $0x67c] ss:$12 sps:$4 sm:$0xff]   ;;  %v11784_v50 = vld [vmem:[#allocation19 + $0x694] ss:$12 sps:$4 sm:$0xff]  }
 0xa97   : > { %v10339_v18 = vadd.f32 %v6206_v55, %v4488_v37  ;;  %v6288_v57 = vpop.f32.mrb[41].mxu1  ;;  %v6208_v58 = vpop.f32.mrb[42].mxu0  ;;  %8527 = vmatpush1.bf16.msra.mxu0 %v11728_v38  ;;  %v10340_v43 = vadd.f32 %v6286_v54, %v4492_v52  ;;  %v11770_v37 = vld [vmem:[#allocation19 + $0x660] ss:$12 sps:$4 sm:$0xff]   ;;  %v11785_v54 = vld [vmem:[#allocation19 + $0x810] ss:$12 sps:$4 sm:$0xff]  }
 0xa98   : > { %v10341_v62 = vadd.f32 %v6288_v57, %v4496_v39  ;;  %v6290_v0 = vpop.f32.mrb[42].mxu1  ;;  %8568 = vmatpush1.bf16.msra.mxu1 %v11731_v47  ;;  %v6209_v1 = vpop.f32.mrb[43].mxu0  ;;  %8528 = vmatprep.subr.bf16.mxu0 %v11736_v49  ;;  %v6461_v8 = vmax.f32 %v10338_v61, 0.0  ;;  %v11773_v38 = vld [vmem:[#allocation19 + $0x7e0] ss:$12 sps:$4 sm:$0xff]  }
 0xa99   : > { %v6462_v3 = vmax.f32 %v10339_v18, 0.0  ;;  %v6291_v13 = vpop.f32.mrb[43].mxu1  ;;  %8569 = vmatprep.subr.bf16.mxu1 %v11739_v53  ;;  %v6463_v11 = vmax.f32 %v10340_v43, 0.0  ;;  %v11781_v39 = vld [vmem:[#allocation19 + $0x7fc] ss:$12 sps:$4 sm:$0xff]  }
 0xa9a   : > { %v6464_v5 = vmax.f32 %v10341_v62, 0.0  ;;  %v13152_v16 = vpack.c.bf16 %v6461_v8, %v6461_v8  ;;  %v11776_v47 = vld [vmem:[#allocation19 + $0x678] ss:$12 sps:$4 sm:$0xff]   ;;  %v11787_v52 = vld [vmem:[#allocation19 + $0x814] ss:$12 sps:$4 sm:$0xff]  }
 0xa9b   : > { %v13146_v6 = vpack.c.bf16 %v6462_v3, %v6462_v3  ;;  %8529 = vmatpush1.bf16.msra.mxu0 %v11734_v60  ;;  %v13154_v42 = vpack.c.bf16 %v6463_v11, %v6463_v11  ;;  %v11779_v49 = vld [vmem:[#allocation19 + $0x7f8] ss:$12 sps:$4 sm:$0xff]   ;;  %v11782_v53 = vld [vmem:[#allocation19 + $0x690] ss:$12 sps:$4 sm:$0xff]   ;;  %v11788_v57 = vld [vmem:[#allocation19 + $0x6a8] ss:$12 sps:$4 sm:$0xff]  }
 0xa9c   : > { %v13148_v25 = vpack.c.bf16 %v6464_v5, %v6464_v5  ;;  %8570 = vmatpush1.bf16.msra.mxu1 %v11737_v20  ;;  %8530 = vmatprep.subr.bf16.mxu0 %v11742_v2  ;;  %v11790_v55 = vld [vmem:[#allocation19 + $0x6ac] ss:$12 sps:$4 sm:$0xff]   ;;  %v11791_v58 = vld [vmem:[#allocation19 + $0x828] ss:$12 sps:$4 sm:$0xff]   ;;  %v11796_v60 = vld [vmem:[#allocation19 + $0x6c4] ss:$12 sps:$4 sm:$0xff]  }
 0xa9d   : > { %8532 = vmatprep.mubr.bf16.mxu0 %v13146_v6  ;;  %8571 = vmatprep.subr.bf16.mxu1 %v11745_v4  ;;  %v11793_v18 = vld [vmem:[#allocation19 + $0x82c] ss:$12 sps:$4 sm:$0xff]   ;;  %v11799_v61 = vld [vmem:[#allocation19 + $0x844] ss:$12 sps:$4 sm:$0xff]   ;;  %v11802_v1 = vld [vmem:[#allocation19 + $0x6dc] ss:$12 sps:$4 sm:$0xff]  }
 0xa9e   : > { %8573 = vmatprep.mubr.bf16.mxu1 %v13148_v25  ;;  %v11794_v62 = vld [vmem:[#allocation19 + $0x6c0] ss:$12 sps:$4 sm:$0xff]   ;;  %v11805_v20 = vld [vmem:[#allocation19 + $0x85c] ss:$12 sps:$4 sm:$0xff]   ;;  %v11800_v2 = vld [vmem:[#allocation19 + $0x6d8] ss:$12 sps:$4 sm:$0xff]  }
 0xa9f   : > { %8531 = vmatpush1.bf16.msra.mxu0 %v11740_v7  ;;  %v11797_v0 = vld [vmem:[#allocation19 + $0x840] ss:$12 sps:$4 sm:$0xff]   ;;  %v11803_v43 = vld [vmem:[#allocation19 + $0x858] ss:$12 sps:$4 sm:$0xff]   ;;  %v11806_v4 = vld [vmem:[#allocation19 + $0x6f0] ss:$12 sps:$4 sm:$0xff]  }
 0xaa0   : > { %8572 = vmatpush1.bf16.msra.mxu1 %v11743_v9  ;;  %8582 = vmatprep.subr.bf16.mxu0 %v11748_v10  ;;  %v11808_v3 = vld [vmem:[#allocation19 + $0x6f4] ss:$12 sps:$4 sm:$0xff]   ;;  %v11809_v5 = vld [vmem:[#allocation19 + $0x870] ss:$12 sps:$4 sm:$0xff]   ;;  %v11814_v7 = vld [vmem:[#allocation19 + $0x70c] ss:$12 sps:$4 sm:$0xff]  }
 0xaa1   : > { %8623 = vmatprep.subr.bf16.mxu1 %v11751_v12  ;;  %v11811_v13 = vld [vmem:[#allocation19 + $0x874] ss:$12 sps:$4 sm:$0xff]   ;;  %v11817_v8 = vld [vmem:[#allocation19 + $0x88c] ss:$12 sps:$4 sm:$0xff]   ;;  %v11820_v11 = vld [vmem:[#allocation19 + $0x724] ss:$12 sps:$4 sm:$0xff]  }
 0xaa2   : > { %8533 = vmatmul.mubr.bf16.vlgmr.msra.gmra.mrb[52].mxu0 %v13152_v16  ;;  %v11812_v9 = vld [vmem:[#allocation19 + $0x708] ss:$12 sps:$4 sm:$0xff]   ;;  %v11823_v12 = vld [vmem:[#allocation19 + $0x8a4] ss:$12 sps:$4 sm:$0xff]  }
 0xaa3   : > { %8574 = vmatmul.mubr.bf16.vlgmr.msra.gmra.mrb[52].mxu1 %v13154_v42  ;;  %8583 = vmatpush1.bf16.msra.mxu0 %v11746_v14  ;;  %v11815_v10 = vld [vmem:[#allocation19 + $0x888] ss:$12 sps:$4 sm:$0xff]   ;;  %v11818_v14 = vld [vmem:[#allocation19 + $0x720] ss:$12 sps:$4 sm:$0xff]  }
 0xaa4   : > { %8624 = vmatpush1.bf16.msra.mxu1 %v11749_v56  ;;  %8584 = vmatprep.subr.bf16.mxu0 %v11754_v41  ;;  %v11821_v56 = vld [vmem:[#allocation19 + $0x8a0] ss:$12 sps:$4 sm:$0xff]   ;;  %v11826_v41 = vld [vmem:[#allocation19 + $0x73c] ss:$12 sps:$4 sm:$0xff]  }
 0xaa5   : > { %8625 = vmatprep.subr.bf16.mxu1 %v11757_v24  ;;  %v11829_v24 = vld [vmem:[#allocation19 + $0x8bc] ss:$12 sps:$4 sm:$0xff]  }
 0xaa7   : > { %8585 = vmatpush1.bf16.msra.mxu0 %v11752_v26  ;;  %v11824_v26 = vld [vmem:[#allocation19 + $0x738] ss:$12 sps:$4 sm:$0xff]  }
 0xaa8   : > { %8626 = vmatpush1.bf16.msra.mxu1 %v11755_v29  ;;  %8586 = vmatprep.subr.bf16.mxu0 %v11760_v30  ;;  %v11827_v29 = vld [vmem:[#allocation19 + $0x8b8] ss:$12 sps:$4 sm:$0xff]   ;;  %v11832_v30 = vld [vmem:[#allocation19 + $0x754] ss:$12 sps:$4 sm:$0xff]  }
 0xaa9   : > { %8627 = vmatprep.subr.bf16.mxu1 %v11763_v40  ;;  %v11835_v40 = vld [vmem:[#allocation19 + $0x8d4] ss:$12 sps:$4 sm:$0xff]  }
 0xaab   : > { %8587 = vmatpush1.bf16.msra.mxu0 %v11758_v31  ;;  %v11830_v31 = vld [vmem:[#allocation19 + $0x750] ss:$12 sps:$4 sm:$0xff]  }
 0xaac   : > { %8628 = vmatpush1.bf16.msra.mxu1 %v11761_v32  ;;  %8588 = vmatprep.subr.bf16.mxu0 %v11766_v33  ;;  %v11833_v32 = vld [vmem:[#allocation19 + $0x8d0] ss:$12 sps:$4 sm:$0xff]   ;;  %v11838_v33 = vld [vmem:[#allocation19 + $0x76c] ss:$12 sps:$4 sm:$0xff]  }
 0xaad   : > { %8629 = vmatprep.subr.bf16.mxu1 %v11769_v27  ;;  %v11841_v27 = vld [vmem:[#allocation19 + $0x8ec] ss:$12 sps:$4 sm:$0xff]  }
 0xaaf   : > { %8589 = vmatpush1.bf16.msra.mxu0 %v11764_v46  ;;  %v11836_v46 = vld [vmem:[#allocation19 + $0x768] ss:$12 sps:$4 sm:$0xff]  }
 0xab0   : > { %8630 = vmatpush1.bf16.msra.mxu1 %v11767_v28  ;;  %8590 = vmatprep.subr.bf16.mxu0 %v11772_v35  ;;  %v11839_v28 = vld [vmem:[#allocation19 + $0x8e8] ss:$12 sps:$4 sm:$0xff]  }
 0xab1   : > { %8631 = vmatprep.subr.bf16.mxu1 %v11775_v36  ;;  %v11842_v35 = vld [vmem:[#allocation19 + $0xc8] ss:$12 sps:$4 sm:$0xff]  }
 0xab2   : > { %v11843_v36 = vld [vmem:[#allocation19 + $0x248] ss:$12 sps:$4 sm:$0xff]  }
 0xab3   : > { %8591 = vmatpush1.bf16.msra.mxu0 %v11770_v37  ;;  %v4462_v37 = vld [vmem:[#allocation17 + $0x8] sm:$0xf] }
 0xab4   : > { %8632 = vmatpush1.bf16.msra.mxu1 %v11773_v38  ;;  %8592 = vmatprep.subr.bf16.mxu0 %v11778_v48  ;;  %v4500_v38 = vrot.slane %v4462_v37, %v12896_v23  ;;  %v4508_v48 = vrot.slane %v4462_v37, %v12927_v59 }
 0xab5   : > { %8633 = vmatprep.subr.bf16.mxu1 %v11781_v39  ;;  %v4504_v39 = vrot.slane %v4462_v37, %v12893_v22 }
 0xab7   : > { %8593 = vmatpush1.bf16.msra.mxu0 %v11776_v47  ;;  %v4512_v47 = vrot.slane %v4462_v37, %v4479_v51  ;;  %v11871_v37 = vld [vmem:[#allocation19 + $0x2f0] ss:$12 sps:$4 sm:$0xff]  }
 0xab8   : > { %8634 = vmatpush1.bf16.msra.mxu1 %v11779_v49  ;;  %8594 = vmatprep.subr.bf16.mxu0 %v11784_v50 }
 0xab9   : > { %8635 = vmatprep.subr.bf16.mxu1 %v11787_v52 }
 0xabb   : > { %8595 = vmatpush1.bf16.msra.mxu0 %v11782_v53 }
 0xabc   : > { %8636 = vmatpush1.bf16.msra.mxu1 %v11785_v54  ;;  %8596 = vmatprep.subr.bf16.mxu0 %v11790_v55 }
 0xabd   : > { %8637 = vmatprep.subr.bf16.mxu1 %v11793_v18 }
 0xabf   : > { %8597 = vmatpush1.bf16.msra.mxu0 %v11788_v57 }
 0xac0   : > { %8638 = vmatpush1.bf16.msra.mxu1 %v11791_v58  ;;  %8598 = vmatprep.subr.bf16.mxu0 %v11796_v60 }
 0xac1   : > { %8639 = vmatprep.subr.bf16.mxu1 %v11799_v61 }
 0xac3   : > { %8599 = vmatpush1.bf16.msra.mxu0 %v11794_v62 }
 0xac4   : > { %8640 = vmatpush1.bf16.msra.mxu1 %v11797_v0  ;;  %8600 = vmatprep.subr.bf16.mxu0 %v11802_v1 }
 0xac5   : > { %8641 = vmatprep.subr.bf16.mxu1 %v11805_v20 }
 0xac7   : > { %8601 = vmatpush1.bf16.msra.mxu0 %v11800_v2 }
 0xac8   : > { %8642 = vmatpush1.bf16.msra.mxu1 %v11803_v43  ;;  %8602 = vmatprep.subr.bf16.mxu0 %v11808_v3 }
 0xac9   : > { %8643 = vmatprep.subr.bf16.mxu1 %v11811_v13  ;;  %v11845_v13 = vld [vmem:[#allocation19 + $0x188] ss:$12 sps:$4 sm:$0xff]  }
 0xacb   : > { %8603 = vmatpush1.bf16.msra.mxu0 %v11806_v4 }
 0xacc   : > { %8644 = vmatpush1.bf16.msra.mxu1 %v11809_v5  ;;  %8604 = vmatprep.subr.bf16.mxu0 %v11814_v7  ;;  %v11846_v5 = vld [vmem:[#allocation19 + $0xe0] ss:$12 sps:$4 sm:$0xff]  }
 0xacd   : > { %8645 = vmatprep.subr.bf16.mxu1 %v11817_v8  ;;  %v11847_v7 = vld [vmem:[#allocation19 + $0x260] ss:$12 sps:$4 sm:$0xff]  }
 0xace   : > { %v11848_v8 = vld [vmem:[#allocation19 + $0x20] ss:$12 sps:$4 sm:$0xff]  }
 0xacf   : > { %8605 = vmatpush1.bf16.msra.mxu0 %v11812_v9  ;;  %v11849_v9 = vld [vmem:[#allocation19 + $0x1a0] ss:$12 sps:$4 sm:$0xff]  }
 0xad0   : > { %8646 = vmatpush1.bf16.msra.mxu1 %v11815_v10  ;;  %8606 = vmatprep.subr.bf16.mxu0 %v11820_v11  ;;  %v11850_v10 = vld [vmem:[#allocation19 + $0xf8] ss:$12 sps:$4 sm:$0xff]  }
 0xad1   : > { %8647 = vmatprep.subr.bf16.mxu1 %v11823_v12  ;;  %v11851_v11 = vld [vmem:[#allocation19 + $0x278] ss:$12 sps:$4 sm:$0xff]  }
 0xad2   : > { %v11852_v12 = vld [vmem:[#allocation19 + $0x38] ss:$12 sps:$4 sm:$0xff]  }
 0xad3   : > { %8607 = vmatpush1.bf16.msra.mxu0 %v11818_v14  ;;  %v11853_v14 = vld [vmem:[#allocation19 + $0x1b8] ss:$12 sps:$4 sm:$0xff]  }
 0xad4   : > { %8648 = vmatpush1.bf16.msra.mxu1 %v11821_v56  ;;  %8608 = vmatprep.subr.bf16.mxu0 %v11826_v41  ;;  %v11854_v56 = vld [vmem:[#allocation19 + $0x110] ss:$12 sps:$4 sm:$0xff]  }
 0xad5   : > { %8649 = vmatprep.subr.bf16.mxu1 %v11829_v24  ;;  %v11855_v41 = vld [vmem:[#allocation19 + $0x290] ss:$12 sps:$4 sm:$0xff]  }
 0xad6   : > { %v11856_v24 = vld [vmem:[#allocation19 + $0x50] ss:$12 sps:$4 sm:$0xff]  }
 0xad7   : > { %8609 = vmatpush1.bf16.msra.mxu0 %v11824_v26  ;;  %v11858_v26 = vld [vmem:[#allocation19 + $0x128] ss:$12 sps:$4 sm:$0xff]  }
 0xad8   : > { %8650 = vmatpush1.bf16.msra.mxu1 %v11827_v29  ;;  %8610 = vmatprep.subr.bf16.mxu0 %v11832_v30  ;;  %v11859_v29 = vld [vmem:[#allocation19 + $0x2a8] ss:$12 sps:$4 sm:$0xff]  }
 0xad9   : > { %8651 = vmatprep.subr.bf16.mxu1 %v11835_v40  ;;  %v11861_v30 = vld [vmem:[#allocation19 + $0x1e8] ss:$12 sps:$4 sm:$0xff]   ;;  %v11862_v40 = vld [vmem:[#allocation19 + $0x140] ss:$12 sps:$4 sm:$0xff]  }
 0xadb   : > { %8611 = vmatpush1.bf16.msra.mxu0 %v11830_v31  ;;  %v11863_v31 = vld [vmem:[#allocation19 + $0x2c0] ss:$12 sps:$4 sm:$0xff]  }
 0xadc   : > { %8652 = vmatpush1.bf16.msra.mxu1 %v11833_v32  ;;  %8612 = vmatprep.subr.bf16.mxu0 %v11838_v33  ;;  %v11864_v32 = vld [vmem:[#allocation19 + $0x80] ss:$12 sps:$4 sm:$0xff]  }
 0xadd   : > { %8653 = vmatprep.subr.bf16.mxu1 %v11841_v27  ;;  %v11865_v33 = vld [vmem:[#allocation19 + $0x200] ss:$12 sps:$4 sm:$0xff]   ;;  %v11866_v27 = vld [vmem:[#allocation19 + $0x158] ss:$12 sps:$4 sm:$0xff]  }
 0xadf   : > { %8613 = vmatpush1.bf16.msra.mxu0 %v11836_v46  ;;  %v11867_v46 = vld [vmem:[#allocation19 + $0x2d8] ss:$12 sps:$4 sm:$0xff]  }
 0xae0   : > { %8654 = vmatpush1.bf16.msra.mxu1 %v11839_v28  ;;  %10154 = vmatprep.subr.bf16.mxu0 %v11842_v35  ;;  %v11868_v28 = vld [vmem:[#allocation19 + $0x98] ss:$12 sps:$4 sm:$0xff]  }
 0xae1   : > { %10176 = vmatprep.subr.bf16.mxu1 %v11843_v36  ;;  %v11869_v35 = vld [vmem:[#allocation19 + $0x218] ss:$12 sps:$4 sm:$0xff]   ;;  %v11870_v36 = vld [vmem:[#allocation19 + $0x170] ss:$12 sps:$4 sm:$0xff]  }
 0xaf5   : > { %v6368_v49 = vpop.f32.mrb[44].mxu0 }
 0xaf6   : > { %v10342_v50 = vadd.f32 %v6368_v49, %v4500_v38  ;;  %v6450_v52 = vpop.f32.mrb[44].mxu1  ;;  %v6370_v53 = vpop.f32.mrb[45].mxu0  ;;  %v11872_v38 = vld [vmem:[#allocation19 + $0xb0] ss:$12 sps:$4 sm:$0xff]   ;;  %v11876_v49 = vld [vmem:[#allocation19 + $0x308] ss:$12 sps:$4 sm:$0xff]  }
 0xaf7   : > { %v10344_v54 = vadd.f32 %v6450_v52, %v4508_v48  ;;  %v10343_v55 = vadd.f32 %v6370_v53, %v4504_v39  ;;  %v6452_v18 = vpop.f32.mrb[45].mxu1  ;;  %v6372_v57 = vpop.f32.mrb[46].mxu0  ;;  %v11873_v48 = vld [vmem:[#allocation19 + $0x230] ss:$12 sps:$4 sm:$0xff]   ;;  %v11874_v39 = vld [vmem:[#allocation19 + $0x3c8] ss:$12 sps:$4 sm:$0xff]  }
 0xaf8   : > { %v6465_v58 = vmax.f32 %v10342_v50, 0.0  ;;  %v10345_v60 = vadd.f32 %v6452_v18, %v4512_v47  ;;  %v6454_v61 = vpop.f32.mrb[46].mxu1  ;;  %v6373_v62 = vpop.f32.mrb[47].mxu0  ;;  %v11875_v47 = vld [vmem:[#allocation19 + $0x548] ss:$12 sps:$4 sm:$0xff]  }
 0xaf9   : > { %v6467_v0 = vmax.f32 %v10344_v54, 0.0  ;;  %v6466_v1 = vmax.f32 %v10343_v55, 0.0  ;;  %v6455_v20 = vpop.f32.mrb[47].mxu1  ;;  %v11877_v50 = vld [vmem:[#allocation19 + $0x488] ss:$12 sps:$4 sm:$0xff]  }
 0xafa   : > { %v6468_v2 = vmax.f32 %v10345_v60, 0.0  ;;  %v13165_v51 = vpack.c.bf16 %v6465_v58, %v6465_v58  ;;  %v11878_v52 = vld [vmem:[#allocation19 + $0x3e0] ss:$12 sps:$4 sm:$0xff]   ;;  %v11882_v18 = vld [vmem:[#allocation19 + $0x3f8] ss:$12 sps:$4 sm:$0xff]  }
 0xafb   : > { %v13163_v43 = vpack.c.bf16 %v6466_v1, %v6466_v1  ;;  %v13169_v4 = vpack.c.bf16 %v6467_v0, %v6467_v0  ;;  %v11879_v53 = vld [vmem:[#allocation19 + $0x560] ss:$12 sps:$4 sm:$0xff]   ;;  %v11883_v57 = vld [vmem:[#allocation19 + $0x578] ss:$12 sps:$4 sm:$0xff]   ;;  %v11886_v60 = vld [vmem:[#allocation19 + $0x410] ss:$12 sps:$4 sm:$0xff]  }
 0xafc   : > { %v13167_v3 = vpack.c.bf16 %v6468_v2, %v6468_v2  ;;  %v11880_v54 = vld [vmem:[#allocation19 + $0x320] ss:$12 sps:$4 sm:$0xff]   ;;  %v11884_v58 = vld [vmem:[#allocation19 + $0x338] ss:$12 sps:$4 sm:$0xff]   ;;  %v11888_v61 = vld [vmem:[#allocation19 + $0x350] ss:$12 sps:$4 sm:$0xff]  }
 0xafd   : > { %8614 = vmatprep.mubr.bf16.mxu0 %v13163_v43  ;;  %v11881_v55 = vld [vmem:[#allocation19 + $0x4a0] ss:$12 sps:$4 sm:$0xff]   ;;  %v11890_v62 = vld [vmem:[#allocation19 + $0x428] ss:$12 sps:$4 sm:$0xff]  }
 0xafe   : > { %8655 = vmatprep.mubr.bf16.mxu1 %v13167_v3  ;;  %8615 = vmatmul.mubr.bf16.vlgmr.msra.gmra.mrb[56].mxu0 %v13165_v51  ;;  %v11891_v0 = vld [vmem:[#allocation19 + $0x5a8] ss:$12 sps:$4 sm:$0xff]   ;;  %v11894_v20 = vld [vmem:[#allocation19 + $0x440] ss:$12 sps:$4 sm:$0xff]  }
 0xaff   : > { %8656 = vmatmul.mubr.bf16.vlgmr.msra.gmra.mrb[56].mxu1 %v13169_v4  ;;  %10155 = vmatpush3.bf16.msra.mxu0 %v11844_v21  ;;  %v11893_v1 = vld [vmem:[#allocation19 + $0x4e8] ss:$12 sps:$4 sm:$0xff]   ;;  %v11895_v2 = vld [vmem:[#allocation19 + $0x5c0] ss:$12 sps:$4 sm:$0xff]  }
 0xb00   : > { %10177 = vmatpush3.bf16.msra.mxu1 %v11845_v13  ;;  %8696 = vmatprep.mubr.bf16.mxu0 %v13120_v44  ;;  %v11857_v44 = vld [vmem:[#allocation19 + $0x1d0] ss:$12 sps:$4 sm:$0xff]   ;;  %v11896_v21 = vld [vmem:[#allocation19 + $0x380] ss:$12 sps:$4 sm:$0xff]  }
 0xb01   : > { %8736 = vmatprep.mubr.bf16.mxu1 %v13122_v45  ;;  %10156 = vmatprep.subr.bf16.mxu0 %v11846_v5  ;;  %v11860_v45 = vld [vmem:[#allocation19 + $0x68] ss:$12 sps:$4 sm:$0xff]   ;;  %v13181_v13 = vld [vmem:[#allocation20] sm:$0x7] }
 0xb02   : > { %10178 = vmatprep.subr.bf16.mxu1 %v11847_v7  ;;  %v11897_v5 = vld [vmem:[#allocation19 + $0x500] ss:$12 sps:$4 sm:$0xff]   ;;  %v11898_v7 = vld [vmem:[#allocation19 + $0x458] ss:$12 sps:$4 sm:$0xff]  }
 0xb03   : > { %10157 = vmatpush3.bf16.msra.mxu0 %v11848_v8  ;;  %v11899_v8 = vld [vmem:[#allocation19 + $0x5d8] ss:$12 sps:$4 sm:$0xff]  }
 0xb04   : > { %10179 = vmatpush3.bf16.msra.mxu1 %v11849_v9  ;;  %10158 = vmatprep.subr.bf16.mxu0 %v11850_v10  ;;  %v6870_v9 = vrot.slane %v13181_v13, %v12896_v23  ;;  %v6874_v10 = vrot.slane %v13181_v13, %v12893_v22  ;;  %v11904_v23 = vld [vmem:[#allocation19 + $0x3b0] ss:$12 sps:$4 sm:$0xff]  }
 0xb05   : > { %10180 = vmatprep.subr.bf16.mxu1 %v11851_v11  ;;  %v11900_v11 = vld [vmem:[#allocation19 + $0x398] ss:$12 sps:$4 sm:$0xff]  }
 0xb07   : > { %10159 = vmatpush3.bf16.msra.mxu0 %v11852_v12  ;;  %v11901_v12 = vld [vmem:[#allocation19 + $0x518] ss:$12 sps:$4 sm:$0xff]  }
 0xb08   : > { %10181 = vmatpush3.bf16.msra.mxu1 %v11853_v14  ;;  %10160 = vmatprep.subr.bf16.mxu0 %v11854_v56  ;;  %v11902_v14 = vld [vmem:[#allocation19 + $0x470] ss:$12 sps:$4 sm:$0xff]  }
 0xb09   : > { %10182 = vmatprep.subr.bf16.mxu1 %v11855_v41  ;;  %v11903_v41 = vld [vmem:[#allocation19 + $0x5f0] ss:$12 sps:$4 sm:$0xff]  }
 0xb0b   : > { %10161 = vmatpush3.bf16.msra.mxu0 %v11856_v24 }
 0xb0c   : > { %10183 = vmatpush3.bf16.msra.mxu1 %v11857_v44  ;;  %10162 = vmatprep.subr.bf16.mxu0 %v11858_v26 }
 0xb0d   : > { %10184 = vmatprep.subr.bf16.mxu1 %v11859_v29 }
 0xb0f   : > { %10163 = vmatpush3.bf16.msra.mxu0 %v11860_v45 }
 0xb10   : > { %10185 = vmatpush3.bf16.msra.mxu1 %v11861_v30  ;;  %10164 = vmatprep.subr.bf16.mxu0 %v11862_v40 }
 0xb11   : > { %10186 = vmatprep.subr.bf16.mxu1 %v11863_v31 }
 0xb13   : > { %10165 = vmatpush3.bf16.msra.mxu0 %v11864_v32  ;;  %v11905_v32 = vld [vmem:[#allocation19 + $0x530] ss:$12 sps:$4 sm:$0xff]  }
 0xb14   : > { %10187 = vmatpush3.bf16.msra.mxu1 %v11865_v33  ;;  %10166 = vmatprep.subr.bf16.mxu0 %v11866_v27  ;;  %v11906_v33 = vld [vmem:[#allocation19 + $0x6c8] ss:$12 sps:$4 sm:$0xff]  }
 0xb15   : > { %10188 = vmatprep.subr.bf16.mxu1 %v11867_v46 }
 0xb17   : > { %10167 = vmatpush3.bf16.msra.mxu0 %v11868_v28  ;;  %v11907_v28 = vld [vmem:[#allocation19 + $0x848] ss:$12 sps:$4 sm:$0xff]  }
 0xb18   : > { %10189 = vmatpush3.bf16.msra.mxu1 %v11869_v35  ;;  %10168 = vmatprep.subr.bf16.mxu0 %v11870_v36  ;;  %v11908_v35 = vld [vmem:[#allocation19 + $0x608] ss:$12 sps:$4 sm:$0xff]  }
 0xb19   : > { %10190 = vmatprep.subr.bf16.mxu1 %v11871_v37  ;;  %v11909_v36 = vld [vmem:[#allocation19 + $0x788] ss:$12 sps:$4 sm:$0xff]   ;;  %v11910_v37 = vld [vmem:[#allocation19 + $0x6e0] ss:$12 sps:$4 sm:$0xff]  }
 0xb1b   : > { %10169 = vmatpush3.bf16.msra.mxu0 %v11872_v38  ;;  %v11911_v38 = vld [vmem:[#allocation19 + $0x860] ss:$12 sps:$4 sm:$0xff]  }
 0xb1c   : > { %10191 = vmatpush3.bf16.msra.mxu1 %v11873_v48  ;;  %10198 = vmatprep.subr.bf16.mxu0 %v11874_v39  ;;  %v11912_v48 = vld [vmem:[#allocation19 + $0x620] ss:$12 sps:$4 sm:$0xff]  }
 0xb1d   : > { %10220 = vmatprep.subr.bf16.mxu1 %v11875_v47  ;;  %v11913_v39 = vld [vmem:[#allocation19 + $0x7a0] ss:$12 sps:$4 sm:$0xff]   ;;  %v11914_v47 = vld [vmem:[#allocation19 + $0x6f8] ss:$12 sps:$4 sm:$0xff]  }
 0xb1e   : > { %8697 = vmatmul.mubr.bf16.vlgmr.msra.gmra.mrb[60].mxu0 %v13132_v34  ;;  %v11885_v34 = vld [vmem:[#allocation19 + $0x4b8] ss:$12 sps:$4 sm:$0xff]  }
 0xb1f   : > { %8737 = vmatmul.mubr.bf16.vlgmr.msra.gmra.mrb[60].mxu1 %v13134_v19  ;;  %10199 = vmatpush3.bf16.msra.mxu0 %v11876_v49  ;;  %v11887_v19 = vld [vmem:[#allocation19 + $0x590] ss:$12 sps:$4 sm:$0xff]   ;;  %v11915_v49 = vld [vmem:[#allocation19 + $0x878] ss:$12 sps:$4 sm:$0xff]  }
 0xb20   : > { %8776 = vmatprep.mubr.bf16.mxu0 %v13146_v6  ;;  %10221 = vmatpush3.bf16.msra.mxu1 %v11877_v50  ;;  %v11889_v6 = vld [vmem:[#allocation19 + $0x4d0] ss:$12 sps:$4 sm:$0xff]   ;;  %v11916_v50 = vld [vmem:[#allocation19 + $0x638] ss:$12 sps:$4 sm:$0xff]  }
 0xb21   : > { %8816 = vmatprep.mubr.bf16.mxu1 %v13148_v25  ;;  %10200 = vmatprep.subr.bf16.mxu0 %v11878_v52  ;;  %v11892_v25 = vld [vmem:[#allocation19 + $0x368] ss:$12 sps:$4 sm:$0xff]   ;;  %v11918_v52 = vld [vmem:[#allocation19 + $0x710] ss:$12 sps:$4 sm:$0xff]  }
 0xb22   : > { %10222 = vmatprep.subr.bf16.mxu1 %v11879_v53  ;;  %v11920_v53 = vld [vmem:[#allocation19 + $0x650] ss:$12 sps:$4 sm:$0xff]  }
 0xb23   : > { %10201 = vmatpush3.bf16.msra.mxu0 %v11880_v54  ;;  %v11922_v54 = vld [vmem:[#allocation19 + $0x728] ss:$12 sps:$4 sm:$0xff]  }
 0xb24   : > { %10223 = vmatpush3.bf16.msra.mxu1 %v11881_v55  ;;  %10202 = vmatprep.subr.bf16.mxu0 %v11882_v18  ;;  %v11923_v55 = vld [vmem:[#allocation19 + $0x8a8] ss:$12 sps:$4 sm:$0xff]  }
 0xb25   : > { %10224 = vmatprep.subr.bf16.mxu1 %v11883_v57  ;;  %v11925_v18 = vld [vmem:[#allocation19 + $0x7e8] ss:$12 sps:$4 sm:$0xff]   ;;  %v11926_v57 = vld [vmem:[#allocation19 + $0x740] ss:$12 sps:$4 sm:$0xff]  }
 0xb27   : > { %10203 = vmatpush3.bf16.msra.mxu0 %v11884_v58  ;;  %v11927_v58 = vld [vmem:[#allocation19 + $0x8c0] ss:$12 sps:$4 sm:$0xff]  }
 0xb28   : > { %10225 = vmatpush3.bf16.msra.mxu1 %v11885_v34  ;;  %10204 = vmatprep.subr.bf16.mxu0 %v11886_v60  ;;  %v11928_v34 = vld [vmem:[#allocation19 + $0x680] ss:$12 sps:$4 sm:$0xff]  }
 0xb29   : > { %10226 = vmatprep.subr.bf16.mxu1 %v11887_v19  ;;  %v11929_v60 = vld [vmem:[#allocation19 + $0x800] ss:$12 sps:$4 sm:$0xff]   ;;  %v11930_v19 = vld [vmem:[#allocation19 + $0x758] ss:$12 sps:$4 sm:$0xff]  }
 0xb2b   : > { %10205 = vmatpush3.bf16.msra.mxu0 %v11888_v61  ;;  %v11931_v61 = vld [vmem:[#allocation19 + $0x8d8] ss:$12 sps:$4 sm:$0xff]  }
 0xb2c   : > { %10227 = vmatpush3.bf16.msra.mxu1 %v11889_v6  ;;  %10206 = vmatprep.subr.bf16.mxu0 %v11890_v62  ;;  %v11932_v6 = vld [vmem:[#allocation19 + $0x698] ss:$12 sps:$4 sm:$0xff]  }
 0xb2d   : > { %10228 = vmatprep.subr.bf16.mxu1 %v11891_v0  ;;  %v11933_v62 = vld [vmem:[#allocation19 + $0x818] ss:$12 sps:$4 sm:$0xff]   ;;  %v11934_v0 = vld [vmem:[#allocation19 + $0x770] ss:$12 sps:$4 sm:$0xff]  }
 0xb2f   : > { %10207 = vmatpush3.bf16.msra.mxu0 %v11892_v25  ;;  %v11935_v25 = vld [vmem:[#allocation19 + $0x8f0] ss:$12 sps:$4 sm:$0xff]  }
 0xb30   : > { %10229 = vmatpush3.bf16.msra.mxu1 %v11893_v1  ;;  %10208 = vmatprep.subr.bf16.mxu0 %v11894_v20  ;;  %v11936_v1 = vld [vmem:[#allocation19 + $0x6b0] ss:$12 sps:$4 sm:$0xff]  }
 0xb31   : > { %10230 = vmatprep.subr.bf16.mxu1 %v11895_v2  ;;  %v11937_v20 = vld [vmem:[#allocation19 + $0x830] ss:$12 sps:$4 sm:$0xff]  }
 0xb33   : > { %10209 = vmatpush3.bf16.msra.mxu0 %v11896_v21 }
 0xb34   : > { %10231 = vmatpush3.bf16.msra.mxu1 %v11897_v5  ;;  %10210 = vmatprep.subr.bf16.mxu0 %v11898_v7 }
 0xb35   : > { %v8452_v56 = vpop.f32.mrb[48].mxu0  ;;  %10232 = vmatprep.subr.bf16.mxu1 %v11899_v8 }
 0xb36   : > { %v8453_v24 = vadd.f32 %v8452_v56, %v6870_v9  ;;  %v8493_v44 = vpop.f32.mrb[48].mxu1  ;;  %v8454_v26 = vpop.f32.mrb[49].mxu0 }
 0xb37   : > { %v8455_v29 = vadd.f32 %v8454_v26, %v6874_v10  ;;  %v8495_v45 = vpop.f32.mrb[49].mxu1  ;;  %10211 = vmatpush3.bf16.msra.mxu0 %v11900_v11  ;;  %v8456_v30 = vpop.f32.mrb[50].mxu0 }
 0xb38   : > { %v13187_v40 = vadd.f32 %v8493_v44, %v8453_v24  ;;  %10233 = vmatpush3.bf16.msra.mxu1 %v11901_v12  ;;  %v8497_v22 = vpop.f32.mrb[50].mxu1  ;;  %v8457_v31 = vpop.f32.mrb[51].mxu0  ;;  %10212 = vmatprep.subr.bf16.mxu0 %v11902_v14 }
 0xb39   : > { %v13189_v27 = vadd.f32 %v8495_v45, %v8455_v29  ;;  %v8498_v46 = vpop.f32.mrb[51].mxu1  ;;  %10234 = vmatprep.subr.bf16.mxu1 %v11903_v41 }
 0xb3a   : > { %v6878_v46 = vrot.slane %v13181_v13, %v12927_v59 }
 0xb3b   : > { %10213 = vmatpush3.bf16.msra.mxu0 %v11904_v23 }
 0xb3c   : > { %10235 = vmatpush3.bf16.msra.mxu1 %v11905_v32  ;;  %10242 = vmatprep.subr.bf16.mxu0 %v11906_v33 }
 0xb3d   : > { %10264 = vmatprep.subr.bf16.mxu1 %v11907_v28 }
 0xb3e   : > { %8777 = vmatmul.mubr.bf16.vlgmr.msra.gmra.mrb[64].mxu0 %v13152_v16  ;;  %v11917_v16 = vld [vmem:[#allocation19 + $0x7b8] ss:$12 sps:$4 sm:$0xff]  }
 0xb3f   : > { %8817 = vmatmul.mubr.bf16.vlgmr.msra.gmra.mrb[64].mxu1 %v13154_v42  ;;  %10243 = vmatpush3.bf16.msra.mxu0 %v11908_v35  ;;  %v11919_v42 = vld [vmem:[#allocation19 + $0x890] ss:$12 sps:$4 sm:$0xff]  }
 0xb40   : > { %8856 = vmatprep.mubr.bf16.mxu0 %v13163_v43  ;;  %10265 = vmatpush3.bf16.msra.mxu1 %v11909_v36  ;;  %v11921_v43 = vld [vmem:[#allocation19 + $0x7d0] ss:$12 sps:$4 sm:$0xff]  }
 0xb41   : > { %8896 = vmatprep.mubr.bf16.mxu1 %v13167_v3  ;;  %10244 = vmatprep.subr.bf16.mxu0 %v11910_v37  ;;  %v11924_v3 = vld [vmem:[#allocation19 + $0x668] ss:$12 sps:$4 sm:$0xff]  }
 0xb42   : > { %10266 = vmatprep.subr.bf16.mxu1 %v11911_v38 }
 0xb43   : > { %10245 = vmatpush3.bf16.msra.mxu0 %v11912_v48 }
 0xb44   : > { %10267 = vmatpush3.bf16.msra.mxu1 %v11913_v39  ;;  %10246 = vmatprep.subr.bf16.mxu0 %v11914_v47 }
 0xb45   : > { %10268 = vmatprep.subr.bf16.mxu1 %v11915_v49 }
 0xb47   : > { %10247 = vmatpush3.bf16.msra.mxu0 %v11916_v50 }
 0xb48   : > { %10269 = vmatpush3.bf16.msra.mxu1 %v11917_v16  ;;  %10248 = vmatprep.subr.bf16.mxu0 %v11918_v52 }
 0xb49   : > { %10270 = vmatprep.subr.bf16.mxu1 %v11919_v42 }
 0xb4b   : > { %10249 = vmatpush3.bf16.msra.mxu0 %v11920_v53 }
 0xb4c   : > { %10271 = vmatpush3.bf16.msra.mxu1 %v11921_v43  ;;  %10250 = vmatprep.subr.bf16.mxu0 %v11922_v54 }
 0xb4d   : > { %10272 = vmatprep.subr.bf16.mxu1 %v11923_v55 }
 0xb4f   : > { %10251 = vmatpush3.bf16.msra.mxu0 %v11924_v3 }
 0xb50   : > { %10273 = vmatpush3.bf16.msra.mxu1 %v11925_v18  ;;  %10252 = vmatprep.subr.bf16.mxu0 %v11926_v57 }
 0xb51   : > { %10274 = vmatprep.subr.bf16.mxu1 %v11927_v58 }
 0xb53   : > { %10253 = vmatpush3.bf16.msra.mxu0 %v11928_v34 }
 0xb54   : > { %10275 = vmatpush3.bf16.msra.mxu1 %v11929_v60  ;;  %10254 = vmatprep.subr.bf16.mxu0 %v11930_v19 }
 0xb55   : > { %10276 = vmatprep.subr.bf16.mxu1 %v11931_v61 }
 0xb57   : > { %10255 = vmatpush3.bf16.msra.mxu0 %v11932_v6 }
 0xb58   : > { %10277 = vmatpush3.bf16.msra.mxu1 %v11933_v62  ;;  %10256 = vmatprep.subr.bf16.mxu0 %v11934_v0 }
 0xb59   : > { %10278 = vmatprep.subr.bf16.mxu1 %v11935_v25 }
 0xb5b   : > { %10257 = vmatpush3.bf16.msra.mxu0 %v11936_v1 }
 0xb5c   : > { %10279 = vmatpush3.bf16.msra.mxu1 %v11937_v20 }
 0xb5e   : > { %8857 = vmatmul.mubr.bf16.vlgmr.msra.gmra.mrb[68].mxu0 %v13165_v51 }
 0xb5f   : > { %8897 = vmatmul.mubr.bf16.vlgmr.msra.gmra.mrb[68].mxu1 %v13169_v4 }
 0xb75   : > { %v8534_v2 = vpop.f32.mrb[52].mxu0 }
 0xb76   : > { %v8535_v21 = vadd.f32 %v8534_v2, %v13187_v40  ;;  %v8575_v5 = vpop.f32.mrb[52].mxu1  ;;  %v8536_v7 = vpop.f32.mrb[53].mxu0 }
 0xb77   : > { %v8537_v8 = vadd.f32 %v8536_v7, %v13189_v27  ;;  %v8577_v9 = vpop.f32.mrb[53].mxu1  ;;  %v8538_v10 = vpop.f32.mrb[54].mxu0 }
 0xb78   : > { %v8576_v11 = vadd.f32 %v8575_v5, %v8535_v21  ;;  %v8579_v12 = vpop.f32.mrb[54].mxu1  ;;  %v8539_v14 = vpop.f32.mrb[55].mxu0 }
 0xb79   : > { %v8578_v56 = vadd.f32 %v8577_v9, %v8537_v8  ;;  %v8580_v41 = vpop.f32.mrb[55].mxu1 }
 0xbd1   : > { %v8616_v24 = vpop.f32.mrb[56].mxu0 }
 0xbd2   : > { %v8617_v44 = vadd.f32 %v8616_v24, %v8576_v11  ;;  %v8657_v51 = vpop.f32.mrb[56].mxu1  ;;  %v8618_v26 = vpop.f32.mrb[57].mxu0 }
 0xbd3   : > { %v8619_v4 = vadd.f32 %v8618_v26, %v8578_v56  ;;  %v8659_v29 = vpop.f32.mrb[57].mxu1  ;;  %v8620_v45 = vpop.f32.mrb[58].mxu0 }
 0xbd4   : > { %v8658_v30 = vadd.f32 %v8657_v51, %v8617_v44  ;;  %v8661_v23 = vpop.f32.mrb[58].mxu1  ;;  %v8621_v40 = vpop.f32.mrb[59].mxu0 }
 0xbd5   : > { %v8660_v22 = vadd.f32 %v8659_v29, %v8619_v4  ;;  %v8662_v31 = vpop.f32.mrb[59].mxu1 }
 0xbd6   : > { %v8904_v32 = vadd.f32 %v8658_v30, %v13040_v15 }
 0xbd7   : > { %v8905_v33 = vadd.f32 %v8660_v22, %v13042_v17 }
 0xbd8   : > { %8907 = vst [vmem:[%s13203_s14] sm:$0xff] %v8904_v32 }
 0xbd9   : > { %8908 = vst [vmem:[%s13203_s14 + $0x8] sm:$0xff] %v8905_v33 }
 0xbf1   : > { %v10170_v27 = vpop.f32.mrb[60].mxu0 }
 0xbf2   : > { %v10192_v28 = vpop.f32.mrb[60].mxu1  ;;  %v10171_v35 = vpop.f32.mrb[61].mxu0 }
 0xbf3   : > { %v10172_v36 = vadd.f32 %v10171_v35, %v10170_v27  ;;  %v10193_v37 = vpop.f32.mrb[61].mxu1  ;;  %v10173_v38 = vpop.f32.mrb[62].mxu0 }
 0xbf4   : > { %v10194_v48 = vadd.f32 %v10193_v37, %v10192_v28  ;;  %v10195_v15 = vpop.f32.mrb[62].mxu1  ;;  %v10174_v39 = vpop.f32.mrb[63].mxu0 }
 0xbf5   : > { %v8699_v17 = vadd.f32 %v10172_v36, %v6878_v46  ;;  %v10196_v47 = vpop.f32.mrb[63].mxu1 }
 0xbf7   : > { %v8739_v49 = vadd.f32 %v10194_v48, %v8699_v17 }
 0xc11   : > { %v10214_v50 = vpop.f32.mrb[64].mxu0 }
 0xc12   : > { %v10236_v16 = vpop.f32.mrb[64].mxu1  ;;  %v10215_v52 = vpop.f32.mrb[65].mxu0 }
 0xc13   : > { %v10216_v42 = vadd.f32 %v10215_v52, %v10214_v50  ;;  %v10237_v53 = vpop.f32.mrb[65].mxu1  ;;  %v10217_v43 = vpop.f32.mrb[66].mxu0 }
 0xc14   : > { %v10238_v54 = vadd.f32 %v10237_v53, %v10236_v16  ;;  %v10239_v55 = vpop.f32.mrb[66].mxu1  ;;  %v10218_v59 = vpop.f32.mrb[67].mxu0 }
 0xc15   : > { %v8779_v13 = vadd.f32 %v10216_v42, %v8739_v49  ;;  %v10240_v3 = vpop.f32.mrb[67].mxu1 }
 0xc17   : > { %v8819_v18 = vadd.f32 %v10238_v54, %v8779_v13 }
 0xc31   : > { %v10258_v57 = vpop.f32.mrb[68].mxu0 }
 0xc32   : > { %v10280_v58 = vpop.f32.mrb[68].mxu1  ;;  %v10259_v34 = vpop.f32.mrb[69].mxu0 }
 0xc33   : > { %v10260_v60 = vadd.f32 %v10259_v34, %v10258_v57  ;;  %v10281_v19 = vpop.f32.mrb[69].mxu1  ;;  %v10261_v61 = vpop.f32.mrb[70].mxu0 }
 0xc34   : > { %v10282_v6 = vadd.f32 %v10281_v19, %v10280_v58  ;;  %v10283_v62 = vpop.f32.mrb[70].mxu1  ;;  %v10262_v0 = vpop.f32.mrb[71].mxu0 }
 0xc35   : > { %v8859_v25 = vadd.f32 %v10260_v60, %v8819_v18  ;;  %v10284_v1 = vpop.f32.mrb[71].mxu1 }
 0xc37   : > { %v8899_v20 = vadd.f32 %v10282_v6, %v8859_v25 }
 0xc39   : > { %v8906_v2 = vadd.f32 %v8899_v20, %v13044_v63 }
 0xc3b   : > { %8909 = vst [vmem:[%s13203_s14 + $0x10] sm:$0xff] %v8906_v2 }
 0xc3c   : > { %12312 = shalt.err (!%p12309_p9)
}
 0xc3d   : > { %s12313_s26 = scalar_lea.hbm %s13215_s5, 384  ;;  %s12317_s14 = scalar_lea.hbm %s13316_s2, 768 }
 0xc3e   : > { %p12314_p7 = scmp.ne.s32.totalorder %s13215_s5, %s12313_s26  ;;  %p12318_p13 = scmp.lt.u32.totalorder %s13215_s5, %s13316_s2 }
 0xc3f   : > { %p12319_p1 = scmp.lt.u32.totalorder %s12317_s14, %s12313_s26  ;;  %p12321_p2 = scmp.lt.u32.totalorder %s12313_s26, %s13215_s5 }
 0xc40   : > { %p12315_p10 = pnand %p12314_p7, %p13317_p0 }
 0xc41   : > { %p12320_p3 = por %p12319_p1, %p12318_p13 }
 0xc42   : > { %p12316_p4 = pneg %p12315_p10 }
 0xc43   : > { %p12322_p6 = por %p12321_p2, %p12320_p3 }
 0xc45   : > { %p12323_p11 = pnand %p12322_p6, %p12316_p4 }
 0xc47   : > { %12326 = shalt.err (!%p12323_p11)
}
 0xc48   : > { %10444 = dma.vmem_to_hbm [thread:$0]  (%p13317_p0), %s13217_s16, 384, %s13215_s5, %s8911_s19  }
 0xc49 PF: > { %s8937_s12 = sand.u32 1, %s12377_s21   ;;  %p13318_p12 = scmp.ne.s32.totalorder %s13300_s28, 0 }
 0xc4a   : > { %p13319_p8 = scmp.ge.s32.totalorder %s12389_s24, 2  ;;  %s8938_s18 = scalar_lea.sflag [#allocation4], %s8937_s12 }
 0xc4c   : > { %p10485_p5 = pnand %p13319_p8, %p13318_p12 }
 0xc4e   : > { %12372 = dma.done.wait (!%p10485_p5), %s8938_s18, 384  }
 0xc4f   : > { %12374 = vsyncadd (!%p10485_p5), %s8938_s18, 4294966912  ;;  %p31_p9 = scmp.ge.s32.totalorder %s12756_s13, 4   ;;  %s13320_s21 = smov %s12381_s22 }
 0xc50   : > { %s13321_s22 = smov %s12385_s23  ;;  %s13322_s23 = smov %s12768_s20 }
 0xc51   : > { %s13323_s24 = smov %s12756_s13  ;;  %33 = sbr.rel (!%p31_p9) target bundleno = 17 (0x11), region = 157 }
 0xc58   :  { %8943 = vsyncpa [#allocation3], 1 }
 0xc59   :  { %8945 = vsyncpa [#allocation3 + $0x1], 1 }
 0xc5a   :  { %8946 = vsyncpa [#allocation6], 1 }
 0xc5b   :  { %8947 = vsyncpa [#allocation9], 1 }
 0xc5c   :  { %8948 = vsyncpa [#allocation12], 1 }
 0xc5d   :  { %8949 = vsyncpa [#allocation15], 1 }
 0xc5e   :  { %8950 = vsyncpa [#allocation18], 1 }
 0xc5f   :  { %8951 = vsyncpa [#allocation21], 1 }
 0xc60   :  { %8952 = vsyncpa [#allocation4], 1 }
 0xc61   :  { %8954 = vsyncpa [#allocation4 + $0x1], 1 }

// kernel: tpu_custom_call.1
= control target key start
LH: loop header
LB: loop body
LE: loop exit
PB: predicated region body
PF: predicated region fallthrough
CT: control target
= control target key end

     0   :  { %s13260_s0 = inlined_call_operand.hbm [shape: f32[2,8,384], index: 0, kind: input, shape index: {}]   ;;  %s13261_s1 = inlined_call_operand.hbm [shape: f32[1,384], index: 1, kind: input, shape index: {}]   ;;  %s13262_s2 = inlined_call_operand.hbm [shape: f32[1,384], index: 2, kind: input, shape index: {}]   ;;  %s13263_s3 = inlined_call_operand.hbm [shape: bf16[384,1536], index: 3, kind: input, shape index: {}]   ;;  %s13264_s4 = inlined_call_operand.hbm [shape: bf16[512,384], index: 4, kind: input, shape index: {}]   ;;  %s13265_s5 = inlined_call_operand.hbm [shape: f32[1,384], index: 5, kind: input, shape index: {}]   ;;  %s13266_s6 = inlined_call_operand.hbm [shape: f32[1,384], index: 6, kind: input, shape index: {}]   ;;  %s13267_s7 = inlined_call_operand.hbm [shape: f32[1,384], index: 7, kind: input, shape index: {}]   ;;  %s13268_s8 = inlined_call_operand.hbm [shape: bf16[384,1536], index: 8, kind: input, shape index: {}]   ;;  %s13269_s9 = inlined_call_operand.hbm [shape: f32[1,1536], index: 9, kind: input, shape index: {}]   ;;  %s13270_s10 = inlined_call_operand.hbm [shape: bf16[1536,384], index: 10, kind: input, shape index: {}]   ;;  %s13271_s11 = inlined_call_operand.hbm [shape: f32[1,384], index: 11, kind: input, shape index: {}]   ;;  %s13272_s12 = inlined_call_operand.hbm [shape: f32[2,8,384], index: 12, kind: output, shape index: {}]  }
   0x1   :  { %13281 = sst [smem:[#allocation32_spill]] %s13261_s1 }
   0x2   :  { %13282 = sst [smem:[#allocation33_spill]] %s13262_s2 }
   0x3   :  { %13283 = sst [smem:[#allocation34_spill]] %s13263_s3 }
   0x4   :  { %13284 = sst [smem:[#allocation35_spill]] %s13265_s5 }
   0x5   :  { %13285 = sst [smem:[#allocation36_spill]] %s13272_s12 }
   0x6   :  { %17 = vsyncpa [#allocation3], 0 }
   0x7   :  { %19 = vsyncpa [#allocation3 + $0x1], 0 }
   0x8   :  { %20 = vsyncpa [#allocation6], 0 }
   0x9   :  { %21 = vsyncpa [#allocation9], 0 }
   0xa   :  { %22 = vsyncpa [#allocation12], 0 }
   0xb   :  { %23 = vsyncpa [#allocation15], 0 }
   0xc   :  { %24 = vsyncpa [#allocation18], 0 }
   0xd   :  { %25 = vsyncpa [#allocation21], 0 }
   0xe   :  { %26 = vsyncpa [#allocation4], 0 }
   0xf   :  { %28 = vsyncpa [#allocation4 + $0x1], 0  ;;  %s12476_s21 = smov 0   ;;  %s12478_s22 = smov 0  }
  0x10   :  { %s12480_s23 = smov 0   ;;  %s12482_s24 = smov 0  }
  0x11 LB: > { %s12391_s25 = smov [#allocation5]   ;;  %s12497_s27 = sadd.s32 4294967295, %s12389_s24   ;;  %s12389_s24 = sphi %s12482_s24, %s13323_s24   ;;  %s12385_s23 = sphi %s12480_s23, %s13322_s23   ;;  %s12381_s22 = sphi %s12478_s22, %s13321_s22   ;;  %s12377_s21 = sphi %s12476_s21, %s13320_s21  }
  0x12   : > { %s335_s26 = sshll.u32 %s12391_s25, 4  ;;  %p9101_p0 = scmp.ge.s32.totalorder %s12389_s24, 1  ;;  %s12502_s26 = int_to_ptr.vmem [resolvable:$true] %s335_s26 }
  0x13   : > { %p13277_p1 = scmp.eq.s32.totalorder %s12497_s27, 0  ;;  %p322_p2 = scmp.lt.s32.totalorder %s12389_s24, 3 }
  0x14   : > { %s12392_s29 = smov [#allocation8]   ;;  %s12393_s14 = smov [#allocation11]  }
  0x15   : > { %p12504_p3 = pnand %p9101_p0, %p322_p2  ;;  %s356_s30 = sshll.u32 %s12392_s29, 4  ;;  %s12511_s30 = int_to_ptr.vmem [resolvable:$true] %s356_s30 }
  0x16   : > { %s383_s15 = sshll.u32 %s12393_s14, 4  ;;  %s13289_s1 = sld [smem:[#allocation32_spill]]  ;;  %s12519_s15 = int_to_ptr.vmem [resolvable:$true] %s383_s15 }
  0x17   : > { %s13286_s28 = scalar_select %p12504_p3, 1, 0 }
  0x18   : > { %p10446_p5 = pneg %p12504_p3 }
  0x19   : > { %13287 = sst [smem:[#allocation31_spill]] %s13286_s28 }
  0x1a   : > { %p12515_p6 = pnand %p10446_p5, %p13277_p1 }
  0x1c   : > { %s11961_s18 = scalar_lea.hbm %s13289_s1, 48  ;;  %p12529_p8 = pneg %p12515_p6 }
  0x1d   : > { %p11962_p7 = scmp.ne.s32.totalorder %s13289_s1, %s11961_s18  ;;  %p11968_p11 = scmp.lt.u32.totalorder %s11961_s18, %s13289_s1 }
  0x1f   : > { %p11964_p9 = pnand %p12529_p8, %p11962_p7 }
  0x21   : > { %p11965_p10 = pneg %p11964_p9 }
  0x23   : > { %p11970_p12 = pnand %p11968_p11, %p11965_p10 }
  0x25   : > { %11973 = shalt.err (!%p11970_p12)
}
  0x26   : > { %s11974_s16 = scalar_lea.vmem %s12502_s26, 48  ;;  %s11981_s17 = scalar_lea.vmem %s12502_s26, 64 }
  0x27   : > { %p11975_p13 = scmp.ne.s32.totalorder %s12502_s26, %s11974_s16  ;;  %p11982_p5 = scmp.lt.s32.totalorder %s12502_s26, %s12502_s26 }
  0x28   : > { %p11983_p7 = scmp.lt.s32.totalorder %s11981_s17, %s11974_s16 }
  0x29   : > { %p11977_p0 = pnand %p11975_p13, %p12529_p8 }
  0x2a   : > { %p11984_p9 = por %p11983_p7, %p11982_p5 }
  0x2b   : > { %p11978_p2 = pneg %p11977_p0 }
  0x2d   : > { %p11985_p4 = pnand %p11984_p9, %p11978_p2 }
  0x2f   : > { %11988 = shalt.err (!%p11985_p4)
}
  0x30   : > { %10449 = dma.hbm_to_vmem [thread:$0]  (!%p12515_p6), %s13289_s1, 48, %s12502_s26, [#allocation6]  }
  0x31   : > { %s13291_s3 = sld [smem:[#allocation34_spill]] }
  0x37   : > { %s11989_s14 = scalar_lea.hbm %s13291_s3, 36864 }
  0x38   : > { %p11990_p10 = scmp.ne.s32.totalorder %s13291_s3, %s11989_s14  ;;  %p11996_p4 = scmp.lt.u32.totalorder %s11989_s14, %s13291_s3 }
  0x3a   : > { %p11992_p11 = pnand %p11990_p10, %p12529_p8 }
  0x3c   : > { %p11993_p12 = pneg %p11992_p11 }
  0x3e   : > { %p11998_p13 = pnand %p11996_p4, %p11993_p12 }
  0x40   : > { %12001 = shalt.err (!%p11998_p13)
}
  0x41   : > { %s12002_s26 = scalar_lea.vmem %s12511_s30, 36864  ;;  %p12010_p7 = scmp.lt.s32.totalorder %s12511_s30, %s12511_s30 }
  0x42   : > { %p12003_p0 = scmp.ne.s32.totalorder %s12511_s30, %s12002_s26  ;;  %p12011_p9 = scmp.lt.s32.totalorder %s12002_s26, %s12002_s26 }
  0x44   : > { %p12005_p2 = pnand %p12003_p0, %p12529_p8  ;;  %p12012_p10 = por %p12011_p9, %p12010_p7 }
  0x46   : > { %p12006_p5 = pneg %p12005_p2 }
  0x48   : > { %p12013_p11 = pnand %p12012_p10, %p12006_p5 }
  0x4a   : > { %12016 = shalt.err (!%p12013_p11)
}
  0x4b   : > { %s13275_s12 = smov 768   ;;  %s13276_s28 = smov 48  }
  0x4c   : > { %10455 = dma.hbm_to_vmem [thread:$0]  (!%p12515_p6), %s13291_s3, 36864, %s12511_s30, [#allocation9], %s13275_s12, %s13275_s12, %s13276_s28  }
  0x4d   : > { %s13292_s5 = sld [smem:[#allocation35_spill]] }
  0x53   : > { %s12017_s14 = scalar_lea.hbm %s13292_s5, 48 }
  0x54   : > { %p12018_p12 = scmp.ne.s32.totalorder %s13292_s5, %s12017_s14  ;;  %p12024_p0 = scmp.lt.u32.totalorder %s12017_s14, %s13292_s5 }
  0x56   : > { %p12020_p4 = pnand %p12018_p12, %p12529_p8 }
  0x58   : > { %p12021_p13 = pneg %p12020_p4 }
  0x5a   : > { %p12026_p2 = pnand %p12024_p0, %p12021_p13 }
  0x5c   : > { %12029 = shalt.err (!%p12026_p2)
}
  0x5d   : > { %s12030_s30 = scalar_lea.vmem %s12519_s15, 48  ;;  %s12037_s18 = scalar_lea.vmem %s12519_s15, 64 }
  0x5e   : > { %p12031_p5 = scmp.ne.s32.totalorder %s12519_s15, %s12030_s30  ;;  %p12038_p10 = scmp.lt.s32.totalorder %s12519_s15, %s12519_s15 }
  0x5f   : > { %p12039_p11 = scmp.lt.s32.totalorder %s12037_s18, %s12030_s30 }
  0x60   : > { %p12033_p7 = pnand %p12031_p5, %p12529_p8 }
  0x61   : > { %p12040_p12 = por %p12039_p11, %p12038_p10 }
  0x62   : > { %p12034_p9 = pneg %p12033_p7 }
  0x64   : > { %p12041_p4 = pnand %p12040_p12, %p12034_p9 }
  0x66   : > { %12044 = shalt.err (!%p12041_p4)
}
  0x67   : > { %10461 = dma.hbm_to_vmem [thread:$0]  (!%p12515_p6), %s13292_s5, 48, %s12519_s15, [#allocation12]  }
  0x68   : > { %s12396_s20 = smov [#allocation14]   ;;  %s12397_s14 = smov [#allocation17]  }
  0x69   : > { %s405_s29 = sshll.u32 %s12396_s20, 4  ;;  %s429_s16 = sshll.u32 %s12397_s14, 4  ;;  %s406_s29 = int_to_ptr.vmem [resolvable:$true] %s405_s29  ;;  %s430_s16 = int_to_ptr.vmem [resolvable:$true] %s429_s16 }
  0x6a   : > { %s12045_s30 = scalar_lea.hbm %s13267_s7, 48 }
  0x6b   : > { %p12046_p13 = scmp.ne.s32.totalorder %s13267_s7, %s12045_s30  ;;  %p12052_p5 = scmp.lt.u32.totalorder %s12045_s30, %s13267_s7 }
  0x6d   : > { %p12048_p0 = pnand %p12046_p13, %p12529_p8 }
  0x6f   : > { %p12049_p2 = pneg %p12048_p0 }
  0x71   : > { %p12054_p7 = pnand %p12052_p5, %p12049_p2 }
  0x73   : > { %12057 = shalt.err (!%p12054_p7)
}
  0x74   : > { %s12058_s15 = scalar_lea.vmem %s406_s29, 48  ;;  %s12065_s19 = scalar_lea.vmem %s406_s29, 64 }
  0x75   : > { %p12059_p9 = scmp.ne.s32.totalorder %s406_s29, %s12058_s15  ;;  %p12066_p12 = scmp.lt.s32.totalorder %s406_s29, %s406_s29 }
  0x76   : > { %p12067_p4 = scmp.lt.s32.totalorder %s12065_s19, %s12058_s15 }
  0x77   : > { %p12061_p10 = pnand %p12059_p9, %p12529_p8 }
  0x78   : > { %p12068_p1 = por %p12067_p4, %p12066_p12 }
  0x79   : > { %p12062_p11 = pneg %p12061_p10 }
  0x7b   : > { %p12069_p3 = pnand %p12068_p1, %p12062_p11 }
  0x7d   : > { %12072 = shalt.err (!%p12069_p3)
}
  0x7e   : > { %10467 = dma.hbm_to_vmem [thread:$0]  (!%p12515_p6), %s13267_s7, 48, %s406_s29, [#allocation15]  }
  0x7f   : > { %s12073_s17 = scalar_lea.hbm %s13269_s9, 192 }
  0x80   : > { %p12074_p13 = scmp.ne.s32.totalorder %s13269_s9, %s12073_s17  ;;  %p12080_p3 = scmp.lt.u32.totalorder %s12073_s17, %s13269_s9 }
  0x82   : > { %p12076_p0 = pnand %p12074_p13, %p12529_p8 }
  0x84   : > { %p12077_p1 = pneg %p12076_p0 }
  0x86   : > { %p12082_p2 = pnand %p12080_p3, %p12077_p1 }
  0x88   : > { %12085 = shalt.err (!%p12082_p2)
}
  0x89   : > { %s12086_s15 = scalar_lea.vmem %s430_s16, 192  ;;  %p12094_p10 = scmp.lt.s32.totalorder %s430_s16, %s430_s16 }
  0x8a   : > { %p12087_p5 = scmp.ne.s32.totalorder %s430_s16, %s12086_s15  ;;  %p12095_p11 = scmp.lt.s32.totalorder %s12086_s15, %s12086_s15 }
  0x8c   : > { %p12089_p7 = pnand %p12087_p5, %p12529_p8  ;;  %p12096_p12 = por %p12095_p11, %p12094_p10 }
  0x8e   : > { %p12090_p9 = pneg %p12089_p7 }
  0x90   : > { %p12097_p4 = pnand %p12096_p12, %p12090_p9 }
  0x92   : > { %12100 = shalt.err (!%p12097_p4)
}
  0x93   : > { %10473 = dma.hbm_to_vmem [thread:$0]  (!%p12515_p6), %s13269_s9, 192, %s430_s16, [#allocation18]  }
  0x94   : > { %s12398_s12 = smov [#allocation7]   ;;  %s12399_s28 = smov [#allocation10]  }
  0x95   : > { %s346_s20 = sshll.u32 %s12398_s12, 4  ;;  %s369_s14 = sshll.u32 %s12399_s28, 4  ;;  %s347_s20 = int_to_ptr.vmem [resolvable:$true] %s346_s20  ;;  %s370_s14 = int_to_ptr.vmem [resolvable:$true] %s369_s14 }
  0x96   : > { %s13293_s2 = sld [smem:[#allocation33_spill]] }
  0x9c   : > { %s12101_s30 = scalar_lea.hbm %s13293_s2, 48 }
  0x9d   : > { %p12102_p13 = scmp.ne.s32.totalorder %s13293_s2, %s12101_s30  ;;  %p12108_p3 = scmp.lt.u32.totalorder %s12101_s30, %s13293_s2 }
  0x9f   : > { %p12104_p0 = pnand %p12102_p13, %p12529_p8 }
  0xa1   : > { %p12105_p1 = pneg %p12104_p0 }
  0xa3   : > { %p12110_p2 = pnand %p12108_p3, %p12105_p1 }
  0xa5   : > { %12113 = shalt.err (!%p12110_p2)
}
  0xa6   : > { %s12114_s16 = scalar_lea.vmem %s347_s20, 48  ;;  %s12121_s19 = scalar_lea.vmem %s347_s20, 64 }
  0xa7   : > { %p12115_p5 = scmp.ne.s32.totalorder %s347_s20, %s12114_s16  ;;  %p12122_p10 = scmp.lt.s32.totalorder %s347_s20, %s347_s20 }
  0xa8   : > { %p12123_p11 = scmp.lt.s32.totalorder %s12121_s19, %s12114_s16 }
  0xa9   : > { %p12117_p7 = pnand %p12115_p5, %p12529_p8 }
  0xaa   : > { %p12124_p12 = por %p12123_p11, %p12122_p10 }
  0xab   : > { %p12118_p9 = pneg %p12117_p7 }
  0xad   : > { %p12125_p4 = pnand %p12124_p12, %p12118_p9 }
  0xaf   : > { %12128 = shalt.err (!%p12125_p4)
}
  0xb0   : > { %10452 = dma.hbm_to_vmem [thread:$0]  (!%p12515_p6), %s13293_s2, 48, %s347_s20, [#allocation6]  }
  0xb1   : > { %s12129_s30 = scalar_lea.hbm %s13264_s4, 12288 }
  0xb2   : > { %p12130_p13 = scmp.ne.s32.totalorder %s13264_s4, %s12129_s30  ;;  %p12136_p3 = scmp.lt.u32.totalorder %s12129_s30, %s13264_s4 }
  0xb4   : > { %p12132_p0 = pnand %p12130_p13, %p12529_p8 }
  0xb6   : > { %p12133_p1 = pneg %p12132_p0 }
  0xb8   : > { %p12138_p2 = pnand %p12136_p3, %p12133_p1 }
  0xba   : > { %12141 = shalt.err (!%p12138_p2)
}
  0xbb   : > { %s12142_s16 = scalar_lea.vmem %s370_s14, 12288  ;;  %p12150_p10 = scmp.lt.s32.totalorder %s370_s14, %s370_s14 }
  0xbc   : > { %p12143_p5 = scmp.ne.s32.totalorder %s370_s14, %s12142_s16  ;;  %p12151_p11 = scmp.lt.s32.totalorder %s12142_s16, %s12142_s16 }
  0xbe   : > { %p12145_p7 = pnand %p12143_p5, %p12529_p8  ;;  %p12152_p12 = por %p12151_p11, %p12150_p10 }
  0xc0   : > { %p12146_p9 = pneg %p12145_p7 }
  0xc2   : > { %p12153_p4 = pnand %p12152_p12, %p12146_p9 }
  0xc4   : > { %12156 = shalt.err (!%p12153_p4)
}
  0xc5   : > { %s13279_s20 = smov 192   ;;  %s12401_s19 = smov 12  }
  0xc6   : > { %10458 = dma.hbm_to_vmem [thread:$0]  (!%p12515_p6), %s13264_s4, 12288, %s370_s14, [#allocation9], %s13279_s20, %s13279_s20, %s12401_s19  }
  0xc7   : > { %s12402_s17 = smov [#allocation13]   ;;  %s12403_s30 = smov [#allocation16]  }
  0xc8   : > { %s394_s26 = sshll.u32 %s12402_s17, 4  ;;  %s415_s18 = sshll.u32 %s12403_s30, 4  ;;  %s395_s26 = int_to_ptr.vmem [resolvable:$true] %s394_s26  ;;  %s416_s18 = int_to_ptr.vmem [resolvable:$true] %s415_s18 }
  0xc9   : > { %s12157_s29 = scalar_lea.hbm %s13266_s6, 48 }
  0xca   : > { %p12158_p13 = scmp.ne.s32.totalorder %s13266_s6, %s12157_s29  ;;  %p12164_p3 = scmp.lt.u32.totalorder %s12157_s29, %s13266_s6 }
  0xcc   : > { %p12160_p0 = pnand %p12158_p13, %p12529_p8 }
  0xce   : > { %p12161_p1 = pneg %p12160_p0 }
  0xd0   : > { %p12166_p2 = pnand %p12164_p3, %p12161_p1 }
  0xd2   : > { %12169 = shalt.err (!%p12166_p2)
}
  0xd3   : > { %s12170_s14 = scalar_lea.vmem %s395_s26, 48  ;;  %s12177_s12 = scalar_lea.vmem %s395_s26, 64 }
  0xd4   : > { %p12171_p5 = scmp.ne.s32.totalorder %s395_s26, %s12170_s14  ;;  %p12178_p10 = scmp.lt.s32.totalorder %s395_s26, %s395_s26 }
  0xd5   : > { %p12179_p11 = scmp.lt.s32.totalorder %s12177_s12, %s12170_s14 }
  0xd6   : > { %p12173_p7 = pnand %p12171_p5, %p12529_p8 }
  0xd7   : > { %p12180_p12 = por %p12179_p11, %p12178_p10 }
  0xd8   : > { %p12174_p9 = pneg %p12173_p7 }
  0xda   : > { %p12181_p4 = pnand %p12180_p12, %p12174_p9 }
  0xdc   : > { %12184 = shalt.err (!%p12181_p4)
}
  0xdd   : > { %10464 = dma.hbm_to_vmem [thread:$0]  (!%p12515_p6), %s13266_s6, 48, %s395_s26, [#allocation12]  }
  0xde   : > { %s12185_s17 = scalar_lea.hbm %s13268_s8, 36864 }
  0xdf   : > { %p12186_p13 = scmp.ne.s32.totalorder %s13268_s8, %s12185_s17  ;;  %p12192_p3 = scmp.lt.u32.totalorder %s12185_s17, %s13268_s8 }
  0xe1   : > { %p12188_p0 = pnand %p12186_p13, %p12529_p8 }
  0xe3   : > { %p12189_p1 = pneg %p12188_p0 }
  0xe5   : > { %p12194_p2 = pnand %p12192_p3, %p12189_p1 }
  0xe7   : > { %12197 = shalt.err (!%p12194_p2)
}
  0xe8   : > { %s12198_s16 = scalar_lea.vmem %s416_s18, 36864  ;;  %p12206_p10 = scmp.lt.s32.totalorder %s416_s18, %s416_s18 }
  0xe9   : > { %p12199_p5 = scmp.ne.s32.totalorder %s416_s18, %s12198_s16  ;;  %p12207_p11 = scmp.lt.s32.totalorder %s12198_s16, %s12198_s16 }
  0xeb   : > { %p12201_p7 = pnand %p12199_p5, %p12529_p8  ;;  %p12208_p12 = por %p12207_p11, %p12206_p10 }
  0xed   : > { %p12202_p9 = pneg %p12201_p7 }
  0xef   : > { %p12209_p4 = pnand %p12208_p12, %p12202_p9 }
  0xf1   : > { %12212 = shalt.err (!%p12209_p4)
}
  0xf2   : > { %s13294_s26 = smov 48   ;;  %s13295_s14 = smov 768  }
  0xf3   : > { %10470 = dma.hbm_to_vmem [thread:$0]  (!%p12515_p6), %s13268_s8, 36864, %s416_s18, [#allocation15], %s13295_s14, %s13295_s14, %s13294_s26  }
  0xf4   : > { %s12404_s28 = smov [#allocation19]   ;;  %s12405_s5 = smov [#allocation20]  }
  0xf5   : > { %s439_s3 = sshll.u32 %s12404_s28, 4  ;;  %s453_s17 = sshll.u32 %s12405_s5, 4  ;;  %s440_s3 = int_to_ptr.vmem [resolvable:$true] %s439_s3  ;;  %s454_s17 = int_to_ptr.vmem [resolvable:$true] %s453_s17 }
  0xf6   : > { %s12213_s15 = scalar_lea.hbm %s13270_s10, 36864 }
  0xf7   : > { %p12214_p13 = scmp.ne.s32.totalorder %s13270_s10, %s12213_s15  ;;  %p12220_p3 = scmp.lt.u32.totalorder %s12213_s15, %s13270_s10 }
  0xf9   : > { %p12216_p0 = pnand %p12214_p13, %p12529_p8 }
  0xfb   : > { %p12217_p1 = pneg %p12216_p0 }
  0xfd   : > { %p12222_p2 = pnand %p12220_p3, %p12217_p1 }
  0xff   : > { %12225 = shalt.err (!%p12222_p2)
}
 0x100   : > { %s12226_s18 = scalar_lea.vmem %s440_s3, 36864  ;;  %p12234_p10 = scmp.lt.s32.totalorder %s440_s3, %s440_s3 }
 0x101   : > { %p12227_p5 = scmp.ne.s32.totalorder %s440_s3, %s12226_s18  ;;  %p12235_p11 = scmp.lt.s32.totalorder %s12226_s18, %s12226_s18 }
 0x103   : > { %p12229_p7 = pnand %p12227_p5, %p12529_p8  ;;  %p12236_p12 = por %p12235_p11, %p12234_p10 }
 0x105   : > { %p12230_p9 = pneg %p12229_p7 }
 0x107   : > { %p12237_p4 = pnand %p12236_p12, %p12230_p9 }
 0x109   : > { %12240 = shalt.err (!%p12237_p4)
}
 0x10a   : > { %s13296_s26 = smov 192   ;;  %s12241_s5 = scalar_lea.hbm %s13271_s11, 48 }
 0x10b   : > { %10476 = dma.hbm_to_vmem [thread:$0]  (!%p12515_p6), %s13270_s10, 36864, %s440_s3, [#allocation18], %s13296_s26, %s13296_s26, %s12401_s19  }
 0x10c   : > { %p12242_p13 = scmp.ne.s32.totalorder %s13271_s11, %s12241_s5  ;;  %p12248_p3 = scmp.lt.u32.totalorder %s12241_s5, %s13271_s11 }
 0x10e   : > { %p12244_p0 = pnand %p12242_p13, %p12529_p8 }
 0x110   : > { %p12245_p1 = pneg %p12244_p0 }
 0x112   : > { %p12250_p2 = pnand %p12248_p3, %p12245_p1 }
 0x114   : > { %12253 = shalt.err (!%p12250_p2)
}
 0x115   : > { %s12254_s16 = scalar_lea.vmem %s454_s17, 48  ;;  %s12261_s19 = scalar_lea.vmem %s454_s17, 64 }
 0x116   : > { %p12255_p5 = scmp.ne.s32.totalorder %s454_s17, %s12254_s16  ;;  %p12262_p10 = scmp.lt.s32.totalorder %s454_s17, %s454_s17 }
 0x117   : > { %p12263_p11 = scmp.lt.s32.totalorder %s12261_s19, %s12254_s16 }
 0x118   : > { %p12257_p7 = pnand %p12255_p5, %p12529_p8 }
 0x119   : > { %p12264_p12 = por %p12263_p11, %p12262_p10 }
 0x11a   : > { %p12258_p9 = pneg %p12257_p7 }
 0x11c   : > { %p12265_p4 = pnand %p12264_p12, %p12258_p9 }
 0x11e   : > { %12268 = shalt.err (!%p12265_p4)
}
 0x11f   : > { %10479 = dma.hbm_to_vmem [thread:$0]  (!%p12515_p6), %s13271_s11, 48, %s454_s17, [#allocation21]  }
 0x120   : > { %s9100_s25 = sadd.s32 4294967294, %s12389_s24   ;;  %s12756_s13 = sadd.s32 1, %s12389_s24  }
 0x121   : > { %s41_s18 = sadd.s32 1, %s12385_s23  ;;  %s38_s26 = ssub.s32 %s12389_s24, %s12756_s13 }
 0x122   : > { %p48_p8 = scmp.ne.s32.totalorder %s12385_s23, %s12381_s22  ;;  %p39_p13 = scmp.eq.s32.totalorder %s38_s26, 0 }
 0x123   : > { %p49_p0 = scmp.eq.s32.totalorder %s12389_s24, 0  ;;  %p54_p1 = scmp.ne.s32.totalorder %s12381_s22, %s12377_s21 }
 0x124   : > { %p309_p3 = scmp.eq.s32.totalorder %s12497_s27, 1  ;;  %p13297_p5 = scmp.eq.s32.totalorder %s12497_s27, 0 }
 0x125   : > { %s12768_s20 = scalar_select %p39_p13, %s12385_s23, %s41_s18  }
 0x126   : > { %p50_p2 = por %p49_p0, %p48_p8  ;;  %p12772_p7 = por %p13297_p5, %p54_p1 }
 0x127   : > { %p12776_p6 = por %p309_p3, %p48_p8  ;;  %p315_p9 = scmp.eq.s32.totalorder %s9100_s25, 1 }
 0x128   : > { %p10499_p10 = scmp.lt.s32.totalorder %s12389_s24, 2  ;;  %s464_s2 = sand.u32 1, %s12385_s23  }
 0x129   : > { %s13299_s17 = scalar_select %p12776_p6, 1, 0 }
 0x12a   : > { %p12782_p11 = por %p315_p9, %p54_p1  ;;  %s10394_s5 = smul.u32 24, %s464_s2 }
 0x12b   : > { %p12786_p12 = pnand %p10499_p10, %p50_p2  ;;  %s10395_s1 = smul.u32 384, %s12389_s24 }
 0x12c   : > { %s13300_s28 = scalar_select %p12782_p11, 1, 0 }
 0x12d   : > { %s12794_s16 = scalar_lea.hbm %s13260_s0, %s10395_s1  ;;  %s468_s19 = scalar_lea.vmem [#allocation2], %s10394_s5 }
 0x12e   : > { %s476_s3 = sshll.u32 %s468_s19, 4  ;;  %s465_s12 = scalar_lea.sflag [#allocation3], %s464_s2  ;;  %s12796_s3 = int_to_ptr.vmem [resolvable:$true] %s476_s3 }
 0x12f   : > { %s12269_s25 = scalar_lea.hbm %s12794_s16, 384  ;;  %p12271_p8 = pneg %p12786_p12 }
 0x130   : > { %p12270_p4 = scmp.ne.s32.totalorder %s12794_s16, %s12269_s25  ;;  %s12274_s1 = scalar_lea.hbm %s13260_s0, 768 }
 0x131   : > { %p12275_p1 = scmp.lt.u32.totalorder %s12794_s16, %s13260_s0  ;;  %p12276_p3 = scmp.lt.u32.totalorder %s12274_s1, %s12269_s25 }
 0x132   : > { %p12272_p13 = pnand %p12271_p8, %p12270_p4  ;;  %p12278_p5 = scmp.lt.u32.totalorder %s12269_s25, %s12794_s16 }
 0x133   : > { %p12277_p2 = por %p12276_p3, %p12275_p1 }
 0x134   : > { %p12273_p0 = pneg %p12272_p13 }
 0x135   : > { %p12279_p9 = por %p12278_p5, %p12277_p2 }
 0x137   : > { %p12280_p10 = pnand %p12279_p9, %p12273_p0 }
 0x139   : > { %12283 = shalt.err (!%p12280_p10)
}
 0x13a   : > { %s12284_s2 = scalar_lea.vmem %s12796_s3, 384  ;;  %s12406_s5 = smov [#allocation2]  }
 0x13b   : > { %p12285_p4 = scmp.ne.s32.totalorder %s12796_s3, %s12284_s2  ;;  %s12289_s19 = sshll.u32 %s12406_s5, 4  ;;  %s12290_s19 = int_to_ptr.vmem [resolvable:$false] %s12289_s19 }
 0x13c   : > { %s12291_s18 = scalar_lea.vmem %s12290_s19, 768  ;;  %p12292_p6 = scmp.lt.s32.totalorder %s12796_s3, %s12290_s19 }
 0x13d   : > { %p12287_p13 = pnand %p12285_p4, %p12271_p8  ;;  %p12293_p1 = scmp.lt.s32.totalorder %s12291_s18, %s12284_s2 }
 0x13f   : > { %p12288_p11 = pneg %p12287_p13  ;;  %p12294_p3 = por %p12293_p1, %p12292_p6 }
 0x141   : > { %p12295_p2 = pnand %p12294_p3, %p12288_p11 }
 0x143   : > { %12298 = shalt.err (!%p12295_p2)
}
 0x144   : > { %10483 = dma.hbm_to_vmem [thread:$0]  (!%p12786_p12), %s12794_s16, 384, %s12796_s3, %s465_s12  }
 0x145   : > { %s13302_s25 = sld [smem:[#allocation31_spill]] }
 0x14b   : > { %p13303_p0 = scmp.ne.s32.totalorder %s13302_s25, 0 }
 0x14c   : > { %s12826_s26 = sand.u32 (!%p13303_p0), 1, %s12381_s22  }
 0x14d   : > { %485 = sbr.rel (%p13303_p0) target bundleno = 3145 (0xc49), region = 68  ;;  %s488_s15 = scalar_lea.sflag (!%p13303_p0), [#allocation3], %s12826_s26 }
 0x14e   : > { %s10396_s1 = smul.u32 (!%p13303_p0), 24, %s12826_s26 }
 0x150   : > { %s12832_s29 = scalar_lea.vmem (!%p13303_p0), [#allocation2], %s10396_s1 }
 0x154   : > { %12344 = dma.done.wait (%p12772_p7), %s488_s15, 384  }
 0x155   : > { %12346 = vsyncadd (%p12772_p7), %s488_s15, 4294966912  ;;  %p13304_p6 = scmp.eq.s32.totalorder %s12497_s27, 0 }
 0x157   : > { %12348 = dma.done.wait (%p13304_p6), [#allocation6], 96   ;;  %p13305_p11 = pmov %p13304_p6 }
 0x158   : > { %p13306_p12 = pmov %p13304_p6 }
 0x159   : > { %12350 = vsyncadd (%p13305_p11), [#allocation6], 4294967200 }
 0x15a   : > { %12352 = dma.done.wait (%p13306_p12), [#allocation9], 49152   ;;  %p13307_p8 = pmov %p13304_p6 }
 0x15b   : > { %p13308_p5 = pmov %p13304_p6 }
 0x15c   : > { %12354 = vsyncadd (%p13307_p8), [#allocation9], 4294918144 }
 0x15d   : > { %12356 = dma.done.wait (%p13308_p5), [#allocation12], 96   ;;  %p13309_p9 = pmov %p13308_p5 }
 0x15e   : > { %p13310_p7 = pmov %p13308_p5 }
 0x15f   : > { %12358 = vsyncadd (%p13309_p9), [#allocation12], 4294967200 }
 0x160   : > { %12360 = dma.done.wait (%p13310_p7), [#allocation15], 36912   ;;  %p13311_p10 = pmov %p13308_p5 }
 0x161   : > { %p13312_p4 = pmov %p13308_p5 }
 0x162   : > { %12362 = vsyncadd (%p13311_p10), [#allocation15], 4294930384 }
 0x163   : > { %12364 = dma.done.wait (%p13312_p4), [#allocation18], 37056   ;;  %p13313_p13 = pmov %p13312_p4 }
 0x164   : > { %p13314_p1 = pmov %p13312_p4 }
 0x165   : > { %12366 = vsyncadd (%p13313_p13), [#allocation18], 4294930240 }
 0x166   : > { %12368 = dma.done.wait (%p13314_p1), [#allocation21], 48   ;;  %p13315_p3 = pmov %p13314_p1 }
 0x167   : > { %v12863_v0 = vld [vmem:[%s12832_s29] sm:$0xff]  ;;  %v12866_v1 = vld [vmem:[%s12832_s29 + $0x8] sm:$0xff]  ;;  %v12869_v2 = vld [vmem:[%s12832_s29 + $0x10] sm:$0xff]  ;;  %vm12409_vm0 = vmmov 0   ;;  %vm2939_vm1 = vcmask 1043456   ;;  %vm2923_vm3 = vcmask 64512  }
 0x168   : > { %12370 = vsyncadd (%p13315_p3), [#allocation21], 4294967248  ;;  %v582_v3 = vadd.f32 %v12866_v1, %v12863_v0  ;;  %v10562_v5 = vld [vmem:[#allocation8 + $0x4] ss:$48 sps:$4 sm:$0xff]   ;;  %v10564_v6 = vld [vmem:[#allocation8 + $0xc] ss:$48 sps:$4 sm:$0xff]  }
 0x169   : > { %v10566_v7 = vld [vmem:[#allocation8] ss:$48 sps:$4 sm:$0xff]   ;;  %v10567_v8 = vld [vmem:[#allocation8 + $0x8] ss:$48 sps:$4 sm:$0xff]   ;;  %v10568_v9 = vld [vmem:[#allocation8 + $0x64] ss:$48 sps:$4 sm:$0xff]   ;;  %2373 = vmatprep.subr.bf16.mxu0 %v10562_v5  ;;  %2455 = vmatprep.subr.bf16.mxu1 %v10564_v6 }
 0x16a   : > { %v583_v4 = vadd.f32 %v582_v3, %v12869_v2  ;;  %v10570_v10 = vld [vmem:[#allocation8 + $0x6c] ss:$48 sps:$4 sm:$0xff]   ;;  %2374 = vmatpush1.bf16.msra.mxu0 %v10566_v7  ;;  %2456 = vmatpush1.bf16.msra.mxu1 %v10567_v8  ;;  %v10572_v11 = vld [vmem:[#allocation8 + $0x60] ss:$48 sps:$4 sm:$0xff]   ;;  %v10573_v12 = vld [vmem:[#allocation8 + $0x68] ss:$48 sps:$4 sm:$0xff]  }
 0x16b   : > { %2375 = vmatprep.subr.bf16.mxu0 %v10568_v9  ;;  %2457 = vmatprep.subr.bf16.mxu1 %v10570_v10  ;;  %v10574_v13 = vld [vmem:[#allocation8 + $0xc4] ss:$48 sps:$4 sm:$0xff]   ;;  %v10576_v14 = vld [vmem:[#allocation8 + $0xcc] ss:$48 sps:$4 sm:$0xff]   ;;  %v10578_v15 = vld [vmem:[#allocation8 + $0xc0] ss:$48 sps:$4 sm:$0xff]  }
 0x16c   : > { %584 = vadd.xlane.f32.xlu0 %v583_v4  ;;  %v10579_v16 = vld [vmem:[#allocation8 + $0xc8] ss:$48 sps:$4 sm:$0xff]   ;;  %v10580_v17 = vld [vmem:[#allocation8 + $0x124] ss:$48 sps:$4 sm:$0xff]   ;;  %v10582_v18 = vld [vmem:[#allocation8 + $0x12c] ss:$48 sps:$4 sm:$0xff]  }
 0x16d   : > { %v10584_v19 = vld [vmem:[#allocation8 + $0x120] ss:$48 sps:$4 sm:$0xff]   ;;  %v10585_v20 = vld [vmem:[#allocation8 + $0x128] ss:$48 sps:$4 sm:$0xff]   ;;  %v10586_v21 = vld [vmem:[#allocation8 + $0x184] ss:$48 sps:$4 sm:$0xff]  }
 0x16e   : > { %2376 = vmatpush1.bf16.msra.mxu0 %v10572_v11  ;;  %2458 = vmatpush1.bf16.msra.mxu1 %v10573_v12  ;;  %v10588_v22 = vld [vmem:[#allocation8 + $0x18c] ss:$48 sps:$4 sm:$0xff]   ;;  %v10590_v23 = vld [vmem:[#allocation8 + $0x180] ss:$48 sps:$4 sm:$0xff]   ;;  %v10591_v24 = vld [vmem:[#allocation8 + $0x188] ss:$48 sps:$4 sm:$0xff]  }
 0x16f   : > { %2377 = vmatprep.subr.bf16.mxu0 %v10574_v13  ;;  %2459 = vmatprep.subr.bf16.mxu1 %v10576_v14  ;;  %v10592_v25 = vld [vmem:[#allocation8 + $0x1e4] ss:$48 sps:$4 sm:$0xff]   ;;  %v10594_v26 = vld [vmem:[#allocation8 + $0x1ec] ss:$48 sps:$4 sm:$0xff]   ;;  %v10596_v27 = vld [vmem:[#allocation8 + $0x1e0] ss:$48 sps:$4 sm:$0xff]  }
 0x170   : > { %v10597_v28 = vld [vmem:[#allocation8 + $0x1e8] ss:$48 sps:$4 sm:$0xff]   ;;  %v10598_v29 = vld [vmem:[#allocation8 + $0x244] ss:$48 sps:$4 sm:$0xff]   ;;  %v10600_v30 = vld [vmem:[#allocation8 + $0x24c] ss:$48 sps:$4 sm:$0xff]  }
 0x171   : > { %v10602_v31 = vld [vmem:[#allocation8 + $0x240] ss:$48 sps:$4 sm:$0xff]   ;;  %v10603_v32 = vld [vmem:[#allocation8 + $0x248] ss:$48 sps:$4 sm:$0xff]   ;;  %v10604_v33 = vld [vmem:[#allocation8 + $0x2a4] ss:$48 sps:$4 sm:$0xff]  }
 0x172   : > { %2378 = vmatpush1.bf16.msra.mxu0 %v10578_v15  ;;  %2460 = vmatpush1.bf16.msra.mxu1 %v10579_v16  ;;  %v10606_v34 = vld [vmem:[#allocation8 + $0x2ac] ss:$48 sps:$4 sm:$0xff]   ;;  %v10608_v35 = vld [vmem:[#allocation8 + $0x2a0] ss:$48 sps:$4 sm:$0xff]   ;;  %v10609_v36 = vld [vmem:[#allocation8 + $0x2a8] ss:$48 sps:$4 sm:$0xff]  }
 0x173   : > { %2379 = vmatprep.subr.bf16.mxu0 %v10580_v17  ;;  %2461 = vmatprep.subr.bf16.mxu1 %v10582_v18  ;;  %v10610_v37 = vld [vmem:[#allocation8 + $0x304] ss:$48 sps:$4 sm:$0xff]   ;;  %v10612_v38 = vld [vmem:[#allocation8 + $0x30c] ss:$48 sps:$4 sm:$0xff]   ;;  %v10614_v39 = vld [vmem:[#allocation8 + $0x300] ss:$48 sps:$4 sm:$0xff]  }
 0x174   : > { %v10615_v40 = vld [vmem:[#allocation8 + $0x308] ss:$48 sps:$4 sm:$0xff]   ;;  %v10616_v41 = vld [vmem:[#allocation8 + $0x364] ss:$48 sps:$4 sm:$0xff]   ;;  %v10618_v42 = vld [vmem:[#allocation8 + $0x36c] ss:$48 sps:$4 sm:$0xff]  }
 0x175   : > { %v10620_v43 = vld [vmem:[#allocation8 + $0x360] ss:$48 sps:$4 sm:$0xff]   ;;  %v10621_v44 = vld [vmem:[#allocation8 + $0x368] ss:$48 sps:$4 sm:$0xff]   ;;  %v10622_v45 = vld [vmem:[#allocation8 + $0x3c4] ss:$48 sps:$4 sm:$0xff]  }
 0x176   : > { %2380 = vmatpush1.bf16.msra.mxu0 %v10584_v19  ;;  %2462 = vmatpush1.bf16.msra.mxu1 %v10585_v20  ;;  %v10624_v46 = vld [vmem:[#allocation8 + $0x3cc] ss:$48 sps:$4 sm:$0xff]   ;;  %v10626_v57 = vld [vmem:[#allocation8 + $0x3c0] ss:$48 sps:$4 sm:$0xff]   ;;  %v10627_v58 = vld [vmem:[#allocation8 + $0x3c8] ss:$48 sps:$4 sm:$0xff]   ;;  %v605_v19 = vlaneseq }
 0x177   : > { %2381 = vmatprep.subr.bf16.mxu0 %v10586_v21  ;;  %2463 = vmatprep.subr.bf16.mxu1 %v10588_v22  ;;  %v10628_v59 = vld [vmem:[#allocation8 + $0x424] ss:$48 sps:$4 sm:$0xff]   ;;  %v10630_v60 = vld [vmem:[#allocation8 + $0x42c] ss:$48 sps:$4 sm:$0xff]   ;;  %v10632_v61 = vld [vmem:[#allocation8 + $0x420] ss:$48 sps:$4 sm:$0xff]  }
 0x178   : > { %v10633_v62 = vld [vmem:[#allocation8 + $0x428] ss:$48 sps:$4 sm:$0xff]   ;;  %v10634_v63 = vld [vmem:[#allocation8 + $0x484] ss:$48 sps:$4 sm:$0xff]   ;;  %v10642_v4 = vld [vmem:[#allocation8 + $0x4ec] ss:$48 sps:$4 sm:$0xff]  }
 0x179   : > { %v10640_v3 = vld [vmem:[#allocation8 + $0x4e4] ss:$48 sps:$4 sm:$0xff]   ;;  %v10644_v5 = vld [vmem:[#allocation8 + $0x4e0] ss:$48 sps:$4 sm:$0xff]   ;;  %v10645_v6 = vld [vmem:[#allocation8 + $0x4e8] ss:$48 sps:$4 sm:$0xff]  }
 0x17a   : > { %2382 = vmatpush1.bf16.msra.mxu0 %v10590_v23  ;;  %2464 = vmatpush1.bf16.msra.mxu1 %v10591_v24  ;;  %v10646_v7 = vld [vmem:[#allocation8 + $0x544] ss:$48 sps:$4 sm:$0xff]   ;;  %v10648_v8 = vld [vmem:[#allocation8 + $0x54c] ss:$48 sps:$4 sm:$0xff]   ;;  %v10650_v9 = vld [vmem:[#allocation8 + $0x540] ss:$48 sps:$4 sm:$0xff]  }
 0x17b   : > { %2383 = vmatprep.subr.bf16.mxu0 %v10592_v25  ;;  %2465 = vmatprep.subr.bf16.mxu1 %v10594_v26  ;;  %v10651_v10 = vld [vmem:[#allocation8 + $0x548] ss:$48 sps:$4 sm:$0xff]   ;;  %v10652_v11 = vld [vmem:[#allocation8 + $0x5a4] ss:$48 sps:$4 sm:$0xff]   ;;  %v10654_v12 = vld [vmem:[#allocation8 + $0x5ac] ss:$48 sps:$4 sm:$0xff]  }
 0x17c   : > { %v10656_v13 = vld [vmem:[#allocation8 + $0x5a0] ss:$48 sps:$4 sm:$0xff]   ;;  %v10657_v14 = vld [vmem:[#allocation8 + $0x5a8] ss:$48 sps:$4 sm:$0xff]   ;;  %v10660_v15 = vld [vmem:[#allocation8 + $0x604] ss:$48 sps:$4 sm:$0xff]  }
 0x17d   : > { %v10663_v16 = vld [vmem:[#allocation8 + $0x60c] ss:$48 sps:$4 sm:$0xff]   ;;  %v12890_v21 = vshrl.u32 %v605_v19, 7  ;;  %v12898_v24 = vld [vmem:[#allocation5] sm:$0x7]  ;;  %s13203_s14 = scalar_lea.vmem [#allocation22], %s10396_s1 }
 0x17e   : > { %2384 = vmatpush1.bf16.msra.mxu0 %v10596_v27  ;;  %2466 = vmatpush1.bf16.msra.mxu1 %v10597_v28  ;;  %v12900_v25 = vld [vmem:[#allocation7] sm:$0x7]  ;;  %s10397_s30 = smul.u32 384, %s12497_s27  ;;  %s8925_s16 = sshll.u32 %s13203_s14, 4  ;;  %s13217_s16 = int_to_ptr.vmem [resolvable:$true] %s8925_s16 }
 0x17f   : > { %2385 = vmatprep.subr.bf16.mxu0 %v10598_v29  ;;  %2467 = vmatprep.subr.bf16.mxu1 %v10600_v30  ;;  %v12893_v22 = vsub.s32 1, %v12890_v21  ;;  %v12896_v23 = vsub.s32 0, %v12890_v21  ;;  %s13316_s2 = sld [smem:[#allocation36_spill]]  ;;  %s8911_s19 = scalar_lea.sflag [#allocation4], %s12826_s26 }
 0x180   : > { %s12299_s18 = scalar_lea.vmem %s13217_s16, 384  ;;  %p13317_p0 = scmp.ne.s32.totalorder %s13299_s17, 0 }
 0x181   : > { %v612_v26 = vrot.slane %v12898_v24, %v12893_v22  ;;  %v608_v27 = vrot.slane %v12898_v24, %v12896_v23  ;;  %v631_v30 = vrot.slane %v12900_v25, %v12893_v22  ;;  %p12300_p2 = scmp.ne.s32.totalorder %s13217_s16, %s12299_s18  ;;  %s12410_s27 = smov [#allocation22]  }
 0x182   : > { %2386 = vmatpush1.bf16.msra.mxu0 %v10602_v31  ;;  %2468 = vmatpush1.bf16.msra.mxu1 %v10603_v32  ;;  %v627_v32 = vrot.slane %v12900_v25, %v12896_v23  ;;  %s12303_s25 = sshll.u32 %s12410_s27, 4  ;;  %s12304_s25 = int_to_ptr.vmem [resolvable:$false] %s12303_s25 }
 0x183   : > { %2387 = vmatprep.subr.bf16.mxu0 %v10604_v33  ;;  %2469 = vmatprep.subr.bf16.mxu1 %v10606_v34  ;;  %p12301_p6 = pnand %p12300_p2, %p13317_p0  ;;  %s12305_s1 = scalar_lea.vmem %s12304_s25, 768 }
 0x184   : > { %p12306_p12 = scmp.lt.s32.totalorder %s13217_s16, %s12304_s25  ;;  %p12307_p8 = scmp.lt.s32.totalorder %s12305_s1, %s12299_s18 }
 0x185   : > { %s13215_s5 = scalar_lea.hbm %s13316_s2, %s10397_s30  ;;  %p12302_p11 = pneg %p12301_p6 }
 0x186   : > { %2388 = vmatpush1.bf16.msra.mxu0 %v10608_v35  ;;  %2470 = vmatpush1.bf16.msra.mxu1 %v10609_v36  ;;  %v10658_v36 = vld [vmem:[#allocation8 + $0x600] ss:$48 sps:$4 sm:$0xff]   ;;  %p12308_p5 = por %p12307_p8, %p12306_p12 }
 0x187   : > { %2389 = vmatprep.subr.bf16.mxu0 %v10610_v37  ;;  %2471 = vmatprep.subr.bf16.mxu1 %v10612_v38  ;;  %v10661_v37 = vld [vmem:[#allocation8 + $0x608] ss:$48 sps:$4 sm:$0xff]  }
 0x188   : > { %p12309_p9 = pnand %p12308_p5, %p12302_p11 }
 0x18a   : > { %2390 = vmatpush1.bf16.msra.mxu0 %v10614_v39  ;;  %2472 = vmatpush1.bf16.msra.mxu1 %v10615_v40  ;;  %v10666_v39 = vld [vmem:[#allocation8 + $0x664] ss:$48 sps:$4 sm:$0xff]   ;;  %v10669_v40 = vld [vmem:[#allocation8 + $0x66c] ss:$48 sps:$4 sm:$0xff]  }
 0x18b   : > { %2391 = vmatprep.subr.bf16.mxu0 %v10616_v41  ;;  %2473 = vmatprep.subr.bf16.mxu1 %v10618_v42 }
 0x18e   : > { %2392 = vmatpush1.bf16.msra.mxu0 %v10620_v43  ;;  %2474 = vmatpush1.bf16.msra.mxu1 %v10621_v44  ;;  %v10664_v43 = vld [vmem:[#allocation8 + $0x660] ss:$48 sps:$4 sm:$0xff]   ;;  %v10667_v44 = vld [vmem:[#allocation8 + $0x668] ss:$48 sps:$4 sm:$0xff]  }
 0x18f   : > { %2393 = vmatprep.subr.bf16.mxu0 %v10622_v45  ;;  %2475 = vmatprep.subr.bf16.mxu1 %v10624_v46  ;;  %v10672_v45 = vld [vmem:[#allocation8 + $0x6c4] ss:$48 sps:$4 sm:$0xff]   ;;  %v10675_v46 = vld [vmem:[#allocation8 + $0x6cc] ss:$48 sps:$4 sm:$0xff]  }
 0x192   : > { %2394 = vmatpush1.bf16.msra.mxu0 %v10626_v57  ;;  %2476 = vmatpush1.bf16.msra.mxu1 %v10627_v58  ;;  %v10682_v57 = vld [vmem:[#allocation8 + $0x780] ss:$48 sps:$4 sm:$0xff]   ;;  %v10685_v58 = vld [vmem:[#allocation8 + $0x788] ss:$48 sps:$4 sm:$0xff]  }
 0x193   : > { %2395 = vmatprep.subr.bf16.mxu0 %v10628_v59  ;;  %2477 = vmatprep.subr.bf16.mxu1 %v10630_v60  ;;  %v12927_v59 = vsub.s32 2, %v12890_v21  ;;  %v10690_v60 = vld [vmem:[#allocation8 + $0x7e4] ss:$48 sps:$4 sm:$0xff]  }
 0x196   : > { %2396 = vmatpush1.bf16.msra.mxu0 %v10632_v61  ;;  %2478 = vmatpush1.bf16.msra.mxu1 %v10633_v62  ;;  %v10693_v61 = vld [vmem:[#allocation8 + $0x7ec] ss:$48 sps:$4 sm:$0xff]   ;;  %v10688_v62 = vld [vmem:[#allocation8 + $0x7e0] ss:$48 sps:$4 sm:$0xff]  }
 0x197   : > { %2397 = vmatprep.subr.bf16.mxu0 %v10634_v63  ;;  %v10691_v63 = vld [vmem:[#allocation8 + $0x7e8] ss:$48 sps:$4 sm:$0xff]  }
 0x1f9   : > { %v585_v47 = vpop.xlane.xlu0 %584 }
 0x1fa   : > { %v587_v48 = vmul.f32 0.0026041667, %v585_v47  ;;  %v10670_v47 = vld [vmem:[#allocation8 + $0x6c0] ss:$48 sps:$4 sm:$0xff]  }
 0x1fc   : > { %v12875_v49 = vsub.f32 %v12863_v0, %v587_v48  ;;  %v12878_v50 = vsub.f32 %v12866_v1, %v587_v48  ;;  %v12881_v51 = vsub.f32 %v12869_v2, %v587_v48  ;;  %v10636_v0 = vld [vmem:[#allocation8 + $0x48c] ss:$48 sps:$4 sm:$0xff]   ;;  %v10638_v1 = vld [vmem:[#allocation8 + $0x480] ss:$48 sps:$4 sm:$0xff]   ;;  %v10639_v2 = vld [vmem:[#allocation8 + $0x488] ss:$48 sps:$4 sm:$0xff]  }
 0x1fd   : > { %2479 = vmatprep.subr.bf16.mxu1 %v10636_v0  ;;  %2398 = vmatpush1.bf16.msra.mxu0 %v10638_v1  ;;  %v12407_v48 = vmov 0   ;;  %v10696_v0 = vld [vmem:[#allocation8 + $0x844] ss:$48 sps:$4 sm:$0xff]   ;;  %v10699_v1 = vld [vmem:[#allocation8 + $0x84c] ss:$48 sps:$4 sm:$0xff]  }
 0x1fe   : > { %v591_v52 = vmul.f32 %v12875_v49, %v12875_v49  ;;  %v592_v53 = vmul.f32 %v12878_v50, %v12878_v50  ;;  %v593_v54 = vmul.f32 %v12881_v51, %v12881_v51  ;;  %2480 = vmatpush1.bf16.msra.mxu1 %v10639_v2  ;;  %2399 = vmatprep.subr.bf16.mxu0 %v10640_v3 }
 0x1ff   : > { %2481 = vmatprep.subr.bf16.mxu1 %v10642_v4  ;;  %v616_v3 = vrot.slane %v12898_v24, %v12927_v59  ;;  %v10694_v4 = vld [vmem:[#allocation8 + $0x840] ss:$48 sps:$4 sm:$0xff]   ;;  %v10715_v24 = vld [vmem:[#allocation8 + $0x78] ss:$48 sps:$4 sm:$0xff]  }
 0x200   : > { %v594_v55 = vadd.f32 %v592_v53, %v591_v52  ;;  %v10681_v52 = vld [vmem:[#allocation8 + $0x72c] ss:$48 sps:$4 sm:$0xff]   ;;  %v10676_v53 = vld [vmem:[#allocation8 + $0x720] ss:$48 sps:$4 sm:$0xff]  }
 0x201   : > { %2400 = vmatpush1.bf16.msra.mxu0 %v10644_v5  ;;  %v10697_v5 = vld [vmem:[#allocation8 + $0x848] ss:$48 sps:$4 sm:$0xff]  }
 0x202   : > { %v595_v56 = vadd.f32 %v594_v55, %v593_v54  ;;  %2482 = vmatpush1.bf16.msra.mxu1 %v10645_v6  ;;  %2401 = vmatprep.subr.bf16.mxu0 %v10646_v7  ;;  %v10679_v54 = vld [vmem:[#allocation8 + $0x728] ss:$48 sps:$4 sm:$0xff]   ;;  %v10684_v55 = vld [vmem:[#allocation8 + $0x784] ss:$48 sps:$4 sm:$0xff]   ;;  %v10705_v7 = vld [vmem:[#allocation8 + $0x8ac] ss:$48 sps:$4 sm:$0xff]  }
 0x203   : > { %2483 = vmatprep.subr.bf16.mxu1 %v10648_v8  ;;  %v10702_v6 = vld [vmem:[#allocation8 + $0x8a4] ss:$48 sps:$4 sm:$0xff]  }
 0x204   : > { %596 = vadd.xlane.f32.xlu0 %v595_v56  ;;  %v10687_v56 = vld [vmem:[#allocation8 + $0x78c] ss:$48 sps:$4 sm:$0xff]  }
 0x205   : > { %2402 = vmatpush1.bf16.msra.mxu0 %v10650_v9  ;;  %v635_v9 = vrot.slane %v12900_v25, %v12927_v59  ;;  %v10720_v25 = vld [vmem:[#allocation8 + $0xd4] ss:$48 sps:$4 sm:$0xff]  }
 0x206   : > { %2484 = vmatpush1.bf16.msra.mxu1 %v10651_v10  ;;  %2403 = vmatprep.subr.bf16.mxu0 %v10652_v11  ;;  %v10700_v10 = vld [vmem:[#allocation8 + $0x8a0] ss:$48 sps:$4 sm:$0xff]   ;;  %v10703_v11 = vld [vmem:[#allocation8 + $0x8a8] ss:$48 sps:$4 sm:$0xff]  }
 0x207   : > { %2485 = vmatprep.subr.bf16.mxu1 %v10654_v12  ;;  %v10708_v12 = vld [vmem:[#allocation8 + $0x14] ss:$48 sps:$4 sm:$0xff]  }
 0x209   : > { %2404 = vmatpush1.bf16.msra.mxu0 %v10656_v13  ;;  %v10711_v13 = vld [vmem:[#allocation8 + $0x1c] ss:$48 sps:$4 sm:$0xff]  }
 0x20a   : > { %2486 = vmatpush1.bf16.msra.mxu1 %v10657_v14  ;;  %2414 = vmatprep.subr.bf16.mxu0 %v10660_v15  ;;  %v10706_v14 = vld [vmem:[#allocation8 + $0x10] ss:$48 sps:$4 sm:$0xff]  }
 0x20b   : > { %2496 = vmatprep.subr.bf16.mxu1 %v10663_v16  ;;  %v10709_v16 = vld [vmem:[#allocation8 + $0x18] ss:$48 sps:$4 sm:$0xff]  }
 0x291   : > { %v597_v17 = vpop.xlane.xlu0 %596 }
 0x292   : > { %v598_v18 = vmul.f32 0.0026041667, %v597_v17  ;;  %v10714_v17 = vld [vmem:[#allocation8 + $0x74] ss:$48 sps:$4 sm:$0xff]  }
 0x294   : > { %v599_v20 = vadd.f32 1e-05, %v598_v18  ;;  %v10712_v18 = vld [vmem:[#allocation8 + $0x70] ss:$48 sps:$4 sm:$0xff]  }
 0x296   : > { %11938 = vrsqrt.f32 %v599_v20  ;;  %v10717_v20 = vld [vmem:[#allocation8 + $0x7c] ss:$48 sps:$4 sm:$0xff]  }
 0x2a0   : > { %v12906_v28 = vpop.eup %11938 }
 0x2a1   : > { %v602_v29 = vmul.f32 %v12906_v28, %v12878_v50  ;;  %v601_v31 = vmul.f32 %v12906_v28, %v12875_v49  ;;  %v10673_v49 = vld [vmem:[#allocation8 + $0x6c8] ss:$48 sps:$4 sm:$0xff]   ;;  %v10678_v50 = vld [vmem:[#allocation8 + $0x724] ss:$48 sps:$4 sm:$0xff]   ;;  %v603_v2 = vmul.f32 %v12906_v28, %v12881_v51 }
 0x2a2   : > { %v10721_v28 = vld [vmem:[#allocation8 + $0xd8] ss:$48 sps:$4 sm:$0xff]  }
 0x2a3   : > { %v621_v33 = vmul.f32 %v612_v26, %v602_v29  ;;  %v620_v34 = vmul.f32 %v608_v27, %v601_v31  ;;  %v622_v8 = vmul.f32 %v616_v3, %v603_v2  ;;  %v10718_v26 = vld [vmem:[#allocation8 + $0xd0] ss:$48 sps:$4 sm:$0xff]   ;;  %v10723_v27 = vld [vmem:[#allocation8 + $0xdc] ss:$48 sps:$4 sm:$0xff]   ;;  %v10726_v29 = vld [vmem:[#allocation8 + $0x134] ss:$48 sps:$4 sm:$0xff]  }
 0x2a4   : > { %v10729_v31 = vld [vmem:[#allocation8 + $0x13c] ss:$48 sps:$4 sm:$0xff]   ;;  %v10774_v2 = vld [vmem:[#allocation8 + $0x434] ss:$48 sps:$4 sm:$0xff]   ;;  %v10772_v3 = vld [vmem:[#allocation8 + $0x430] ss:$48 sps:$4 sm:$0xff]  }
 0x2a5   : > { %v640_v35 = vadd.f32 %v631_v30, %v621_v33  ;;  %v639_v38 = vadd.f32 %v627_v32, %v620_v34  ;;  %v641_v51 = vadd.f32 %v635_v9, %v622_v8  ;;  %v10724_v30 = vld [vmem:[#allocation8 + $0x130] ss:$48 sps:$4 sm:$0xff]   ;;  %v10727_v32 = vld [vmem:[#allocation8 + $0x138] ss:$48 sps:$4 sm:$0xff]   ;;  %v10732_v33 = vld [vmem:[#allocation8 + $0x194] ss:$48 sps:$4 sm:$0xff]  }
 0x2a6   : > { %v10730_v34 = vld [vmem:[#allocation8 + $0x190] ss:$48 sps:$4 sm:$0xff]   ;;  %v10783_v8 = vld [vmem:[#allocation8 + $0x49c] ss:$48 sps:$4 sm:$0xff]   ;;  %v10781_v9 = vld [vmem:[#allocation8 + $0x498] ss:$48 sps:$4 sm:$0xff]  }
 0x2a7   : > { %v12916_v41 = vpack.c.bf16 %v640_v35, %v640_v35  ;;  %v12918_v42 = vpack.c.bf16 %v639_v38, %v639_v38  ;;  %v12935_v15 = vpack.c.bf16 %v641_v51, %v641_v51  ;;  %v10735_v35 = vld [vmem:[#allocation8 + $0x19c] ss:$48 sps:$4 sm:$0xff]   ;;  %v10736_v38 = vld [vmem:[#allocation8 + $0x1f0] ss:$48 sps:$4 sm:$0xff]  }
 0x2a8   : > { %v10789_v51 = vld [vmem:[#allocation8 + $0x4fc] ss:$48 sps:$4 sm:$0xff]  }
 0x2a9   : > { %2405 = vmatprep.mubr.bf16.mxu0 %v12916_v41  ;;  %2487 = vmatprep.mubr.bf16.mxu1 %v12916_v41 }
 0x2aa   : > { %2406 = vmatmul.mubr.bf16.vlgmr.msra.gmra.mrb[0].mxu0 %v12918_v42  ;;  %2488 = vmatmul.mubr.bf16.vlgmr.msra.gmra.mrb[0].mxu1 %v12918_v42 }
 0x2ab   : > { %2415 = vmatpush1.bf16.msra.mxu0 %v10658_v36  ;;  %2497 = vmatpush1.bf16.msra.mxu1 %v10661_v37  ;;  %v10733_v36 = vld [vmem:[#allocation8 + $0x198] ss:$48 sps:$4 sm:$0xff]   ;;  %v10738_v37 = vld [vmem:[#allocation8 + $0x1f4] ss:$48 sps:$4 sm:$0xff]  }
 0x2ac   : > { %2416 = vmatprep.subr.bf16.mxu0 %v10666_v39  ;;  %2498 = vmatprep.subr.bf16.mxu1 %v10669_v40  ;;  %v10741_v39 = vld [vmem:[#allocation8 + $0x1fc] ss:$48 sps:$4 sm:$0xff]   ;;  %v10739_v40 = vld [vmem:[#allocation8 + $0x1f8] ss:$48 sps:$4 sm:$0xff]  }
 0x2ad   : > { %2446 = vmatprep.mubr.bf16.mxu0 %v12407_v48  ;;  %2528 = vmatprep.mubr.bf16.mxu1 %v12407_v48 }
 0x2af   : > { %2417 = vmatpush1.bf16.msra.mxu0 %v10664_v43  ;;  %2499 = vmatpush1.bf16.msra.mxu1 %v10667_v44  ;;  %v10744_v43 = vld [vmem:[#allocation8 + $0x254] ss:$48 sps:$4 sm:$0xff]   ;;  %v10742_v44 = vld [vmem:[#allocation8 + $0x250] ss:$48 sps:$4 sm:$0xff]  }
 0x2b0   : > { %2418 = vmatprep.subr.bf16.mxu0 %v10672_v45  ;;  %2500 = vmatprep.subr.bf16.mxu1 %v10675_v46  ;;  %v10747_v45 = vld [vmem:[#allocation8 + $0x25c] ss:$48 sps:$4 sm:$0xff]   ;;  %v10745_v46 = vld [vmem:[#allocation8 + $0x258] ss:$48 sps:$4 sm:$0xff]  }
 0x2b3   : > { %2419 = vmatpush1.bf16.msra.mxu0 %v10670_v47  ;;  %2501 = vmatpush1.bf16.msra.mxu1 %v10673_v49  ;;  %v10750_v47 = vld [vmem:[#allocation8 + $0x2b4] ss:$48 sps:$4 sm:$0xff]   ;;  %v10748_v49 = vld [vmem:[#allocation8 + $0x2b0] ss:$48 sps:$4 sm:$0xff]  }
 0x2b4   : > { %2420 = vmatprep.subr.bf16.mxu0 %v10678_v50  ;;  %2502 = vmatprep.subr.bf16.mxu1 %v10681_v52  ;;  %v10753_v50 = vld [vmem:[#allocation8 + $0x2bc] ss:$48 sps:$4 sm:$0xff]   ;;  %v10751_v52 = vld [vmem:[#allocation8 + $0x2b8] ss:$48 sps:$4 sm:$0xff]  }
 0x2b7   : > { %2421 = vmatpush1.bf16.msra.mxu0 %v10676_v53  ;;  %2503 = vmatpush1.bf16.msra.mxu1 %v10679_v54  ;;  %v10756_v53 = vld [vmem:[#allocation8 + $0x314] ss:$48 sps:$4 sm:$0xff]   ;;  %v10754_v54 = vld [vmem:[#allocation8 + $0x310] ss:$48 sps:$4 sm:$0xff]  }
 0x2b8   : > { %2422 = vmatprep.subr.bf16.mxu0 %v10684_v55  ;;  %2504 = vmatprep.subr.bf16.mxu1 %v10687_v56  ;;  %v10759_v55 = vld [vmem:[#allocation8 + $0x31c] ss:$48 sps:$4 sm:$0xff]   ;;  %v10757_v56 = vld [vmem:[#allocation8 + $0x318] ss:$48 sps:$4 sm:$0xff]  }
 0x2bb   : > { %2423 = vmatpush1.bf16.msra.mxu0 %v10682_v57  ;;  %2505 = vmatpush1.bf16.msra.mxu1 %v10685_v58  ;;  %v10762_v57 = vld [vmem:[#allocation8 + $0x374] ss:$48 sps:$4 sm:$0xff]   ;;  %v10765_v58 = vld [vmem:[#allocation8 + $0x37c] ss:$48 sps:$4 sm:$0xff]  }
 0x2bc   : > { %2424 = vmatprep.subr.bf16.mxu0 %v10690_v60  ;;  %2506 = vmatprep.subr.bf16.mxu1 %v10693_v61  ;;  %v10760_v60 = vld [vmem:[#allocation8 + $0x370] ss:$48 sps:$4 sm:$0xff]   ;;  %v10763_v61 = vld [vmem:[#allocation8 + $0x378] ss:$48 sps:$4 sm:$0xff]  }
 0x2bf   : > { %2425 = vmatpush1.bf16.msra.mxu0 %v10688_v62  ;;  %2507 = vmatpush1.bf16.msra.mxu1 %v10691_v63  ;;  %v10768_v62 = vld [vmem:[#allocation8 + $0x3d4] ss:$48 sps:$4 sm:$0xff]   ;;  %v10766_v63 = vld [vmem:[#allocation8 + $0x3d0] ss:$48 sps:$4 sm:$0xff]  }
 0x2c0   : > { %2426 = vmatprep.subr.bf16.mxu0 %v10696_v0  ;;  %2508 = vmatprep.subr.bf16.mxu1 %v10699_v1  ;;  %v10771_v0 = vld [vmem:[#allocation8 + $0x3dc] ss:$48 sps:$4 sm:$0xff]   ;;  %v10769_v1 = vld [vmem:[#allocation8 + $0x3d8] ss:$48 sps:$4 sm:$0xff]  }
 0x2c3   : > { %2427 = vmatpush1.bf16.msra.mxu0 %v10694_v4  ;;  %2509 = vmatpush1.bf16.msra.mxu1 %v10697_v5  ;;  %v10777_v4 = vld [vmem:[#allocation8 + $0x43c] ss:$48 sps:$4 sm:$0xff]   ;;  %v10775_v5 = vld [vmem:[#allocation8 + $0x438] ss:$48 sps:$4 sm:$0xff]  }
 0x2c4   : > { %2428 = vmatprep.subr.bf16.mxu0 %v10702_v6  ;;  %2510 = vmatprep.subr.bf16.mxu1 %v10705_v7  ;;  %v10780_v6 = vld [vmem:[#allocation8 + $0x494] ss:$48 sps:$4 sm:$0xff]   ;;  %v10778_v7 = vld [vmem:[#allocation8 + $0x490] ss:$48 sps:$4 sm:$0xff]  }
 0x2c7   : > { %2429 = vmatpush1.bf16.msra.mxu0 %v10700_v10  ;;  %2511 = vmatpush1.bf16.msra.mxu1 %v10703_v11  ;;  %v10786_v10 = vld [vmem:[#allocation8 + $0x4f4] ss:$48 sps:$4 sm:$0xff]   ;;  %v10784_v11 = vld [vmem:[#allocation8 + $0x4f0] ss:$48 sps:$4 sm:$0xff]  }
 0x2c8   : > { %2537 = vmatprep.subr.bf16.mxu0 %v10708_v12  ;;  %2619 = vmatprep.subr.bf16.mxu1 %v10711_v13  ;;  %v10787_v12 = vld [vmem:[#allocation8 + $0x4f8] ss:$48 sps:$4 sm:$0xff]   ;;  %v10792_v13 = vld [vmem:[#allocation8 + $0x554] ss:$48 sps:$4 sm:$0xff]  }
 0x2ca   : > { %2447 = vmatmul.mubr.bf16.vlgmr.msra.gmra.mrb[0].mxu0 %v12935_v15  ;;  %2529 = vmatmul.mubr.bf16.vlgmr.msra.gmra.mrb[0].mxu1 %v12935_v15 }
 0x2cb   : > { %2538 = vmatpush1.bf16.msra.mxu0 %v10706_v14  ;;  %2569 = vmatprep.mubr.bf16.mxu0 %v12916_v41  ;;  %v10790_v14 = vld [vmem:[#allocation8 + $0x550] ss:$48 sps:$4 sm:$0xff]  }
 0x2cc   : > { %2620 = vmatpush1.bf16.msra.mxu1 %v10709_v16  ;;  %2651 = vmatprep.mubr.bf16.mxu1 %v12916_v41  ;;  %v10795_v16 = vld [vmem:[#allocation8 + $0x55c] ss:$48 sps:$4 sm:$0xff]  }
 0x2cd   : > { %2539 = vmatprep.subr.bf16.mxu0 %v10714_v17  ;;  %2621 = vmatprep.subr.bf16.mxu1 %v10717_v20  ;;  %v10793_v17 = vld [vmem:[#allocation8 + $0x558] ss:$48 sps:$4 sm:$0xff]   ;;  %v10796_v20 = vld [vmem:[#allocation8 + $0x5b0] ss:$48 sps:$4 sm:$0xff]  }
 0x2cf   : > { %2540 = vmatpush1.bf16.msra.mxu0 %v10712_v18  ;;  %v10798_v18 = vld [vmem:[#allocation8 + $0x5b4] ss:$48 sps:$4 sm:$0xff]  }
 0x2d0   : > { %2622 = vmatpush1.bf16.msra.mxu1 %v10715_v24  ;;  %2541 = vmatprep.subr.bf16.mxu0 %v10720_v25  ;;  %v10801_v24 = vld [vmem:[#allocation8 + $0x5bc] ss:$48 sps:$4 sm:$0xff]   ;;  %v10799_v25 = vld [vmem:[#allocation8 + $0x5b8] ss:$48 sps:$4 sm:$0xff]  }
 0x2d1   : > { %2623 = vmatprep.subr.bf16.mxu1 %v10723_v27  ;;  %v10807_v27 = vld [vmem:[#allocation8 + $0x61c] ss:$48 sps:$4 sm:$0xff]  }
 0x2d3   : > { %2542 = vmatpush1.bf16.msra.mxu0 %v10718_v26  ;;  %v10804_v26 = vld [vmem:[#allocation8 + $0x614] ss:$48 sps:$4 sm:$0xff]  }
 0x2d4   : > { %2624 = vmatpush1.bf16.msra.mxu1 %v10721_v28  ;;  %2543 = vmatprep.subr.bf16.mxu0 %v10726_v29  ;;  %v10802_v28 = vld [vmem:[#allocation8 + $0x610] ss:$48 sps:$4 sm:$0xff]   ;;  %v10805_v29 = vld [vmem:[#allocation8 + $0x618] ss:$48 sps:$4 sm:$0xff]  }
 0x2d5   : > { %2625 = vmatprep.subr.bf16.mxu1 %v10729_v31  ;;  %v10813_v31 = vld [vmem:[#allocation8 + $0x67c] ss:$48 sps:$4 sm:$0xff]  }
 0x2d7   : > { %2544 = vmatpush1.bf16.msra.mxu0 %v10724_v30  ;;  %v10810_v30 = vld [vmem:[#allocation8 + $0x674] ss:$48 sps:$4 sm:$0xff]  }
 0x2d8   : > { %2626 = vmatpush1.bf16.msra.mxu1 %v10727_v32  ;;  %2545 = vmatprep.subr.bf16.mxu0 %v10732_v33  ;;  %v10808_v32 = vld [vmem:[#allocation8 + $0x670] ss:$48 sps:$4 sm:$0xff]   ;;  %v10811_v33 = vld [vmem:[#allocation8 + $0x678] ss:$48 sps:$4 sm:$0xff]  }
 0x2d9   : > { %2627 = vmatprep.subr.bf16.mxu1 %v10735_v35  ;;  %v10819_v35 = vld [vmem:[#allocation8 + $0x6dc] ss:$48 sps:$4 sm:$0xff]  }
 0x2db   : > { %2546 = vmatpush1.bf16.msra.mxu0 %v10730_v34  ;;  %v10816_v34 = vld [vmem:[#allocation8 + $0x6d4] ss:$48 sps:$4 sm:$0xff]  }
 0x2dc   : > { %2628 = vmatpush1.bf16.msra.mxu1 %v10733_v36  ;;  %2547 = vmatprep.subr.bf16.mxu0 %v10738_v37  ;;  %v10814_v36 = vld [vmem:[#allocation8 + $0x6d0] ss:$48 sps:$4 sm:$0xff]   ;;  %v10817_v37 = vld [vmem:[#allocation8 + $0x6d8] ss:$48 sps:$4 sm:$0xff]  }
 0x2dd   : > { %2629 = vmatprep.subr.bf16.mxu1 %v10741_v39  ;;  %v10825_v39 = vld [vmem:[#allocation8 + $0x73c] ss:$48 sps:$4 sm:$0xff]  }
 0x2df   : > { %2548 = vmatpush1.bf16.msra.mxu0 %v10736_v38  ;;  %v10822_v38 = vld [vmem:[#allocation8 + $0x734] ss:$48 sps:$4 sm:$0xff]  }
 0x2e0   : > { %2630 = vmatpush1.bf16.msra.mxu1 %v10739_v40  ;;  %2549 = vmatprep.subr.bf16.mxu0 %v10744_v43  ;;  %v10820_v40 = vld [vmem:[#allocation8 + $0x730] ss:$48 sps:$4 sm:$0xff]   ;;  %v10823_v43 = vld [vmem:[#allocation8 + $0x738] ss:$48 sps:$4 sm:$0xff]  }
 0x2e1   : > { %2631 = vmatprep.subr.bf16.mxu1 %v10747_v45  ;;  %v10831_v45 = vld [vmem:[#allocation8 + $0x79c] ss:$48 sps:$4 sm:$0xff]  }
 0x2e3   : > { %2550 = vmatpush1.bf16.msra.mxu0 %v10742_v44  ;;  %v10828_v44 = vld [vmem:[#allocation8 + $0x794] ss:$48 sps:$4 sm:$0xff]  }
 0x2e4   : > { %2632 = vmatpush1.bf16.msra.mxu1 %v10745_v46  ;;  %2551 = vmatprep.subr.bf16.mxu0 %v10750_v47  ;;  %v10826_v46 = vld [vmem:[#allocation8 + $0x790] ss:$48 sps:$4 sm:$0xff]   ;;  %v10829_v47 = vld [vmem:[#allocation8 + $0x798] ss:$48 sps:$4 sm:$0xff]  }
 0x2e5   : > { %2633 = vmatprep.subr.bf16.mxu1 %v10753_v50  ;;  %v10837_v50 = vld [vmem:[#allocation8 + $0x7fc] ss:$48 sps:$4 sm:$0xff]  }
 0x2e7   : > { %2552 = vmatpush1.bf16.msra.mxu0 %v10748_v49  ;;  %v10834_v49 = vld [vmem:[#allocation8 + $0x7f4] ss:$48 sps:$4 sm:$0xff]  }
 0x2e8   : > { %2634 = vmatpush1.bf16.msra.mxu1 %v10751_v52  ;;  %2553 = vmatprep.subr.bf16.mxu0 %v10756_v53  ;;  %v10832_v52 = vld [vmem:[#allocation8 + $0x7f0] ss:$48 sps:$4 sm:$0xff]   ;;  %v10835_v53 = vld [vmem:[#allocation8 + $0x7f8] ss:$48 sps:$4 sm:$0xff]  }
 0x2e9   : > { %2635 = vmatprep.subr.bf16.mxu1 %v10759_v55  ;;  %v10843_v55 = vld [vmem:[#allocation8 + $0x85c] ss:$48 sps:$4 sm:$0xff]  }
 0x2eb   : > { %2554 = vmatpush1.bf16.msra.mxu0 %v10754_v54  ;;  %v10840_v54 = vld [vmem:[#allocation8 + $0x854] ss:$48 sps:$4 sm:$0xff]  }
 0x2ec   : > { %2636 = vmatpush1.bf16.msra.mxu1 %v10757_v56  ;;  %2555 = vmatprep.subr.bf16.mxu0 %v10762_v57  ;;  %v10838_v56 = vld [vmem:[#allocation8 + $0x850] ss:$48 sps:$4 sm:$0xff]   ;;  %v10841_v57 = vld [vmem:[#allocation8 + $0x858] ss:$48 sps:$4 sm:$0xff]  }
 0x2ed   : > { %2637 = vmatprep.subr.bf16.mxu1 %v10765_v58  ;;  %v10846_v58 = vld [vmem:[#allocation8 + $0x8b4] ss:$48 sps:$4 sm:$0xff]  }
 0x2ef   : > { %2556 = vmatpush1.bf16.msra.mxu0 %v10760_v60  ;;  %v10849_v60 = vld [vmem:[#allocation8 + $0x8bc] ss:$48 sps:$4 sm:$0xff]  }
 0x2f0   : > { %2638 = vmatpush1.bf16.msra.mxu1 %v10763_v61  ;;  %2557 = vmatprep.subr.bf16.mxu0 %v10768_v62  ;;  %v10844_v61 = vld [vmem:[#allocation8 + $0x8b0] ss:$48 sps:$4 sm:$0xff]   ;;  %v10847_v62 = vld [vmem:[#allocation8 + $0x8b8] ss:$48 sps:$4 sm:$0xff]  }
 0x2f1   : > { %2639 = vmatprep.subr.bf16.mxu1 %v10771_v0  ;;  %v10855_v0 = vld [vmem:[#allocation8 + $0x2c] ss:$48 sps:$4 sm:$0xff]  }
 0x2f3   : > { %2558 = vmatpush1.bf16.msra.mxu0 %v10766_v63  ;;  %v10852_v63 = vld [vmem:[#allocation8 + $0x24] ss:$48 sps:$4 sm:$0xff]  }
 0x2f4   : > { %2640 = vmatpush1.bf16.msra.mxu1 %v10769_v1  ;;  %2559 = vmatprep.subr.bf16.mxu0 %v10774_v2  ;;  %v10850_v1 = vld [vmem:[#allocation8 + $0x20] ss:$48 sps:$4 sm:$0xff]   ;;  %v10853_v2 = vld [vmem:[#allocation8 + $0x28] ss:$48 sps:$4 sm:$0xff]  }
 0x2f5   : > { %2641 = vmatprep.subr.bf16.mxu1 %v10777_v4  ;;  %v10861_v4 = vld [vmem:[#allocation8 + $0x8c] ss:$48 sps:$4 sm:$0xff]  }
 0x2f7   : > { %2560 = vmatpush1.bf16.msra.mxu0 %v10772_v3  ;;  %v10858_v3 = vld [vmem:[#allocation8 + $0x84] ss:$48 sps:$4 sm:$0xff]  }
 0x2f8   : > { %2642 = vmatpush1.bf16.msra.mxu1 %v10775_v5  ;;  %2561 = vmatprep.subr.bf16.mxu0 %v10780_v6  ;;  %v10856_v5 = vld [vmem:[#allocation8 + $0x80] ss:$48 sps:$4 sm:$0xff]   ;;  %v10859_v6 = vld [vmem:[#allocation8 + $0x88] ss:$48 sps:$4 sm:$0xff]  }
 0x2f9   : > { %2643 = vmatprep.subr.bf16.mxu1 %v10783_v8  ;;  %v10867_v8 = vld [vmem:[#allocation8 + $0xec] ss:$48 sps:$4 sm:$0xff]  }
 0x2fb   : > { %2562 = vmatpush1.bf16.msra.mxu0 %v10778_v7  ;;  %v10864_v7 = vld [vmem:[#allocation8 + $0xe4] ss:$48 sps:$4 sm:$0xff]  }
 0x2fc   : > { %2644 = vmatpush1.bf16.msra.mxu1 %v10781_v9  ;;  %2563 = vmatprep.subr.bf16.mxu0 %v10786_v10  ;;  %v10862_v9 = vld [vmem:[#allocation8 + $0xe0] ss:$48 sps:$4 sm:$0xff]   ;;  %v10865_v10 = vld [vmem:[#allocation8 + $0xe8] ss:$48 sps:$4 sm:$0xff]  }
 0x2fd   : > { %2645 = vmatprep.subr.bf16.mxu1 %v10789_v51  ;;  %v10873_v51 = vld [vmem:[#allocation8 + $0x14c] ss:$48 sps:$4 sm:$0xff]  }
 0x2ff   : > { %2564 = vmatpush1.bf16.msra.mxu0 %v10784_v11  ;;  %v10870_v11 = vld [vmem:[#allocation8 + $0x144] ss:$48 sps:$4 sm:$0xff]  }
 0x300   : > { %2646 = vmatpush1.bf16.msra.mxu1 %v10787_v12  ;;  %2565 = vmatprep.subr.bf16.mxu0 %v10792_v13  ;;  %v10868_v12 = vld [vmem:[#allocation8 + $0x140] ss:$48 sps:$4 sm:$0xff]   ;;  %v10871_v13 = vld [vmem:[#allocation8 + $0x148] ss:$48 sps:$4 sm:$0xff]  }
 0x301   : > { %2647 = vmatprep.subr.bf16.mxu1 %v10795_v16  ;;  %v10879_v16 = vld [vmem:[#allocation8 + $0x1ac] ss:$48 sps:$4 sm:$0xff]  }
 0x303   : > { %2566 = vmatpush1.bf16.msra.mxu0 %v10790_v14  ;;  %v10876_v14 = vld [vmem:[#allocation8 + $0x1a4] ss:$48 sps:$4 sm:$0xff]  }
 0x304   : > { %2648 = vmatpush1.bf16.msra.mxu1 %v10793_v17  ;;  %2567 = vmatprep.subr.bf16.mxu0 %v10798_v18  ;;  %v10877_v17 = vld [vmem:[#allocation8 + $0x1a8] ss:$48 sps:$4 sm:$0xff]   ;;  %v10882_v18 = vld [vmem:[#allocation8 + $0x204] ss:$48 sps:$4 sm:$0xff]  }
 0x305   : > { %2649 = vmatprep.subr.bf16.mxu1 %v10801_v24  ;;  %v10880_v24 = vld [vmem:[#allocation8 + $0x200] ss:$48 sps:$4 sm:$0xff]  }
 0x307   : > { %2568 = vmatpush1.bf16.msra.mxu0 %v10796_v20  ;;  %v10885_v20 = vld [vmem:[#allocation8 + $0x20c] ss:$48 sps:$4 sm:$0xff]  }
 0x308   : > { %2650 = vmatpush1.bf16.msra.mxu1 %v10799_v25  ;;  %2578 = vmatprep.subr.bf16.mxu0 %v10804_v26  ;;  %v10883_v25 = vld [vmem:[#allocation8 + $0x208] ss:$48 sps:$4 sm:$0xff]   ;;  %v10888_v26 = vld [vmem:[#allocation8 + $0x264] ss:$48 sps:$4 sm:$0xff]  }
 0x309   : > { %2660 = vmatprep.subr.bf16.mxu1 %v10807_v27  ;;  %v10891_v27 = vld [vmem:[#allocation8 + $0x26c] ss:$48 sps:$4 sm:$0xff]  }
 0x30a   : > { %2570 = vmatmul.mubr.bf16.vlgmr.msra.gmra.mrb[4].mxu0 %v12918_v42 }
 0x30b   : > { %2652 = vmatmul.mubr.bf16.vlgmr.msra.gmra.mrb[4].mxu1 %v12918_v42  ;;  %2579 = vmatpush1.bf16.msra.mxu0 %v10802_v28  ;;  %v10886_v28 = vld [vmem:[#allocation8 + $0x260] ss:$48 sps:$4 sm:$0xff]  }
 0x30c   : > { %2661 = vmatpush1.bf16.msra.mxu1 %v10805_v29  ;;  %2580 = vmatprep.subr.bf16.mxu0 %v10810_v30  ;;  %v10889_v29 = vld [vmem:[#allocation8 + $0x268] ss:$48 sps:$4 sm:$0xff]   ;;  %v10894_v30 = vld [vmem:[#allocation8 + $0x2c4] ss:$48 sps:$4 sm:$0xff]  }
 0x30d   : > { %2662 = vmatprep.subr.bf16.mxu1 %v10813_v31  ;;  %2610 = vmatprep.mubr.bf16.mxu0 %v12407_v48  ;;  %v10897_v31 = vld [vmem:[#allocation8 + $0x2cc] ss:$48 sps:$4 sm:$0xff]  }
 0x30e   : > { %2692 = vmatprep.mubr.bf16.mxu1 %v12407_v48 }
 0x30f   : > { %2581 = vmatpush1.bf16.msra.mxu0 %v10808_v32  ;;  %v10892_v32 = vld [vmem:[#allocation8 + $0x2c0] ss:$48 sps:$4 sm:$0xff]  }
 0x310   : > { %2663 = vmatpush1.bf16.msra.mxu1 %v10811_v33  ;;  %2582 = vmatprep.subr.bf16.mxu0 %v10816_v34  ;;  %v10895_v33 = vld [vmem:[#allocation8 + $0x2c8] ss:$48 sps:$4 sm:$0xff]   ;;  %v10900_v34 = vld [vmem:[#allocation8 + $0x324] ss:$48 sps:$4 sm:$0xff]  }
 0x311   : > { %2664 = vmatprep.subr.bf16.mxu1 %v10819_v35  ;;  %v10903_v35 = vld [vmem:[#allocation8 + $0x32c] ss:$48 sps:$4 sm:$0xff]  }
 0x313   : > { %2583 = vmatpush1.bf16.msra.mxu0 %v10814_v36  ;;  %v10898_v36 = vld [vmem:[#allocation8 + $0x320] ss:$48 sps:$4 sm:$0xff]  }
 0x314   : > { %2665 = vmatpush1.bf16.msra.mxu1 %v10817_v37  ;;  %2584 = vmatprep.subr.bf16.mxu0 %v10822_v38  ;;  %v10901_v37 = vld [vmem:[#allocation8 + $0x328] ss:$48 sps:$4 sm:$0xff]   ;;  %v10906_v38 = vld [vmem:[#allocation8 + $0x384] ss:$48 sps:$4 sm:$0xff]  }
 0x315   : > { %2666 = vmatprep.subr.bf16.mxu1 %v10825_v39  ;;  %v10909_v39 = vld [vmem:[#allocation8 + $0x38c] ss:$48 sps:$4 sm:$0xff]  }
 0x317   : > { %2585 = vmatpush1.bf16.msra.mxu0 %v10820_v40  ;;  %v10904_v40 = vld [vmem:[#allocation8 + $0x380] ss:$48 sps:$4 sm:$0xff]  }
 0x318   : > { %2667 = vmatpush1.bf16.msra.mxu1 %v10823_v43  ;;  %2586 = vmatprep.subr.bf16.mxu0 %v10828_v44  ;;  %v10907_v43 = vld [vmem:[#allocation8 + $0x388] ss:$48 sps:$4 sm:$0xff]   ;;  %v10912_v44 = vld [vmem:[#allocation8 + $0x3e4] ss:$48 sps:$4 sm:$0xff]  }
 0x319   : > { %2668 = vmatprep.subr.bf16.mxu1 %v10831_v45  ;;  %v10915_v45 = vld [vmem:[#allocation8 + $0x3ec] ss:$48 sps:$4 sm:$0xff]  }
 0x31b   : > { %2587 = vmatpush1.bf16.msra.mxu0 %v10826_v46  ;;  %v10910_v46 = vld [vmem:[#allocation8 + $0x3e0] ss:$48 sps:$4 sm:$0xff]  }
 0x31c   : > { %2669 = vmatpush1.bf16.msra.mxu1 %v10829_v47  ;;  %2588 = vmatprep.subr.bf16.mxu0 %v10834_v49  ;;  %v10913_v47 = vld [vmem:[#allocation8 + $0x3e8] ss:$48 sps:$4 sm:$0xff]   ;;  %v10918_v49 = vld [vmem:[#allocation8 + $0x444] ss:$48 sps:$4 sm:$0xff]  }
 0x31d   : > { %2670 = vmatprep.subr.bf16.mxu1 %v10837_v50  ;;  %v10921_v50 = vld [vmem:[#allocation8 + $0x44c] ss:$48 sps:$4 sm:$0xff]  }
 0x31f   : > { %2589 = vmatpush1.bf16.msra.mxu0 %v10832_v52  ;;  %v10916_v52 = vld [vmem:[#allocation8 + $0x440] ss:$48 sps:$4 sm:$0xff]  }
 0x320   : > { %2671 = vmatpush1.bf16.msra.mxu1 %v10835_v53  ;;  %2590 = vmatprep.subr.bf16.mxu0 %v10840_v54  ;;  %v10919_v53 = vld [vmem:[#allocation8 + $0x448] ss:$48 sps:$4 sm:$0xff]   ;;  %v10924_v54 = vld [vmem:[#allocation8 + $0x4a4] ss:$48 sps:$4 sm:$0xff]  }
 0x321   : > { %2672 = vmatprep.subr.bf16.mxu1 %v10843_v55  ;;  %v10927_v55 = vld [vmem:[#allocation8 + $0x4ac] ss:$48 sps:$4 sm:$0xff]  }
 0x323   : > { %2591 = vmatpush1.bf16.msra.mxu0 %v10838_v56  ;;  %v10922_v56 = vld [vmem:[#allocation8 + $0x4a0] ss:$48 sps:$4 sm:$0xff]  }
 0x324   : > { %2673 = vmatpush1.bf16.msra.mxu1 %v10841_v57  ;;  %2592 = vmatprep.subr.bf16.mxu0 %v10846_v58  ;;  %v10925_v57 = vld [vmem:[#allocation8 + $0x4a8] ss:$48 sps:$4 sm:$0xff]   ;;  %v10930_v58 = vld [vmem:[#allocation8 + $0x504] ss:$48 sps:$4 sm:$0xff]  }
 0x325   : > { %2674 = vmatprep.subr.bf16.mxu1 %v10849_v60  ;;  %v10933_v60 = vld [vmem:[#allocation8 + $0x50c] ss:$48 sps:$4 sm:$0xff]  }
 0x327   : > { %2593 = vmatpush1.bf16.msra.mxu0 %v10844_v61  ;;  %v10928_v61 = vld [vmem:[#allocation8 + $0x500] ss:$48 sps:$4 sm:$0xff]  }
 0x328   : > { %2675 = vmatpush1.bf16.msra.mxu1 %v10847_v62  ;;  %2701 = vmatprep.subr.bf16.mxu0 %v10852_v63  ;;  %v10931_v62 = vld [vmem:[#allocation8 + $0x508] ss:$48 sps:$4 sm:$0xff]   ;;  %v10936_v63 = vld [vmem:[#allocation8 + $0x564] ss:$48 sps:$4 sm:$0xff]  }
 0x329   : > { %2783 = vmatprep.subr.bf16.mxu1 %v10855_v0  ;;  %v10939_v0 = vld [vmem:[#allocation8 + $0x56c] ss:$48 sps:$4 sm:$0xff]  }
 0x32a   : > { %2611 = vmatmul.mubr.bf16.vlgmr.msra.gmra.mrb[4].mxu0 %v12935_v15 }
 0x32b   : > { %2693 = vmatmul.mubr.bf16.vlgmr.msra.gmra.mrb[4].mxu1 %v12935_v15  ;;  %2702 = vmatpush1.bf16.msra.mxu0 %v10850_v1  ;;  %v10934_v1 = vld [vmem:[#allocation8 + $0x560] ss:$48 sps:$4 sm:$0xff]  }
 0x32c   : > { %2733 = vmatprep.mubr.bf16.mxu0 %v12916_v41  ;;  %2784 = vmatpush1.bf16.msra.mxu1 %v10853_v2  ;;  %v10937_v2 = vld [vmem:[#allocation8 + $0x568] ss:$48 sps:$4 sm:$0xff]  }
 0x32d   : > { %2815 = vmatprep.mubr.bf16.mxu1 %v12916_v41  ;;  %2703 = vmatprep.subr.bf16.mxu0 %v10858_v3  ;;  %v10874_v41 = vld [vmem:[#allocation8 + $0x1a0] ss:$48 sps:$4 sm:$0xff]   ;;  %v10942_v3 = vld [vmem:[#allocation8 + $0x5c4] ss:$48 sps:$4 sm:$0xff]  }
 0x32e   : > { %2785 = vmatprep.subr.bf16.mxu1 %v10861_v4  ;;  %v10945_v4 = vld [vmem:[#allocation8 + $0x5cc] ss:$48 sps:$4 sm:$0xff]  }
 0x32f   : > { %2704 = vmatpush1.bf16.msra.mxu0 %v10856_v5  ;;  %v10940_v5 = vld [vmem:[#allocation8 + $0x5c0] ss:$48 sps:$4 sm:$0xff]  }
 0x330   : > { %2786 = vmatpush1.bf16.msra.mxu1 %v10859_v6  ;;  %2705 = vmatprep.subr.bf16.mxu0 %v10864_v7  ;;  %v10943_v6 = vld [vmem:[#allocation8 + $0x5c8] ss:$48 sps:$4 sm:$0xff]   ;;  %v10948_v7 = vld [vmem:[#allocation8 + $0x624] ss:$48 sps:$4 sm:$0xff]  }
 0x331   : > { %2787 = vmatprep.subr.bf16.mxu1 %v10867_v8  ;;  %v10951_v8 = vld [vmem:[#allocation8 + $0x62c] ss:$48 sps:$4 sm:$0xff]  }
 0x333   : > { %2706 = vmatpush1.bf16.msra.mxu0 %v10862_v9  ;;  %v10946_v9 = vld [vmem:[#allocation8 + $0x620] ss:$48 sps:$4 sm:$0xff]  }
 0x334   : > { %2788 = vmatpush1.bf16.msra.mxu1 %v10865_v10  ;;  %2707 = vmatprep.subr.bf16.mxu0 %v10870_v11  ;;  %v10949_v10 = vld [vmem:[#allocation8 + $0x628] ss:$48 sps:$4 sm:$0xff]   ;;  %v10954_v11 = vld [vmem:[#allocation8 + $0x684] ss:$48 sps:$4 sm:$0xff]  }
 0x335   : > { %2789 = vmatprep.subr.bf16.mxu1 %v10873_v51  ;;  %v10957_v51 = vld [vmem:[#allocation8 + $0x68c] ss:$48 sps:$4 sm:$0xff]  }
 0x337   : > { %2708 = vmatpush1.bf16.msra.mxu0 %v10868_v12  ;;  %v10952_v12 = vld [vmem:[#allocation8 + $0x680] ss:$48 sps:$4 sm:$0xff]  }
 0x338   : > { %2790 = vmatpush1.bf16.msra.mxu1 %v10871_v13  ;;  %2709 = vmatprep.subr.bf16.mxu0 %v10876_v14  ;;  %v10955_v13 = vld [vmem:[#allocation8 + $0x688] ss:$48 sps:$4 sm:$0xff]   ;;  %v10960_v14 = vld [vmem:[#allocation8 + $0x6e4] ss:$48 sps:$4 sm:$0xff]  }
 0x339   : > { %2791 = vmatprep.subr.bf16.mxu1 %v10879_v16  ;;  %v10963_v16 = vld [vmem:[#allocation8 + $0x6ec] ss:$48 sps:$4 sm:$0xff]  }
 0x33b   : > { %2710 = vmatpush1.bf16.msra.mxu0 %v10874_v41  ;;  %v10958_v41 = vld [vmem:[#allocation8 + $0x6e0] ss:$48 sps:$4 sm:$0xff]  }
 0x33c   : > { %2792 = vmatpush1.bf16.msra.mxu1 %v10877_v17  ;;  %2711 = vmatprep.subr.bf16.mxu0 %v10882_v18  ;;  %v10961_v17 = vld [vmem:[#allocation8 + $0x6e8] ss:$48 sps:$4 sm:$0xff]   ;;  %v10966_v18 = vld [vmem:[#allocation8 + $0x744] ss:$48 sps:$4 sm:$0xff]  }
 0x33d   : > { %2793 = vmatprep.subr.bf16.mxu1 %v10885_v20  ;;  %v10964_v20 = vld [vmem:[#allocation8 + $0x740] ss:$48 sps:$4 sm:$0xff]  }
 0x33f   : > { %2712 = vmatpush1.bf16.msra.mxu0 %v10880_v24  ;;  %v10967_v24 = vld [vmem:[#allocation8 + $0x748] ss:$48 sps:$4 sm:$0xff]  }
 0x340   : > { %2794 = vmatpush1.bf16.msra.mxu1 %v10883_v25  ;;  %2713 = vmatprep.subr.bf16.mxu0 %v10888_v26  ;;  %v10972_v25 = vld [vmem:[#allocation8 + $0x7a4] ss:$48 sps:$4 sm:$0xff]   ;;  %v10975_v26 = vld [vmem:[#allocation8 + $0x7ac] ss:$48 sps:$4 sm:$0xff]  }
 0x341   : > { %2795 = vmatprep.subr.bf16.mxu1 %v10891_v27  ;;  %v10970_v27 = vld [vmem:[#allocation8 + $0x7a0] ss:$48 sps:$4 sm:$0xff]  }
 0x343   : > { %2714 = vmatpush1.bf16.msra.mxu0 %v10886_v28  ;;  %v10973_v28 = vld [vmem:[#allocation8 + $0x7a8] ss:$48 sps:$4 sm:$0xff]  }
 0x344   : > { %2796 = vmatpush1.bf16.msra.mxu1 %v10889_v29  ;;  %2715 = vmatprep.subr.bf16.mxu0 %v10894_v30  ;;  %v10978_v29 = vld [vmem:[#allocation8 + $0x804] ss:$48 sps:$4 sm:$0xff]   ;;  %v10981_v30 = vld [vmem:[#allocation8 + $0x80c] ss:$48 sps:$4 sm:$0xff]  }
 0x345   : > { %2797 = vmatprep.subr.bf16.mxu1 %v10897_v31  ;;  %v10976_v31 = vld [vmem:[#allocation8 + $0x800] ss:$48 sps:$4 sm:$0xff]  }
 0x347   : > { %2716 = vmatpush1.bf16.msra.mxu0 %v10892_v32  ;;  %v10979_v32 = vld [vmem:[#allocation8 + $0x808] ss:$48 sps:$4 sm:$0xff]  }
 0x348   : > { %2798 = vmatpush1.bf16.msra.mxu1 %v10895_v33  ;;  %2717 = vmatprep.subr.bf16.mxu0 %v10900_v34  ;;  %v10984_v33 = vld [vmem:[#allocation8 + $0x864] ss:$48 sps:$4 sm:$0xff]   ;;  %v10987_v34 = vld [vmem:[#allocation8 + $0x86c] ss:$48 sps:$4 sm:$0xff]  }
 0x349   : > { %2799 = vmatprep.subr.bf16.mxu1 %v10903_v35  ;;  %v10982_v35 = vld [vmem:[#allocation8 + $0x860] ss:$48 sps:$4 sm:$0xff]  }
 0x34b   : > { %2718 = vmatpush1.bf16.msra.mxu0 %v10898_v36  ;;  %v10985_v36 = vld [vmem:[#allocation8 + $0x868] ss:$48 sps:$4 sm:$0xff]  }
 0x34c   : > { %2800 = vmatpush1.bf16.msra.mxu1 %v10901_v37  ;;  %2719 = vmatprep.subr.bf16.mxu0 %v10906_v38  ;;  %v10990_v37 = vld [vmem:[#allocation8 + $0x8c4] ss:$48 sps:$4 sm:$0xff]   ;;  %v10993_v38 = vld [vmem:[#allocation8 + $0x8cc] ss:$48 sps:$4 sm:$0xff]  }
 0x34d   : > { %2801 = vmatprep.subr.bf16.mxu1 %v10909_v39  ;;  %v10988_v39 = vld [vmem:[#allocation8 + $0x8c0] ss:$48 sps:$4 sm:$0xff]  }
 0x34f   : > { %2720 = vmatpush1.bf16.msra.mxu0 %v10904_v40  ;;  %v10991_v40 = vld [vmem:[#allocation8 + $0x8c8] ss:$48 sps:$4 sm:$0xff]  }
 0x350   : > { %2802 = vmatpush1.bf16.msra.mxu1 %v10907_v43  ;;  %2721 = vmatprep.subr.bf16.mxu0 %v10912_v44  ;;  %v12408_v43 = vmov 0.0  }
 0x351   : > { %2803 = vmatprep.subr.bf16.mxu1 %v10915_v45 }
 0x353   : > { %2722 = vmatpush1.bf16.msra.mxu0 %v10910_v46 }
 0x354   : > { %2804 = vmatpush1.bf16.msra.mxu1 %v10913_v47  ;;  %2723 = vmatprep.subr.bf16.mxu0 %v10918_v49 }
 0x355   : > { %2805 = vmatprep.subr.bf16.mxu1 %v10921_v50 }
 0x357   : > { %2724 = vmatpush1.bf16.msra.mxu0 %v10916_v52 }
 0x358   : > { %2806 = vmatpush1.bf16.msra.mxu1 %v10919_v53  ;;  %2725 = vmatprep.subr.bf16.mxu0 %v10924_v54 }
 0x359   : > { %2807 = vmatprep.subr.bf16.mxu1 %v10927_v55 }
 0x35b   : > { %2726 = vmatpush1.bf16.msra.mxu0 %v10922_v56 }
 0x35c   : > { %2808 = vmatpush1.bf16.msra.mxu1 %v10925_v57  ;;  %2727 = vmatprep.subr.bf16.mxu0 %v10930_v58 }
 0x35d   : > { %2809 = vmatprep.subr.bf16.mxu1 %v10933_v60 }
 0x35f   : > { %2728 = vmatpush1.bf16.msra.mxu0 %v10928_v61 }
 0x360   : > { %2810 = vmatpush1.bf16.msra.mxu1 %v10931_v62  ;;  %2729 = vmatprep.subr.bf16.mxu0 %v10936_v63 }
 0x361   : > { %2811 = vmatprep.subr.bf16.mxu1 %v10939_v0 }
 0x363   : > { %2730 = vmatpush1.bf16.msra.mxu0 %v10934_v1 }
 0x364   : > { %2812 = vmatpush1.bf16.msra.mxu1 %v10937_v2  ;;  %2731 = vmatprep.subr.bf16.mxu0 %v10942_v3 }
 0x365   : > { %2813 = vmatprep.subr.bf16.mxu1 %v10945_v4 }
 0x367   : > { %2732 = vmatpush1.bf16.msra.mxu0 %v10940_v5 }
 0x368   : > { %2814 = vmatpush1.bf16.msra.mxu1 %v10943_v6  ;;  %2742 = vmatprep.subr.bf16.mxu0 %v10948_v7 }
 0x369   : > { %2824 = vmatprep.subr.bf16.mxu1 %v10951_v8 }
 0x36a   : > { %2734 = vmatmul.mubr.bf16.vlgmr.msra.gmra.mrb[8].mxu0 %v12918_v42 }
 0x36b   : > { %2816 = vmatmul.mubr.bf16.vlgmr.msra.gmra.mrb[8].mxu1 %v12918_v42  ;;  %2743 = vmatpush1.bf16.msra.mxu0 %v10946_v9  ;;  %v10969_v42 = vld [vmem:[#allocation8 + $0x74c] ss:$48 sps:$4 sm:$0xff]  }
 0x36c   : > { %2825 = vmatpush1.bf16.msra.mxu1 %v10949_v10  ;;  %2744 = vmatprep.subr.bf16.mxu0 %v10954_v11 }
 0x36d   : > { %2826 = vmatprep.subr.bf16.mxu1 %v10957_v51  ;;  %2774 = vmatprep.mubr.bf16.mxu0 %v12407_v48 }
 0x36e   : > { %2856 = vmatprep.mubr.bf16.mxu1 %v12407_v48 }
 0x36f   : > { %2745 = vmatpush1.bf16.msra.mxu0 %v10952_v12 }
 0x370   : > { %2827 = vmatpush1.bf16.msra.mxu1 %v10955_v13  ;;  %2746 = vmatprep.subr.bf16.mxu0 %v10960_v14 }
 0x371   : > { %2828 = vmatprep.subr.bf16.mxu1 %v10963_v16 }
 0x373   : > { %2747 = vmatpush1.bf16.msra.mxu0 %v10958_v41 }
 0x374   : > { %2829 = vmatpush1.bf16.msra.mxu1 %v10961_v17  ;;  %2748 = vmatprep.subr.bf16.mxu0 %v10966_v18 }
 0x375   : > { %2830 = vmatprep.subr.bf16.mxu1 %v10969_v42 }
 0x377   : > { %2749 = vmatpush1.bf16.msra.mxu0 %v10964_v20 }
 0x378   : > { %2831 = vmatpush1.bf16.msra.mxu1 %v10967_v24  ;;  %2750 = vmatprep.subr.bf16.mxu0 %v10972_v25  ;;  %v2880_v24 = vand.u32 127, %v605_v19 }
 0x379   : > { %2832 = vmatprep.subr.bf16.mxu1 %v10975_v26 }
 0x37a   : > { %vm2881_vm2 = vcmp.ge.s32.totalorder %v12890_v21, %v2880_v24  ;;  %v11014_v24 = vld [vmem:[#allocation10 + $0x7c] ss:$12 sps:$4 sm:$0xff]  }
 0x37b   : > { %2751 = vmatpush1.bf16.msra.mxu0 %v10970_v27 }
 0x37c   : > { %2833 = vmatpush1.bf16.msra.mxu1 %v10973_v28  ;;  %2752 = vmatprep.subr.bf16.mxu0 %v10978_v29 }
 0x37d   : > { %2834 = vmatprep.subr.bf16.mxu1 %v10981_v30 }
 0x37f   : > { %2753 = vmatpush1.bf16.msra.mxu0 %v10976_v31 }
 0x380   : > { %2835 = vmatpush1.bf16.msra.mxu1 %v10979_v32  ;;  %2754 = vmatprep.subr.bf16.mxu0 %v10984_v33 }
 0x381   : > { %2836 = vmatprep.subr.bf16.mxu1 %v10987_v34 }
 0x383   : > { %2755 = vmatpush1.bf16.msra.mxu0 %v10982_v35 }
 0x384   : > { %2837 = vmatpush1.bf16.msra.mxu1 %v10985_v36  ;;  %2756 = vmatprep.subr.bf16.mxu0 %v10990_v37 }
 0x385   : > { %2838 = vmatprep.subr.bf16.mxu1 %v10993_v38 }
 0x387   : > { %2757 = vmatpush1.bf16.msra.mxu0 %v10988_v39 }
 0x388   : > { %2839 = vmatpush1.bf16.msra.mxu1 %v10991_v40  ;;  %10286 = vmatprep.subr.bf16.mxu0 %v12408_v43 }
 0x389   : > { %10292 = vmatprep.subr.bf16.mxu1 %v12408_v43 }
 0x38a   : > { %2775 = vmatmul.mubr.bf16.vlgmr.msra.gmra.mrb[8].mxu0 %v12935_v15 }
 0x38b   : > { %2857 = vmatmul.mubr.bf16.vlgmr.msra.gmra.mrb[8].mxu1 %v12935_v15  ;;  %10288 = vmatprep.mubr.msk.bf16.mxu0 %vm12409_vm0, %v12408_v43 }
 0x38c   : > { %10294 = vmatprep.mubr.msk.bf16.mxu1 %vm12409_vm0, %v12408_v43 }
 0x39d   : > { %v2448_v44 = vpop.f32.mrb[0].mxu0  ;;  %v2530_v45 = vpop.f32.mrb[0].mxu1 }
 0x39e   : > { %v2450_v46 = vpop.f32.mrb[1].mxu0  ;;  %v2532_v47 = vpop.f32.mrb[1].mxu1  ;;  %v2865_v63 = vpack.c.bf16 %v2448_v44, %v2448_v44  ;;  %v2867_v3 = vpack.c.bf16 %v2530_v45, %v2530_v45 }
 0x39f   : > { %v2452_v49 = vpop.f32.mrb[2].mxu0  ;;  %v2534_v50 = vpop.f32.mrb[2].mxu1  ;;  %v2866_v1 = vpack.c.bf16 %v2450_v46, %v2450_v46  ;;  %v2868_v5 = vpack.c.bf16 %v2532_v47, %v2532_v47 }
 0x3a0   : > { %v2453_v52 = vpop.f32.mrb[3].mxu0  ;;  %v2535_v53 = vpop.f32.mrb[3].mxu1 }
 0x3fd   : > { %v2612_v54 = vpop.f32.mrb[4].mxu0 }
 0x3fe   : > { %v2869_v55 = vpack.c.bf16 %v2612_v54, %v2612_v54  ;;  %v2694_v56 = vpop.f32.mrb[4].mxu1  ;;  %v2614_v57 = vpop.f32.mrb[5].mxu0 }
 0x3ff   : > { %v2696_v15 = vpop.f32.mrb[5].mxu1  ;;  %v2616_v58 = vpop.f32.mrb[6].mxu0  ;;  %v2870_v0 = vpack.c.bf16 %v2614_v57, %v2614_v57  ;;  %v2871_v2 = vpack.c.bf16 %v2694_v56, %v2694_v56 }
 0x400   : > { %v2698_v60 = vpop.f32.mrb[6].mxu1  ;;  %v2617_v61 = vpop.f32.mrb[7].mxu0  ;;  %10287 = vmatpush3.bf16.xpose.msra.mxu0 %v2869_v55  ;;  %v2872_v4 = vpack.c.bf16 %v2696_v15, %v2696_v15 }
 0x401   : > { %v2699_v62 = vpop.f32.mrb[7].mxu1  ;;  %10298 = vmatprep.subr.bf16.mxu0 %v12408_v43 }
 0x407   : > { %10289 = vmatmul.mubr.bf16.vlgmr.msra.gmra.mrb[12].mxu0 %v2865_v63 }
 0x408   : > { %10299 = vmatpush3.bf16.xpose.msra.mxu0 %v2870_v0  ;;  %10300 = vmatprep.mubr.msk.bf16.mxu0 %vm12409_vm0, %v12408_v43 }
 0x409   : > { %10310 = vmatprep.subr.bf16.mxu0 %v12408_v43 }
 0x40f   : > { %10301 = vmatmul.mubr.bf16.vlgmr.msra.gmra.mrb[16].mxu0 %v2866_v1 }
 0x410   : > { %10311 = vmatpush3.bf16.xpose.msra.mxu0 %v2871_v2  ;;  %10312 = vmatprep.mubr.msk.bf16.mxu0 %vm12409_vm0, %v12408_v43 }
 0x411   : > { %10322 = vmatprep.subr.bf16.mxu0 %v12408_v43 }
 0x417   : > { %10313 = vmatmul.mubr.bf16.vlgmr.msra.gmra.mrb[20].mxu0 %v2867_v3 }
 0x418   : > { %10323 = vmatpush3.bf16.xpose.msra.mxu0 %v2872_v4  ;;  %10324 = vmatprep.mubr.msk.bf16.mxu0 %vm12409_vm0, %v12408_v43 }
 0x41f   : > { %10325 = vmatmul.mubr.bf16.vlgmr.msra.gmra.mrb[24].mxu0 %v2868_v5 }
 0x45d   : > { %v2776_v6 = vpop.f32.mrb[8].mxu0 }
 0x45e   : > { %v2873_v7 = vpack.c.bf16 %v2776_v6, %v2776_v6  ;;  %v2858_v8 = vpop.f32.mrb[8].mxu1  ;;  %v2778_v9 = vpop.f32.mrb[9].mxu0 }
 0x45f   : > { %v2875_v10 = vpack.c.bf16 %v2858_v8, %v2858_v8  ;;  %v2874_v11 = vpack.c.bf16 %v2778_v9, %v2778_v9  ;;  %v2860_v51 = vpop.f32.mrb[9].mxu1  ;;  %v2780_v12 = vpop.f32.mrb[10].mxu0  ;;  %v10994_v9 = vld [vmem:[#allocation10] ss:$12 sps:$4 sm:$0xff]  }
 0x460   : > { %v2941_v13 = vsel %vm2939_vm1, %v2873_v7, 0  ;;  %v2876_v14 = vpack.c.bf16 %v2860_v51, %v2860_v51  ;;  %v2862_v16 = vpop.f32.mrb[10].mxu1  ;;  %v2781_v41 = vpop.f32.mrb[11].mxu0  ;;  %v10997_v51 = vld [vmem:[#allocation10 + $0x18] ss:$12 sps:$4 sm:$0xff]  }
 0x461   : > { %v12972_v17 = vsel %vm2939_vm1, %v2875_v10, 0  ;;  %v12975_v18 = vsel %vm2939_vm1, %v2874_v11, 0  ;;  %v2863_v42 = vpop.f32.mrb[11].mxu1  ;;  %10293 = vmatpush3.bf16.msra.mxu1 %v2941_v13  ;;  %v10996_v10 = vld [vmem:[#allocation10 + $0x4] ss:$12 sps:$4 sm:$0xff]  }
 0x462   : > { %v12978_v20 = vsel %vm2939_vm1, %v2876_v14, 0  ;;  %10304 = vmatprep.subr.bf16.mxu1 %v12408_v43  ;;  %v10999_v11 = vld [vmem:[#allocation10 + $0x1c] ss:$12 sps:$4 sm:$0xff]   ;;  %3944 = vmatprep.subr.bf16.mxu0 %v10996_v10  ;;  %v11002_v12 = vld [vmem:[#allocation10 + $0x34] ss:$12 sps:$4 sm:$0xff]  }
 0x463   : > { %3945 = vmatpush1.bf16.msra.mxu0 %v10994_v9  ;;  %v11000_v13 = vld [vmem:[#allocation10 + $0x30] ss:$12 sps:$4 sm:$0xff]   ;;  %v11005_v14 = vld [vmem:[#allocation10 + $0x4c] ss:$12 sps:$4 sm:$0xff]   ;;  %v11003_v16 = vld [vmem:[#allocation10 + $0x48] ss:$12 sps:$4 sm:$0xff]  }
 0x464   : > { %3946 = vmatprep.subr.bf16.mxu0 %v10999_v11  ;;  %v11008_v41 = vld [vmem:[#allocation10 + $0x64] ss:$12 sps:$4 sm:$0xff]   ;;  %v11006_v42 = vld [vmem:[#allocation10 + $0x60] ss:$12 sps:$4 sm:$0xff]   ;;  %v11051_v9 = vld [vmem:[#allocation10 + $0x228] ss:$12 sps:$4 sm:$0xff]  }
 0x465   : > { %v11059_v10 = vld [vmem:[#allocation10 + $0x244] ss:$12 sps:$4 sm:$0xff]   ;;  %v11057_v11 = vld [vmem:[#allocation10 + $0x240] ss:$12 sps:$4 sm:$0xff]  }
 0x467   : > { %3947 = vmatpush1.bf16.msra.mxu0 %v10997_v51  ;;  %v11065_v51 = vld [vmem:[#allocation10 + $0x25c] ss:$12 sps:$4 sm:$0xff]  }
 0x468   : > { %3948 = vmatprep.subr.bf16.mxu0 %v11002_v12  ;;  %v11063_v12 = vld [vmem:[#allocation10 + $0x258] ss:$12 sps:$4 sm:$0xff]  }
 0x46b   : > { %3949 = vmatpush1.bf16.msra.mxu0 %v11000_v13  ;;  %v11066_v13 = vld [vmem:[#allocation10 + $0x150] ss:$12 sps:$4 sm:$0xff]  }
 0x46c   : > { %3950 = vmatprep.subr.bf16.mxu0 %v11005_v14  ;;  %v11068_v14 = vld [vmem:[#allocation10 + $0x154] ss:$12 sps:$4 sm:$0xff]  }
 0x46f   : > { %3951 = vmatpush1.bf16.msra.mxu0 %v11003_v16  ;;  %v11069_v16 = vld [vmem:[#allocation10 + $0x270] ss:$12 sps:$4 sm:$0xff]  }
 0x470   : > { %3952 = vmatprep.subr.bf16.mxu0 %v11008_v41  ;;  %v11071_v41 = vld [vmem:[#allocation10 + $0x274] ss:$12 sps:$4 sm:$0xff]  }
 0x473   : > { %3953 = vmatpush1.bf16.msra.mxu0 %v11006_v42  ;;  %v11074_v42 = vld [vmem:[#allocation10 + $0x16c] ss:$12 sps:$4 sm:$0xff]  }
 0x474   : > { %3954 = vmatprep.subr.bf16.mxu0 %v11014_v24  ;;  %v11077_v24 = vld [vmem:[#allocation10 + $0x28c] ss:$12 sps:$4 sm:$0xff]  }
 0x4da   : > { %v2916_v25 = vpop.f32.mrb[12].mxu0 }
 0x4db   : > { %v2922_v26 = vsel %vm2881_vm2, %v2916_v25, -inf  ;;  %v10290_v27 = vpop.f32.mrb[13].mxu0  ;;  %v11012_v25 = vld [vmem:[#allocation10 + $0x78] ss:$12 sps:$4 sm:$0xff]  }
 0x4dc   : > { %v2919_v28 = vpop.f32.mrb[14].mxu0  ;;  %v2924_v29 = vsel %vm2923_vm3, %v2922_v26, -inf  ;;  %3955 = vmatpush1.bf16.msra.mxu0 %v11012_v25  ;;  %v11018_v27 = vld [vmem:[#allocation10 + $0x90] ss:$12 sps:$4 sm:$0xff]   ;;  %v11072_v25 = vld [vmem:[#allocation10 + $0x168] ss:$12 sps:$4 sm:$0xff]  }
 0x4dd   : > { %2925 = vmax.xlane.f32.xlu1 %v2924_v29  ;;  %v10291_v30 = vpop.f32.mrb[15].mxu0  ;;  %v11026_v28 = vld [vmem:[#allocation10 + $0xac] ss:$12 sps:$4 sm:$0xff]   ;;  %v11024_v29 = vld [vmem:[#allocation10 + $0xa8] ss:$12 sps:$4 sm:$0xff]  }
 0x4de   : > { %v11032_v30 = vld [vmem:[#allocation10 + $0xc4] ss:$12 sps:$4 sm:$0xff]  }
 0x4e2   : > { %v3018_v31 = vpop.f32.mrb[16].mxu0 }
 0x4e3   : > { %v3024_v32 = vsel %vm2881_vm2, %v3018_v31, -inf  ;;  %v10302_v33 = vpop.f32.mrb[17].mxu0  ;;  %v11030_v31 = vld [vmem:[#allocation10 + $0xc0] ss:$12 sps:$4 sm:$0xff]  }
 0x4e4   : > { %v3021_v34 = vpop.f32.mrb[18].mxu0  ;;  %v3025_v19 = vsel %vm2923_vm3, %v3024_v32, -inf  ;;  %v11036_v33 = vld [vmem:[#allocation10 + $0xd8] ss:$12 sps:$4 sm:$0xff]  }
 0x4e5   : > { %3026 = vmax.xlane.f32.xlu1 %v3025_v19  ;;  %v10303_v35 = vpop.f32.mrb[19].mxu0  ;;  %v11044_v34 = vld [vmem:[#allocation10 + $0xf4] ss:$12 sps:$4 sm:$0xff]   ;;  %v11042_v19 = vld [vmem:[#allocation10 + $0xf0] ss:$12 sps:$4 sm:$0xff]  }
 0x4e6   : > { %v11050_v35 = vld [vmem:[#allocation10 + $0x10c] ss:$12 sps:$4 sm:$0xff]  }
 0x4ea   : > { %v3118_v36 = vpop.f32.mrb[20].mxu0 }
 0x4eb   : > { %v3124_v37 = vsel %vm2881_vm2, %v3118_v36, -inf  ;;  %v10314_v38 = vpop.f32.mrb[21].mxu0  ;;  %v11048_v36 = vld [vmem:[#allocation10 + $0x108] ss:$12 sps:$4 sm:$0xff]  }
 0x4ec   : > { %v3121_v39 = vpop.f32.mrb[22].mxu0  ;;  %v3125_v40 = vsel %vm2923_vm3, %v3124_v37, -inf  ;;  %v11054_v38 = vld [vmem:[#allocation10 + $0x120] ss:$12 sps:$4 sm:$0xff]  }
 0x4ed   : > { %3126 = vmax.xlane.f32.xlu0 %v3125_v40  ;;  %v10315_v44 = vpop.f32.mrb[23].mxu0  ;;  %v11062_v39 = vld [vmem:[#allocation10 + $0x13c] ss:$12 sps:$4 sm:$0xff]   ;;  %v11060_v40 = vld [vmem:[#allocation10 + $0x138] ss:$12 sps:$4 sm:$0xff]  }
 0x4f2   : > { %v3218_v45 = vpop.f32.mrb[24].mxu0 }
 0x4f3   : > { %v3224_v46 = vsel %vm2881_vm2, %v3218_v45, -inf  ;;  %v10326_v47 = vpop.f32.mrb[25].mxu0 }
 0x4f4   : > { %v3221_v49 = vpop.f32.mrb[26].mxu0  ;;  %v3225_v50 = vsel %vm2923_vm3, %v3224_v46, -inf }
 0x4f5   : > { %3226 = vmax.xlane.f32.xlu1 %v3225_v50  ;;  %v10327_v52 = vpop.f32.mrb[27].mxu0 }
 0x56a   : > { %v2926_v53 = vpop.xlane.xlu1 %2925 }
 0x56b   : > { %v2927_v54 = vsub.f32 %v2922_v26, %v2926_v53  ;;  %v11020_v26 = vld [vmem:[#allocation10 + $0x94] ss:$12 sps:$4 sm:$0xff]  }
 0x56c   : > { %3956 = vmatprep.subr.bf16.mxu0 %v11020_v26  ;;  %v11075_v26 = vld [vmem:[#allocation10 + $0x288] ss:$12 sps:$4 sm:$0xff]  }
 0x56d   : > { %v2928_v55 = vmul.f32 1.442695, %v2927_v54  ;;  %3957 = vmatpush1.bf16.msra.mxu0 %v11018_v27  ;;  %v11078_v27 = vld [vmem:[#allocation10 + $0x2a0] ss:$12 sps:$4 sm:$0xff]  }
 0x56e   : > { %3958 = vmatprep.subr.bf16.mxu0 %v11026_v28  ;;  %v11080_v28 = vld [vmem:[#allocation10 + $0x2a4] ss:$12 sps:$4 sm:$0xff]  }
 0x56f   : > { %11940 = vpow2.f32 %v2928_v55 }
 0x571   : > { %3959 = vmatpush1.bf16.msra.mxu0 %v11024_v29  ;;  %v11081_v29 = vld [vmem:[#allocation10 + $0xc8] ss:$12 sps:$4 sm:$0xff]  }
 0x572   : > { %v3027_v56 = vpop.xlane.xlu1 %3026  ;;  %3960 = vmatprep.subr.bf16.mxu0 %v11032_v30  ;;  %v11085_v30 = vld [vmem:[#allocation10 + $0x2bc] ss:$12 sps:$4 sm:$0xff]  }
 0x573   : > { %v3028_v57 = vsub.f32 %v3024_v32, %v3027_v56  ;;  %v11038_v32 = vld [vmem:[#allocation10 + $0xdc] ss:$12 sps:$4 sm:$0xff]  }
 0x575   : > { %v3029_v15 = vmul.f32 1.442695, %v3028_v57  ;;  %3961 = vmatpush1.bf16.msra.mxu0 %v11030_v31  ;;  %v11083_v31 = vld [vmem:[#allocation10 + $0x2b8] ss:$12 sps:$4 sm:$0xff]  }
 0x576   : > { %3962 = vmatprep.subr.bf16.mxu0 %v11038_v32  ;;  %v11088_v32 = vld [vmem:[#allocation10 + $0x2d0] ss:$12 sps:$4 sm:$0xff]  }
 0x577   : > { %11942 = vpow2.f32 %v3029_v15  ;;  %v11011_v15 = vld [vmem:[#allocation10 + $0x184] ss:$12 sps:$4 sm:$0xff]  }
 0x579   : > { %v12995_v58 = vpop.eup %11940  ;;  %3963 = vmatpush1.bf16.msra.mxu0 %v11036_v33  ;;  %v11090_v33 = vld [vmem:[#allocation10 + $0x2d4] ss:$12 sps:$4 sm:$0xff]  }
 0x57a   : > { %v3127_v60 = vpop.xlane.xlu0 %3126  ;;  %v2930_v61 = vsel %vm2923_vm3, %v12995_v58, 0.0  ;;  %3964 = vmatprep.subr.bf16.mxu0 %v11044_v34  ;;  %v11095_v34 = vld [vmem:[#allocation10 + $0x2ec] ss:$12 sps:$4 sm:$0xff]  }
 0x57b   : > { %v3128_v62 = vsub.f32 %v3124_v37, %v3127_v60  ;;  %2931 = vadd.xlane.f32.xlu0 %v2930_v61  ;;  %v11056_v37 = vld [vmem:[#allocation10 + $0x124] ss:$12 sps:$4 sm:$0xff]   ;;  %v11009_v60 = vld [vmem:[#allocation10 + $0x180] ss:$12 sps:$4 sm:$0xff]  }
 0x57d   : > { %v3129_v63 = vmul.f32 1.442695, %v3128_v62  ;;  %3965 = vmatpush1.bf16.msra.mxu0 %v11042_v19  ;;  %v11017_v62 = vld [vmem:[#allocation10 + $0x19c] ss:$12 sps:$4 sm:$0xff]  }
 0x57e   : > { %3966 = vmatprep.subr.bf16.mxu0 %v11050_v35  ;;  %v11093_v19 = vld [vmem:[#allocation10 + $0x2e8] ss:$12 sps:$4 sm:$0xff]  }
 0x57f   : > { %11944 = vpow2.f32 %v3129_v63  ;;  %v11015_v63 = vld [vmem:[#allocation10 + $0x198] ss:$12 sps:$4 sm:$0xff]   ;;  %v11099_v35 = vld [vmem:[#allocation10 + $0x248] ss:$12 sps:$4 sm:$0xff]  }
 0x581   : > { %v12999_v0 = vpop.eup %11942  ;;  %3967 = vmatpush1.bf16.msra.mxu0 %v11048_v36 }
 0x582   : > { %v3227_v1 = vpop.xlane.xlu1 %3226  ;;  %v3031_v2 = vsel %vm2923_vm3, %v12999_v0, 0.0  ;;  %3968 = vmatprep.subr.bf16.mxu0 %v11056_v37 }
 0x583   : > { %v3228_v3 = vsub.f32 %v3224_v46, %v3227_v1  ;;  %3032 = vadd.xlane.f32.xlu1 %v3031_v2  ;;  %v11021_v1 = vld [vmem:[#allocation10 + $0x1b0] ss:$12 sps:$4 sm:$0xff]   ;;  %v11027_v2 = vld [vmem:[#allocation10 + $0x1c8] ss:$12 sps:$4 sm:$0xff]  }
 0x585   : > { %v3229_v4 = vmul.f32 1.442695, %v3228_v3  ;;  %3969 = vmatpush1.bf16.msra.mxu0 %v11054_v38  ;;  %v11033_v3 = vld [vmem:[#allocation10 + $0x1e0] ss:$12 sps:$4 sm:$0xff]  }
 0x586   : > { %3970 = vmatprep.subr.bf16.mxu0 %v11062_v39 }
 0x587   : > { %11946 = vpow2.f32 %v3229_v4  ;;  %v11041_v4 = vld [vmem:[#allocation10 + $0x1fc] ss:$12 sps:$4 sm:$0xff]  }
 0x589   : > { %v13003_v5 = vpop.eup %11944  ;;  %3971 = vmatpush1.bf16.msra.mxu0 %v11060_v40 }
 0x58a   : > { %v3131_v6 = vsel %vm2923_vm3, %v13003_v5, 0.0  ;;  %3972 = vmatprep.subr.bf16.mxu0 %v11068_v14  ;;  %v11114_v14 = vld [vmem:[#allocation10 + $0x2a8] ss:$12 sps:$4 sm:$0xff]  }
 0x58b   : > { %3132 = vadd.xlane.f32.xlu0 %v3131_v6  ;;  %v11047_v6 = vld [vmem:[#allocation10 + $0x214] ss:$12 sps:$4 sm:$0xff]  }
 0x58d   : > { %3973 = vmatpush1.bf16.msra.mxu0 %v11066_v13  ;;  %v11113_v13 = vld [vmem:[#allocation10 + $0x1d0] ss:$12 sps:$4 sm:$0xff]  }
 0x58e   : > { %3974 = vmatprep.subr.bf16.mxu0 %v11074_v42  ;;  %v11117_v42 = vld [vmem:[#allocation10 + $0x200] ss:$12 sps:$4 sm:$0xff]  }
 0x591   : > { %v13007_v7 = vpop.eup %11946  ;;  %3975 = vmatpush1.bf16.msra.mxu0 %v11072_v25  ;;  %v11119_v25 = vld [vmem:[#allocation10 + $0x218] ss:$12 sps:$4 sm:$0xff]  }
 0x592   : > { %v3231_v8 = vsel %vm2923_vm3, %v13007_v7, 0.0  ;;  %10110 = vmatprep.subr.bf16.mxu0 %v11081_v29 }
 0x593   : > { %3232 = vadd.xlane.f32.xlu1 %v3231_v8  ;;  %v11053_v8 = vld [vmem:[#allocation10 + $0x22c] ss:$12 sps:$4 sm:$0xff]  }
 0x608   : > { %v2932_v44 = vpop.xlane.xlu0 %2931 }
 0x609   : > { %11948 = vrcp.f32 %v2932_v44 }
 0x610   : > { %v3033_v45 = vpop.xlane.xlu1 %3032 }
 0x611   : > { %11950 = vrcp.f32 %v3033_v45 }
 0x613   : > { %v11949_v46 = vpop.eup %11948 }
 0x614   : > { %v2934_v47 = vmul.f32 %v11949_v46, %v12995_v58  ;;  %v11082_v46 = vld [vmem:[#allocation10 + $0x8] ss:$12 sps:$4 sm:$0xff]  }
 0x616   : > { %v2935_v49 = vpack.c.bf16 %v2934_v47, %v2934_v47 }
 0x618   : > { %10295 = vmatmul.mubr.msk.bf16.vlgmr.msra.gmra.mrb[12].mxu1 %vm2923_vm3, %v2935_v49  ;;  %v3133_v50 = vpop.xlane.xlu0 %3132 }
 0x619   : > { %10305 = vmatpush3.bf16.msra.mxu1 %v12975_v18  ;;  %11952 = vrcp.f32 %v3133_v50  ;;  %10306 = vmatprep.mubr.msk.bf16.mxu1 %vm12409_vm0, %v12408_v43  ;;  %v11086_v50 = vld [vmem:[#allocation10 + $0xe0] ss:$12 sps:$4 sm:$0xff]  }
 0x61a   : > { %10316 = vmatprep.subr.bf16.mxu1 %v12408_v43 }
 0x61b   : > { %v11951_v52 = vpop.eup %11950 }
 0x61c   : > { %v3035_v53 = vmul.f32 %v11951_v52, %v12999_v0  ;;  %v11023_v0 = vld [vmem:[#allocation10 + $0x1b4] ss:$12 sps:$4 sm:$0xff]  }
 0x61e   : > { %v3036_v54 = vpack.c.bf16 %v3035_v53, %v3035_v53  ;;  %v11087_v53 = vld [vmem:[#allocation10 + $0x20] ss:$12 sps:$4 sm:$0xff]  }
 0x620   : > { %10307 = vmatmul.mubr.msk.bf16.vlgmr.msra.gmra.mrb[16].mxu1 %vm2923_vm3, %v3036_v54  ;;  %v3233_v55 = vpop.xlane.xlu1 %3232  ;;  %v11091_v54 = vld [vmem:[#allocation10 + $0xf8] ss:$12 sps:$4 sm:$0xff]  }
 0x621   : > { %10317 = vmatpush3.bf16.msra.mxu1 %v12972_v17  ;;  %11954 = vrcp.f32 %v3233_v55  ;;  %10318 = vmatprep.mubr.msk.bf16.mxu1 %vm12409_vm0, %v12408_v43 }
 0x622   : > { %10328 = vmatprep.subr.bf16.mxu1 %v12408_v43 }
 0x623   : > { %v11953_v18 = vpop.eup %11952 }
 0x624   : > { %v3135_v56 = vmul.f32 %v11953_v18, %v13003_v5  ;;  %v11039_v5 = vld [vmem:[#allocation10 + $0x1f8] ss:$12 sps:$4 sm:$0xff]  }
 0x626   : > { %v3136_v57 = vpack.c.bf16 %v3135_v56, %v3135_v56  ;;  %v11092_v56 = vld [vmem:[#allocation10 + $0x38] ss:$12 sps:$4 sm:$0xff]  }
 0x628   : > { %10319 = vmatmul.mubr.msk.bf16.vlgmr.msra.gmra.mrb[20].mxu1 %vm2923_vm3, %v3136_v57 }
 0x629   : > { %10329 = vmatpush3.bf16.msra.mxu1 %v12978_v20  ;;  %10330 = vmatprep.mubr.msk.bf16.mxu1 %vm12409_vm0, %v12408_v43  ;;  %v11029_v20 = vld [vmem:[#allocation10 + $0x1cc] ss:$12 sps:$4 sm:$0xff]   ;;  %v11035_v43 = vld [vmem:[#allocation10 + $0x1e4] ss:$12 sps:$4 sm:$0xff]  }
 0x62a   : > { %3985 = vmatprep.subr.bf16.mxu1 %v11011_v15  ;;  %v11096_v15 = vld [vmem:[#allocation10 + $0x110] ss:$12 sps:$4 sm:$0xff]  }
 0x62b   : > { %v11955_v17 = vpop.eup %11954 }
 0x62c   : > { %v3235_v58 = vmul.f32 %v11955_v17, %v13007_v7  ;;  %v11045_v7 = vld [vmem:[#allocation10 + $0x210] ss:$12 sps:$4 sm:$0xff]  }
 0x62e   : > { %v3236_v61 = vpack.c.bf16 %v3235_v58, %v3235_v58  ;;  %v11097_v58 = vld [vmem:[#allocation10 + $0x50] ss:$12 sps:$4 sm:$0xff]  }
 0x630   : > { %10331 = vmatmul.mubr.msk.bf16.vlgmr.msra.gmra.mrb[24].mxu1 %vm2923_vm3, %v3236_v61 }
 0x631   : > { %3986 = vmatpush1.bf16.msra.mxu1 %v11009_v60  ;;  %v11098_v60 = vld [vmem:[#allocation10 + $0x128] ss:$12 sps:$4 sm:$0xff]  }
 0x632   : > { %3987 = vmatprep.subr.bf16.mxu1 %v11017_v62 }
 0x635   : > { %3988 = vmatpush1.bf16.msra.mxu1 %v11015_v63 }
 0x636   : > { %3989 = vmatprep.subr.bf16.mxu1 %v11023_v0  ;;  %v11100_v0 = vld [vmem:[#allocation10 + $0x68] ss:$12 sps:$4 sm:$0xff]  }
 0x639   : > { %3990 = vmatpush1.bf16.msra.mxu1 %v11021_v1  ;;  %v11101_v1 = vld [vmem:[#allocation10 + $0x188] ss:$12 sps:$4 sm:$0xff]  }
 0x63a   : > { %3991 = vmatprep.subr.bf16.mxu1 %v11029_v20 }
 0x63d   : > { %3992 = vmatpush1.bf16.msra.mxu1 %v11027_v2 }
 0x63e   : > { %3993 = vmatprep.subr.bf16.mxu1 %v11035_v43  ;;  %v11102_v43 = vld [vmem:[#allocation10 + $0x140] ss:$12 sps:$4 sm:$0xff]  }
 0x641   : > { %3994 = vmatpush1.bf16.msra.mxu1 %v11033_v3 }
 0x642   : > { %3995 = vmatprep.subr.bf16.mxu1 %v11041_v4  ;;  %v11103_v4 = vld [vmem:[#allocation10 + $0x260] ss:$12 sps:$4 sm:$0xff]  }
 0x645   : > { %3996 = vmatpush1.bf16.msra.mxu1 %v11039_v5  ;;  %v11104_v5 = vld [vmem:[#allocation10 + $0x80] ss:$12 sps:$4 sm:$0xff]  }
 0x646   : > { %3997 = vmatprep.subr.bf16.mxu1 %v11047_v6  ;;  %v11105_v6 = vld [vmem:[#allocation10 + $0x1a0] ss:$12 sps:$4 sm:$0xff]  }
 0x649   : > { %3998 = vmatpush1.bf16.msra.mxu1 %v11045_v7  ;;  %v11106_v7 = vld [vmem:[#allocation10 + $0x158] ss:$12 sps:$4 sm:$0xff]  }
 0x64a   : > { %3999 = vmatprep.subr.bf16.mxu1 %v11053_v8  ;;  %v11107_v8 = vld [vmem:[#allocation10 + $0x278] ss:$12 sps:$4 sm:$0xff]  }
 0x64d   : > { %4000 = vmatpush1.bf16.msra.mxu1 %v11051_v9  ;;  %v11108_v9 = vld [vmem:[#allocation10 + $0x98] ss:$12 sps:$4 sm:$0xff]  }
 0x64e   : > { %4001 = vmatprep.subr.bf16.mxu1 %v11059_v10  ;;  %v11109_v10 = vld [vmem:[#allocation10 + $0x1b8] ss:$12 sps:$4 sm:$0xff]  }
 0x651   : > { %4002 = vmatpush1.bf16.msra.mxu1 %v11057_v11  ;;  %v11110_v11 = vld [vmem:[#allocation10 + $0x170] ss:$12 sps:$4 sm:$0xff]  }
 0x652   : > { %4003 = vmatprep.subr.bf16.mxu1 %v11065_v51  ;;  %v11111_v51 = vld [vmem:[#allocation10 + $0x290] ss:$12 sps:$4 sm:$0xff]  }
 0x655   : > { %4004 = vmatpush1.bf16.msra.mxu1 %v11063_v12  ;;  %v11112_v12 = vld [vmem:[#allocation10 + $0xb0] ss:$12 sps:$4 sm:$0xff]  }
 0x656   : > { %4005 = vmatprep.subr.bf16.mxu1 %v11071_v41  ;;  %v11116_v41 = vld [vmem:[#allocation10 + $0x2c0] ss:$12 sps:$4 sm:$0xff]  }
 0x659   : > { %4006 = vmatpush1.bf16.msra.mxu1 %v11069_v16  ;;  %v11115_v16 = vld [vmem:[#allocation10 + $0x1e8] ss:$12 sps:$4 sm:$0xff]  }
 0x65a   : > { %4007 = vmatprep.subr.bf16.mxu1 %v11077_v24  ;;  %v11118_v24 = vld [vmem:[#allocation10 + $0x2d8] ss:$12 sps:$4 sm:$0xff]  }
 0x65d   : > { %4008 = vmatpush1.bf16.msra.mxu1 %v11075_v26  ;;  %v11120_v26 = vld [vmem:[#allocation10 + $0x2f0] ss:$12 sps:$4 sm:$0xff]  }
 0x65e   : > { %4009 = vmatprep.subr.bf16.mxu1 %v11080_v28 }
 0x661   : > { %4010 = vmatpush1.bf16.msra.mxu1 %v11078_v27  ;;  %v11121_v27 = vld [vmem:[#allocation10 + $0x230] ss:$12 sps:$4 sm:$0xff]  }
 0x662   : > { %4011 = vmatprep.subr.bf16.mxu1 %v11085_v30 }
 0x665   : > { %4012 = vmatpush1.bf16.msra.mxu1 %v11083_v31 }
 0x666   : > { %4013 = vmatprep.subr.bf16.mxu1 %v11090_v33 }
 0x669   : > { %4014 = vmatpush1.bf16.msra.mxu1 %v11088_v32 }
 0x66a   : > { %4015 = vmatprep.subr.bf16.mxu1 %v11095_v34 }
 0x66d   : > { %4016 = vmatpush1.bf16.msra.mxu1 %v11093_v19 }
 0x66e   : > { %10132 = vmatprep.subr.bf16.mxu1 %v11099_v35 }
 0x6eb   : > { %v2977_v36 = vpop.f32.mrb[12].mxu1 }
 0x6ec   : > { %v10296_v37 = vpop.f32.mrb[13].mxu1  ;;  %v13030_v47 = vpack.c.bf16 %v2977_v36, %v2977_v36 }
 0x6ed   : > { %v2980_v38 = vpop.f32.mrb[14].mxu1 }
 0x6ee   : > { %v10297_v39 = vpop.f32.mrb[15].mxu1 }
 0x6f3   : > { %v3077_v40 = vpop.f32.mrb[16].mxu1 }
 0x6f4   : > { %v3083_v44 = vpack.c.bf16 %v3077_v40, %v3077_v40  ;;  %v10308_v45 = vpop.f32.mrb[17].mxu1 }
 0x6f5   : > { %v3080_v49 = vpop.f32.mrb[18].mxu1  ;;  %v3284_v45 = vld [vmem:[#allocation11] sm:$0x7] }
 0x6f6   : > { %v10309_v52 = vpop.f32.mrb[19].mxu1  ;;  %3976 = vmatprep.mubr.bf16.mxu0 %v3083_v44  ;;  %v3297_v49 = vrot.slane %v3284_v45, %v12927_v59 }
 0x6f7   : > { %3977 = vmatmul.mubr.bf16.vlgmr.msra.gmra.mrb[28].mxu0 %v13030_v47 }
 0x6f8   : > { %10111 = vmatpush3.bf16.msra.mxu0 %v11082_v46  ;;  %4058 = vmatprep.mubr.bf16.mxu0 %v3083_v44  ;;  %v3289_v46 = vrot.slane %v3284_v45, %v12896_v23 }
 0x6f9   : > { %10112 = vmatprep.subr.bf16.mxu0 %v11086_v50  ;;  %v11958_v50 = vld [vmem:[%s12832_s29] sm:$0xff] }
 0x6fa   : > { %v3301_v52 = vadd.f32 %v11958_v50, %v3289_v46  ;;  %v11179_v46 = vld [vmem:[#allocation16 + $0x368] ss:$48 sps:$4 sm:$0xff]   ;;  %v11182_v50 = vld [vmem:[#allocation16 + $0x3c0] ss:$48 sps:$4 sm:$0xff]  }
 0x6fb   : > { %v3177_v55 = vpop.f32.mrb[20].mxu1 }
 0x6fc   : > { %10113 = vmatpush3.bf16.msra.mxu0 %v11087_v53  ;;  %v10320_v18 = vpop.f32.mrb[21].mxu1  ;;  %v3183_v20 = vpack.c.bf16 %v3177_v55, %v3177_v55  ;;  %v11959_v53 = vld [vmem:[%s12832_s29 + $0x8] sm:$0xff] }
 0x6fd   : > { %v3180_v57 = vpop.f32.mrb[22].mxu1  ;;  %10114 = vmatprep.subr.bf16.mxu0 %v11091_v54 }
 0x6fe   : > { %v10321_v17 = vpop.f32.mrb[23].mxu1 }
 0x700   : > { %10115 = vmatpush3.bf16.msra.mxu0 %v11092_v56  ;;  %v11960_v56 = vld [vmem:[%s12832_s29 + $0x10] sm:$0xff] }
 0x701   : > { %10116 = vmatprep.subr.bf16.mxu0 %v11096_v15  ;;  %v3303_v57 = vadd.f32 %v11960_v56, %v3297_v49  ;;  %v11187_v49 = vld [vmem:[#allocation16 + $0x3cc] ss:$48 sps:$4 sm:$0xff]  }
 0x703   : > { %v3277_v61 = vpop.f32.mrb[24].mxu1 }
 0x704   : > { %v3283_v62 = vpack.c.bf16 %v3277_v61, %v3277_v61  ;;  %10117 = vmatpush3.bf16.msra.mxu0 %v11097_v58  ;;  %v10332_v63 = vpop.f32.mrb[25].mxu1 }
 0x705   : > { %v3280_v2 = vpop.f32.mrb[26].mxu1  ;;  %10118 = vmatprep.subr.bf16.mxu0 %v11098_v60 }
 0x706   : > { %v10333_v3 = vpop.f32.mrb[27].mxu1  ;;  %4017 = vmatprep.mubr.bf16.mxu1 %v3283_v62  ;;  %v11124_v2 = vld [vmem:[#allocation16 + $0x4] ss:$48 sps:$4 sm:$0xff]  }
 0x707   : > { %4018 = vmatmul.mubr.bf16.vlgmr.msra.gmra.mrb[28].mxu1 %v3183_v20  ;;  %v11127_v3 = vld [vmem:[#allocation16 + $0xc] ss:$48 sps:$4 sm:$0xff]  }
 0x708   : > { %10119 = vmatpush3.bf16.msra.mxu0 %v11100_v0  ;;  %10133 = vmatpush3.bf16.msra.mxu1 %v11101_v1 }
 0x709   : > { %4098 = vmatprep.mubr.bf16.mxu1 %v3283_v62  ;;  %10120 = vmatprep.subr.bf16.mxu0 %v11102_v43  ;;  %v11125_v43 = vld [vmem:[#allocation16 + $0x8] ss:$48 sps:$4 sm:$0xff]  }
 0x70a   : > { %10134 = vmatprep.subr.bf16.mxu1 %v11103_v4  ;;  %v11130_v4 = vld [vmem:[#allocation16 + $0x64] ss:$48 sps:$4 sm:$0xff]  }
 0x70c   : > { %10121 = vmatpush3.bf16.msra.mxu0 %v11104_v5  ;;  %10135 = vmatpush3.bf16.msra.mxu1 %v11105_v6  ;;  %v11133_v5 = vld [vmem:[#allocation16 + $0x6c] ss:$48 sps:$4 sm:$0xff]   ;;  %v11128_v6 = vld [vmem:[#allocation16 + $0x60] ss:$48 sps:$4 sm:$0xff]  }
 0x70d   : > { %10122 = vmatprep.subr.bf16.mxu0 %v11106_v7  ;;  %10136 = vmatprep.subr.bf16.mxu1 %v11107_v8  ;;  %v11131_v7 = vld [vmem:[#allocation16 + $0x68] ss:$48 sps:$4 sm:$0xff]   ;;  %v11136_v8 = vld [vmem:[#allocation16 + $0xc4] ss:$48 sps:$4 sm:$0xff]  }
 0x710   : > { %10123 = vmatpush3.bf16.msra.mxu0 %v11108_v9  ;;  %10137 = vmatpush3.bf16.msra.mxu1 %v11109_v10  ;;  %v11139_v9 = vld [vmem:[#allocation16 + $0xcc] ss:$48 sps:$4 sm:$0xff]   ;;  %v11134_v10 = vld [vmem:[#allocation16 + $0xc0] ss:$48 sps:$4 sm:$0xff]  }
 0x711   : > { %10124 = vmatprep.subr.bf16.mxu0 %v11110_v11  ;;  %10138 = vmatprep.subr.bf16.mxu1 %v11111_v51  ;;  %v11137_v11 = vld [vmem:[#allocation16 + $0xc8] ss:$48 sps:$4 sm:$0xff]   ;;  %v11142_v51 = vld [vmem:[#allocation16 + $0x124] ss:$48 sps:$4 sm:$0xff]  }
 0x714   : > { %10125 = vmatpush3.bf16.msra.mxu0 %v11112_v12  ;;  %10139 = vmatpush3.bf16.msra.mxu1 %v11113_v13  ;;  %v11145_v12 = vld [vmem:[#allocation16 + $0x12c] ss:$48 sps:$4 sm:$0xff]   ;;  %v11140_v13 = vld [vmem:[#allocation16 + $0x120] ss:$48 sps:$4 sm:$0xff]  }
 0x715   : > { %10140 = vmatprep.subr.bf16.mxu1 %v11114_v14  ;;  %5965 = vmatprep.subr.bf16.mxu0 %v11124_v2  ;;  %v11143_v14 = vld [vmem:[#allocation16 + $0x128] ss:$48 sps:$4 sm:$0xff]  }
 0x716   : > { %v11191_v2 = vld [vmem:[#allocation16 + $0x428] ss:$48 sps:$4 sm:$0xff]  }
 0x717   : > { %4059 = vmatmul.mubr.bf16.vlgmr.msra.gmra.mrb[32].mxu0 %v13030_v47  ;;  %v3293_v47 = vrot.slane %v3284_v45, %v12893_v22  ;;  %v11176_v45 = vld [vmem:[#allocation16 + $0x360] ss:$48 sps:$4 sm:$0xff]  }
 0x718   : > { %10141 = vmatpush3.bf16.msra.mxu1 %v11115_v16  ;;  %v11148_v16 = vld [vmem:[#allocation16 + $0x184] ss:$48 sps:$4 sm:$0xff]  }
 0x719   : > { %10142 = vmatprep.subr.bf16.mxu1 %v11116_v41  ;;  %v3302_v54 = vadd.f32 %v11959_v53, %v3293_v47  ;;  %v11151_v41 = vld [vmem:[#allocation16 + $0x18c] ss:$48 sps:$4 sm:$0xff]   ;;  %v11184_v47 = vld [vmem:[#allocation16 + $0x3c4] ss:$48 sps:$4 sm:$0xff]  }
 0x71c   : > { %10143 = vmatpush3.bf16.msra.mxu1 %v11117_v42  ;;  %v11146_v42 = vld [vmem:[#allocation16 + $0x180] ss:$48 sps:$4 sm:$0xff]  }
 0x71d   : > { %10144 = vmatprep.subr.bf16.mxu1 %v11118_v24  ;;  %v11149_v24 = vld [vmem:[#allocation16 + $0x188] ss:$48 sps:$4 sm:$0xff]  }
 0x720   : > { %10145 = vmatpush3.bf16.msra.mxu1 %v11119_v25  ;;  %v11154_v25 = vld [vmem:[#allocation16 + $0x1e4] ss:$48 sps:$4 sm:$0xff]  }
 0x721   : > { %10146 = vmatprep.subr.bf16.mxu1 %v11120_v26  ;;  %v11157_v26 = vld [vmem:[#allocation16 + $0x1ec] ss:$48 sps:$4 sm:$0xff]  }
 0x724   : > { %10147 = vmatpush3.bf16.msra.mxu1 %v11121_v27  ;;  %v11152_v27 = vld [vmem:[#allocation16 + $0x1e0] ss:$48 sps:$4 sm:$0xff]  }
 0x725   : > { %6047 = vmatprep.subr.bf16.mxu1 %v11127_v3  ;;  %v11194_v3 = vld [vmem:[#allocation16 + $0x480] ss:$48 sps:$4 sm:$0xff]  }
 0x727   : > { %4099 = vmatmul.mubr.bf16.vlgmr.msra.gmra.mrb[32].mxu1 %v3183_v20  ;;  %v11122_v20 = vld [vmem:[#allocation16] ss:$48 sps:$4 sm:$0xff]  }
 0x728   : > { %5966 = vmatpush1.bf16.msra.mxu0 %v11122_v20  ;;  %6048 = vmatpush1.bf16.msra.mxu1 %v11125_v43  ;;  %v11188_v20 = vld [vmem:[#allocation16 + $0x420] ss:$48 sps:$4 sm:$0xff]   ;;  %v11196_v43 = vld [vmem:[#allocation16 + $0x484] ss:$48 sps:$4 sm:$0xff]  }
 0x729   : > { %5967 = vmatprep.subr.bf16.mxu0 %v11130_v4  ;;  %6049 = vmatprep.subr.bf16.mxu1 %v11133_v5  ;;  %v11197_v4 = vld [vmem:[#allocation16 + $0x488] ss:$48 sps:$4 sm:$0xff]   ;;  %v11199_v5 = vld [vmem:[#allocation16 + $0x48c] ss:$48 sps:$4 sm:$0xff]  }
 0x72c   : > { %5968 = vmatpush1.bf16.msra.mxu0 %v11128_v6  ;;  %6050 = vmatpush1.bf16.msra.mxu1 %v11131_v7  ;;  %v11202_v6 = vld [vmem:[#allocation16 + $0x4e4] ss:$48 sps:$4 sm:$0xff]   ;;  %v11205_v7 = vld [vmem:[#allocation16 + $0x4ec] ss:$48 sps:$4 sm:$0xff]  }
 0x72d   : > { %5969 = vmatprep.subr.bf16.mxu0 %v11136_v8  ;;  %6051 = vmatprep.subr.bf16.mxu1 %v11139_v9  ;;  %v11200_v8 = vld [vmem:[#allocation16 + $0x4e0] ss:$48 sps:$4 sm:$0xff]   ;;  %v11203_v9 = vld [vmem:[#allocation16 + $0x4e8] ss:$48 sps:$4 sm:$0xff]  }
 0x730   : > { %5970 = vmatpush1.bf16.msra.mxu0 %v11134_v10  ;;  %6052 = vmatpush1.bf16.msra.mxu1 %v11137_v11  ;;  %v11208_v10 = vld [vmem:[#allocation16 + $0x544] ss:$48 sps:$4 sm:$0xff]   ;;  %v11211_v11 = vld [vmem:[#allocation16 + $0x54c] ss:$48 sps:$4 sm:$0xff]  }
 0x731   : > { %5971 = vmatprep.subr.bf16.mxu0 %v11142_v51  ;;  %6053 = vmatprep.subr.bf16.mxu1 %v11145_v12  ;;  %v11206_v51 = vld [vmem:[#allocation16 + $0x540] ss:$48 sps:$4 sm:$0xff]   ;;  %v11209_v12 = vld [vmem:[#allocation16 + $0x548] ss:$48 sps:$4 sm:$0xff]  }
 0x734   : > { %5972 = vmatpush1.bf16.msra.mxu0 %v11140_v13  ;;  %6054 = vmatpush1.bf16.msra.mxu1 %v11143_v14  ;;  %v11214_v13 = vld [vmem:[#allocation16 + $0x5a4] ss:$48 sps:$4 sm:$0xff]   ;;  %v11217_v14 = vld [vmem:[#allocation16 + $0x5ac] ss:$48 sps:$4 sm:$0xff]  }
 0x735   : > { %5973 = vmatprep.subr.bf16.mxu0 %v11148_v16  ;;  %6055 = vmatprep.subr.bf16.mxu1 %v11151_v41  ;;  %v11212_v16 = vld [vmem:[#allocation16 + $0x5a0] ss:$48 sps:$4 sm:$0xff]   ;;  %v11215_v41 = vld [vmem:[#allocation16 + $0x5a8] ss:$48 sps:$4 sm:$0xff]  }
 0x738   : > { %5974 = vmatpush1.bf16.msra.mxu0 %v11146_v42  ;;  %6056 = vmatpush1.bf16.msra.mxu1 %v11149_v24  ;;  %v11220_v42 = vld [vmem:[#allocation16 + $0x604] ss:$48 sps:$4 sm:$0xff]   ;;  %v11223_v24 = vld [vmem:[#allocation16 + $0x60c] ss:$48 sps:$4 sm:$0xff]  }
 0x739   : > { %5975 = vmatprep.subr.bf16.mxu0 %v11154_v25  ;;  %6057 = vmatprep.subr.bf16.mxu1 %v11157_v26 }
 0x73c   : > { %5976 = vmatpush1.bf16.msra.mxu0 %v11152_v27 }
 0x7ca   : > { %v3978_v28 = vpop.f32.mrb[28].mxu0 }
 0x7cb   : > { %v3980_v29 = vpop.f32.mrb[29].mxu0 }
 0x7cc   : > { %v3982_v30 = vpop.f32.mrb[30].mxu0 }
 0x7cd   : > { %v3983_v31 = vpop.f32.mrb[31].mxu0  ;;  %v11163_v30 = vld [vmem:[#allocation16 + $0x24c] ss:$48 sps:$4 sm:$0xff]  }
 0x7ce   : > { %v11158_v31 = vld [vmem:[#allocation16 + $0x240] ss:$48 sps:$4 sm:$0xff]  }
 0x7da   : > { %v4019_v32 = vpop.f32.mrb[28].mxu1 }
 0x7db   : > { %v4020_v33 = vadd.f32 %v4019_v32, %v3978_v28  ;;  %v4021_v34 = vpop.f32.mrb[29].mxu1  ;;  %v11155_v28 = vld [vmem:[#allocation16 + $0x1e8] ss:$48 sps:$4 sm:$0xff]  }
 0x7dc   : > { %v4022_v19 = vadd.f32 %v4021_v34, %v3980_v29  ;;  %v4023_v35 = vpop.f32.mrb[30].mxu1  ;;  %v11160_v29 = vld [vmem:[#allocation16 + $0x244] ss:$48 sps:$4 sm:$0xff]   ;;  %6058 = vmatpush1.bf16.msra.mxu1 %v11155_v28  ;;  %v11161_v32 = vld [vmem:[#allocation16 + $0x248] ss:$48 sps:$4 sm:$0xff]  }
 0x7dd   : > { %v4024_v36 = vpop.f32.mrb[31].mxu1  ;;  %v13040_v15 = vadd.f32 %v4020_v33, %v3301_v52  ;;  %5977 = vmatprep.subr.bf16.mxu0 %v11160_v29  ;;  %v11166_v33 = vld [vmem:[#allocation16 + $0x2a4] ss:$48 sps:$4 sm:$0xff]   ;;  %6059 = vmatprep.subr.bf16.mxu1 %v11163_v30  ;;  %v11169_v34 = vld [vmem:[#allocation16 + $0x2ac] ss:$48 sps:$4 sm:$0xff]  }
 0x7de   : > { %v13042_v17 = vadd.f32 %v4022_v19, %v3302_v54  ;;  %5978 = vmatpush1.bf16.msra.mxu0 %v11158_v31  ;;  %v11164_v19 = vld [vmem:[#allocation16 + $0x2a0] ss:$48 sps:$4 sm:$0xff]   ;;  %v11167_v35 = vld [vmem:[#allocation16 + $0x2a8] ss:$48 sps:$4 sm:$0xff]   ;;  %v11172_v36 = vld [vmem:[#allocation16 + $0x304] ss:$48 sps:$4 sm:$0xff]  }
 0x7df   : > { %5979 = vmatprep.subr.bf16.mxu0 %v11166_v33  ;;  %v11185_v52 = vld [vmem:[#allocation16 + $0x3c8] ss:$48 sps:$4 sm:$0xff]   ;;  %v13062_v29 = vld [vmem:[#allocation14] sm:$0x7] }
 0x7e0   : > { %v4111_v0 = vadd.f32 %v13042_v17, %v13040_v15  ;;  %6060 = vmatpush1.bf16.msra.mxu1 %v11161_v32  ;;  %v13060_v28 = vld [vmem:[#allocation13] sm:$0x7] }
 0x7e1   : > { %6061 = vmatprep.subr.bf16.mxu1 %v11169_v34  ;;  %v4140_v30 = vrot.slane %v13060_v28, %v12893_v22  ;;  %v4136_v31 = vrot.slane %v13060_v28, %v12896_v23  ;;  %v4159_v34 = vrot.slane %v13062_v29, %v12893_v22 }
 0x7e2   : > { %5980 = vmatpush1.bf16.msra.mxu0 %v11164_v19 }
 0x7e3   : > { %5981 = vmatprep.subr.bf16.mxu0 %v11172_v36 }
 0x7e4   : > { %6062 = vmatpush1.bf16.msra.mxu1 %v11167_v35  ;;  %v4155_v35 = vrot.slane %v13062_v29, %v12896_v23 }
 0x7ea   : > { %v10126_v37 = vpop.f32.mrb[32].mxu0 }
 0x7eb   : > { %v10127_v38 = vpop.f32.mrb[33].mxu0 }
 0x7ec   : > { %v10128_v39 = vadd.f32 %v10127_v38, %v10126_v37  ;;  %v10129_v40 = vpop.f32.mrb[34].mxu0  ;;  %v11175_v37 = vld [vmem:[#allocation16 + $0x30c] ss:$48 sps:$4 sm:$0xff]   ;;  %v11170_v38 = vld [vmem:[#allocation16 + $0x300] ss:$48 sps:$4 sm:$0xff]  }
 0x7ed   : > { %v10130_v44 = vpop.f32.mrb[35].mxu0  ;;  %v11178_v40 = vld [vmem:[#allocation16 + $0x364] ss:$48 sps:$4 sm:$0xff]   ;;  %6063 = vmatprep.subr.bf16.mxu1 %v11175_v37  ;;  %5982 = vmatpush1.bf16.msra.mxu0 %v11170_v38 }
 0x7ee   : > { %v11181_v44 = vld [vmem:[#allocation16 + $0x36c] ss:$48 sps:$4 sm:$0xff]   ;;  %5983 = vmatprep.subr.bf16.mxu0 %v11178_v40 }
 0x7f1   : > { %5984 = vmatpush1.bf16.msra.mxu0 %v11176_v45  ;;  %v11221_v45 = vld [vmem:[#allocation16 + $0x608] ss:$48 sps:$4 sm:$0xff]  }
 0x7f2   : > { %5985 = vmatprep.subr.bf16.mxu0 %v11184_v47  ;;  %v11226_v47 = vld [vmem:[#allocation16 + $0x664] ss:$48 sps:$4 sm:$0xff]  }
 0x7f5   : > { %5986 = vmatpush1.bf16.msra.mxu0 %v11182_v50  ;;  %v11224_v50 = vld [vmem:[#allocation16 + $0x660] ss:$48 sps:$4 sm:$0xff]  }
 0x7fa   : > { %v10148_v55 = vpop.f32.mrb[32].mxu1 }
 0x7fb   : > { %v10149_v18 = vpop.f32.mrb[33].mxu1 }
 0x7fc   : > { %v10150_v58 = vadd.f32 %v10149_v18, %v10148_v55  ;;  %v10151_v60 = vpop.f32.mrb[34].mxu1 }
 0x7fd   : > { %v10152_v61 = vpop.f32.mrb[35].mxu1 }
 0x7fe   : > { %v4101_v62 = vadd.f32 %v10150_v58, %v10128_v39  ;;  %v11173_v39 = vld [vmem:[#allocation16 + $0x308] ss:$48 sps:$4 sm:$0xff]  }
 0x7ff   : > { %6064 = vmatpush1.bf16.msra.mxu1 %v11173_v39 }
 0x800   : > { %v13044_v63 = vadd.f32 %v4101_v62, %v3303_v57  ;;  %6065 = vmatprep.subr.bf16.mxu1 %v11181_v44  ;;  %v11218_v44 = vld [vmem:[#allocation16 + $0x600] ss:$48 sps:$4 sm:$0xff]  }
 0x802   : > { %v4112_v1 = vadd.f32 %v4111_v0, %v13044_v63  ;;  %v11190_v0 = vld [vmem:[#allocation16 + $0x424] ss:$48 sps:$4 sm:$0xff]  }
 0x803   : > { %6066 = vmatpush1.bf16.msra.mxu1 %v11179_v46  ;;  %5987 = vmatprep.subr.bf16.mxu0 %v11190_v0  ;;  %v11247_v0 = vld [vmem:[#allocation16 + $0x78c] ss:$48 sps:$4 sm:$0xff]  }
 0x804   : > { %4113 = vadd.xlane.f32.xlu0 %v4112_v1  ;;  %6067 = vmatprep.subr.bf16.mxu1 %v11187_v49  ;;  %v11193_v1 = vld [vmem:[#allocation16 + $0x42c] ss:$48 sps:$4 sm:$0xff]  }
 0x805   : > { %5988 = vmatpush1.bf16.msra.mxu0 %v11188_v20  ;;  %v11229_v49 = vld [vmem:[#allocation16 + $0x66c] ss:$48 sps:$4 sm:$0xff]   ;;  %v11245_v20 = vld [vmem:[#allocation16 + $0x788] ss:$48 sps:$4 sm:$0xff]  }
 0x806   : > { %5989 = vmatprep.subr.bf16.mxu0 %v11196_v43  ;;  %v11253_v43 = vld [vmem:[#allocation16 + $0x7ec] ss:$48 sps:$4 sm:$0xff]  }
 0x807   : > { %6068 = vmatpush1.bf16.msra.mxu1 %v11185_v52  ;;  %v11227_v52 = vld [vmem:[#allocation16 + $0x668] ss:$48 sps:$4 sm:$0xff]  }
 0x808   : > { %6069 = vmatprep.subr.bf16.mxu1 %v11193_v1  ;;  %v11242_v1 = vld [vmem:[#allocation16 + $0x780] ss:$48 sps:$4 sm:$0xff]  }
 0x809   : > { %5990 = vmatpush1.bf16.msra.mxu0 %v11194_v3  ;;  %v11248_v3 = vld [vmem:[#allocation16 + $0x7e0] ss:$48 sps:$4 sm:$0xff]  }
 0x80a   : > { %5991 = vmatprep.subr.bf16.mxu0 %v11202_v6  ;;  %v11259_v6 = vld [vmem:[#allocation16 + $0x84c] ss:$48 sps:$4 sm:$0xff]  }
 0x80b   : > { %6070 = vmatpush1.bf16.msra.mxu1 %v11191_v2  ;;  %v11250_v2 = vld [vmem:[#allocation16 + $0x7e4] ss:$48 sps:$4 sm:$0xff]  }
 0x80c   : > { %6071 = vmatprep.subr.bf16.mxu1 %v11199_v5  ;;  %v11256_v5 = vld [vmem:[#allocation16 + $0x844] ss:$48 sps:$4 sm:$0xff]  }
 0x80d   : > { %5992 = vmatpush1.bf16.msra.mxu0 %v11200_v8  ;;  %v4144_v8 = vrot.slane %v13060_v28, %v12927_v59  ;;  %v11277_v28 = vld [vmem:[#allocation16 + $0x7c] ss:$48 sps:$4 sm:$0xff]  }
 0x80e   : > { %5993 = vmatprep.subr.bf16.mxu0 %v11208_v10  ;;  %v11257_v10 = vld [vmem:[#allocation16 + $0x848] ss:$48 sps:$4 sm:$0xff]  }
 0x80f   : > { %6072 = vmatpush1.bf16.msra.mxu1 %v11197_v4  ;;  %v11251_v4 = vld [vmem:[#allocation16 + $0x7e8] ss:$48 sps:$4 sm:$0xff]  }
 0x810   : > { %6073 = vmatprep.subr.bf16.mxu1 %v11205_v7 }
 0x811   : > { %5994 = vmatpush1.bf16.msra.mxu0 %v11206_v51  ;;  %v11265_v51 = vld [vmem:[#allocation16 + $0x8ac] ss:$48 sps:$4 sm:$0xff]  }
 0x812   : > { %5995 = vmatprep.subr.bf16.mxu0 %v11214_v13  ;;  %v4163_v13 = vrot.slane %v13062_v29, %v12927_v59  ;;  %v11272_v29 = vld [vmem:[#allocation16 + $0x70] ss:$48 sps:$4 sm:$0xff]  }
 0x813   : > { %6074 = vmatpush1.bf16.msra.mxu1 %v11203_v9  ;;  %v11254_v9 = vld [vmem:[#allocation16 + $0x840] ss:$48 sps:$4 sm:$0xff]  }
 0x814   : > { %6075 = vmatprep.subr.bf16.mxu1 %v11211_v11  ;;  %v11262_v11 = vld [vmem:[#allocation16 + $0x8a4] ss:$48 sps:$4 sm:$0xff]  }
 0x815   : > { %5996 = vmatpush1.bf16.msra.mxu0 %v11212_v16  ;;  %v11263_v16 = vld [vmem:[#allocation16 + $0x8a8] ss:$48 sps:$4 sm:$0xff]  }
 0x816   : > { %6006 = vmatprep.subr.bf16.mxu0 %v11220_v42  ;;  %v11271_v42 = vld [vmem:[#allocation16 + $0x1c] ss:$48 sps:$4 sm:$0xff]  }
 0x817   : > { %6076 = vmatpush1.bf16.msra.mxu1 %v11209_v12 }
 0x818   : > { %6077 = vmatprep.subr.bf16.mxu1 %v11217_v14  ;;  %v11260_v14 = vld [vmem:[#allocation16 + $0x8a0] ss:$48 sps:$4 sm:$0xff]  }
 0x81b   : > { %6078 = vmatpush1.bf16.msra.mxu1 %v11215_v41  ;;  %v11268_v41 = vld [vmem:[#allocation16 + $0x14] ss:$48 sps:$4 sm:$0xff]  }
 0x81c   : > { %6088 = vmatprep.subr.bf16.mxu1 %v11223_v24  ;;  %v11266_v24 = vld [vmem:[#allocation16 + $0x10] ss:$48 sps:$4 sm:$0xff]  }
 0x891   : > { %v4114_v53 = vpop.xlane.xlu0 %4113 }
 0x892   : > { %v4115_v54 = vmul.f32 0.0026041667, %v4114_v53  ;;  %v11232_v53 = vld [vmem:[#allocation16 + $0x6c4] ss:$48 sps:$4 sm:$0xff]  }
 0x894   : > { %v13050_v55 = vsub.f32 %v13040_v15, %v4115_v54  ;;  %v4117_v18 = vsub.f32 %v13042_v17, %v4115_v54  ;;  %v13054_v56 = vsub.f32 %v13044_v63, %v4115_v54  ;;  %v11235_v54 = vld [vmem:[#allocation16 + $0x6cc] ss:$48 sps:$4 sm:$0xff]  }
 0x896   : > { %v4119_v57 = vmul.f32 %v13050_v55, %v13050_v55  ;;  %v4120_v58 = vmul.f32 %v4117_v18, %v4117_v18  ;;  %v4121_v60 = vmul.f32 %v13054_v56, %v13054_v56 }
 0x898   : > { %v4122_v61 = vadd.f32 %v4120_v58, %v4119_v57  ;;  %v11238_v57 = vld [vmem:[#allocation16 + $0x724] ss:$48 sps:$4 sm:$0xff]   ;;  %v11241_v58 = vld [vmem:[#allocation16 + $0x72c] ss:$48 sps:$4 sm:$0xff]  }
 0x89a   : > { %v4123_v62 = vadd.f32 %v4122_v61, %v4121_v60  ;;  %v11236_v60 = vld [vmem:[#allocation16 + $0x720] ss:$48 sps:$4 sm:$0xff]   ;;  %v11239_v61 = vld [vmem:[#allocation16 + $0x728] ss:$48 sps:$4 sm:$0xff]  }
 0x89c   : > { %4124 = vadd.xlane.f32.xlu1 %v4123_v62  ;;  %v11244_v62 = vld [vmem:[#allocation16 + $0x784] ss:$48 sps:$4 sm:$0xff]  }
 0x929   : > { %v4125_v25 = vpop.xlane.xlu1 %4124 }
 0x92a   : > { %v4126_v26 = vmul.f32 0.0026041667, %v4125_v25 }
 0x92c   : > { %v4127_v27 = vadd.f32 1e-05, %v4126_v26  ;;  %v11269_v26 = vld [vmem:[#allocation16 + $0x18] ss:$48 sps:$4 sm:$0xff]  }
 0x92e   : > { %11956 = vrsqrt.f32 %v4127_v27  ;;  %v11274_v27 = vld [vmem:[#allocation16 + $0x74] ss:$48 sps:$4 sm:$0xff]  }
 0x938   : > { %v11957_v32 = vpop.eup %11956 }
 0x939   : > { %v4130_v33 = vmul.f32 %v11957_v32, %v4117_v18  ;;  %v4129_v19 = vmul.f32 %v11957_v32, %v13050_v55  ;;  %v11230_v55 = vld [vmem:[#allocation16 + $0x6c0] ss:$48 sps:$4 sm:$0xff]   ;;  %v11233_v18 = vld [vmem:[#allocation16 + $0x6c8] ss:$48 sps:$4 sm:$0xff]   ;;  %v4131_v7 = vmul.f32 %v11957_v32, %v13054_v56  ;;  %v11283_v32 = vld [vmem:[#allocation16 + $0xdc] ss:$48 sps:$4 sm:$0xff]  }
 0x93b   : > { %v4149_v36 = vmul.f32 %v4140_v30, %v4130_v33  ;;  %v4148_v37 = vmul.f32 %v4136_v31, %v4129_v19  ;;  %v4150_v12 = vmul.f32 %v4144_v8, %v4131_v7  ;;  %v11275_v30 = vld [vmem:[#allocation16 + $0x78] ss:$48 sps:$4 sm:$0xff]   ;;  %v11280_v31 = vld [vmem:[#allocation16 + $0xd4] ss:$48 sps:$4 sm:$0xff]   ;;  %v11278_v33 = vld [vmem:[#allocation16 + $0xd0] ss:$48 sps:$4 sm:$0xff]  }
 0x93c   : > { %v11286_v19 = vld [vmem:[#allocation16 + $0x134] ss:$48 sps:$4 sm:$0xff]   ;;  %v11326_v7 = vld [vmem:[#allocation16 + $0x3d0] ss:$48 sps:$4 sm:$0xff]   ;;  %v11329_v8 = vld [vmem:[#allocation16 + $0x3d8] ss:$48 sps:$4 sm:$0xff]  }
 0x93d   : > { %v4168_v38 = vadd.f32 %v4159_v34, %v4149_v36  ;;  %v4167_v39 = vadd.f32 %v4155_v35, %v4148_v37  ;;  %v4169_v56 = vadd.f32 %v4163_v13, %v4150_v12  ;;  %v11281_v34 = vld [vmem:[#allocation16 + $0xd8] ss:$48 sps:$4 sm:$0xff]   ;;  %v11289_v35 = vld [vmem:[#allocation16 + $0x13c] ss:$48 sps:$4 sm:$0xff]   ;;  %v11284_v36 = vld [vmem:[#allocation16 + $0x130] ss:$48 sps:$4 sm:$0xff]  }
 0x93e   : > { %v11287_v37 = vld [vmem:[#allocation16 + $0x138] ss:$48 sps:$4 sm:$0xff]   ;;  %v11340_v12 = vld [vmem:[#allocation16 + $0x494] ss:$48 sps:$4 sm:$0xff]   ;;  %v11343_v13 = vld [vmem:[#allocation16 + $0x49c] ss:$48 sps:$4 sm:$0xff]  }
 0x93f   : > { %v13073_v40 = vpack.c.bf16 %v4168_v38, %v4168_v38  ;;  %v13075_v46 = vpack.c.bf16 %v4167_v39, %v4167_v39  ;;  %v13088_v25 = vpack.c.bf16 %v4169_v56, %v4169_v56  ;;  %v11292_v38 = vld [vmem:[#allocation16 + $0x194] ss:$48 sps:$4 sm:$0xff]   ;;  %v11295_v39 = vld [vmem:[#allocation16 + $0x19c] ss:$48 sps:$4 sm:$0xff]  }
 0x940   : > { %v11346_v56 = vld [vmem:[#allocation16 + $0x4f4] ss:$48 sps:$4 sm:$0xff]  }
 0x941   : > { %5997 = vmatprep.mubr.bf16.mxu0 %v13073_v40  ;;  %6079 = vmatprep.mubr.bf16.mxu1 %v13073_v40 }
 0x942   : > { %5998 = vmatmul.mubr.bf16.vlgmr.msra.gmra.mrb[36].mxu0 %v13075_v46  ;;  %6080 = vmatmul.mubr.bf16.vlgmr.msra.gmra.mrb[36].mxu1 %v13075_v46 }
 0x943   : > { %6007 = vmatpush1.bf16.msra.mxu0 %v11218_v44  ;;  %6089 = vmatpush1.bf16.msra.mxu1 %v11221_v45  ;;  %v11290_v44 = vld [vmem:[#allocation16 + $0x190] ss:$48 sps:$4 sm:$0xff]   ;;  %v11293_v45 = vld [vmem:[#allocation16 + $0x198] ss:$48 sps:$4 sm:$0xff]  }
 0x944   : > { %6008 = vmatprep.subr.bf16.mxu0 %v11226_v47  ;;  %6090 = vmatprep.subr.bf16.mxu1 %v11229_v49  ;;  %v11298_v47 = vld [vmem:[#allocation16 + $0x1f4] ss:$48 sps:$4 sm:$0xff]   ;;  %v11301_v49 = vld [vmem:[#allocation16 + $0x1fc] ss:$48 sps:$4 sm:$0xff]  }
 0x945   : > { %6038 = vmatprep.mubr.bf16.mxu0 %v12407_v48  ;;  %6120 = vmatprep.mubr.bf16.mxu1 %v12407_v48 }
 0x947   : > { %6009 = vmatpush1.bf16.msra.mxu0 %v11224_v50  ;;  %6091 = vmatpush1.bf16.msra.mxu1 %v11227_v52  ;;  %v11296_v50 = vld [vmem:[#allocation16 + $0x1f0] ss:$48 sps:$4 sm:$0xff]   ;;  %v11299_v52 = vld [vmem:[#allocation16 + $0x1f8] ss:$48 sps:$4 sm:$0xff]  }
 0x948   : > { %6010 = vmatprep.subr.bf16.mxu0 %v11232_v53  ;;  %6092 = vmatprep.subr.bf16.mxu1 %v11235_v54  ;;  %v11304_v53 = vld [vmem:[#allocation16 + $0x254] ss:$48 sps:$4 sm:$0xff]   ;;  %v11307_v54 = vld [vmem:[#allocation16 + $0x25c] ss:$48 sps:$4 sm:$0xff]  }
 0x94b   : > { %6011 = vmatpush1.bf16.msra.mxu0 %v11230_v55  ;;  %6093 = vmatpush1.bf16.msra.mxu1 %v11233_v18  ;;  %v11302_v55 = vld [vmem:[#allocation16 + $0x250] ss:$48 sps:$4 sm:$0xff]   ;;  %v11305_v18 = vld [vmem:[#allocation16 + $0x258] ss:$48 sps:$4 sm:$0xff]  }
 0x94c   : > { %6012 = vmatprep.subr.bf16.mxu0 %v11238_v57  ;;  %6094 = vmatprep.subr.bf16.mxu1 %v11241_v58  ;;  %v11310_v57 = vld [vmem:[#allocation16 + $0x2b4] ss:$48 sps:$4 sm:$0xff]   ;;  %v11313_v58 = vld [vmem:[#allocation16 + $0x2bc] ss:$48 sps:$4 sm:$0xff]  }
 0x94f   : > { %6013 = vmatpush1.bf16.msra.mxu0 %v11236_v60  ;;  %6095 = vmatpush1.bf16.msra.mxu1 %v11239_v61  ;;  %v11308_v60 = vld [vmem:[#allocation16 + $0x2b0] ss:$48 sps:$4 sm:$0xff]   ;;  %v11311_v61 = vld [vmem:[#allocation16 + $0x2b8] ss:$48 sps:$4 sm:$0xff]  }
 0x950   : > { %6014 = vmatprep.subr.bf16.mxu0 %v11244_v62  ;;  %6096 = vmatprep.subr.bf16.mxu1 %v11247_v0  ;;  %v11316_v62 = vld [vmem:[#allocation16 + $0x314] ss:$48 sps:$4 sm:$0xff]   ;;  %v11319_v0 = vld [vmem:[#allocation16 + $0x31c] ss:$48 sps:$4 sm:$0xff]  }
 0x953   : > { %6015 = vmatpush1.bf16.msra.mxu0 %v11242_v1  ;;  %6097 = vmatpush1.bf16.msra.mxu1 %v11245_v20  ;;  %v11314_v1 = vld [vmem:[#allocation16 + $0x310] ss:$48 sps:$4 sm:$0xff]   ;;  %v11317_v20 = vld [vmem:[#allocation16 + $0x318] ss:$48 sps:$4 sm:$0xff]  }
 0x954   : > { %6016 = vmatprep.subr.bf16.mxu0 %v11250_v2  ;;  %6098 = vmatprep.subr.bf16.mxu1 %v11253_v43  ;;  %v11322_v2 = vld [vmem:[#allocation16 + $0x374] ss:$48 sps:$4 sm:$0xff]   ;;  %v11325_v43 = vld [vmem:[#allocation16 + $0x37c] ss:$48 sps:$4 sm:$0xff]  }
 0x957   : > { %6017 = vmatpush1.bf16.msra.mxu0 %v11248_v3  ;;  %6099 = vmatpush1.bf16.msra.mxu1 %v11251_v4  ;;  %v11320_v3 = vld [vmem:[#allocation16 + $0x370] ss:$48 sps:$4 sm:$0xff]   ;;  %v11323_v4 = vld [vmem:[#allocation16 + $0x378] ss:$48 sps:$4 sm:$0xff]  }
 0x958   : > { %6018 = vmatprep.subr.bf16.mxu0 %v11256_v5  ;;  %6100 = vmatprep.subr.bf16.mxu1 %v11259_v6  ;;  %v11328_v5 = vld [vmem:[#allocation16 + $0x3d4] ss:$48 sps:$4 sm:$0xff]   ;;  %v11331_v6 = vld [vmem:[#allocation16 + $0x3dc] ss:$48 sps:$4 sm:$0xff]  }
 0x95b   : > { %6019 = vmatpush1.bf16.msra.mxu0 %v11254_v9  ;;  %6101 = vmatpush1.bf16.msra.mxu1 %v11257_v10  ;;  %v11334_v9 = vld [vmem:[#allocation16 + $0x434] ss:$48 sps:$4 sm:$0xff]   ;;  %v11337_v10 = vld [vmem:[#allocation16 + $0x43c] ss:$48 sps:$4 sm:$0xff]  }
 0x95c   : > { %6020 = vmatprep.subr.bf16.mxu0 %v11262_v11  ;;  %6102 = vmatprep.subr.bf16.mxu1 %v11265_v51  ;;  %v11332_v11 = vld [vmem:[#allocation16 + $0x430] ss:$48 sps:$4 sm:$0xff]   ;;  %v11335_v51 = vld [vmem:[#allocation16 + $0x438] ss:$48 sps:$4 sm:$0xff]  }
 0x95f   : > { %6021 = vmatpush1.bf16.msra.mxu0 %v11260_v14  ;;  %6103 = vmatpush1.bf16.msra.mxu1 %v11263_v16  ;;  %v11338_v14 = vld [vmem:[#allocation16 + $0x490] ss:$48 sps:$4 sm:$0xff]   ;;  %v11341_v16 = vld [vmem:[#allocation16 + $0x498] ss:$48 sps:$4 sm:$0xff]  }
 0x960   : > { %6129 = vmatprep.subr.bf16.mxu0 %v11268_v41  ;;  %6211 = vmatprep.subr.bf16.mxu1 %v11271_v42  ;;  %v11349_v41 = vld [vmem:[#allocation16 + $0x4fc] ss:$48 sps:$4 sm:$0xff]   ;;  %v11344_v42 = vld [vmem:[#allocation16 + $0x4f0] ss:$48 sps:$4 sm:$0xff]  }
 0x962   : > { %6039 = vmatmul.mubr.bf16.vlgmr.msra.gmra.mrb[36].mxu0 %v13088_v25  ;;  %6121 = vmatmul.mubr.bf16.vlgmr.msra.gmra.mrb[36].mxu1 %v13088_v25 }
 0x963   : > { %6130 = vmatpush1.bf16.msra.mxu0 %v11266_v24  ;;  %6161 = vmatprep.mubr.bf16.mxu0 %v13073_v40  ;;  %v11347_v24 = vld [vmem:[#allocation16 + $0x4f8] ss:$48 sps:$4 sm:$0xff]  }
 0x964   : > { %6212 = vmatpush1.bf16.msra.mxu1 %v11269_v26  ;;  %6243 = vmatprep.mubr.bf16.mxu1 %v13073_v40  ;;  %v11352_v26 = vld [vmem:[#allocation16 + $0x554] ss:$48 sps:$4 sm:$0xff]  }
 0x965   : > { %6131 = vmatprep.subr.bf16.mxu0 %v11274_v27  ;;  %6213 = vmatprep.subr.bf16.mxu1 %v11277_v28  ;;  %v11355_v27 = vld [vmem:[#allocation16 + $0x55c] ss:$48 sps:$4 sm:$0xff]   ;;  %v11350_v28 = vld [vmem:[#allocation16 + $0x550] ss:$48 sps:$4 sm:$0xff]  }
 0x967   : > { %6132 = vmatpush1.bf16.msra.mxu0 %v11272_v29  ;;  %v11353_v29 = vld [vmem:[#allocation16 + $0x558] ss:$48 sps:$4 sm:$0xff]  }
 0x968   : > { %6214 = vmatpush1.bf16.msra.mxu1 %v11275_v30  ;;  %6133 = vmatprep.subr.bf16.mxu0 %v11280_v31  ;;  %v11358_v30 = vld [vmem:[#allocation16 + $0x5b4] ss:$48 sps:$4 sm:$0xff]   ;;  %v11361_v31 = vld [vmem:[#allocation16 + $0x5bc] ss:$48 sps:$4 sm:$0xff]  }
 0x969   : > { %6215 = vmatprep.subr.bf16.mxu1 %v11283_v32  ;;  %v11356_v32 = vld [vmem:[#allocation16 + $0x5b0] ss:$48 sps:$4 sm:$0xff]  }
 0x96b   : > { %6134 = vmatpush1.bf16.msra.mxu0 %v11278_v33  ;;  %v11359_v33 = vld [vmem:[#allocation16 + $0x5b8] ss:$48 sps:$4 sm:$0xff]  }
 0x96c   : > { %6216 = vmatpush1.bf16.msra.mxu1 %v11281_v34  ;;  %6135 = vmatprep.subr.bf16.mxu0 %v11286_v19  ;;  %v11364_v34 = vld [vmem:[#allocation16 + $0x614] ss:$48 sps:$4 sm:$0xff]   ;;  %v11367_v19 = vld [vmem:[#allocation16 + $0x61c] ss:$48 sps:$4 sm:$0xff]  }
 0x96d   : > { %6217 = vmatprep.subr.bf16.mxu1 %v11289_v35  ;;  %v11362_v35 = vld [vmem:[#allocation16 + $0x610] ss:$48 sps:$4 sm:$0xff]  }
 0x96f   : > { %6136 = vmatpush1.bf16.msra.mxu0 %v11284_v36  ;;  %v11365_v36 = vld [vmem:[#allocation16 + $0x618] ss:$48 sps:$4 sm:$0xff]  }
 0x970   : > { %6218 = vmatpush1.bf16.msra.mxu1 %v11287_v37  ;;  %6137 = vmatprep.subr.bf16.mxu0 %v11292_v38  ;;  %v11370_v37 = vld [vmem:[#allocation16 + $0x674] ss:$48 sps:$4 sm:$0xff]   ;;  %v11373_v38 = vld [vmem:[#allocation16 + $0x67c] ss:$48 sps:$4 sm:$0xff]  }
 0x971   : > { %6219 = vmatprep.subr.bf16.mxu1 %v11295_v39  ;;  %v11368_v39 = vld [vmem:[#allocation16 + $0x670] ss:$48 sps:$4 sm:$0xff]  }
 0x973   : > { %6138 = vmatpush1.bf16.msra.mxu0 %v11290_v44  ;;  %v11371_v44 = vld [vmem:[#allocation16 + $0x678] ss:$48 sps:$4 sm:$0xff]  }
 0x974   : > { %6220 = vmatpush1.bf16.msra.mxu1 %v11293_v45  ;;  %6139 = vmatprep.subr.bf16.mxu0 %v11298_v47  ;;  %v11376_v45 = vld [vmem:[#allocation16 + $0x6d4] ss:$48 sps:$4 sm:$0xff]   ;;  %v11379_v47 = vld [vmem:[#allocation16 + $0x6dc] ss:$48 sps:$4 sm:$0xff]  }
 0x975   : > { %6221 = vmatprep.subr.bf16.mxu1 %v11301_v49  ;;  %v11374_v49 = vld [vmem:[#allocation16 + $0x6d0] ss:$48 sps:$4 sm:$0xff]  }
 0x977   : > { %6140 = vmatpush1.bf16.msra.mxu0 %v11296_v50  ;;  %v11377_v50 = vld [vmem:[#allocation16 + $0x6d8] ss:$48 sps:$4 sm:$0xff]  }
 0x978   : > { %6222 = vmatpush1.bf16.msra.mxu1 %v11299_v52  ;;  %6141 = vmatprep.subr.bf16.mxu0 %v11304_v53  ;;  %v11382_v52 = vld [vmem:[#allocation16 + $0x734] ss:$48 sps:$4 sm:$0xff]   ;;  %v11385_v53 = vld [vmem:[#allocation16 + $0x73c] ss:$48 sps:$4 sm:$0xff]  }
 0x979   : > { %6223 = vmatprep.subr.bf16.mxu1 %v11307_v54  ;;  %v11380_v54 = vld [vmem:[#allocation16 + $0x730] ss:$48 sps:$4 sm:$0xff]  }
 0x97b   : > { %6142 = vmatpush1.bf16.msra.mxu0 %v11302_v55  ;;  %v11383_v55 = vld [vmem:[#allocation16 + $0x738] ss:$48 sps:$4 sm:$0xff]  }
 0x97c   : > { %6224 = vmatpush1.bf16.msra.mxu1 %v11305_v18  ;;  %6143 = vmatprep.subr.bf16.mxu0 %v11310_v57  ;;  %v11388_v18 = vld [vmem:[#allocation16 + $0x794] ss:$48 sps:$4 sm:$0xff]   ;;  %v11391_v57 = vld [vmem:[#allocation16 + $0x79c] ss:$48 sps:$4 sm:$0xff]  }
 0x97d   : > { %6225 = vmatprep.subr.bf16.mxu1 %v11313_v58  ;;  %v11386_v58 = vld [vmem:[#allocation16 + $0x790] ss:$48 sps:$4 sm:$0xff]  }
 0x97f   : > { %6144 = vmatpush1.bf16.msra.mxu0 %v11308_v60  ;;  %v11389_v60 = vld [vmem:[#allocation16 + $0x798] ss:$48 sps:$4 sm:$0xff]  }
 0x980   : > { %6226 = vmatpush1.bf16.msra.mxu1 %v11311_v61  ;;  %6145 = vmatprep.subr.bf16.mxu0 %v11316_v62  ;;  %v11394_v61 = vld [vmem:[#allocation16 + $0x7f4] ss:$48 sps:$4 sm:$0xff]   ;;  %v11397_v62 = vld [vmem:[#allocation16 + $0x7fc] ss:$48 sps:$4 sm:$0xff]  }
 0x981   : > { %6227 = vmatprep.subr.bf16.mxu1 %v11319_v0  ;;  %v11392_v0 = vld [vmem:[#allocation16 + $0x7f0] ss:$48 sps:$4 sm:$0xff]  }
 0x983   : > { %6146 = vmatpush1.bf16.msra.mxu0 %v11314_v1  ;;  %v11395_v1 = vld [vmem:[#allocation16 + $0x7f8] ss:$48 sps:$4 sm:$0xff]  }
 0x984   : > { %6228 = vmatpush1.bf16.msra.mxu1 %v11317_v20  ;;  %6147 = vmatprep.subr.bf16.mxu0 %v11322_v2  ;;  %v11400_v20 = vld [vmem:[#allocation16 + $0x854] ss:$48 sps:$4 sm:$0xff]   ;;  %v11403_v2 = vld [vmem:[#allocation16 + $0x85c] ss:$48 sps:$4 sm:$0xff]  }
 0x985   : > { %6229 = vmatprep.subr.bf16.mxu1 %v11325_v43  ;;  %v11398_v43 = vld [vmem:[#allocation16 + $0x850] ss:$48 sps:$4 sm:$0xff]  }
 0x987   : > { %6148 = vmatpush1.bf16.msra.mxu0 %v11320_v3  ;;  %v11401_v3 = vld [vmem:[#allocation16 + $0x858] ss:$48 sps:$4 sm:$0xff]  }
 0x988   : > { %6230 = vmatpush1.bf16.msra.mxu1 %v11323_v4  ;;  %6149 = vmatprep.subr.bf16.mxu0 %v11328_v5  ;;  %v11406_v4 = vld [vmem:[#allocation16 + $0x8b4] ss:$48 sps:$4 sm:$0xff]   ;;  %v11409_v5 = vld [vmem:[#allocation16 + $0x8bc] ss:$48 sps:$4 sm:$0xff]  }
 0x989   : > { %6231 = vmatprep.subr.bf16.mxu1 %v11331_v6  ;;  %v11404_v6 = vld [vmem:[#allocation16 + $0x8b0] ss:$48 sps:$4 sm:$0xff]  }
 0x98b   : > { %6150 = vmatpush1.bf16.msra.mxu0 %v11326_v7  ;;  %v11407_v7 = vld [vmem:[#allocation16 + $0x8b8] ss:$48 sps:$4 sm:$0xff]  }
 0x98c   : > { %6232 = vmatpush1.bf16.msra.mxu1 %v11329_v8  ;;  %6151 = vmatprep.subr.bf16.mxu0 %v11334_v9  ;;  %v11412_v8 = vld [vmem:[#allocation16 + $0x24] ss:$48 sps:$4 sm:$0xff]   ;;  %v11415_v9 = vld [vmem:[#allocation16 + $0x2c] ss:$48 sps:$4 sm:$0xff]  }
 0x98d   : > { %6233 = vmatprep.subr.bf16.mxu1 %v11337_v10  ;;  %v11410_v10 = vld [vmem:[#allocation16 + $0x20] ss:$48 sps:$4 sm:$0xff]  }
 0x98f   : > { %6152 = vmatpush1.bf16.msra.mxu0 %v11332_v11  ;;  %v11413_v11 = vld [vmem:[#allocation16 + $0x28] ss:$48 sps:$4 sm:$0xff]  }
 0x990   : > { %6234 = vmatpush1.bf16.msra.mxu1 %v11335_v51  ;;  %6153 = vmatprep.subr.bf16.mxu0 %v11340_v12  ;;  %v11418_v51 = vld [vmem:[#allocation16 + $0x84] ss:$48 sps:$4 sm:$0xff]   ;;  %v11421_v12 = vld [vmem:[#allocation16 + $0x8c] ss:$48 sps:$4 sm:$0xff]  }
 0x991   : > { %6235 = vmatprep.subr.bf16.mxu1 %v11343_v13  ;;  %v11416_v13 = vld [vmem:[#allocation16 + $0x80] ss:$48 sps:$4 sm:$0xff]  }
 0x993   : > { %6154 = vmatpush1.bf16.msra.mxu0 %v11338_v14  ;;  %v11419_v14 = vld [vmem:[#allocation16 + $0x88] ss:$48 sps:$4 sm:$0xff]  }
 0x994   : > { %6236 = vmatpush1.bf16.msra.mxu1 %v11341_v16  ;;  %6155 = vmatprep.subr.bf16.mxu0 %v11346_v56  ;;  %v11424_v16 = vld [vmem:[#allocation16 + $0xe4] ss:$48 sps:$4 sm:$0xff]   ;;  %v11427_v56 = vld [vmem:[#allocation16 + $0xec] ss:$48 sps:$4 sm:$0xff]  }
 0x995   : > { %6237 = vmatprep.subr.bf16.mxu1 %v11349_v41  ;;  %v11422_v41 = vld [vmem:[#allocation16 + $0xe0] ss:$48 sps:$4 sm:$0xff]  }
 0x997   : > { %6156 = vmatpush1.bf16.msra.mxu0 %v11344_v42  ;;  %v11425_v42 = vld [vmem:[#allocation16 + $0xe8] ss:$48 sps:$4 sm:$0xff]  }
 0x998   : > { %6238 = vmatpush1.bf16.msra.mxu1 %v11347_v24  ;;  %6157 = vmatprep.subr.bf16.mxu0 %v11352_v26  ;;  %v11430_v24 = vld [vmem:[#allocation16 + $0x144] ss:$48 sps:$4 sm:$0xff]   ;;  %v11433_v26 = vld [vmem:[#allocation16 + $0x14c] ss:$48 sps:$4 sm:$0xff]  }
 0x999   : > { %6239 = vmatprep.subr.bf16.mxu1 %v11355_v27  ;;  %v11428_v27 = vld [vmem:[#allocation16 + $0x140] ss:$48 sps:$4 sm:$0xff]  }
 0x99b   : > { %6158 = vmatpush1.bf16.msra.mxu0 %v11350_v28  ;;  %v11431_v28 = vld [vmem:[#allocation16 + $0x148] ss:$48 sps:$4 sm:$0xff]  }
 0x99c   : > { %6240 = vmatpush1.bf16.msra.mxu1 %v11353_v29  ;;  %6159 = vmatprep.subr.bf16.mxu0 %v11358_v30  ;;  %v11436_v29 = vld [vmem:[#allocation16 + $0x1a4] ss:$48 sps:$4 sm:$0xff]   ;;  %v11439_v30 = vld [vmem:[#allocation16 + $0x1ac] ss:$48 sps:$4 sm:$0xff]  }
 0x99d   : > { %6241 = vmatprep.subr.bf16.mxu1 %v11361_v31  ;;  %v11437_v31 = vld [vmem:[#allocation16 + $0x1a8] ss:$48 sps:$4 sm:$0xff]  }
 0x99f   : > { %6160 = vmatpush1.bf16.msra.mxu0 %v11356_v32  ;;  %v11442_v32 = vld [vmem:[#allocation16 + $0x204] ss:$48 sps:$4 sm:$0xff]  }
 0x9a0   : > { %6242 = vmatpush1.bf16.msra.mxu1 %v11359_v33  ;;  %6170 = vmatprep.subr.bf16.mxu0 %v11364_v34  ;;  %v11445_v33 = vld [vmem:[#allocation16 + $0x20c] ss:$48 sps:$4 sm:$0xff]   ;;  %v11440_v34 = vld [vmem:[#allocation16 + $0x200] ss:$48 sps:$4 sm:$0xff]  }
 0x9a1   : > { %6252 = vmatprep.subr.bf16.mxu1 %v11367_v19  ;;  %v11443_v19 = vld [vmem:[#allocation16 + $0x208] ss:$48 sps:$4 sm:$0xff]  }
 0x9a2   : > { %6162 = vmatmul.mubr.bf16.vlgmr.msra.gmra.mrb[40].mxu0 %v13075_v46 }
 0x9a3   : > { %6244 = vmatmul.mubr.bf16.vlgmr.msra.gmra.mrb[40].mxu1 %v13075_v46  ;;  %6171 = vmatpush1.bf16.msra.mxu0 %v11362_v35  ;;  %v11448_v35 = vld [vmem:[#allocation16 + $0x264] ss:$48 sps:$4 sm:$0xff]  }
 0x9a4   : > { %6253 = vmatpush1.bf16.msra.mxu1 %v11365_v36  ;;  %6172 = vmatprep.subr.bf16.mxu0 %v11370_v37  ;;  %v11451_v36 = vld [vmem:[#allocation16 + $0x26c] ss:$48 sps:$4 sm:$0xff]   ;;  %v11446_v37 = vld [vmem:[#allocation16 + $0x260] ss:$48 sps:$4 sm:$0xff]  }
 0x9a5   : > { %6254 = vmatprep.subr.bf16.mxu1 %v11373_v38  ;;  %6202 = vmatprep.mubr.bf16.mxu0 %v12407_v48  ;;  %v11449_v38 = vld [vmem:[#allocation16 + $0x268] ss:$48 sps:$4 sm:$0xff]  }
 0x9a6   : > { %6284 = vmatprep.mubr.bf16.mxu1 %v12407_v48 }
 0x9a7   : > { %6173 = vmatpush1.bf16.msra.mxu0 %v11368_v39  ;;  %v11454_v39 = vld [vmem:[#allocation16 + $0x2c4] ss:$48 sps:$4 sm:$0xff]  }
 0x9a8   : > { %6255 = vmatpush1.bf16.msra.mxu1 %v11371_v44  ;;  %6174 = vmatprep.subr.bf16.mxu0 %v11376_v45  ;;  %v11457_v44 = vld [vmem:[#allocation16 + $0x2cc] ss:$48 sps:$4 sm:$0xff]   ;;  %v11452_v45 = vld [vmem:[#allocation16 + $0x2c0] ss:$48 sps:$4 sm:$0xff]  }
 0x9a9   : > { %6256 = vmatprep.subr.bf16.mxu1 %v11379_v47  ;;  %v11455_v47 = vld [vmem:[#allocation16 + $0x2c8] ss:$48 sps:$4 sm:$0xff]  }
 0x9ab   : > { %6175 = vmatpush1.bf16.msra.mxu0 %v11374_v49  ;;  %v11460_v49 = vld [vmem:[#allocation16 + $0x324] ss:$48 sps:$4 sm:$0xff]  }
 0x9ac   : > { %6257 = vmatpush1.bf16.msra.mxu1 %v11377_v50  ;;  %6176 = vmatprep.subr.bf16.mxu0 %v11382_v52  ;;  %v11463_v50 = vld [vmem:[#allocation16 + $0x32c] ss:$48 sps:$4 sm:$0xff]   ;;  %v11458_v52 = vld [vmem:[#allocation16 + $0x320] ss:$48 sps:$4 sm:$0xff]  }
 0x9ad   : > { %6258 = vmatprep.subr.bf16.mxu1 %v11385_v53  ;;  %v11461_v53 = vld [vmem:[#allocation16 + $0x328] ss:$48 sps:$4 sm:$0xff]  }
 0x9af   : > { %6177 = vmatpush1.bf16.msra.mxu0 %v11380_v54  ;;  %v11466_v54 = vld [vmem:[#allocation16 + $0x384] ss:$48 sps:$4 sm:$0xff]  }
 0x9b0   : > { %6259 = vmatpush1.bf16.msra.mxu1 %v11383_v55  ;;  %6178 = vmatprep.subr.bf16.mxu0 %v11388_v18  ;;  %v11469_v55 = vld [vmem:[#allocation16 + $0x38c] ss:$48 sps:$4 sm:$0xff]   ;;  %v11464_v18 = vld [vmem:[#allocation16 + $0x380] ss:$48 sps:$4 sm:$0xff]  }
 0x9b1   : > { %6260 = vmatprep.subr.bf16.mxu1 %v11391_v57  ;;  %v11467_v57 = vld [vmem:[#allocation16 + $0x388] ss:$48 sps:$4 sm:$0xff]  }
 0x9b3   : > { %6179 = vmatpush1.bf16.msra.mxu0 %v11386_v58  ;;  %v11472_v58 = vld [vmem:[#allocation16 + $0x3e4] ss:$48 sps:$4 sm:$0xff]  }
 0x9b4   : > { %6261 = vmatpush1.bf16.msra.mxu1 %v11389_v60  ;;  %6180 = vmatprep.subr.bf16.mxu0 %v11394_v61  ;;  %v11475_v60 = vld [vmem:[#allocation16 + $0x3ec] ss:$48 sps:$4 sm:$0xff]   ;;  %v11470_v61 = vld [vmem:[#allocation16 + $0x3e0] ss:$48 sps:$4 sm:$0xff]  }
 0x9b5   : > { %6262 = vmatprep.subr.bf16.mxu1 %v11397_v62  ;;  %v11473_v62 = vld [vmem:[#allocation16 + $0x3e8] ss:$48 sps:$4 sm:$0xff]  }
 0x9b7   : > { %6181 = vmatpush1.bf16.msra.mxu0 %v11392_v0  ;;  %v11478_v0 = vld [vmem:[#allocation16 + $0x444] ss:$48 sps:$4 sm:$0xff]  }
 0x9b8   : > { %6263 = vmatpush1.bf16.msra.mxu1 %v11395_v1  ;;  %6182 = vmatprep.subr.bf16.mxu0 %v11400_v20  ;;  %v11481_v1 = vld [vmem:[#allocation16 + $0x44c] ss:$48 sps:$4 sm:$0xff]   ;;  %v11476_v20 = vld [vmem:[#allocation16 + $0x440] ss:$48 sps:$4 sm:$0xff]  }
 0x9b9   : > { %6264 = vmatprep.subr.bf16.mxu1 %v11403_v2  ;;  %v11479_v2 = vld [vmem:[#allocation16 + $0x448] ss:$48 sps:$4 sm:$0xff]  }
 0x9bb   : > { %6183 = vmatpush1.bf16.msra.mxu0 %v11398_v43  ;;  %v11484_v43 = vld [vmem:[#allocation16 + $0x4a4] ss:$48 sps:$4 sm:$0xff]  }
 0x9bc   : > { %6265 = vmatpush1.bf16.msra.mxu1 %v11401_v3  ;;  %6184 = vmatprep.subr.bf16.mxu0 %v11406_v4  ;;  %v11487_v3 = vld [vmem:[#allocation16 + $0x4ac] ss:$48 sps:$4 sm:$0xff]   ;;  %v11482_v4 = vld [vmem:[#allocation16 + $0x4a0] ss:$48 sps:$4 sm:$0xff]  }
 0x9bd   : > { %6266 = vmatprep.subr.bf16.mxu1 %v11409_v5  ;;  %v11485_v5 = vld [vmem:[#allocation16 + $0x4a8] ss:$48 sps:$4 sm:$0xff]  }
 0x9bf   : > { %6185 = vmatpush1.bf16.msra.mxu0 %v11404_v6  ;;  %v11490_v6 = vld [vmem:[#allocation16 + $0x504] ss:$48 sps:$4 sm:$0xff]  }
 0x9c0   : > { %6267 = vmatpush1.bf16.msra.mxu1 %v11407_v7  ;;  %6293 = vmatprep.subr.bf16.mxu0 %v11412_v8  ;;  %v11493_v7 = vld [vmem:[#allocation16 + $0x50c] ss:$48 sps:$4 sm:$0xff]   ;;  %v11488_v8 = vld [vmem:[#allocation16 + $0x500] ss:$48 sps:$4 sm:$0xff]  }
 0x9c1   : > { %6375 = vmatprep.subr.bf16.mxu1 %v11415_v9  ;;  %v11491_v9 = vld [vmem:[#allocation16 + $0x508] ss:$48 sps:$4 sm:$0xff]  }
 0x9c2   : > { %6203 = vmatmul.mubr.bf16.vlgmr.msra.gmra.mrb[40].mxu0 %v13088_v25 }
 0x9c3   : > { %6285 = vmatmul.mubr.bf16.vlgmr.msra.gmra.mrb[40].mxu1 %v13088_v25  ;;  %6294 = vmatpush1.bf16.msra.mxu0 %v11410_v10  ;;  %v11496_v10 = vld [vmem:[#allocation16 + $0x564] ss:$48 sps:$4 sm:$0xff]  }
 0x9c4   : > { %6325 = vmatprep.mubr.bf16.mxu0 %v13073_v40  ;;  %6376 = vmatpush1.bf16.msra.mxu1 %v11413_v11  ;;  %v11499_v11 = vld [vmem:[#allocation16 + $0x56c] ss:$48 sps:$4 sm:$0xff]  }
 0x9c5   : > { %6407 = vmatprep.mubr.bf16.mxu1 %v13073_v40  ;;  %6295 = vmatprep.subr.bf16.mxu0 %v11418_v51  ;;  %v11434_v40 = vld [vmem:[#allocation16 + $0x1a0] ss:$48 sps:$4 sm:$0xff]  }
 0x9c6   : > { %6377 = vmatprep.subr.bf16.mxu1 %v11421_v12  ;;  %v11494_v51 = vld [vmem:[#allocation16 + $0x560] ss:$48 sps:$4 sm:$0xff]   ;;  %v11497_v12 = vld [vmem:[#allocation16 + $0x568] ss:$48 sps:$4 sm:$0xff]  }
 0x9c7   : > { %6296 = vmatpush1.bf16.msra.mxu0 %v11416_v13  ;;  %v11502_v13 = vld [vmem:[#allocation16 + $0x5c4] ss:$48 sps:$4 sm:$0xff]  }
 0x9c8   : > { %6378 = vmatpush1.bf16.msra.mxu1 %v11419_v14  ;;  %6297 = vmatprep.subr.bf16.mxu0 %v11424_v16  ;;  %v11505_v14 = vld [vmem:[#allocation16 + $0x5cc] ss:$48 sps:$4 sm:$0xff]   ;;  %v11500_v16 = vld [vmem:[#allocation16 + $0x5c0] ss:$48 sps:$4 sm:$0xff]  }
 0x9c9   : > { %6379 = vmatprep.subr.bf16.mxu1 %v11427_v56  ;;  %v11503_v56 = vld [vmem:[#allocation16 + $0x5c8] ss:$48 sps:$4 sm:$0xff]  }
 0x9cb   : > { %6298 = vmatpush1.bf16.msra.mxu0 %v11422_v41  ;;  %v11508_v41 = vld [vmem:[#allocation16 + $0x624] ss:$48 sps:$4 sm:$0xff]  }
 0x9cc   : > { %6380 = vmatpush1.bf16.msra.mxu1 %v11425_v42  ;;  %6299 = vmatprep.subr.bf16.mxu0 %v11430_v24  ;;  %v11511_v42 = vld [vmem:[#allocation16 + $0x62c] ss:$48 sps:$4 sm:$0xff]   ;;  %v11506_v24 = vld [vmem:[#allocation16 + $0x620] ss:$48 sps:$4 sm:$0xff]  }
 0x9cd   : > { %6381 = vmatprep.subr.bf16.mxu1 %v11433_v26  ;;  %v11509_v26 = vld [vmem:[#allocation16 + $0x628] ss:$48 sps:$4 sm:$0xff]  }
 0x9cf   : > { %6300 = vmatpush1.bf16.msra.mxu0 %v11428_v27  ;;  %v11514_v27 = vld [vmem:[#allocation16 + $0x684] ss:$48 sps:$4 sm:$0xff]  }
 0x9d0   : > { %6382 = vmatpush1.bf16.msra.mxu1 %v11431_v28  ;;  %6301 = vmatprep.subr.bf16.mxu0 %v11436_v29  ;;  %v11517_v28 = vld [vmem:[#allocation16 + $0x68c] ss:$48 sps:$4 sm:$0xff]   ;;  %v11512_v29 = vld [vmem:[#allocation16 + $0x680] ss:$48 sps:$4 sm:$0xff]  }
 0x9d1   : > { %6383 = vmatprep.subr.bf16.mxu1 %v11439_v30  ;;  %v11515_v30 = vld [vmem:[#allocation16 + $0x688] ss:$48 sps:$4 sm:$0xff]  }
 0x9d3   : > { %6302 = vmatpush1.bf16.msra.mxu0 %v11434_v40  ;;  %v11520_v40 = vld [vmem:[#allocation16 + $0x6e4] ss:$48 sps:$4 sm:$0xff]  }
 0x9d4   : > { %6384 = vmatpush1.bf16.msra.mxu1 %v11437_v31  ;;  %6303 = vmatprep.subr.bf16.mxu0 %v11442_v32  ;;  %v11523_v31 = vld [vmem:[#allocation16 + $0x6ec] ss:$48 sps:$4 sm:$0xff]   ;;  %v11518_v32 = vld [vmem:[#allocation16 + $0x6e0] ss:$48 sps:$4 sm:$0xff]  }
 0x9d5   : > { %6385 = vmatprep.subr.bf16.mxu1 %v11445_v33  ;;  %v11521_v33 = vld [vmem:[#allocation16 + $0x6e8] ss:$48 sps:$4 sm:$0xff]  }
 0x9d7   : > { %6304 = vmatpush1.bf16.msra.mxu0 %v11440_v34  ;;  %v11526_v34 = vld [vmem:[#allocation16 + $0x744] ss:$48 sps:$4 sm:$0xff]  }
 0x9d8   : > { %6386 = vmatpush1.bf16.msra.mxu1 %v11443_v19  ;;  %6305 = vmatprep.subr.bf16.mxu0 %v11448_v35  ;;  %v11524_v19 = vld [vmem:[#allocation16 + $0x740] ss:$48 sps:$4 sm:$0xff]   ;;  %v11527_v35 = vld [vmem:[#allocation16 + $0x748] ss:$48 sps:$4 sm:$0xff]  }
 0x9d9   : > { %6387 = vmatprep.subr.bf16.mxu1 %v11451_v36  ;;  %v11532_v36 = vld [vmem:[#allocation16 + $0x7a4] ss:$48 sps:$4 sm:$0xff]  }
 0x9db   : > { %6306 = vmatpush1.bf16.msra.mxu0 %v11446_v37  ;;  %v11535_v37 = vld [vmem:[#allocation16 + $0x7ac] ss:$48 sps:$4 sm:$0xff]  }
 0x9dc   : > { %6388 = vmatpush1.bf16.msra.mxu1 %v11449_v38  ;;  %6307 = vmatprep.subr.bf16.mxu0 %v11454_v39  ;;  %v11530_v38 = vld [vmem:[#allocation16 + $0x7a0] ss:$48 sps:$4 sm:$0xff]   ;;  %v11538_v39 = vld [vmem:[#allocation16 + $0x804] ss:$48 sps:$4 sm:$0xff]  }
 0x9dd   : > { %6389 = vmatprep.subr.bf16.mxu1 %v11457_v44  ;;  %v11541_v44 = vld [vmem:[#allocation16 + $0x80c] ss:$48 sps:$4 sm:$0xff]  }
 0x9df   : > { %6308 = vmatpush1.bf16.msra.mxu0 %v11452_v45  ;;  %v11536_v45 = vld [vmem:[#allocation16 + $0x800] ss:$48 sps:$4 sm:$0xff]  }
 0x9e0   : > { %6390 = vmatpush1.bf16.msra.mxu1 %v11455_v47  ;;  %6309 = vmatprep.subr.bf16.mxu0 %v11460_v49  ;;  %v11539_v47 = vld [vmem:[#allocation16 + $0x808] ss:$48 sps:$4 sm:$0xff]   ;;  %v11544_v49 = vld [vmem:[#allocation16 + $0x864] ss:$48 sps:$4 sm:$0xff]  }
 0x9e1   : > { %6391 = vmatprep.subr.bf16.mxu1 %v11463_v50  ;;  %v11547_v50 = vld [vmem:[#allocation16 + $0x86c] ss:$48 sps:$4 sm:$0xff]  }
 0x9e3   : > { %6310 = vmatpush1.bf16.msra.mxu0 %v11458_v52  ;;  %v11542_v52 = vld [vmem:[#allocation16 + $0x860] ss:$48 sps:$4 sm:$0xff]  }
 0x9e4   : > { %6392 = vmatpush1.bf16.msra.mxu1 %v11461_v53  ;;  %6311 = vmatprep.subr.bf16.mxu0 %v11466_v54  ;;  %v11545_v53 = vld [vmem:[#allocation16 + $0x868] ss:$48 sps:$4 sm:$0xff]   ;;  %v11550_v54 = vld [vmem:[#allocation16 + $0x8c4] ss:$48 sps:$4 sm:$0xff]  }
 0x9e5   : > { %6393 = vmatprep.subr.bf16.mxu1 %v11469_v55  ;;  %v11553_v55 = vld [vmem:[#allocation16 + $0x8cc] ss:$48 sps:$4 sm:$0xff]  }
 0x9e7   : > { %6312 = vmatpush1.bf16.msra.mxu0 %v11464_v18  ;;  %v11548_v18 = vld [vmem:[#allocation16 + $0x8c0] ss:$48 sps:$4 sm:$0xff]  }
 0x9e8   : > { %6394 = vmatpush1.bf16.msra.mxu1 %v11467_v57  ;;  %6313 = vmatprep.subr.bf16.mxu0 %v11472_v58  ;;  %v11551_v57 = vld [vmem:[#allocation16 + $0x8c8] ss:$48 sps:$4 sm:$0xff]   ;;  %v11556_v58 = vld [vmem:[#allocation19 + $0x4] ss:$12 sps:$4 sm:$0xff]  }
 0x9e9   : > { %6395 = vmatprep.subr.bf16.mxu1 %v11475_v60  ;;  %v11559_v60 = vld [vmem:[#allocation19 + $0x184] ss:$12 sps:$4 sm:$0xff]  }
 0x9eb   : > { %6314 = vmatpush1.bf16.msra.mxu0 %v11470_v61  ;;  %v11554_v61 = vld [vmem:[#allocation19] ss:$12 sps:$4 sm:$0xff]  }
 0x9ec   : > { %6396 = vmatpush1.bf16.msra.mxu1 %v11473_v62  ;;  %6315 = vmatprep.subr.bf16.mxu0 %v11478_v0  ;;  %v11557_v62 = vld [vmem:[#allocation19 + $0x180] ss:$12 sps:$4 sm:$0xff]   ;;  %v11562_v0 = vld [vmem:[#allocation19 + $0x1c] ss:$12 sps:$4 sm:$0xff]  }
 0x9ed   : > { %6397 = vmatprep.subr.bf16.mxu1 %v11481_v1  ;;  %v11565_v1 = vld [vmem:[#allocation19 + $0x19c] ss:$12 sps:$4 sm:$0xff]  }
 0x9ef   : > { %6316 = vmatpush1.bf16.msra.mxu0 %v11476_v20  ;;  %v11560_v20 = vld [vmem:[#allocation19 + $0x18] ss:$12 sps:$4 sm:$0xff]  }
 0x9f0   : > { %6398 = vmatpush1.bf16.msra.mxu1 %v11479_v2  ;;  %6317 = vmatprep.subr.bf16.mxu0 %v11484_v43  ;;  %v11563_v2 = vld [vmem:[#allocation19 + $0x198] ss:$12 sps:$4 sm:$0xff]   ;;  %v11568_v43 = vld [vmem:[#allocation19 + $0x34] ss:$12 sps:$4 sm:$0xff]  }
 0x9f1   : > { %6399 = vmatprep.subr.bf16.mxu1 %v11487_v3  ;;  %v11571_v3 = vld [vmem:[#allocation19 + $0x1b4] ss:$12 sps:$4 sm:$0xff]  }
 0x9f3   : > { %6318 = vmatpush1.bf16.msra.mxu0 %v11482_v4  ;;  %v11566_v4 = vld [vmem:[#allocation19 + $0x30] ss:$12 sps:$4 sm:$0xff]  }
 0x9f4   : > { %6400 = vmatpush1.bf16.msra.mxu1 %v11485_v5  ;;  %6319 = vmatprep.subr.bf16.mxu0 %v11490_v6  ;;  %v11569_v5 = vld [vmem:[#allocation19 + $0x1b0] ss:$12 sps:$4 sm:$0xff]   ;;  %v11574_v6 = vld [vmem:[#allocation19 + $0x4c] ss:$12 sps:$4 sm:$0xff]  }
 0x9f5   : > { %6401 = vmatprep.subr.bf16.mxu1 %v11493_v7  ;;  %v11577_v7 = vld [vmem:[#allocation19 + $0x1cc] ss:$12 sps:$4 sm:$0xff]  }
 0x9f7   : > { %6320 = vmatpush1.bf16.msra.mxu0 %v11488_v8  ;;  %v11572_v8 = vld [vmem:[#allocation19 + $0x48] ss:$12 sps:$4 sm:$0xff]  }
 0x9f8   : > { %6402 = vmatpush1.bf16.msra.mxu1 %v11491_v9  ;;  %6321 = vmatprep.subr.bf16.mxu0 %v11496_v10  ;;  %v11580_v9 = vld [vmem:[#allocation19 + $0x64] ss:$12 sps:$4 sm:$0xff]  }
 0x9f9   : > { %6403 = vmatprep.subr.bf16.mxu1 %v11499_v11  ;;  %v11583_v10 = vld [vmem:[#allocation19 + $0x1e4] ss:$12 sps:$4 sm:$0xff]   ;;  %v11578_v11 = vld [vmem:[#allocation19 + $0x60] ss:$12 sps:$4 sm:$0xff]  }
 0x9fb   : > { %6322 = vmatpush1.bf16.msra.mxu0 %v11494_v51  ;;  %v4479_v51 = vsub.s32 3, %v12890_v21 }
 0x9fc   : > { %6404 = vmatpush1.bf16.msra.mxu1 %v11497_v12  ;;  %6323 = vmatprep.subr.bf16.mxu0 %v11502_v13  ;;  %v11581_v12 = vld [vmem:[#allocation19 + $0x1e0] ss:$12 sps:$4 sm:$0xff]   ;;  %v13109_v13 = vld [vmem:[#allocation17] sm:$0xff] }
 0x9fd   : > { %6405 = vmatprep.subr.bf16.mxu1 %v11505_v14  ;;  %v11586_v14 = vld [vmem:[#allocation19 + $0x7c] ss:$12 sps:$4 sm:$0xff]  }
 0x9ff   : > { %6324 = vmatpush1.bf16.msra.mxu0 %v11500_v16  ;;  %v11589_v16 = vld [vmem:[#allocation19 + $0x1fc] ss:$12 sps:$4 sm:$0xff]  }
 0xa00   : > { %6406 = vmatpush1.bf16.msra.mxu1 %v11503_v56  ;;  %6334 = vmatprep.subr.bf16.mxu0 %v11508_v41  ;;  %v4472_v56 = vrot.slane %v13109_v13, %v12893_v22  ;;  %v4480_v41 = vrot.slane %v13109_v13, %v4479_v51 }
 0xa01   : > { %6416 = vmatprep.subr.bf16.mxu1 %v11511_v42  ;;  %v11584_v42 = vld [vmem:[#allocation19 + $0x78] ss:$12 sps:$4 sm:$0xff]  }
 0xa02   : > { %6326 = vmatmul.mubr.bf16.vlgmr.msra.gmra.mrb[44].mxu0 %v13075_v46 }
 0xa03   : > { %6408 = vmatmul.mubr.bf16.vlgmr.msra.gmra.mrb[44].mxu1 %v13075_v46  ;;  %6335 = vmatpush1.bf16.msra.mxu0 %v11506_v24  ;;  %v11529_v46 = vld [vmem:[#allocation16 + $0x74c] ss:$48 sps:$4 sm:$0xff]   ;;  %v11587_v24 = vld [vmem:[#allocation19 + $0x1f8] ss:$12 sps:$4 sm:$0xff]  }
 0xa04   : > { %6417 = vmatpush1.bf16.msra.mxu1 %v11509_v26  ;;  %6336 = vmatprep.subr.bf16.mxu0 %v11514_v27  ;;  %v11592_v26 = vld [vmem:[#allocation19 + $0x94] ss:$12 sps:$4 sm:$0xff]  }
 0xa05   : > { %6418 = vmatprep.subr.bf16.mxu1 %v11517_v28  ;;  %6366 = vmatprep.mubr.bf16.mxu0 %v12407_v48 }
 0xa06   : > { %6448 = vmatprep.mubr.bf16.mxu1 %v12407_v48  ;;  %v11533_v48 = vld [vmem:[#allocation16 + $0x7a8] ss:$48 sps:$4 sm:$0xff]  }
 0xa07   : > { %6337 = vmatpush1.bf16.msra.mxu0 %v11512_v29  ;;  %v11595_v29 = vld [vmem:[#allocation19 + $0x214] ss:$12 sps:$4 sm:$0xff]  }
 0xa08   : > { %6419 = vmatpush1.bf16.msra.mxu1 %v11515_v30  ;;  %6338 = vmatprep.subr.bf16.mxu0 %v11520_v40 }
 0xa09   : > { %6420 = vmatprep.subr.bf16.mxu1 %v11523_v31 }
 0xa0b   : > { %6339 = vmatpush1.bf16.msra.mxu0 %v11518_v32 }
 0xa0c   : > { %6421 = vmatpush1.bf16.msra.mxu1 %v11521_v33  ;;  %6340 = vmatprep.subr.bf16.mxu0 %v11526_v34 }
 0xa0d   : > { %6422 = vmatprep.subr.bf16.mxu1 %v11529_v46  ;;  %v11590_v46 = vld [vmem:[#allocation19 + $0x90] ss:$12 sps:$4 sm:$0xff]  }
 0xa0f   : > { %6341 = vmatpush1.bf16.msra.mxu0 %v11524_v19 }
 0xa10   : > { %6423 = vmatpush1.bf16.msra.mxu1 %v11527_v35  ;;  %6342 = vmatprep.subr.bf16.mxu0 %v11532_v36  ;;  %v11593_v36 = vld [vmem:[#allocation19 + $0x210] ss:$12 sps:$4 sm:$0xff]  }
 0xa11   : > { %6424 = vmatprep.subr.bf16.mxu1 %v11535_v37  ;;  %v11598_v37 = vld [vmem:[#allocation19 + $0xac] ss:$12 sps:$4 sm:$0xff]  }
 0xa13   : > { %6343 = vmatpush1.bf16.msra.mxu0 %v11530_v38 }
 0xa14   : > { %6425 = vmatpush1.bf16.msra.mxu1 %v11533_v48  ;;  %6344 = vmatprep.subr.bf16.mxu0 %v11538_v39  ;;  %v11601_v39 = vld [vmem:[#allocation19 + $0x22c] ss:$12 sps:$4 sm:$0xff]  }
 0xa15   : > { %6426 = vmatprep.subr.bf16.mxu1 %v11541_v44 }
 0xa17   : > { %6345 = vmatpush1.bf16.msra.mxu0 %v11536_v45 }
 0xa18   : > { %6427 = vmatpush1.bf16.msra.mxu1 %v11539_v47  ;;  %6346 = vmatprep.subr.bf16.mxu0 %v11544_v49  ;;  %v11596_v47 = vld [vmem:[#allocation19 + $0xa8] ss:$12 sps:$4 sm:$0xff]  }
 0xa19   : > { %6428 = vmatprep.subr.bf16.mxu1 %v11547_v50  ;;  %v11599_v49 = vld [vmem:[#allocation19 + $0x228] ss:$12 sps:$4 sm:$0xff]   ;;  %v11604_v50 = vld [vmem:[#allocation19 + $0xc4] ss:$12 sps:$4 sm:$0xff]  }
 0xa1b   : > { %6347 = vmatpush1.bf16.msra.mxu0 %v11542_v52  ;;  %v11607_v52 = vld [vmem:[#allocation19 + $0x244] ss:$12 sps:$4 sm:$0xff]  }
 0xa1c   : > { %6429 = vmatpush1.bf16.msra.mxu1 %v11545_v53  ;;  %6348 = vmatprep.subr.bf16.mxu0 %v11550_v54  ;;  %v11602_v53 = vld [vmem:[#allocation19 + $0xc0] ss:$12 sps:$4 sm:$0xff]  }
 0xa1d   : > { %6430 = vmatprep.subr.bf16.mxu1 %v11553_v55  ;;  %v11605_v54 = vld [vmem:[#allocation19 + $0x240] ss:$12 sps:$4 sm:$0xff]   ;;  %v11610_v55 = vld [vmem:[#allocation19 + $0xdc] ss:$12 sps:$4 sm:$0xff]  }
 0xa1f   : > { %6349 = vmatpush1.bf16.msra.mxu0 %v11548_v18  ;;  %v11613_v18 = vld [vmem:[#allocation19 + $0x25c] ss:$12 sps:$4 sm:$0xff]  }
 0xa20   : > { %6431 = vmatpush1.bf16.msra.mxu1 %v11551_v57  ;;  %8418 = vmatprep.subr.bf16.mxu0 %v11556_v58  ;;  %v11608_v57 = vld [vmem:[#allocation19 + $0xd8] ss:$12 sps:$4 sm:$0xff]  }
 0xa21   : > { %8459 = vmatprep.subr.bf16.mxu1 %v11559_v60  ;;  %v11611_v58 = vld [vmem:[#allocation19 + $0x258] ss:$12 sps:$4 sm:$0xff]   ;;  %v11616_v60 = vld [vmem:[#allocation19 + $0xf4] ss:$12 sps:$4 sm:$0xff]  }
 0xa22   : > { %6367 = vmatmul.mubr.bf16.vlgmr.msra.gmra.mrb[44].mxu0 %v13088_v25 }
 0xa23   : > { %6449 = vmatmul.mubr.bf16.vlgmr.msra.gmra.mrb[44].mxu1 %v13088_v25  ;;  %8419 = vmatpush1.bf16.msra.mxu0 %v11554_v61  ;;  %v11575_v25 = vld [vmem:[#allocation19 + $0x1c8] ss:$12 sps:$4 sm:$0xff]  }
 0xa24   : > { %8460 = vmatpush1.bf16.msra.mxu1 %v11557_v62  ;;  %8420 = vmatprep.subr.bf16.mxu0 %v11562_v0  ;;  %v11619_v61 = vld [vmem:[#allocation19 + $0x274] ss:$12 sps:$4 sm:$0xff]   ;;  %v11614_v62 = vld [vmem:[#allocation19 + $0xf0] ss:$12 sps:$4 sm:$0xff]  }
 0xa25   : > { %8461 = vmatprep.subr.bf16.mxu1 %v11565_v1  ;;  %v11617_v0 = vld [vmem:[#allocation19 + $0x270] ss:$12 sps:$4 sm:$0xff]   ;;  %v11622_v1 = vld [vmem:[#allocation19 + $0x10c] ss:$12 sps:$4 sm:$0xff]  }
 0xa27   : > { %8421 = vmatpush1.bf16.msra.mxu0 %v11560_v20  ;;  %v11625_v20 = vld [vmem:[#allocation19 + $0x28c] ss:$12 sps:$4 sm:$0xff]  }
 0xa28   : > { %8462 = vmatpush1.bf16.msra.mxu1 %v11563_v2  ;;  %8422 = vmatprep.subr.bf16.mxu0 %v11568_v43  ;;  %v11620_v2 = vld [vmem:[#allocation19 + $0x108] ss:$12 sps:$4 sm:$0xff]  }
 0xa29   : > { %8463 = vmatprep.subr.bf16.mxu1 %v11571_v3  ;;  %v11623_v43 = vld [vmem:[#allocation19 + $0x288] ss:$12 sps:$4 sm:$0xff]   ;;  %v11628_v3 = vld [vmem:[#allocation19 + $0x124] ss:$12 sps:$4 sm:$0xff]  }
 0xa2b   : > { %8423 = vmatpush1.bf16.msra.mxu0 %v11566_v4  ;;  %v11631_v4 = vld [vmem:[#allocation19 + $0x2a4] ss:$12 sps:$4 sm:$0xff]  }
 0xa2c   : > { %8464 = vmatpush1.bf16.msra.mxu1 %v11569_v5  ;;  %8424 = vmatprep.subr.bf16.mxu0 %v11574_v6  ;;  %v11626_v5 = vld [vmem:[#allocation19 + $0x120] ss:$12 sps:$4 sm:$0xff]  }
 0xa2d   : > { %8465 = vmatprep.subr.bf16.mxu1 %v11577_v7  ;;  %v11629_v6 = vld [vmem:[#allocation19 + $0x2a0] ss:$12 sps:$4 sm:$0xff]   ;;  %v11634_v7 = vld [vmem:[#allocation19 + $0x13c] ss:$12 sps:$4 sm:$0xff]  }
 0xa2f   : > { %8425 = vmatpush1.bf16.msra.mxu0 %v11572_v8  ;;  %v11637_v8 = vld [vmem:[#allocation19 + $0x2bc] ss:$12 sps:$4 sm:$0xff]  }
 0xa30   : > { %8466 = vmatpush1.bf16.msra.mxu1 %v11575_v25  ;;  %8426 = vmatprep.subr.bf16.mxu0 %v11580_v9  ;;  %v11632_v25 = vld [vmem:[#allocation19 + $0x138] ss:$12 sps:$4 sm:$0xff]   ;;  %v4468_v9 = vrot.slane %v13109_v13, %v12896_v23 }
 0xa31   : > { %8467 = vmatprep.subr.bf16.mxu1 %v11583_v10  ;;  %v11635_v10 = vld [vmem:[#allocation19 + $0x2b8] ss:$12 sps:$4 sm:$0xff]  }
 0xa33   : > { %8427 = vmatpush1.bf16.msra.mxu0 %v11578_v11  ;;  %v11640_v11 = vld [vmem:[#allocation19 + $0x154] ss:$12 sps:$4 sm:$0xff]  }
 0xa34   : > { %8468 = vmatpush1.bf16.msra.mxu1 %v11581_v12  ;;  %8428 = vmatprep.subr.bf16.mxu0 %v11586_v14  ;;  %v4476_v12 = vrot.slane %v13109_v13, %v12927_v59  ;;  %v11643_v14 = vld [vmem:[#allocation19 + $0x2d4] ss:$12 sps:$4 sm:$0xff]  }
 0xa35   : > { %v13116_v27 = vpop.f32.mrb[36].mxu0  ;;  %v13118_v28 = vpop.f32.mrb[36].mxu1  ;;  %8469 = vmatprep.subr.bf16.mxu1 %v11589_v16  ;;  %v11638_v16 = vld [vmem:[#allocation19 + $0x150] ss:$12 sps:$4 sm:$0xff]  }
 0xa36   : > { %v6042_v30 = vpop.f32.mrb[37].mxu0  ;;  %v6124_v40 = vpop.f32.mrb[37].mxu1 }
 0xa37   : > { %v10335_v31 = vadd.f32 %v6042_v30, %v4472_v56  ;;  %v10337_v32 = vadd.f32 %v6124_v40, %v4480_v41  ;;  %v6044_v33 = vpop.f32.mrb[38].mxu0  ;;  %v6126_v34 = vpop.f32.mrb[38].mxu1  ;;  %8429 = vmatpush1.bf16.msra.mxu0 %v11584_v42  ;;  %v10334_v56 = vadd.f32 %v13116_v27, %v4468_v9  ;;  %v11641_v41 = vld [vmem:[#allocation19 + $0x2d0] ss:$12 sps:$4 sm:$0xff]   ;;  %v11646_v42 = vld [vmem:[#allocation19 + $0x16c] ss:$12 sps:$4 sm:$0xff]  }
 0xa38   : > { %8470 = vmatpush1.bf16.msra.mxu1 %v11587_v24  ;;  %v6045_v19 = vpop.f32.mrb[39].mxu0  ;;  %v6127_v35 = vpop.f32.mrb[39].mxu1  ;;  %8430 = vmatprep.subr.bf16.mxu0 %v11592_v26  ;;  %v10336_v24 = vadd.f32 %v13118_v28, %v4476_v12  ;;  %v11649_v26 = vld [vmem:[#allocation19 + $0x2ec] ss:$12 sps:$4 sm:$0xff]   ;;  %v11647_v40 = vld [vmem:[#allocation19 + $0x2e8] ss:$12 sps:$4 sm:$0xff]  }
 0xa39   : > { %v6458_v38 = vmax.f32 %v10335_v31, 0.0  ;;  %v6460_v48 = vmax.f32 %v10337_v32, 0.0  ;;  %8471 = vmatprep.subr.bf16.mxu1 %v11595_v29  ;;  %v11644_v29 = vld [vmem:[#allocation19 + $0x168] ss:$12 sps:$4 sm:$0xff]   ;;  %v6457_v30 = vmax.f32 %v10334_v56, 0.0 }
 0xa3a   : > { %v11652_v31 = vld [vmem:[#allocation19 + $0x304] ss:$12 sps:$4 sm:$0xff]   ;;  %v6459_v32 = vmax.f32 %v10336_v24, 0.0  ;;  %v11650_v27 = vld [vmem:[#allocation19 + $0x300] ss:$12 sps:$4 sm:$0xff]  }
 0xa3b   : > { %v13120_v44 = vpack.c.bf16 %v6458_v38, %v6458_v38  ;;  %v13122_v45 = vpack.c.bf16 %v6460_v48, %v6460_v48  ;;  %8431 = vmatpush1.bf16.msra.mxu0 %v11590_v46  ;;  %v11655_v33 = vld [vmem:[#allocation19 + $0x484] ss:$12 sps:$4 sm:$0xff]   ;;  %v13132_v34 = vpack.c.bf16 %v6457_v30, %v6457_v30  ;;  %v11653_v46 = vld [vmem:[#allocation19 + $0x480] ss:$12 sps:$4 sm:$0xff]   ;;  %v11658_v28 = vld [vmem:[#allocation19 + $0x31c] ss:$12 sps:$4 sm:$0xff]  }
 0xa3c   : > { %8472 = vmatpush1.bf16.msra.mxu1 %v11593_v36  ;;  %8432 = vmatprep.subr.bf16.mxu0 %v11598_v37  ;;  %v13134_v19 = vpack.c.bf16 %v6459_v32, %v6459_v32  ;;  %v11661_v35 = vld [vmem:[#allocation19 + $0x49c] ss:$12 sps:$4 sm:$0xff]   ;;  %v11656_v36 = vld [vmem:[#allocation19 + $0x318] ss:$12 sps:$4 sm:$0xff]   ;;  %v11664_v38 = vld [vmem:[#allocation19 + $0x334] ss:$12 sps:$4 sm:$0xff]  }
 0xa3d   : > { %8450 = vmatprep.mubr.bf16.mxu0 %v13120_v44  ;;  %8491 = vmatprep.mubr.bf16.mxu1 %v13122_v45  ;;  %v11659_v37 = vld [vmem:[#allocation19 + $0x498] ss:$12 sps:$4 sm:$0xff]   ;;  %v11667_v48 = vld [vmem:[#allocation19 + $0x4b4] ss:$12 sps:$4 sm:$0xff]   ;;  %v11706_v9 = vld [vmem:[#allocation19 + $0x3dc] ss:$12 sps:$4 sm:$0xff]  }
 0xa3e   : > { %8473 = vmatprep.subr.bf16.mxu1 %v11601_v39  ;;  %v11662_v39 = vld [vmem:[#allocation19 + $0x330] ss:$12 sps:$4 sm:$0xff]   ;;  %v11707_v12 = vld [vmem:[#allocation19 + $0x558] ss:$12 sps:$4 sm:$0xff]   ;;  %v4487_v32 = vsub.s32 5, %v12890_v21 }
 0xa3f   : > { %8433 = vmatpush1.bf16.msra.mxu0 %v11596_v47  ;;  %v11665_v47 = vld [vmem:[#allocation19 + $0x4b0] ss:$12 sps:$4 sm:$0xff]   ;;  %v11721_v24 = vld [vmem:[#allocation19 + $0x58c] ss:$12 sps:$4 sm:$0xff]  }
 0xa40   : > { %8474 = vmatpush1.bf16.msra.mxu1 %v11599_v49  ;;  %8434 = vmatprep.subr.bf16.mxu0 %v11604_v50  ;;  %v11670_v49 = vld [vmem:[#allocation19 + $0x34c] ss:$12 sps:$4 sm:$0xff]   ;;  %v11710_v56 = vld [vmem:[#allocation19 + $0x3f0] ss:$12 sps:$4 sm:$0xff]  }
 0xa41   : > { %8475 = vmatprep.subr.bf16.mxu1 %v11607_v52  ;;  %v11673_v50 = vld [vmem:[#allocation19 + $0x4cc] ss:$12 sps:$4 sm:$0xff]   ;;  %v11668_v52 = vld [vmem:[#allocation19 + $0x348] ss:$12 sps:$4 sm:$0xff]   ;;  %v11724_v30 = vld [vmem:[#allocation19 + $0x424] ss:$12 sps:$4 sm:$0xff]  }
 0xa43   : > { %8435 = vmatpush1.bf16.msra.mxu0 %v11602_v53  ;;  %v11671_v53 = vld [vmem:[#allocation19 + $0x4c8] ss:$12 sps:$4 sm:$0xff]  }
 0xa44   : > { %8476 = vmatpush1.bf16.msra.mxu1 %v11605_v54  ;;  %8436 = vmatprep.subr.bf16.mxu0 %v11610_v55  ;;  %v11676_v54 = vld [vmem:[#allocation19 + $0x364] ss:$12 sps:$4 sm:$0xff]  }
 0xa45   : > { %8477 = vmatprep.subr.bf16.mxu1 %v11613_v18  ;;  %v11679_v55 = vld [vmem:[#allocation19 + $0x4e4] ss:$12 sps:$4 sm:$0xff]   ;;  %v11674_v18 = vld [vmem:[#allocation19 + $0x360] ss:$12 sps:$4 sm:$0xff]  }
 0xa47   : > { %8437 = vmatpush1.bf16.msra.mxu0 %v11608_v57  ;;  %v11677_v57 = vld [vmem:[#allocation19 + $0x4e0] ss:$12 sps:$4 sm:$0xff]  }
 0xa48   : > { %8478 = vmatpush1.bf16.msra.mxu1 %v11611_v58  ;;  %8438 = vmatprep.subr.bf16.mxu0 %v11616_v60  ;;  %v11682_v58 = vld [vmem:[#allocation19 + $0x37c] ss:$12 sps:$4 sm:$0xff]  }
 0xa49   : > { %8479 = vmatprep.subr.bf16.mxu1 %v11619_v61  ;;  %v11685_v60 = vld [vmem:[#allocation19 + $0x4fc] ss:$12 sps:$4 sm:$0xff]   ;;  %v11680_v61 = vld [vmem:[#allocation19 + $0x378] ss:$12 sps:$4 sm:$0xff]  }
 0xa4b   : > { %8439 = vmatpush1.bf16.msra.mxu0 %v11614_v62  ;;  %v11683_v62 = vld [vmem:[#allocation19 + $0x4f8] ss:$12 sps:$4 sm:$0xff]  }
 0xa4c   : > { %8480 = vmatpush1.bf16.msra.mxu1 %v11617_v0  ;;  %8440 = vmatprep.subr.bf16.mxu0 %v11622_v1  ;;  %v11688_v0 = vld [vmem:[#allocation19 + $0x394] ss:$12 sps:$4 sm:$0xff]  }
 0xa4d   : > { %8481 = vmatprep.subr.bf16.mxu1 %v11625_v20  ;;  %v11691_v1 = vld [vmem:[#allocation19 + $0x514] ss:$12 sps:$4 sm:$0xff]   ;;  %v11686_v20 = vld [vmem:[#allocation19 + $0x390] ss:$12 sps:$4 sm:$0xff]  }
 0xa4f   : > { %8441 = vmatpush1.bf16.msra.mxu0 %v11620_v2  ;;  %v11689_v2 = vld [vmem:[#allocation19 + $0x510] ss:$12 sps:$4 sm:$0xff]  }
 0xa50   : > { %8482 = vmatpush1.bf16.msra.mxu1 %v11623_v43  ;;  %8442 = vmatprep.subr.bf16.mxu0 %v11628_v3  ;;  %v11694_v43 = vld [vmem:[#allocation19 + $0x3ac] ss:$12 sps:$4 sm:$0xff]  }
 0xa51   : > { %8483 = vmatprep.subr.bf16.mxu1 %v11631_v4  ;;  %v11697_v3 = vld [vmem:[#allocation19 + $0x52c] ss:$12 sps:$4 sm:$0xff]   ;;  %v11692_v4 = vld [vmem:[#allocation19 + $0x3a8] ss:$12 sps:$4 sm:$0xff]  }
 0xa53   : > { %8443 = vmatpush1.bf16.msra.mxu0 %v11626_v5  ;;  %v11695_v5 = vld [vmem:[#allocation19 + $0x528] ss:$12 sps:$4 sm:$0xff]  }
 0xa54   : > { %8484 = vmatpush1.bf16.msra.mxu1 %v11629_v6  ;;  %8444 = vmatprep.subr.bf16.mxu0 %v11634_v7  ;;  %v11700_v6 = vld [vmem:[#allocation19 + $0x3c4] ss:$12 sps:$4 sm:$0xff]  }
 0xa55   : > { %8485 = vmatprep.subr.bf16.mxu1 %v11637_v8  ;;  %v11703_v7 = vld [vmem:[#allocation19 + $0x544] ss:$12 sps:$4 sm:$0xff]   ;;  %v11698_v8 = vld [vmem:[#allocation19 + $0x3c0] ss:$12 sps:$4 sm:$0xff]  }
 0xa57   : > { %8445 = vmatpush1.bf16.msra.mxu0 %v11632_v25  ;;  %v11701_v25 = vld [vmem:[#allocation19 + $0x540] ss:$12 sps:$4 sm:$0xff]  }
 0xa58   : > { %8486 = vmatpush1.bf16.msra.mxu1 %v11635_v10  ;;  %8446 = vmatprep.subr.bf16.mxu0 %v11640_v11  ;;  %v11709_v10 = vld [vmem:[#allocation19 + $0x55c] ss:$12 sps:$4 sm:$0xff]   ;;  %v11704_v11 = vld [vmem:[#allocation19 + $0x3d8] ss:$12 sps:$4 sm:$0xff]  }
 0xa59   : > { %8487 = vmatprep.subr.bf16.mxu1 %v11643_v14  ;;  %v11712_v14 = vld [vmem:[#allocation19 + $0x3f4] ss:$12 sps:$4 sm:$0xff]  }
 0xa5b   : > { %8447 = vmatpush1.bf16.msra.mxu0 %v11638_v16  ;;  %v11715_v16 = vld [vmem:[#allocation19 + $0x574] ss:$12 sps:$4 sm:$0xff]  }
 0xa5c   : > { %8488 = vmatpush1.bf16.msra.mxu1 %v11641_v41  ;;  %8448 = vmatprep.subr.bf16.mxu0 %v11646_v42  ;;  %v11713_v41 = vld [vmem:[#allocation19 + $0x570] ss:$12 sps:$4 sm:$0xff]   ;;  %v11718_v42 = vld [vmem:[#allocation19 + $0x40c] ss:$12 sps:$4 sm:$0xff]  }
 0xa5d   : > { %8489 = vmatprep.subr.bf16.mxu1 %v11649_v26  ;;  %v11716_v26 = vld [vmem:[#allocation19 + $0x408] ss:$12 sps:$4 sm:$0xff]  }
 0xa5f   : > { %8449 = vmatpush1.bf16.msra.mxu0 %v11644_v29  ;;  %v11719_v29 = vld [vmem:[#allocation19 + $0x588] ss:$12 sps:$4 sm:$0xff]  }
 0xa60   : > { %8490 = vmatpush1.bf16.msra.mxu1 %v11647_v40  ;;  %8500 = vmatprep.subr.bf16.mxu0 %v11652_v31  ;;  %v11727_v40 = vld [vmem:[#allocation19 + $0x5a4] ss:$12 sps:$4 sm:$0xff]   ;;  %v11722_v31 = vld [vmem:[#allocation19 + $0x420] ss:$12 sps:$4 sm:$0xff]  }
 0xa61   : > { %8541 = vmatprep.subr.bf16.mxu1 %v11655_v33  ;;  %v11725_v33 = vld [vmem:[#allocation19 + $0x5a0] ss:$12 sps:$4 sm:$0xff]  }
 0xa62   : > { %8451 = vmatmul.mubr.bf16.vlgmr.msra.gmra.mrb[48].mxu0 %v13132_v34 }
 0xa63   : > { %8492 = vmatmul.mubr.bf16.vlgmr.msra.gmra.mrb[48].mxu1 %v13134_v19  ;;  %8501 = vmatpush1.bf16.msra.mxu0 %v11650_v27  ;;  %v4483_v27 = vsub.s32 4, %v12890_v21 }
 0xa64   : > { %8542 = vmatpush1.bf16.msra.mxu1 %v11653_v46  ;;  %8502 = vmatprep.subr.bf16.mxu0 %v11658_v28  ;;  %v4495_v46 = vsub.s32 7, %v12890_v21  ;;  %v11730_v28 = vld [vmem:[#allocation19 + $0x43c] ss:$12 sps:$4 sm:$0xff]  }
 0xa65   : > { %8543 = vmatprep.subr.bf16.mxu1 %v11661_v35  ;;  %v4491_v35 = vsub.s32 6, %v12890_v21  ;;  %v11844_v21 = vld [vmem:[#allocation19 + $0x8] ss:$12 sps:$4 sm:$0xff]  }
 0xa67   : > { %8503 = vmatpush1.bf16.msra.mxu0 %v11656_v36  ;;  %v11733_v36 = vld [vmem:[#allocation19 + $0x5bc] ss:$12 sps:$4 sm:$0xff]  }
 0xa68   : > { %8544 = vmatpush1.bf16.msra.mxu1 %v11659_v37  ;;  %8504 = vmatprep.subr.bf16.mxu0 %v11664_v38  ;;  %v4488_v37 = vrot.slane %v13109_v13, %v4487_v32  ;;  %v11728_v38 = vld [vmem:[#allocation19 + $0x438] ss:$12 sps:$4 sm:$0xff]   ;;  %v11761_v32 = vld [vmem:[#allocation19 + $0x7b0] ss:$12 sps:$4 sm:$0xff]  }
 0xa69   : > { %8545 = vmatprep.subr.bf16.mxu1 %v11667_v48  ;;  %v4484_v48 = vrot.slane %v13109_v13, %v4483_v27  ;;  %v11769_v27 = vld [vmem:[#allocation19 + $0x7cc] ss:$12 sps:$4 sm:$0xff]  }
 0xa6b   : > { %8505 = vmatpush1.bf16.msra.mxu0 %v11662_v39  ;;  %v4496_v39 = vrot.slane %v13109_v13, %v4495_v46  ;;  %v11764_v46 = vld [vmem:[#allocation19 + $0x648] ss:$12 sps:$4 sm:$0xff]  }
 0xa6c   : > { %8546 = vmatpush1.bf16.msra.mxu1 %v11665_v47  ;;  %8506 = vmatprep.subr.bf16.mxu0 %v11670_v49  ;;  %v11731_v47 = vld [vmem:[#allocation19 + $0x5b8] ss:$12 sps:$4 sm:$0xff]   ;;  %v11736_v49 = vld [vmem:[#allocation19 + $0x454] ss:$12 sps:$4 sm:$0xff]  }
 0xa6d   : > { %8547 = vmatprep.subr.bf16.mxu1 %v11673_v50 }
 0xa6f   : > { %8507 = vmatpush1.bf16.msra.mxu0 %v11668_v52  ;;  %v4492_v52 = vrot.slane %v13109_v13, %v4491_v35  ;;  %v11772_v35 = vld [vmem:[#allocation19 + $0x664] ss:$12 sps:$4 sm:$0xff]  }
 0xa70   : > { %8548 = vmatpush1.bf16.msra.mxu1 %v11671_v53  ;;  %8508 = vmatprep.subr.bf16.mxu0 %v11676_v54  ;;  %v11739_v53 = vld [vmem:[#allocation19 + $0x5d4] ss:$12 sps:$4 sm:$0xff]  }
 0xa71   : > { %8549 = vmatprep.subr.bf16.mxu1 %v11679_v55 }
 0xa73   : > { %8509 = vmatpush1.bf16.msra.mxu0 %v11674_v18 }
 0xa74   : > { %8550 = vmatpush1.bf16.msra.mxu1 %v11677_v57  ;;  %8510 = vmatprep.subr.bf16.mxu0 %v11682_v58 }
 0xa75   : > { %8551 = vmatprep.subr.bf16.mxu1 %v11685_v60  ;;  %v11734_v60 = vld [vmem:[#allocation19 + $0x450] ss:$12 sps:$4 sm:$0xff]  }
 0xa77   : > { %8511 = vmatpush1.bf16.msra.mxu0 %v11680_v61 }
 0xa78   : > { %8552 = vmatpush1.bf16.msra.mxu1 %v11683_v62  ;;  %8512 = vmatprep.subr.bf16.mxu0 %v11688_v0 }
 0xa79   : > { %8553 = vmatprep.subr.bf16.mxu1 %v11691_v1 }
 0xa7b   : > { %8513 = vmatpush1.bf16.msra.mxu0 %v11686_v20  ;;  %v11737_v20 = vld [vmem:[#allocation19 + $0x5d0] ss:$12 sps:$4 sm:$0xff]  }
 0xa7c   : > { %8554 = vmatpush1.bf16.msra.mxu1 %v11689_v2  ;;  %8514 = vmatprep.subr.bf16.mxu0 %v11694_v43  ;;  %v11742_v2 = vld [vmem:[#allocation19 + $0x46c] ss:$12 sps:$4 sm:$0xff]  }
 0xa7d   : > { %8555 = vmatprep.subr.bf16.mxu1 %v11697_v3 }
 0xa7f   : > { %8515 = vmatpush1.bf16.msra.mxu0 %v11692_v4  ;;  %v11745_v4 = vld [vmem:[#allocation19 + $0x5ec] ss:$12 sps:$4 sm:$0xff]  }
 0xa80   : > { %8556 = vmatpush1.bf16.msra.mxu1 %v11695_v5  ;;  %8516 = vmatprep.subr.bf16.mxu0 %v11700_v6 }
 0xa81   : > { %8557 = vmatprep.subr.bf16.mxu1 %v11703_v7  ;;  %v11740_v7 = vld [vmem:[#allocation19 + $0x468] ss:$12 sps:$4 sm:$0xff]  }
 0xa83   : > { %8517 = vmatpush1.bf16.msra.mxu0 %v11698_v8 }
 0xa84   : > { %8558 = vmatpush1.bf16.msra.mxu1 %v11701_v25  ;;  %8518 = vmatprep.subr.bf16.mxu0 %v11706_v9  ;;  %v11743_v9 = vld [vmem:[#allocation19 + $0x5e8] ss:$12 sps:$4 sm:$0xff]  }
 0xa85   : > { %8559 = vmatprep.subr.bf16.mxu1 %v11709_v10  ;;  %v11748_v10 = vld [vmem:[#allocation19 + $0x604] ss:$12 sps:$4 sm:$0xff]  }
 0xa87   : > { %8519 = vmatpush1.bf16.msra.mxu0 %v11704_v11 }
 0xa88   : > { %8560 = vmatpush1.bf16.msra.mxu1 %v11707_v12  ;;  %8520 = vmatprep.subr.bf16.mxu0 %v11712_v14  ;;  %v11751_v12 = vld [vmem:[#allocation19 + $0x784] ss:$12 sps:$4 sm:$0xff]   ;;  %v11746_v14 = vld [vmem:[#allocation19 + $0x600] ss:$12 sps:$4 sm:$0xff]  }
 0xa89   : > { %8561 = vmatprep.subr.bf16.mxu1 %v11715_v16 }
 0xa8b   : > { %8521 = vmatpush1.bf16.msra.mxu0 %v11710_v56  ;;  %v11749_v56 = vld [vmem:[#allocation19 + $0x780] ss:$12 sps:$4 sm:$0xff]  }
 0xa8c   : > { %8562 = vmatpush1.bf16.msra.mxu1 %v11713_v41  ;;  %8522 = vmatprep.subr.bf16.mxu0 %v11718_v42  ;;  %v11754_v41 = vld [vmem:[#allocation19 + $0x61c] ss:$12 sps:$4 sm:$0xff]  }
 0xa8d   : > { %8563 = vmatprep.subr.bf16.mxu1 %v11721_v24  ;;  %v11757_v24 = vld [vmem:[#allocation19 + $0x79c] ss:$12 sps:$4 sm:$0xff]  }
 0xa8f   : > { %8523 = vmatpush1.bf16.msra.mxu0 %v11716_v26  ;;  %v11752_v26 = vld [vmem:[#allocation19 + $0x618] ss:$12 sps:$4 sm:$0xff]  }
 0xa90   : > { %8564 = vmatpush1.bf16.msra.mxu1 %v11719_v29  ;;  %8524 = vmatprep.subr.bf16.mxu0 %v11724_v30  ;;  %v11755_v29 = vld [vmem:[#allocation19 + $0x798] ss:$12 sps:$4 sm:$0xff]   ;;  %v11760_v30 = vld [vmem:[#allocation19 + $0x634] ss:$12 sps:$4 sm:$0xff]  }
 0xa91   : > { %8565 = vmatprep.subr.bf16.mxu1 %v11727_v40  ;;  %v11763_v40 = vld [vmem:[#allocation19 + $0x7b4] ss:$12 sps:$4 sm:$0xff]  }
 0xa93   : > { %8525 = vmatpush1.bf16.msra.mxu0 %v11722_v31  ;;  %v11758_v31 = vld [vmem:[#allocation19 + $0x630] ss:$12 sps:$4 sm:$0xff]  }
 0xa94   : > { %8566 = vmatpush1.bf16.msra.mxu1 %v11725_v33  ;;  %8526 = vmatprep.subr.bf16.mxu0 %v11730_v28  ;;  %v11766_v33 = vld [vmem:[#allocation19 + $0x64c] ss:$12 sps:$4 sm:$0xff]   ;;  %v11767_v28 = vld [vmem:[#allocation19 + $0x7c8] ss:$12 sps:$4 sm:$0xff]  }
 0xa95   : > { %v6204_v50 = vpop.f32.mrb[40].mxu0  ;;  %8567 = vmatprep.subr.bf16.mxu1 %v11733_v36  ;;  %v11775_v36 = vld [vmem:[#allocation19 + $0x7e4] ss:$12 sps:$4 sm:$0xff]  }
 0xa96   : > { %v6286_v54 = vpop.f32.mrb[40].mxu1  ;;  %v6206_v55 = vpop.f32.mrb[41].mxu0  ;;  %v10338_v61 = vadd.f32 %v6204_v50, %v4484_v48  ;;  %v11778_v48 = vld [vmem:[#allocation19 + $0x67c] ss:$12 sps:$4 sm:$0xff]   ;;  %v11784_v50 = vld [vmem:[#allocation19 + $0x694] ss:$12 sps:$4 sm:$0xff]  }
 0xa97   : > { %v10339_v18 = vadd.f32 %v6206_v55, %v4488_v37  ;;  %v6288_v57 = vpop.f32.mrb[41].mxu1  ;;  %v6208_v58 = vpop.f32.mrb[42].mxu0  ;;  %8527 = vmatpush1.bf16.msra.mxu0 %v11728_v38  ;;  %v10340_v43 = vadd.f32 %v6286_v54, %v4492_v52  ;;  %v11770_v37 = vld [vmem:[#allocation19 + $0x660] ss:$12 sps:$4 sm:$0xff]   ;;  %v11785_v54 = vld [vmem:[#allocation19 + $0x810] ss:$12 sps:$4 sm:$0xff]  }
 0xa98   : > { %v10341_v62 = vadd.f32 %v6288_v57, %v4496_v39  ;;  %v6290_v0 = vpop.f32.mrb[42].mxu1  ;;  %8568 = vmatpush1.bf16.msra.mxu1 %v11731_v47  ;;  %v6209_v1 = vpop.f32.mrb[43].mxu0  ;;  %8528 = vmatprep.subr.bf16.mxu0 %v11736_v49  ;;  %v6461_v8 = vmax.f32 %v10338_v61, 0.0  ;;  %v11773_v38 = vld [vmem:[#allocation19 + $0x7e0] ss:$12 sps:$4 sm:$0xff]  }
 0xa99   : > { %v6462_v3 = vmax.f32 %v10339_v18, 0.0  ;;  %v6291_v13 = vpop.f32.mrb[43].mxu1  ;;  %8569 = vmatprep.subr.bf16.mxu1 %v11739_v53  ;;  %v6463_v11 = vmax.f32 %v10340_v43, 0.0  ;;  %v11781_v39 = vld [vmem:[#allocation19 + $0x7fc] ss:$12 sps:$4 sm:$0xff]  }
 0xa9a   : > { %v6464_v5 = vmax.f32 %v10341_v62, 0.0  ;;  %v13152_v16 = vpack.c.bf16 %v6461_v8, %v6461_v8  ;;  %v11776_v47 = vld [vmem:[#allocation19 + $0x678] ss:$12 sps:$4 sm:$0xff]   ;;  %v11787_v52 = vld [vmem:[#allocation19 + $0x814] ss:$12 sps:$4 sm:$0xff]  }
 0xa9b   : > { %v13146_v6 = vpack.c.bf16 %v6462_v3, %v6462_v3  ;;  %8529 = vmatpush1.bf16.msra.mxu0 %v11734_v60  ;;  %v13154_v42 = vpack.c.bf16 %v6463_v11, %v6463_v11  ;;  %v11779_v49 = vld [vmem:[#allocation19 + $0x7f8] ss:$12 sps:$4 sm:$0xff]   ;;  %v11782_v53 = vld [vmem:[#allocation19 + $0x690] ss:$12 sps:$4 sm:$0xff]   ;;  %v11788_v57 = vld [vmem:[#allocation19 + $0x6a8] ss:$12 sps:$4 sm:$0xff]  }
 0xa9c   : > { %v13148_v25 = vpack.c.bf16 %v6464_v5, %v6464_v5  ;;  %8570 = vmatpush1.bf16.msra.mxu1 %v11737_v20  ;;  %8530 = vmatprep.subr.bf16.mxu0 %v11742_v2  ;;  %v11790_v55 = vld [vmem:[#allocation19 + $0x6ac] ss:$12 sps:$4 sm:$0xff]   ;;  %v11791_v58 = vld [vmem:[#allocation19 + $0x828] ss:$12 sps:$4 sm:$0xff]   ;;  %v11796_v60 = vld [vmem:[#allocation19 + $0x6c4] ss:$12 sps:$4 sm:$0xff]  }
 0xa9d   : > { %8532 = vmatprep.mubr.bf16.mxu0 %v13146_v6  ;;  %8571 = vmatprep.subr.bf16.mxu1 %v11745_v4  ;;  %v11793_v18 = vld [vmem:[#allocation19 + $0x82c] ss:$12 sps:$4 sm:$0xff]   ;;  %v11799_v61 = vld [vmem:[#allocation19 + $0x844] ss:$12 sps:$4 sm:$0xff]   ;;  %v11802_v1 = vld [vmem:[#allocation19 + $0x6dc] ss:$12 sps:$4 sm:$0xff]  }
 0xa9e   : > { %8573 = vmatprep.mubr.bf16.mxu1 %v13148_v25  ;;  %v11794_v62 = vld [vmem:[#allocation19 + $0x6c0] ss:$12 sps:$4 sm:$0xff]   ;;  %v11805_v20 = vld [vmem:[#allocation19 + $0x85c] ss:$12 sps:$4 sm:$0xff]   ;;  %v11800_v2 = vld [vmem:[#allocation19 + $0x6d8] ss:$12 sps:$4 sm:$0xff]  }
 0xa9f   : > { %8531 = vmatpush1.bf16.msra.mxu0 %v11740_v7  ;;  %v11797_v0 = vld [vmem:[#allocation19 + $0x840] ss:$12 sps:$4 sm:$0xff]   ;;  %v11803_v43 = vld [vmem:[#allocation19 + $0x858] ss:$12 sps:$4 sm:$0xff]   ;;  %v11806_v4 = vld [vmem:[#allocation19 + $0x6f0] ss:$12 sps:$4 sm:$0xff]  }
 0xaa0   : > { %8572 = vmatpush1.bf16.msra.mxu1 %v11743_v9  ;;  %8582 = vmatprep.subr.bf16.mxu0 %v11748_v10  ;;  %v11808_v3 = vld [vmem:[#allocation19 + $0x6f4] ss:$12 sps:$4 sm:$0xff]   ;;  %v11809_v5 = vld [vmem:[#allocation19 + $0x870] ss:$12 sps:$4 sm:$0xff]   ;;  %v11814_v7 = vld [vmem:[#allocation19 + $0x70c] ss:$12 sps:$4 sm:$0xff]  }
 0xaa1   : > { %8623 = vmatprep.subr.bf16.mxu1 %v11751_v12  ;;  %v11811_v13 = vld [vmem:[#allocation19 + $0x874] ss:$12 sps:$4 sm:$0xff]   ;;  %v11817_v8 = vld [vmem:[#allocation19 + $0x88c] ss:$12 sps:$4 sm:$0xff]   ;;  %v11820_v11 = vld [vmem:[#allocation19 + $0x724] ss:$12 sps:$4 sm:$0xff]  }
 0xaa2   : > { %8533 = vmatmul.mubr.bf16.vlgmr.msra.gmra.mrb[52].mxu0 %v13152_v16  ;;  %v11812_v9 = vld [vmem:[#allocation19 + $0x708] ss:$12 sps:$4 sm:$0xff]   ;;  %v11823_v12 = vld [vmem:[#allocation19 + $0x8a4] ss:$12 sps:$4 sm:$0xff]  }
 0xaa3   : > { %8574 = vmatmul.mubr.bf16.vlgmr.msra.gmra.mrb[52].mxu1 %v13154_v42  ;;  %8583 = vmatpush1.bf16.msra.mxu0 %v11746_v14  ;;  %v11815_v10 = vld [vmem:[#allocation19 + $0x888] ss:$12 sps:$4 sm:$0xff]   ;;  %v11818_v14 = vld [vmem:[#allocation19 + $0x720] ss:$12 sps:$4 sm:$0xff]  }
 0xaa4   : > { %8624 = vmatpush1.bf16.msra.mxu1 %v11749_v56  ;;  %8584 = vmatprep.subr.bf16.mxu0 %v11754_v41  ;;  %v11821_v56 = vld [vmem:[#allocation19 + $0x8a0] ss:$12 sps:$4 sm:$0xff]   ;;  %v11826_v41 = vld [vmem:[#allocation19 + $0x73c] ss:$12 sps:$4 sm:$0xff]  }
 0xaa5   : > { %8625 = vmatprep.subr.bf16.mxu1 %v11757_v24  ;;  %v11829_v24 = vld [vmem:[#allocation19 + $0x8bc] ss:$12 sps:$4 sm:$0xff]  }
 0xaa7   : > { %8585 = vmatpush1.bf16.msra.mxu0 %v11752_v26  ;;  %v11824_v26 = vld [vmem:[#allocation19 + $0x738] ss:$12 sps:$4 sm:$0xff]  }
 0xaa8   : > { %8626 = vmatpush1.bf16.msra.mxu1 %v11755_v29  ;;  %8586 = vmatprep.subr.bf16.mxu0 %v11760_v30  ;;  %v11827_v29 = vld [vmem:[#allocation19 + $0x8b8] ss:$12 sps:$4 sm:$0xff]   ;;  %v11832_v30 = vld [vmem:[#allocation19 + $0x754] ss:$12 sps:$4 sm:$0xff]  }
 0xaa9   : > { %8627 = vmatprep.subr.bf16.mxu1 %v11763_v40  ;;  %v11835_v40 = vld [vmem:[#allocation19 + $0x8d4] ss:$12 sps:$4 sm:$0xff]  }
 0xaab   : > { %8587 = vmatpush1.bf16.msra.mxu0 %v11758_v31  ;;  %v11830_v31 = vld [vmem:[#allocation19 + $0x750] ss:$12 sps:$4 sm:$0xff]  }
 0xaac   : > { %8628 = vmatpush1.bf16.msra.mxu1 %v11761_v32  ;;  %8588 = vmatprep.subr.bf16.mxu0 %v11766_v33  ;;  %v11833_v32 = vld [vmem:[#allocation19 + $0x8d0] ss:$12 sps:$4 sm:$0xff]   ;;  %v11838_v33 = vld [vmem:[#allocation19 + $0x76c] ss:$12 sps:$4 sm:$0xff]  }
 0xaad   : > { %8629 = vmatprep.subr.bf16.mxu1 %v11769_v27  ;;  %v11841_v27 = vld [vmem:[#allocation19 + $0x8ec] ss:$12 sps:$4 sm:$0xff]  }
 0xaaf   : > { %8589 = vmatpush1.bf16.msra.mxu0 %v11764_v46  ;;  %v11836_v46 = vld [vmem:[#allocation19 + $0x768] ss:$12 sps:$4 sm:$0xff]  }
 0xab0   : > { %8630 = vmatpush1.bf16.msra.mxu1 %v11767_v28  ;;  %8590 = vmatprep.subr.bf16.mxu0 %v11772_v35  ;;  %v11839_v28 = vld [vmem:[#allocation19 + $0x8e8] ss:$12 sps:$4 sm:$0xff]  }
 0xab1   : > { %8631 = vmatprep.subr.bf16.mxu1 %v11775_v36  ;;  %v11842_v35 = vld [vmem:[#allocation19 + $0xc8] ss:$12 sps:$4 sm:$0xff]  }
 0xab2   : > { %v11843_v36 = vld [vmem:[#allocation19 + $0x248] ss:$12 sps:$4 sm:$0xff]  }
 0xab3   : > { %8591 = vmatpush1.bf16.msra.mxu0 %v11770_v37  ;;  %v4462_v37 = vld [vmem:[#allocation17 + $0x8] sm:$0xf] }
 0xab4   : > { %8632 = vmatpush1.bf16.msra.mxu1 %v11773_v38  ;;  %8592 = vmatprep.subr.bf16.mxu0 %v11778_v48  ;;  %v4500_v38 = vrot.slane %v4462_v37, %v12896_v23  ;;  %v4508_v48 = vrot.slane %v4462_v37, %v12927_v59 }
 0xab5   : > { %8633 = vmatprep.subr.bf16.mxu1 %v11781_v39  ;;  %v4504_v39 = vrot.slane %v4462_v37, %v12893_v22 }
 0xab7   : > { %8593 = vmatpush1.bf16.msra.mxu0 %v11776_v47  ;;  %v4512_v47 = vrot.slane %v4462_v37, %v4479_v51  ;;  %v11871_v37 = vld [vmem:[#allocation19 + $0x2f0] ss:$12 sps:$4 sm:$0xff]  }
 0xab8   : > { %8634 = vmatpush1.bf16.msra.mxu1 %v11779_v49  ;;  %8594 = vmatprep.subr.bf16.mxu0 %v11784_v50 }
 0xab9   : > { %8635 = vmatprep.subr.bf16.mxu1 %v11787_v52 }
 0xabb   : > { %8595 = vmatpush1.bf16.msra.mxu0 %v11782_v53 }
 0xabc   : > { %8636 = vmatpush1.bf16.msra.mxu1 %v11785_v54  ;;  %8596 = vmatprep.subr.bf16.mxu0 %v11790_v55 }
 0xabd   : > { %8637 = vmatprep.subr.bf16.mxu1 %v11793_v18 }
 0xabf   : > { %8597 = vmatpush1.bf16.msra.mxu0 %v11788_v57 }
 0xac0   : > { %8638 = vmatpush1.bf16.msra.mxu1 %v11791_v58  ;;  %8598 = vmatprep.subr.bf16.mxu0 %v11796_v60 }
 0xac1   : > { %8639 = vmatprep.subr.bf16.mxu1 %v11799_v61 }
 0xac3   : > { %8599 = vmatpush1.bf16.msra.mxu0 %v11794_v62 }
 0xac4   : > { %8640 = vmatpush1.bf16.msra.mxu1 %v11797_v0  ;;  %8600 = vmatprep.subr.bf16.mxu0 %v11802_v1 }
 0xac5   : > { %8641 = vmatprep.subr.bf16.mxu1 %v11805_v20 }
 0xac7   : > { %8601 = vmatpush1.bf16.msra.mxu0 %v11800_v2 }
 0xac8   : > { %8642 = vmatpush1.bf16.msra.mxu1 %v11803_v43  ;;  %8602 = vmatprep.subr.bf16.mxu0 %v11808_v3 }
 0xac9   : > { %8643 = vmatprep.subr.bf16.mxu1 %v11811_v13  ;;  %v11845_v13 = vld [vmem:[#allocation19 + $0x188] ss:$12 sps:$4 sm:$0xff]  }
 0xacb   : > { %8603 = vmatpush1.bf16.msra.mxu0 %v11806_v4 }
 0xacc   : > { %8644 = vmatpush1.bf16.msra.mxu1 %v11809_v5  ;;  %8604 = vmatprep.subr.bf16.mxu0 %v11814_v7  ;;  %v11846_v5 = vld [vmem:[#allocation19 + $0xe0] ss:$12 sps:$4 sm:$0xff]  }
 0xacd   : > { %8645 = vmatprep.subr.bf16.mxu1 %v11817_v8  ;;  %v11847_v7 = vld [vmem:[#allocation19 + $0x260] ss:$12 sps:$4 sm:$0xff]  }
 0xace   : > { %v11848_v8 = vld [vmem:[#allocation19 + $0x20] ss:$12 sps:$4 sm:$0xff]  }
 0xacf   : > { %8605 = vmatpush1.bf16.msra.mxu0 %v11812_v9  ;;  %v11849_v9 = vld [vmem:[#allocation19 + $0x1a0] ss:$12 sps:$4 sm:$0xff]  }
 0xad0   : > { %8646 = vmatpush1.bf16.msra.mxu1 %v11815_v10  ;;  %8606 = vmatprep.subr.bf16.mxu0 %v11820_v11  ;;  %v11850_v10 = vld [vmem:[#allocation19 + $0xf8] ss:$12 sps:$4 sm:$0xff]  }
 0xad1   : > { %8647 = vmatprep.subr.bf16.mxu1 %v11823_v12  ;;  %v11851_v11 = vld [vmem:[#allocation19 + $0x278] ss:$12 sps:$4 sm:$0xff]  }
 0xad2   : > { %v11852_v12 = vld [vmem:[#allocation19 + $0x38] ss:$12 sps:$4 sm:$0xff]  }
 0xad3   : > { %8607 = vmatpush1.bf16.msra.mxu0 %v11818_v14  ;;  %v11853_v14 = vld [vmem:[#allocation19 + $0x1b8] ss:$12 sps:$4 sm:$0xff]  }
 0xad4   : > { %8648 = vmatpush1.bf16.msra.mxu1 %v11821_v56  ;;  %8608 = vmatprep.subr.bf16.mxu0 %v11826_v41  ;;  %v11854_v56 = vld [vmem:[#allocation19 + $0x110] ss:$12 sps:$4 sm:$0xff]  }
 0xad5   : > { %8649 = vmatprep.subr.bf16.mxu1 %v11829_v24  ;;  %v11855_v41 = vld [vmem:[#allocation19 + $0x290] ss:$12 sps:$4 sm:$0xff]  }
 0xad6   : > { %v11856_v24 = vld [vmem:[#allocation19 + $0x50] ss:$12 sps:$4 sm:$0xff]  }
 0xad7   : > { %8609 = vmatpush1.bf16.msra.mxu0 %v11824_v26  ;;  %v11858_v26 = vld [vmem:[#allocation19 + $0x128] ss:$12 sps:$4 sm:$0xff]  }
 0xad8   : > { %8650 = vmatpush1.bf16.msra.mxu1 %v11827_v29  ;;  %8610 = vmatprep.subr.bf16.mxu0 %v11832_v30  ;;  %v11859_v29 = vld [vmem:[#allocation19 + $0x2a8] ss:$12 sps:$4 sm:$0xff]  }
 0xad9   : > { %8651 = vmatprep.subr.bf16.mxu1 %v11835_v40  ;;  %v11861_v30 = vld [vmem:[#allocation19 + $0x1e8] ss:$12 sps:$4 sm:$0xff]   ;;  %v11862_v40 = vld [vmem:[#allocation19 + $0x140] ss:$12 sps:$4 sm:$0xff]  }
 0xadb   : > { %8611 = vmatpush1.bf16.msra.mxu0 %v11830_v31  ;;  %v11863_v31 = vld [vmem:[#allocation19 + $0x2c0] ss:$12 sps:$4 sm:$0xff]  }
 0xadc   : > { %8652 = vmatpush1.bf16.msra.mxu1 %v11833_v32  ;;  %8612 = vmatprep.subr.bf16.mxu0 %v11838_v33  ;;  %v11864_v32 = vld [vmem:[#allocation19 + $0x80] ss:$12 sps:$4 sm:$0xff]  }
 0xadd   : > { %8653 = vmatprep.subr.bf16.mxu1 %v11841_v27  ;;  %v11865_v33 = vld [vmem:[#allocation19 + $0x200] ss:$12 sps:$4 sm:$0xff]   ;;  %v11866_v27 = vld [vmem:[#allocation19 + $0x158] ss:$12 sps:$4 sm:$0xff]  }
 0xadf   : > { %8613 = vmatpush1.bf16.msra.mxu0 %v11836_v46  ;;  %v11867_v46 = vld [vmem:[#allocation19 + $0x2d8] ss:$12 sps:$4 sm:$0xff]  }
 0xae0   : > { %8654 = vmatpush1.bf16.msra.mxu1 %v11839_v28  ;;  %10154 = vmatprep.subr.bf16.mxu0 %v11842_v35  ;;  %v11868_v28 = vld [vmem:[#allocation19 + $0x98] ss:$12 sps:$4 sm:$0xff]  }
 0xae1   : > { %10176 = vmatprep.subr.bf16.mxu1 %v11843_v36  ;;  %v11869_v35 = vld [vmem:[#allocation19 + $0x218] ss:$12 sps:$4 sm:$0xff]   ;;  %v11870_v36 = vld [vmem:[#allocation19 + $0x170] ss:$12 sps:$4 sm:$0xff]  }
 0xaf5   : > { %v6368_v49 = vpop.f32.mrb[44].mxu0 }
 0xaf6   : > { %v10342_v50 = vadd.f32 %v6368_v49, %v4500_v38  ;;  %v6450_v52 = vpop.f32.mrb[44].mxu1  ;;  %v6370_v53 = vpop.f32.mrb[45].mxu0  ;;  %v11872_v38 = vld [vmem:[#allocation19 + $0xb0] ss:$12 sps:$4 sm:$0xff]   ;;  %v11876_v49 = vld [vmem:[#allocation19 + $0x308] ss:$12 sps:$4 sm:$0xff]  }
 0xaf7   : > { %v10344_v54 = vadd.f32 %v6450_v52, %v4508_v48  ;;  %v10343_v55 = vadd.f32 %v6370_v53, %v4504_v39  ;;  %v6452_v18 = vpop.f32.mrb[45].mxu1  ;;  %v6372_v57 = vpop.f32.mrb[46].mxu0  ;;  %v11873_v48 = vld [vmem:[#allocation19 + $0x230] ss:$12 sps:$4 sm:$0xff]   ;;  %v11874_v39 = vld [vmem:[#allocation19 + $0x3c8] ss:$12 sps:$4 sm:$0xff]  }
 0xaf8   : > { %v6465_v58 = vmax.f32 %v10342_v50, 0.0  ;;  %v10345_v60 = vadd.f32 %v6452_v18, %v4512_v47  ;;  %v6454_v61 = vpop.f32.mrb[46].mxu1  ;;  %v6373_v62 = vpop.f32.mrb[47].mxu0  ;;  %v11875_v47 = vld [vmem:[#allocation19 + $0x548] ss:$12 sps:$4 sm:$0xff]  }
 0xaf9   : > { %v6467_v0 = vmax.f32 %v10344_v54, 0.0  ;;  %v6466_v1 = vmax.f32 %v10343_v55, 0.0  ;;  %v6455_v20 = vpop.f32.mrb[47].mxu1  ;;  %v11877_v50 = vld [vmem:[#allocation19 + $0x488] ss:$12 sps:$4 sm:$0xff]  }
 0xafa   : > { %v6468_v2 = vmax.f32 %v10345_v60, 0.0  ;;  %v13165_v51 = vpack.c.bf16 %v6465_v58, %v6465_v58  ;;  %v11878_v52 = vld [vmem:[#allocation19 + $0x3e0] ss:$12 sps:$4 sm:$0xff]   ;;  %v11882_v18 = vld [vmem:[#allocation19 + $0x3f8] ss:$12 sps:$4 sm:$0xff]  }
 0xafb   : > { %v13163_v43 = vpack.c.bf16 %v6466_v1, %v6466_v1  ;;  %v13169_v4 = vpack.c.bf16 %v6467_v0, %v6467_v0  ;;  %v11879_v53 = vld [vmem:[#allocation19 + $0x560] ss:$12 sps:$4 sm:$0xff]   ;;  %v11883_v57 = vld [vmem:[#allocation19 + $0x578] ss:$12 sps:$4 sm:$0xff]   ;;  %v11886_v60 = vld [vmem:[#allocation19 + $0x410] ss:$12 sps:$4 sm:$0xff]  }
 0xafc   : > { %v13167_v3 = vpack.c.bf16 %v6468_v2, %v6468_v2  ;;  %v11880_v54 = vld [vmem:[#allocation19 + $0x320] ss:$12 sps:$4 sm:$0xff]   ;;  %v11884_v58 = vld [vmem:[#allocation19 + $0x338] ss:$12 sps:$4 sm:$0xff]   ;;  %v11888_v61 = vld [vmem:[#allocation19 + $0x350] ss:$12 sps:$4 sm:$0xff]  }
 0xafd   : > { %8614 = vmatprep.mubr.bf16.mxu0 %v13163_v43  ;;  %v11881_v55 = vld [vmem:[#allocation19 + $0x4a0] ss:$12 sps:$4 sm:$0xff]   ;;  %v11890_v62 = vld [vmem:[#allocation19 + $0x428] ss:$12 sps:$4 sm:$0xff]  }
 0xafe   : > { %8655 = vmatprep.mubr.bf16.mxu1 %v13167_v3  ;;  %8615 = vmatmul.mubr.bf16.vlgmr.msra.gmra.mrb[56].mxu0 %v13165_v51  ;;  %v11891_v0 = vld [vmem:[#allocation19 + $0x5a8] ss:$12 sps:$4 sm:$0xff]   ;;  %v11894_v20 = vld [vmem:[#allocation19 + $0x440] ss:$12 sps:$4 sm:$0xff]  }
 0xaff   : > { %8656 = vmatmul.mubr.bf16.vlgmr.msra.gmra.mrb[56].mxu1 %v13169_v4  ;;  %10155 = vmatpush3.bf16.msra.mxu0 %v11844_v21  ;;  %v11893_v1 = vld [vmem:[#allocation19 + $0x4e8] ss:$12 sps:$4 sm:$0xff]   ;;  %v11895_v2 = vld [vmem:[#allocation19 + $0x5c0] ss:$12 sps:$4 sm:$0xff]  }
 0xb00   : > { %10177 = vmatpush3.bf16.msra.mxu1 %v11845_v13  ;;  %8696 = vmatprep.mubr.bf16.mxu0 %v13120_v44  ;;  %v11857_v44 = vld [vmem:[#allocation19 + $0x1d0] ss:$12 sps:$4 sm:$0xff]   ;;  %v11896_v21 = vld [vmem:[#allocation19 + $0x380] ss:$12 sps:$4 sm:$0xff]  }
 0xb01   : > { %8736 = vmatprep.mubr.bf16.mxu1 %v13122_v45  ;;  %10156 = vmatprep.subr.bf16.mxu0 %v11846_v5  ;;  %v11860_v45 = vld [vmem:[#allocation19 + $0x68] ss:$12 sps:$4 sm:$0xff]   ;;  %v13181_v13 = vld [vmem:[#allocation20] sm:$0x7] }
 0xb02   : > { %10178 = vmatprep.subr.bf16.mxu1 %v11847_v7  ;;  %v11897_v5 = vld [vmem:[#allocation19 + $0x500] ss:$12 sps:$4 sm:$0xff]   ;;  %v11898_v7 = vld [vmem:[#allocation19 + $0x458] ss:$12 sps:$4 sm:$0xff]  }
 0xb03   : > { %10157 = vmatpush3.bf16.msra.mxu0 %v11848_v8  ;;  %v11899_v8 = vld [vmem:[#allocation19 + $0x5d8] ss:$12 sps:$4 sm:$0xff]  }
 0xb04   : > { %10179 = vmatpush3.bf16.msra.mxu1 %v11849_v9  ;;  %10158 = vmatprep.subr.bf16.mxu0 %v11850_v10  ;;  %v6870_v9 = vrot.slane %v13181_v13, %v12896_v23  ;;  %v6874_v10 = vrot.slane %v13181_v13, %v12893_v22  ;;  %v11904_v23 = vld [vmem:[#allocation19 + $0x3b0] ss:$12 sps:$4 sm:$0xff]  }
 0xb05   : > { %10180 = vmatprep.subr.bf16.mxu1 %v11851_v11  ;;  %v11900_v11 = vld [vmem:[#allocation19 + $0x398] ss:$12 sps:$4 sm:$0xff]  }
 0xb07   : > { %10159 = vmatpush3.bf16.msra.mxu0 %v11852_v12  ;;  %v11901_v12 = vld [vmem:[#allocation19 + $0x518] ss:$12 sps:$4 sm:$0xff]  }
 0xb08   : > { %10181 = vmatpush3.bf16.msra.mxu1 %v11853_v14  ;;  %10160 = vmatprep.subr.bf16.mxu0 %v11854_v56  ;;  %v11902_v14 = vld [vmem:[#allocation19 + $0x470] ss:$12 sps:$4 sm:$0xff]  }
 0xb09   : > { %10182 = vmatprep.subr.bf16.mxu1 %v11855_v41  ;;  %v11903_v41 = vld [vmem:[#allocation19 + $0x5f0] ss:$12 sps:$4 sm:$0xff]  }
 0xb0b   : > { %10161 = vmatpush3.bf16.msra.mxu0 %v11856_v24 }
 0xb0c   : > { %10183 = vmatpush3.bf16.msra.mxu1 %v11857_v44  ;;  %10162 = vmatprep.subr.bf16.mxu0 %v11858_v26 }
 0xb0d   : > { %10184 = vmatprep.subr.bf16.mxu1 %v11859_v29 }
 0xb0f   : > { %10163 = vmatpush3.bf16.msra.mxu0 %v11860_v45 }
 0xb10   : > { %10185 = vmatpush3.bf16.msra.mxu1 %v11861_v30  ;;  %10164 = vmatprep.subr.bf16.mxu0 %v11862_v40 }
 0xb11   : > { %10186 = vmatprep.subr.bf16.mxu1 %v11863_v31 }
 0xb13   : > { %10165 = vmatpush3.bf16.msra.mxu0 %v11864_v32  ;;  %v11905_v32 = vld [vmem:[#allocation19 + $0x530] ss:$12 sps:$4 sm:$0xff]  }
 0xb14   : > { %10187 = vmatpush3.bf16.msra.mxu1 %v11865_v33  ;;  %10166 = vmatprep.subr.bf16.mxu0 %v11866_v27  ;;  %v11906_v33 = vld [vmem:[#allocation19 + $0x6c8] ss:$12 sps:$4 sm:$0xff]  }
 0xb15   : > { %10188 = vmatprep.subr.bf16.mxu1 %v11867_v46 }
 0xb17   : > { %10167 = vmatpush3.bf16.msra.mxu0 %v11868_v28  ;;  %v11907_v28 = vld [vmem:[#allocation19 + $0x848] ss:$12 sps:$4 sm:$0xff]  }
 0xb18   : > { %10189 = vmatpush3.bf16.msra.mxu1 %v11869_v35  ;;  %10168 = vmatprep.subr.bf16.mxu0 %v11870_v36  ;;  %v11908_v35 = vld [vmem:[#allocation19 + $0x608] ss:$12 sps:$4 sm:$0xff]  }
 0xb19   : > { %10190 = vmatprep.subr.bf16.mxu1 %v11871_v37  ;;  %v11909_v36 = vld [vmem:[#allocation19 + $0x788] ss:$12 sps:$4 sm:$0xff]   ;;  %v11910_v37 = vld [vmem:[#allocation19 + $0x6e0] ss:$12 sps:$4 sm:$0xff]  }
 0xb1b   : > { %10169 = vmatpush3.bf16.msra.mxu0 %v11872_v38  ;;  %v11911_v38 = vld [vmem:[#allocation19 + $0x860] ss:$12 sps:$4 sm:$0xff]  }
 0xb1c   : > { %10191 = vmatpush3.bf16.msra.mxu1 %v11873_v48  ;;  %10198 = vmatprep.subr.bf16.mxu0 %v11874_v39  ;;  %v11912_v48 = vld [vmem:[#allocation19 + $0x620] ss:$12 sps:$4 sm:$0xff]  }
 0xb1d   : > { %10220 = vmatprep.subr.bf16.mxu1 %v11875_v47  ;;  %v11913_v39 = vld [vmem:[#allocation19 + $0x7a0] ss:$12 sps:$4 sm:$0xff]   ;;  %v11914_v47 = vld [vmem:[#allocation19 + $0x6f8] ss:$12 sps:$4 sm:$0xff]  }
 0xb1e   : > { %8697 = vmatmul.mubr.bf16.vlgmr.msra.gmra.mrb[60].mxu0 %v13132_v34  ;;  %v11885_v34 = vld [vmem:[#allocation19 + $0x4b8] ss:$12 sps:$4 sm:$0xff]  }
 0xb1f   : > { %8737 = vmatmul.mubr.bf16.vlgmr.msra.gmra.mrb[60].mxu1 %v13134_v19  ;;  %10199 = vmatpush3.bf16.msra.mxu0 %v11876_v49  ;;  %v11887_v19 = vld [vmem:[#allocation19 + $0x590] ss:$12 sps:$4 sm:$0xff]   ;;  %v11915_v49 = vld [vmem:[#allocation19 + $0x878] ss:$12 sps:$4 sm:$0xff]  }
 0xb20   : > { %8776 = vmatprep.mubr.bf16.mxu0 %v13146_v6  ;;  %10221 = vmatpush3.bf16.msra.mxu1 %v11877_v50  ;;  %v11889_v6 = vld [vmem:[#allocation19 + $0x4d0] ss:$12 sps:$4 sm:$0xff]   ;;  %v11916_v50 = vld [vmem:[#allocation19 + $0x638] ss:$12 sps:$4 sm:$0xff]  }
 0xb21   : > { %8816 = vmatprep.mubr.bf16.mxu1 %v13148_v25  ;;  %10200 = vmatprep.subr.bf16.mxu0 %v11878_v52  ;;  %v11892_v25 = vld [vmem:[#allocation19 + $0x368] ss:$12 sps:$4 sm:$0xff]   ;;  %v11918_v52 = vld [vmem:[#allocation19 + $0x710] ss:$12 sps:$4 sm:$0xff]  }
 0xb22   : > { %10222 = vmatprep.subr.bf16.mxu1 %v11879_v53  ;;  %v11920_v53 = vld [vmem:[#allocation19 + $0x650] ss:$12 sps:$4 sm:$0xff]  }
 0xb23   : > { %10201 = vmatpush3.bf16.msra.mxu0 %v11880_v54  ;;  %v11922_v54 = vld [vmem:[#allocation19 + $0x728] ss:$12 sps:$4 sm:$0xff]  }
 0xb24   : > { %10223 = vmatpush3.bf16.msra.mxu1 %v11881_v55  ;;  %10202 = vmatprep.subr.bf16.mxu0 %v11882_v18  ;;  %v11923_v55 = vld [vmem:[#allocation19 + $0x8a8] ss:$12 sps:$4 sm:$0xff]  }
 0xb25   : > { %10224 = vmatprep.subr.bf16.mxu1 %v11883_v57  ;;  %v11925_v18 = vld [vmem:[#allocation19 + $0x7e8] ss:$12 sps:$4 sm:$0xff]   ;;  %v11926_v57 = vld [vmem:[#allocation19 + $0x740] ss:$12 sps:$4 sm:$0xff]  }
 0xb27   : > { %10203 = vmatpush3.bf16.msra.mxu0 %v11884_v58  ;;  %v11927_v58 = vld [vmem:[#allocation19 + $0x8c0] ss:$12 sps:$4 sm:$0xff]  }
 0xb28   : > { %10225 = vmatpush3.bf16.msra.mxu1 %v11885_v34  ;;  %10204 = vmatprep.subr.bf16.mxu0 %v11886_v60  ;;  %v11928_v34 = vld [vmem:[#allocation19 + $0x680] ss:$12 sps:$4 sm:$0xff]  }
 0xb29   : > { %10226 = vmatprep.subr.bf16.mxu1 %v11887_v19  ;;  %v11929_v60 = vld [vmem:[#allocation19 + $0x800] ss:$12 sps:$4 sm:$0xff]   ;;  %v11930_v19 = vld [vmem:[#allocation19 + $0x758] ss:$12 sps:$4 sm:$0xff]  }
 0xb2b   : > { %10205 = vmatpush3.bf16.msra.mxu0 %v11888_v61  ;;  %v11931_v61 = vld [vmem:[#allocation19 + $0x8d8] ss:$12 sps:$4 sm:$0xff]  }
 0xb2c   : > { %10227 = vmatpush3.bf16.msra.mxu1 %v11889_v6  ;;  %10206 = vmatprep.subr.bf16.mxu0 %v11890_v62  ;;  %v11932_v6 = vld [vmem:[#allocation19 + $0x698] ss:$12 sps:$4 sm:$0xff]  }
 0xb2d   : > { %10228 = vmatprep.subr.bf16.mxu1 %v11891_v0  ;;  %v11933_v62 = vld [vmem:[#allocation19 + $0x818] ss:$12 sps:$4 sm:$0xff]   ;;  %v11934_v0 = vld [vmem:[#allocation19 + $0x770] ss:$12 sps:$4 sm:$0xff]  }
 0xb2f   : > { %10207 = vmatpush3.bf16.msra.mxu0 %v11892_v25  ;;  %v11935_v25 = vld [vmem:[#allocation19 + $0x8f0] ss:$12 sps:$4 sm:$0xff]  }
 0xb30   : > { %10229 = vmatpush3.bf16.msra.mxu1 %v11893_v1  ;;  %10208 = vmatprep.subr.bf16.mxu0 %v11894_v20  ;;  %v11936_v1 = vld [vmem:[#allocation19 + $0x6b0] ss:$12 sps:$4 sm:$0xff]  }
 0xb31   : > { %10230 = vmatprep.subr.bf16.mxu1 %v11895_v2  ;;  %v11937_v20 = vld [vmem:[#allocation19 + $0x830] ss:$12 sps:$4 sm:$0xff]  }
 0xb33   : > { %10209 = vmatpush3.bf16.msra.mxu0 %v11896_v21 }
 0xb34   : > { %10231 = vmatpush3.bf16.msra.mxu1 %v11897_v5  ;;  %10210 = vmatprep.subr.bf16.mxu0 %v11898_v7 }
 0xb35   : > { %v8452_v56 = vpop.f32.mrb[48].mxu0  ;;  %10232 = vmatprep.subr.bf16.mxu1 %v11899_v8 }
 0xb36   : > { %v8453_v24 = vadd.f32 %v8452_v56, %v6870_v9  ;;  %v8493_v44 = vpop.f32.mrb[48].mxu1  ;;  %v8454_v26 = vpop.f32.mrb[49].mxu0 }
 0xb37   : > { %v8455_v29 = vadd.f32 %v8454_v26, %v6874_v10  ;;  %v8495_v45 = vpop.f32.mrb[49].mxu1  ;;  %10211 = vmatpush3.bf16.msra.mxu0 %v11900_v11  ;;  %v8456_v30 = vpop.f32.mrb[50].mxu0 }
 0xb38   : > { %v13187_v40 = vadd.f32 %v8493_v44, %v8453_v24  ;;  %10233 = vmatpush3.bf16.msra.mxu1 %v11901_v12  ;;  %v8497_v22 = vpop.f32.mrb[50].mxu1  ;;  %v8457_v31 = vpop.f32.mrb[51].mxu0  ;;  %10212 = vmatprep.subr.bf16.mxu0 %v11902_v14 }
 0xb39   : > { %v13189_v27 = vadd.f32 %v8495_v45, %v8455_v29  ;;  %v8498_v46 = vpop.f32.mrb[51].mxu1  ;;  %10234 = vmatprep.subr.bf16.mxu1 %v11903_v41 }
 0xb3a   : > { %v6878_v46 = vrot.slane %v13181_v13, %v12927_v59 }
 0xb3b   : > { %10213 = vmatpush3.bf16.msra.mxu0 %v11904_v23 }
 0xb3c   : > { %10235 = vmatpush3.bf16.msra.mxu1 %v11905_v32  ;;  %10242 = vmatprep.subr.bf16.mxu0 %v11906_v33 }
 0xb3d   : > { %10264 = vmatprep.subr.bf16.mxu1 %v11907_v28 }
 0xb3e   : > { %8777 = vmatmul.mubr.bf16.vlgmr.msra.gmra.mrb[64].mxu0 %v13152_v16  ;;  %v11917_v16 = vld [vmem:[#allocation19 + $0x7b8] ss:$12 sps:$4 sm:$0xff]  }
 0xb3f   : > { %8817 = vmatmul.mubr.bf16.vlgmr.msra.gmra.mrb[64].mxu1 %v13154_v42  ;;  %10243 = vmatpush3.bf16.msra.mxu0 %v11908_v35  ;;  %v11919_v42 = vld [vmem:[#allocation19 + $0x890] ss:$12 sps:$4 sm:$0xff]  }
 0xb40   : > { %8856 = vmatprep.mubr.bf16.mxu0 %v13163_v43  ;;  %10265 = vmatpush3.bf16.msra.mxu1 %v11909_v36  ;;  %v11921_v43 = vld [vmem:[#allocation19 + $0x7d0] ss:$12 sps:$4 sm:$0xff]  }
 0xb41   : > { %8896 = vmatprep.mubr.bf16.mxu1 %v13167_v3  ;;  %10244 = vmatprep.subr.bf16.mxu0 %v11910_v37  ;;  %v11924_v3 = vld [vmem:[#allocation19 + $0x668] ss:$12 sps:$4 sm:$0xff]  }
 0xb42   : > { %10266 = vmatprep.subr.bf16.mxu1 %v11911_v38 }
 0xb43   : > { %10245 = vmatpush3.bf16.msra.mxu0 %v11912_v48 }
 0xb44   : > { %10267 = vmatpush3.bf16.msra.mxu1 %v11913_v39  ;;  %10246 = vmatprep.subr.bf16.mxu0 %v11914_v47 }
 0xb45   : > { %10268 = vmatprep.subr.bf16.mxu1 %v11915_v49 }
 0xb47   : > { %10247 = vmatpush3.bf16.msra.mxu0 %v11916_v50 }
 0xb48   : > { %10269 = vmatpush3.bf16.msra.mxu1 %v11917_v16  ;;  %10248 = vmatprep.subr.bf16.mxu0 %v11918_v52 }
 0xb49   : > { %10270 = vmatprep.subr.bf16.mxu1 %v11919_v42 }
 0xb4b   : > { %10249 = vmatpush3.bf16.msra.mxu0 %v11920_v53 }
 0xb4c   : > { %10271 = vmatpush3.bf16.msra.mxu1 %v11921_v43  ;;  %10250 = vmatprep.subr.bf16.mxu0 %v11922_v54 }
 0xb4d   : > { %10272 = vmatprep.subr.bf16.mxu1 %v11923_v55 }
 0xb4f   : > { %10251 = vmatpush3.bf16.msra.mxu0 %v11924_v3 }
 0xb50   : > { %10273 = vmatpush3.bf16.msra.mxu1 %v11925_v18  ;;  %10252 = vmatprep.subr.bf16.mxu0 %v11926_v57 }
 0xb51   : > { %10274 = vmatprep.subr.bf16.mxu1 %v11927_v58 }
 0xb53   : > { %10253 = vmatpush3.bf16.msra.mxu0 %v11928_v34 }
 0xb54   : > { %10275 = vmatpush3.bf16.msra.mxu1 %v11929_v60  ;;  %10254 = vmatprep.subr.bf16.mxu0 %v11930_v19 }
 0xb55   : > { %10276 = vmatprep.subr.bf16.mxu1 %v11931_v61 }
 0xb57   : > { %10255 = vmatpush3.bf16.msra.mxu0 %v11932_v6 }
 0xb58   : > { %10277 = vmatpush3.bf16.msra.mxu1 %v11933_v62  ;;  %10256 = vmatprep.subr.bf16.mxu0 %v11934_v0 }
 0xb59   : > { %10278 = vmatprep.subr.bf16.mxu1 %v11935_v25 }
 0xb5b   : > { %10257 = vmatpush3.bf16.msra.mxu0 %v11936_v1 }
 0xb5c   : > { %10279 = vmatpush3.bf16.msra.mxu1 %v11937_v20 }
 0xb5e   : > { %8857 = vmatmul.mubr.bf16.vlgmr.msra.gmra.mrb[68].mxu0 %v13165_v51 }
 0xb5f   : > { %8897 = vmatmul.mubr.bf16.vlgmr.msra.gmra.mrb[68].mxu1 %v13169_v4 }
 0xb75   : > { %v8534_v2 = vpop.f32.mrb[52].mxu0 }
 0xb76   : > { %v8535_v21 = vadd.f32 %v8534_v2, %v13187_v40  ;;  %v8575_v5 = vpop.f32.mrb[52].mxu1  ;;  %v8536_v7 = vpop.f32.mrb[53].mxu0 }
 0xb77   : > { %v8537_v8 = vadd.f32 %v8536_v7, %v13189_v27  ;;  %v8577_v9 = vpop.f32.mrb[53].mxu1  ;;  %v8538_v10 = vpop.f32.mrb[54].mxu0 }
 0xb78   : > { %v8576_v11 = vadd.f32 %v8575_v5, %v8535_v21  ;;  %v8579_v12 = vpop.f32.mrb[54].mxu1  ;;  %v8539_v14 = vpop.f32.mrb[55].mxu0 }
 0xb79   : > { %v8578_v56 = vadd.f32 %v8577_v9, %v8537_v8  ;;  %v8580_v41 = vpop.f32.mrb[55].mxu1 }
 0xbd1   : > { %v8616_v24 = vpop.f32.mrb[56].mxu0 }
 0xbd2   : > { %v8617_v44 = vadd.f32 %v8616_v24, %v8576_v11  ;;  %v8657_v51 = vpop.f32.mrb[56].mxu1  ;;  %v8618_v26 = vpop.f32.mrb[57].mxu0 }
 0xbd3   : > { %v8619_v4 = vadd.f32 %v8618_v26, %v8578_v56  ;;  %v8659_v29 = vpop.f32.mrb[57].mxu1  ;;  %v8620_v45 = vpop.f32.mrb[58].mxu0 }
 0xbd4   : > { %v8658_v30 = vadd.f32 %v8657_v51, %v8617_v44  ;;  %v8661_v23 = vpop.f32.mrb[58].mxu1  ;;  %v8621_v40 = vpop.f32.mrb[59].mxu0 }
 0xbd5   : > { %v8660_v22 = vadd.f32 %v8659_v29, %v8619_v4  ;;  %v8662_v31 = vpop.f32.mrb[59].mxu1 }
 0xbd6   : > { %v8904_v32 = vadd.f32 %v8658_v30, %v13040_v15 }
 0xbd7   : > { %v8905_v33 = vadd.f32 %v8660_v22, %v13042_v17 }
 0xbd8   : > { %8907 = vst [vmem:[%s13203_s14] sm:$0xff] %v8904_v32 }
 0xbd9   : > { %8908 = vst [vmem:[%s13203_s14 + $0x8] sm:$0xff] %v8905_v33 }
 0xbf1   : > { %v10170_v27 = vpop.f32.mrb[60].mxu0 }
 0xbf2   : > { %v10192_v28 = vpop.f32.mrb[60].mxu1  ;;  %v10171_v35 = vpop.f32.mrb[61].mxu0 }
 0xbf3   : > { %v10172_v36 = vadd.f32 %v10171_v35, %v10170_v27  ;;  %v10193_v37 = vpop.f32.mrb[61].mxu1  ;;  %v10173_v38 = vpop.f32.mrb[62].mxu0 }
 0xbf4   : > { %v10194_v48 = vadd.f32 %v10193_v37, %v10192_v28  ;;  %v10195_v15 = vpop.f32.mrb[62].mxu1  ;;  %v10174_v39 = vpop.f32.mrb[63].mxu0 }
 0xbf5   : > { %v8699_v17 = vadd.f32 %v10172_v36, %v6878_v46  ;;  %v10196_v47 = vpop.f32.mrb[63].mxu1 }
 0xbf7   : > { %v8739_v49 = vadd.f32 %v10194_v48, %v8699_v17 }
 0xc11   : > { %v10214_v50 = vpop.f32.mrb[64].mxu0 }
 0xc12   : > { %v10236_v16 = vpop.f32.mrb[64].mxu1  ;;  %v10215_v52 = vpop.f32.mrb[65].mxu0 }
 0xc13   : > { %v10216_v42 = vadd.f32 %v10215_v52, %v10214_v50  ;;  %v10237_v53 = vpop.f32.mrb[65].mxu1  ;;  %v10217_v43 = vpop.f32.mrb[66].mxu0 }
 0xc14   : > { %v10238_v54 = vadd.f32 %v10237_v53, %v10236_v16  ;;  %v10239_v55 = vpop.f32.mrb[66].mxu1  ;;  %v10218_v59 = vpop.f32.mrb[67].mxu0 }
 0xc15   : > { %v8779_v13 = vadd.f32 %v10216_v42, %v8739_v49  ;;  %v10240_v3 = vpop.f32.mrb[67].mxu1 }
 0xc17   : > { %v8819_v18 = vadd.f32 %v10238_v54, %v8779_v13 }
 0xc31   : > { %v10258_v57 = vpop.f32.mrb[68].mxu0 }
 0xc32   : > { %v10280_v58 = vpop.f32.mrb[68].mxu1  ;;  %v10259_v34 = vpop.f32.mrb[69].mxu0 }
 0xc33   : > { %v10260_v60 = vadd.f32 %v10259_v34, %v10258_v57  ;;  %v10281_v19 = vpop.f32.mrb[69].mxu1  ;;  %v10261_v61 = vpop.f32.mrb[70].mxu0 }
 0xc34   : > { %v10282_v6 = vadd.f32 %v10281_v19, %v10280_v58  ;;  %v10283_v62 = vpop.f32.mrb[70].mxu1  ;;  %v10262_v0 = vpop.f32.mrb[71].mxu0 }
 0xc35   : > { %v8859_v25 = vadd.f32 %v10260_v60, %v8819_v18  ;;  %v10284_v1 = vpop.f32.mrb[71].mxu1 }
 0xc37   : > { %v8899_v20 = vadd.f32 %v10282_v6, %v8859_v25 }
 0xc39   : > { %v8906_v2 = vadd.f32 %v8899_v20, %v13044_v63 }
 0xc3b   : > { %8909 = vst [vmem:[%s13203_s14 + $0x10] sm:$0xff] %v8906_v2 }
 0xc3c   : > { %12312 = shalt.err (!%p12309_p9)
}
 0xc3d   : > { %s12313_s26 = scalar_lea.hbm %s13215_s5, 384  ;;  %s12317_s14 = scalar_lea.hbm %s13316_s2, 768 }
 0xc3e   : > { %p12314_p7 = scmp.ne.s32.totalorder %s13215_s5, %s12313_s26  ;;  %p12318_p13 = scmp.lt.u32.totalorder %s13215_s5, %s13316_s2 }
 0xc3f   : > { %p12319_p1 = scmp.lt.u32.totalorder %s12317_s14, %s12313_s26  ;;  %p12321_p2 = scmp.lt.u32.totalorder %s12313_s26, %s13215_s5 }
 0xc40   : > { %p12315_p10 = pnand %p12314_p7, %p13317_p0 }
 0xc41   : > { %p12320_p3 = por %p12319_p1, %p12318_p13 }
 0xc42   : > { %p12316_p4 = pneg %p12315_p10 }
 0xc43   : > { %p12322_p6 = por %p12321_p2, %p12320_p3 }
 0xc45   : > { %p12323_p11 = pnand %p12322_p6, %p12316_p4 }
 0xc47   : > { %12326 = shalt.err (!%p12323_p11)
}
 0xc48   : > { %10444 = dma.vmem_to_hbm [thread:$0]  (%p13317_p0), %s13217_s16, 384, %s13215_s5, %s8911_s19  }
 0xc49 PF: > { %s8937_s12 = sand.u32 1, %s12377_s21   ;;  %p13318_p12 = scmp.ne.s32.totalorder %s13300_s28, 0 }
 0xc4a   : > { %p13319_p8 = scmp.ge.s32.totalorder %s12389_s24, 2  ;;  %s8938_s18 = scalar_lea.sflag [#allocation4], %s8937_s12 }
 0xc4c   : > { %p10485_p5 = pnand %p13319_p8, %p13318_p12 }
 0xc4e   : > { %12372 = dma.done.wait (!%p10485_p5), %s8938_s18, 384  }
 0xc4f   : > { %12374 = vsyncadd (!%p10485_p5), %s8938_s18, 4294966912  ;;  %p31_p9 = scmp.ge.s32.totalorder %s12756_s13, 4   ;;  %s13320_s21 = smov %s12381_s22 }
 0xc50   : > { %s13321_s22 = smov %s12385_s23  ;;  %s13322_s23 = smov %s12768_s20 }
 0xc51   : > { %s13323_s24 = smov %s12756_s13  ;;  %33 = sbr.rel (!%p31_p9) target bundleno = 17 (0x11), region = 157 }
 0xc58   :  { %8943 = vsyncpa [#allocation3], 1 }
 0xc59   :  { %8945 = vsyncpa [#allocation3 + $0x1], 1 }
 0xc5a   :  { %8946 = vsyncpa [#allocation6], 1 }
 0xc5b   :  { %8947 = vsyncpa [#allocation9], 1 }
 0xc5c   :  { %8948 = vsyncpa [#allocation12], 1 }
 0xc5d   :  { %8949 = vsyncpa [#allocation15], 1 }
 0xc5e   :  { %8950 = vsyncpa [#allocation18], 1 }
 0xc5f   :  { %8951 = vsyncpa [#allocation21], 1 }
 0xc60   :  { %8952 = vsyncpa [#allocation4], 1 }
 0xc61   :  { %8954 = vsyncpa [#allocation4 + $0x1], 1 }

</bundles_post_ra>
